<compile_context>
chip_gen: v7x
topology: tpu7x:2x2x1
jax: 0.10.0
libtpu: 0.0.40
codegen_flags: <defaults>
</compile_context>

<pallas_src>
import functools

import jax
import jax.numpy as jnp
from jax.experimental import pallas as pl
from jax.experimental.pallas import tpu as pltpu


# Fixed module hyper-parameters (from the PyTorch spec).
K = 64          # kernel_size
S = 3           # stride
P = 1           # padding
OP = 1          # output_padding (decoder)
J_TAPS = -(-K // S)   # 22 shifted matmuls per strided conv / per transposed-conv phase


# ---------------------------------------------------------------------------
# Pallas kernel:  out[m, :] = act( sum_j  x[m + j, :] @ W[j]  +  b )
# (fused "multi-tap" matmul: im2col never materializes in HBM)
# ---------------------------------------------------------------------------
def _tapped_matmul_kernel(x_ref, w_ref, b_ref, o_ref, *, taps, relu):
    # x_ref: (rows, G)        bf16 input buffer, rows >= M + taps - 1
    # w_ref: (taps, G, Cout)  bf16 per-tap weights
    # b_ref: (1, Cout)        f32 bias
    # o_ref: (M, Cout)        output block (lane-dense last dim)
    m, cout = o_ref.shape
    acc = jnp.zeros((m, cout), jnp.float32)
    for j in range(taps):                 # unrolled: static slices feed the MXU
        acc += jnp.dot(x_ref[j:j + m, :], w_ref[j],
                       preferred_element_type=jnp.float32)
    acc += b_ref[...]
    if relu:
        acc = jnp.maximum(acc, 0.0)
    o_ref[...] = acc.astype(o_ref.dtype)


# ---------------------------------------------------------------------------
# pallas_call wrappers
# ---------------------------------------------------------------------------
def _tapped_conv(xbuf, w_taps, bias, m_out, *, relu, out_dtype):
    # xbuf: (B, rows, G) bf16; w_taps: (taps, G, Cout) bf16; bias: (1, Cout) f32
    bsz, rows, g = xbuf.shape
    taps, g2, cout = w_taps.shape
    assert g2 == g and rows >= m_out + taps - 1
    kernel = functools.partial(_tapped_matmul_kernel, taps=taps, relu=relu)
    return pl.pallas_call(
        kernel,
        out_shape=jax.ShapeDtypeStruct((bsz, m_out, cout), out_dtype),
        grid_spec=pltpu.PrefetchScalarGridSpec(
            num_scalar_prefetch=0,
            grid=(bsz,),
            in_specs=[
                pl.BlockSpec((None, rows, g), lambda b: (b, 0, 0)),
                pl.BlockSpec((taps, g, cout), lambda b: (0, 0, 0)),
                pl.BlockSpec((1, cout), lambda b: (0, 0)),
            ],
            out_specs=pl.BlockSpec((None, m_out, cout), lambda b: (b, 0, 0)),
        ),
        compiler_params=pltpu.CompilerParams(dimension_semantics=("parallel",)),
    )(xbuf, w_taps, bias)


def _tapped_conv_phases(xbuf, w_taps, bias, m_out, *, relu, out_dtype):
    # Polyphase transposed conv: one grid step per (batch, phase).
    # xbuf: (B, S, rows, Cin) bf16; w_taps: (S, taps, Cin, Cout) bf16
    bsz, nph, rows, cin = xbuf.shape
    nph2, taps, cin2, cout = w_taps.shape
    assert nph2 == nph and cin2 == cin and rows >= m_out + taps - 1
    kernel = functools.partial(_tapped_matmul_kernel, taps=taps, relu=relu)
    return pl.pallas_call(
        kernel,
        out_shape=jax.ShapeDtypeStruct((bsz, nph, m_out, cout), out_dtype),
        grid_spec=pltpu.PrefetchScalarGridSpec(
            num_scalar_prefetch=0,
            grid=(bsz, nph),
            in_specs=[
                pl.BlockSpec((None, None, rows, cin), lambda b, d: (b, d, 0, 0)),
                pl.BlockSpec((None, taps, cin, cout), lambda b, d: (d, 0, 0, 0)),
                pl.BlockSpec((1, cout), lambda b, d: (0, 0)),
            ],
            out_specs=pl.BlockSpec((None, None, m_out, cout),
                                   lambda b, d: (b, d, 0, 0)),
        ),
        compiler_params=pltpu.CompilerParams(
            dimension_semantics=("parallel", "parallel")),
    )(xbuf, w_taps, bias)


# ---------------------------------------------------------------------------
# One-time weight preparation (layout + bf16 cast folded out of the hot path)
# ---------------------------------------------------------------------------
def _conv_taps_from_torch_weight(w):
    # w: (Cout, Cin, K) torch Conv1d layout -> (J_TAPS, S*Cin, Cout) bf16.
    cout, cin, k = w.shape
    wk = jnp.transpose(w, (2, 1, 0))                         # (K, Cin, Cout)
    wk = jnp.pad(wk, ((0, J_TAPS * S - k), (0, 0), (0, 0)))  # zero taps at the end
    return wk.reshape(J_TAPS, S * cin, cout).astype(jnp.bfloat16)


def _convt_phase_taps_from_torch_weight(w):
    # w: (Cin, Cout, K) torch ConvTranspose1d layout ->
    # (S, J_TAPS, Cin, Cout) bf16.  Phase slot d owns outputs o with o % S == d,
    # i.e. kernel-tap residue r = (d + P) % S; taps are j-reversed so the phase
    # becomes a plain stride-1 multi-tap conv.
    cin, cout, k = w.shape
    phases = []
    for d in range(S):
        r = (d + P) % S
        j_r = -(-(k - r) // S)                               # ceil((K - r) / S)
        mats = []
        for jj in range(J_TAPS):
            if jj < j_r:
                mats.append(w[:, :, r + S * (j_r - 1 - jj)])
            else:
                mats.append(jnp.zeros((cin, cout), w.dtype))
        phases.append(jnp.stack(mats, 0))
    return jnp.stack(phases, 0).astype(jnp.bfloat16)


def prepare_params(params):
    """Convert torch-layout f32 params to kernel-ready form (run once)."""
    # Final layer: pad Cout 1 -> 128 with zeros so the kernel output stays
    # lane-dense instead of 1-wide masked stores; wrapper slices lane 0.
    w4p = jnp.pad(params["w4"], ((0, 0), (0, 127), (0, 0)))
    b4p = jnp.pad(params["b4"], ((0, 127),))
    return dict(
        # Layer 1 has Cin=1: plain im2col patches (same bytes as h1) feed a
        # single-tap matmul so the MXU sees a contraction of K=64, not S*Cin=3.
        w1=jnp.transpose(params["w1"][:, 0, :], (1, 0))[None].astype(jnp.bfloat16),
        b1=params["b1"].reshape(1, -1).astype(jnp.float32),
        w2=_conv_taps_from_torch_weight(params["w2"]),
        b2=params["b2"].reshape(1, -1).astype(jnp.float32),
        w3=_convt_phase_taps_from_torch_weight(params["w3"]),
        b3=params["b3"].reshape(1, -1).astype(jnp.float32),
        w4=_convt_phase_taps_from_torch_weight(w4p),
        b4=b4p.reshape(1, -1).astype(jnp.float32),
    )


# ---------------------------------------------------------------------------
# Cheap activation-side glue (pads / reshapes of compact channels-last data)
# ---------------------------------------------------------------------------
def _grouped_conv_input(h):
    # h: (B, Lin, Cin) -> grouped buffer (B, Lg, S*Cin), output length M.
    bsz, lin, cin = h.shape
    m = (lin + 2 * P - K) // S + 1
    assert m >= 1, "input too short for this layer"
    lg = m + J_TAPS - 1
    assert S * lg >= lin + 2 * P
    hp = jnp.pad(h, ((0, 0), (P, S * lg - lin - P), (0, 0)))
    return hp.reshape(bsz, lg, S * cin), m


def _convt_phase_inputs(h, out_len):
    # h: (B, Lin, Cin) -> per-phase buffers (B, S, rows, Cin), phase length Mq.
    bsz, lin, cin = h.shape
    assert out_len % S == 0
    mq = out_len // S
    rows = mq + J_TAPS - 1
    bufs = []
    for d in range(S):
        r = (d + P) % S
        j_r = -(-(K - r) // S)
        q_min = max(0, (P - r + S - 1) // S)
        assert S * q_min + r - P == d      # phase d owns output positions o == d (mod S)
        left = j_r - 1 - q_min
        right = rows - left - lin
        assert left >= 0 and right >= 0
        bufs.append(jnp.pad(h, ((0, 0), (left, right), (0, 0))))
    return jnp.stack(bufs, 1), mq


# ---------------------------------------------------------------------------
# Full forward pass (matches Conv1dAutoencoder.forward)
# ---------------------------------------------------------------------------
@jax.jit
def conv1d_autoencoder(x, prep):
    # x: (B, 1, L) float32 NCL (PyTorch layout). Returns (B, 1, L_out) float32.
    bsz, _, l_in = x.shape
    act = jnp.bfloat16

    # ---- encoder 1: Conv1d(1 -> 64, K=64, s=3, p=1) + ReLU -------------------
    m1 = (l_in + 2 * P - K) // S + 1
    xp = jnp.pad(x[:, 0, :], ((0, 0), (P, P)))                    # (B, L+2)
    idx = jnp.arange(m1)[:, None] * S + jnp.arange(K)[None, :]
    patches = xp[:, idx].astype(act)                              # (B, M1, K)
    h1 = _tapped_conv(patches, prep["w1"], prep["b1"], m1,
                      relu=True, out_dtype=act)                   # (B, M1, 64)

    # ---- encoder 2: Conv1d(64 -> 128, K=64, s=3, p=1) + ReLU -----------------
    buf2, m2 = _grouped_conv_input(h1)                            # (B, Lg, 192)
    h2 = _tapped_conv(buf2, prep["w2"], prep["b2"], m2,
                      relu=True, out_dtype=act)                   # (B, M2, 128)

    # ---- decoder 1: ConvTranspose1d(128 -> 64) + ReLU (polyphase) ------------
    l3 = (m2 - 1) * S - 2 * P + K + OP
    buf3, mq3 = _convt_phase_inputs(h2, l3)
    o3 = _tapped_conv_phases(buf3, prep["w3"], prep["b3"], mq3,
                             relu=True, out_dtype=act)            # (B, S, Mq3, 64)
    h3 = jnp.transpose(o3, (0, 2, 1, 3)).reshape(bsz, l3, 64)     # interleave phases

    # ---- decoder 2: ConvTranspose1d(64 -> 1), Cout padded to 128 -------------
    l4 = (l3 - 1) * S - 2 * P + K + OP
    buf4, mq4 = _convt_phase_inputs(h3, l4)
    o4 = _tapped_conv_phases(buf4, prep["w4"], prep["b4"], mq4,
                             relu=False, out_dtype=jnp.float32)   # (B, S, Mq4, 128)
    y = jnp.transpose(o4, (0, 2, 1, 3)).reshape(bsz, l4, 128)[:, :, :1]
    return jnp.transpose(y, (0, 2, 1))                            # (B, 1, L4) NCL


# ---------------------------------------------------------------------------
# Parameter init (PyTorch-default-style uniform bounds) and pure-JAX reference
# ---------------------------------------------------------------------------
def init_params(key):
    def uniform(k, shape, bound):
        return jax.random.uniform(k, shape, jnp.float32, -bound, bound)
    ks = jax.random.split(key, 8)
    b1 = 1.0 / (1 * K) ** 0.5
    b2 = 1.0 / (64 * K) ** 0.5
    b3 = 1.0 / (64 * K) ** 0.5   # ConvTranspose fan_in = Cout * K
    b4 = 1.0 / (1 * K) ** 0.5
    return dict(
        w1=uniform(ks[0], (64, 1, K), b1),   b1=uniform(ks[1], (64,), b1),
        w2=uniform(ks[2], (128, 64, K), b2), b2=uniform(ks[3], (128,), b2),
        w3=uniform(ks[4], (128, 64, K), b3), b3=uniform(ks[5], (64,), b3),
        w4=uniform(ks[6], (64, 1, K), b4),   b4=uniform(ks[7], (1,), b4),
    )


def _ref_forward(x, params):
    dn = ("NCH", "OIH", "NCH")

    def conv(h, w, b, stride, pad):
        y = jax.lax.conv_general_dilated(h, w, (stride,), [(pad, pad)],
                                         dimension_numbers=dn)
        return y + b[None, :, None]

    def convt(h, w, b, stride, pad, out_pad):
        k = w.shape[2]
        w_eq = jnp.flip(w, 2).transpose(1, 0, 2)
        y = jax.lax.conv_general_dilated(
            h, w_eq, (1,), [(k - 1 - pad, k - 1 - pad + out_pad)],
            lhs_dilation=(stride,), dimension_numbers=dn)
        return y + b[None, :, None]

    h = jax.nn.relu(conv(x, params["w1"], params["b1"], S, P))
    h = jax.nn.relu(conv(h, params["w2"], params["b2"], S, P))
    h = jax.nn.relu(convt(h, params["w3"], params["b3"], S, P, OP))
    return convt(h, params["w4"], params["b4"], S, P, OP)


if __name__ == "__main__":
    key = jax.random.PRNGKey(0)
    kx, kp = jax.random.split(key)

    # Two stride-3, K=64 convs require L >= 245; use the smallest sensible size.
    B, L = 2, 245
    x = jax.random.normal(kx, (B, 1, L), jnp.float32)
    params = init_params(kp)
    prep = prepare_params(params)

    y = conv1d_autoencoder(x, prep)
    jax.block_until_ready(y)

    # Expected lengths: encoder 245 -> 62 -> 1; decoder 1 -> 63 -> 249.
    assert y.shape == (B, 1, 249), y.shape
    assert bool(jnp.all(jnp.isfinite(y)))

    # Loose sanity check vs. a pure-XLA reference (kernel matmuls run in bf16).
    y_ref = _ref_forward(x, params)
    scale = float(jnp.max(jnp.abs(y_ref))) + 1e-6
    err = float(jnp.max(jnp.abs(y - y_ref)))
    assert err <= 5e-2 * scale + 1e-2, (err, scale)

    print("KERNEL_OK")
</pallas_src>

<mosaic_0001>
module attributes {stable_mosaic.version = 11 : i64} {
  func.func @_tapped_matmul_kernel(%arg0: i32, %arg1: memref<1x62x64xbf16, #tpu.memory_space<vmem>>, %arg2: memref<1x64x64xbf16, #tpu.memory_space<vmem>>, %arg3: memref<1x64xf32, #tpu.memory_space<vmem>>, %arg4: memref<1x62x64xbf16, #tpu.memory_space<vmem>>) attributes {dimension_semantics = [#tpu.dimension_semantics<parallel>], iteration_bounds = array<i64: 2>, scalar_prefetch = 0 : i64, scratch_operands = 0 : i64, tpu.core_type = #tpu.core_type<tc>, window_params = [{transform_indices = @transform_0, window_bounds = array<i64: 1, 62, 64>}, {pipeline_mode = #tpu.pipeline_mode<synchronous>, transform_indices = @transform_1, window_bounds = array<i64: 1, 64, 64>}, {pipeline_mode = #tpu.pipeline_mode<synchronous>, transform_indices = @transform_2, window_bounds = array<i64: 1, 64>}, {transform_indices = @transform_3, window_bounds = array<i64: 1, 62, 64>}]} {
    %cst = arith.constant 0.000000e+00 : f32
    %0 = vector.broadcast %cst : f32 to vector<62x64xf32>
    %c0 = arith.constant 0 : index
    %c0_0 = arith.constant 0 : index
    %c0_1 = arith.constant 0 : index
    %1 = vector.load %arg1[%c0, %c0_0, %c0_1] : memref<1x62x64xbf16, #tpu.memory_space<vmem>>, vector<1x62x64xbf16>
    %2 = vector.shape_cast %1 : vector<1x62x64xbf16> to vector<62x64xbf16>
    %c0_2 = arith.constant 0 : index
    %c0_3 = arith.constant 0 : index
    %c0_4 = arith.constant 0 : index
    %3 = vector.load %arg2[%c0_2, %c0_3, %c0_4] : memref<1x64x64xbf16, #tpu.memory_space<vmem>>, vector<1x64x64xbf16>
    %4 = vector.shape_cast %3 : vector<1x64x64xbf16> to vector<64x64xbf16>
    %cst_5 = arith.constant dense<0.000000e+00> : vector<62x64xf32>
    %5 = tpu.matmul %2, %4, %cst_5 {dimension_numbers = #tpu.dot_dimension_numbers<[1], [0], [0], [1], [0, 0, 1, 1], [], []>} : vector<62x64xbf16>, vector<64x64xbf16>, vector<62x64xf32> -> vector<62x64xf32>
    %6 = arith.addf %0, %5 : vector<62x64xf32>
    %c0_6 = arith.constant 0 : index
    %c0_7 = arith.constant 0 : index
    %7 = vector.load %arg3[%c0_6, %c0_7] : memref<1x64xf32, #tpu.memory_space<vmem>>, vector<1x64xf32>
    %8 = vector.broadcast %7 : vector<1x64xf32> to vector<62x64xf32>
    %9 = arith.addf %6, %8 : vector<62x64xf32>
    %cst_8 = arith.constant 0.000000e+00 : f32
    %10 = vector.broadcast %cst_8 : f32 to vector<62x64xf32>
    %11 = arith.maximumf %9, %10 : vector<62x64xf32>
    %12 = arith.truncf %11 : vector<62x64xf32> to vector<62x64xbf16>
    %c0_9 = arith.constant 0 : index
    %c0_10 = arith.constant 0 : index
    %c0_11 = arith.constant 0 : index
    %13 = vector.load %arg4[%c0_9, %c0_10, %c0_11] : memref<1x62x64xbf16, #tpu.memory_space<vmem>>, vector<1x62x64xbf16>
    %14 = vector.shape_cast %13 : vector<1x62x64xbf16> to vector<62x64xbf16>
    %15 = vector.shape_cast %12 : vector<62x64xbf16> to vector<1x62x64xbf16>
    tpu.vector_store %arg4[%c0_9, %c0_10, %c0_11], %15 {strides = array<i32>} : memref<1x62x64xbf16, #tpu.memory_space<vmem>>, vector<1x62x64xbf16>,
    return
  }
  func.func @transform_0(%arg0: i32) -> (i32, i32, i32) {
    %c0_i32 = arith.constant 0 : i32
    %c0_i32_0 = arith.constant 0 : i32
    %c0_i32_1 = arith.constant 0 : i32
    return %arg0, %c0_i32, %c0_i32_0 : i32, i32, i32
  }
  func.func @transform_1(%arg0: i32) -> (i32, i32, i32) {
    %c0_i32 = arith.constant 0 : i32
    %c0_i32_0 = arith.constant 0 : i32
    %c0_i32_1 = arith.constant 0 : i32
    %c0_i32_2 = arith.constant 0 : i32
    return %c0_i32, %c0_i32_0, %c0_i32_1 : i32, i32, i32
  }
  func.func @transform_2(%arg0: i32) -> (i32, i32) {
    %c0_i32 = arith.constant 0 : i32
    %c0_i32_0 = arith.constant 0 : i32
    %c0_i32_1 = arith.constant 0 : i32
    return %c0_i32, %c0_i32_0 : i32, i32
  }
  func.func @transform_3(%arg0: i32) -> (i32, i32, i32) {
    %c0_i32 = arith.constant 0 : i32
    %c0_i32_0 = arith.constant 0 : i32
    %c0_i32_1 = arith.constant 0 : i32
    return %arg0, %c0_i32, %c0_i32_0 : i32, i32, i32
  }
}

module attributes {stable_mosaic.version = 11 : i64} {
  func.func @_tapped_matmul_kernel(%arg0: i32, %arg1: memref<1x22x192xbf16, #tpu.memory_space<vmem>>, %arg2: memref<22x192x128xbf16, #tpu.memory_space<vmem>>, %arg3: memref<1x128xf32, #tpu.memory_space<vmem>>, %arg4: memref<1x1x128xbf16, #tpu.memory_space<vmem>>) attributes {dimension_semantics = [#tpu.dimension_semantics<parallel>], iteration_bounds = array<i64: 2>, scalar_prefetch = 0 : i64, scratch_operands = 0 : i64, tpu.core_type = #tpu.core_type<tc>, window_params = [{transform_indices = @transform_0, window_bounds = array<i64: 1, 22, 192>}, {pipeline_mode = #tpu.pipeline_mode<synchronous>, transform_indices = @transform_1, window_bounds = array<i64: 22, 192, 128>}, {pipeline_mode = #tpu.pipeline_mode<synchronous>, transform_indices = @transform_2, window_bounds = array<i64: 1, 128>}, {transform_indices = @transform_3, window_bounds = array<i64: 1, 1, 128>}]} {
    %cst = arith.constant 0.000000e+00 : f32
    %0 = vector.broadcast %cst : f32 to vector<1x128xf32>
    %c0 = arith.constant 0 : index
    %c0_0 = arith.constant 0 : index
    %c0_1 = arith.constant 0 : index
    %1 = vector.load %arg1[%c0, %c0_0, %c0_1] : memref<1x22x192xbf16, #tpu.memory_space<vmem>>, vector<1x1x192xbf16>
    %2 = vector.shape_cast %1 : vector<1x1x192xbf16> to vector<1x192xbf16>
    %c0_2 = arith.constant 0 : index
    %c0_3 = arith.constant 0 : index
    %c0_4 = arith.constant 0 : index
    %3 = vector.load %arg2[%c0_2, %c0_3, %c0_4] : memref<22x192x128xbf16, #tpu.memory_space<vmem>>, vector<1x192x128xbf16>
    %4 = vector.shape_cast %3 : vector<1x192x128xbf16> to vector<192x128xbf16>
    %cst_5 = arith.constant dense<0.000000e+00> : vector<1x128xf32>
    %5 = tpu.matmul %2, %4, %cst_5 {dimension_numbers = #tpu.dot_dimension_numbers<[1], [0], [0], [1], [0, 0, 1, 1], [], []>} : vector<1x192xbf16>, vector<192x128xbf16>, vector<1x128xf32> -> vector<1x128xf32>
    %6 = arith.addf %0, %5 : vector<1x128xf32>
    %c0_6 = arith.constant 0 : index
    %c1 = arith.constant 1 : index
    %c0_7 = arith.constant 0 : index
    %7 = vector.load %arg1[%c0_6, %c1, %c0_7] : memref<1x22x192xbf16, #tpu.memory_space<vmem>>, vector<1x1x192xbf16>
    %8 = vector.shape_cast %7 : vector<1x1x192xbf16> to vector<1x192xbf16>
    %c1_8 = arith.constant 1 : index
    %c0_9 = arith.constant 0 : index
    %c0_10 = arith.constant 0 : index
    %9 = vector.load %arg2[%c1_8, %c0_9, %c0_10] : memref<22x192x128xbf16, #tpu.memory_space<vmem>>, vector<1x192x128xbf16>
    %10 = vector.shape_cast %9 : vector<1x192x128xbf16> to vector<192x128xbf16>
    %cst_11 = arith.constant dense<0.000000e+00> : vector<1x128xf32>
    %11 = tpu.matmul %8, %10, %cst_11 {dimension_numbers = #tpu.dot_dimension_numbers<[1], [0], [0], [1], [0, 0, 1, 1], [], []>} : vector<1x192xbf16>, vector<192x128xbf16>, vector<1x128xf32> -> vector<1x128xf32>
    %12 = arith.addf %6, %11 : vector<1x128xf32>
    %c0_12 = arith.constant 0 : index
    %c2 = arith.constant 2 : index
    %c0_13 = arith.constant 0 : index
    %13 = vector.load %arg1[%c0_12, %c2, %c0_13] : memref<1x22x192xbf16, #tpu.memory_space<vmem>>, vector<1x1x192xbf16>
    %14 = vector.shape_cast %13 : vector<1x1x192xbf16> to vector<1x192xbf16>
    %c2_14 = arith.constant 2 : index
    %c0_15 = arith.constant 0 : index
    %c0_16 = arith.constant 0 : index
    %15 = vector.load %arg2[%c2_14, %c0_15, %c0_16] : memref<22x192x128xbf16, #tpu.memory_space<vmem>>, vector<1x192x128xbf16>
    %16 = vector.shape_cast %15 : vector<1x192x128xbf16> to vector<192x128xbf16>
    %cst_17 = arith.constant dense<0.000000e+00> : vector<1x128xf32>
    %17 = tpu.matmul %14, %16, %cst_17 {dimension_numbers = #tpu.dot_dimension_numbers<[1], [0], [0], [1], [0, 0, 1, 1], [], []>} : vector<1x192xbf16>, vector<192x128xbf16>, vector<1x128xf32> -> vector<1x128xf32>
    %18 = arith.addf %12, %17 : vector<1x128xf32>
    %c0_18 = arith.constant 0 : index
    %c3 = arith.constant 3 : index
    %c0_19 = arith.constant 0 : index
    %19 = vector.load %arg1[%c0_18, %c3, %c0_19] : memref<1x22x192xbf16, #tpu.memory_space<vmem>>, vector<1x1x192xbf16>
    %20 = vector.shape_cast %19 : vector<1x1x192xbf16> to vector<1x192xbf16>
    %c3_20 = arith.constant 3 : index
    %c0_21 = arith.constant 0 : index
    %c0_22 = arith.constant 0 : index
    %21 = vector.load %arg2[%c3_20, %c0_21, %c0_22] : memref<22x192x128xbf16, #tpu.memory_space<vmem>>, vector<1x192x128xbf16>
    %22 = vector.shape_cast %21 : vector<1x192x128xbf16> to vector<192x128xbf16>
    %cst_23 = arith.constant dense<0.000000e+00> : vector<1x128xf32>
    %23 = tpu.matmul %20, %22, %cst_23 {dimension_numbers = #tpu.dot_dimension_numbers<[1], [0], [0], [1], [0, 0, 1, 1], [], []>} : vector<1x192xbf16>, vector<192x128xbf16>, vector<1x128xf32> -> vector<1x128xf32>
    %24 = arith.addf %18, %23 : vector<1x128xf32>
    %c0_24 = arith.constant 0 : index
    %c4 = arith.constant 4 : index
    %c0_25 = arith.constant 0 : index
    %25 = vector.load %arg1[%c0_24, %c4, %c0_25] : memref<1x22x192xbf16, #tpu.memory_space<vmem>>, vector<1x1x192xbf16>
    %26 = vector.shape_cast %25 : vector<1x1x192xbf16> to vector<1x192xbf16>
    %c4_26 = arith.constant 4 : index
    %c0_27 = arith.constant 0 : index
    %c0_28 = arith.constant 0 : index
    %27 = vector.load %arg2[%c4_26, %c0_27, %c0_28] : memref<22x192x128xbf16, #tpu.memory_space<vmem>>, vector<1x192x128xbf16>
    %28 = vector.shape_cast %27 : vector<1x192x128xbf16> to vector<192x128xbf16>
    %cst_29 = arith.constant dense<0.000000e+00> : vector<1x128xf32>
    %29 = tpu.matmul %26, %28, %cst_29 {dimension_numbers = #tpu.dot_dimension_numbers<[1], [0], [0], [1], [0, 0, 1, 1], [], []>} : vector<1x192xbf16>, vector<192x128xbf16>, vector<1x128xf32> -> vector<1x128xf32>
    %30 = arith.addf %24, %29 : vector<1x128xf32>
    %c0_30 = arith.constant 0 : index
    %c5 = arith.constant 5 : index
    %c0_31 = arith.constant 0 : index
    %31 = vector.load %arg1[%c0_30, %c5, %c0_31] : memref<1x22x192xbf16, #tpu.memory_space<vmem>>, vector<1x1x192xbf16>
    %32 = vector.shape_cast %31 : vector<1x1x192xbf16> to vector<1x192xbf16>
    %c5_32 = arith.constant 5 : index
    %c0_33 = arith.constant 0 : index
    %c0_34 = arith.constant 0 : index
    %33 = vector.load %arg2[%c5_32, %c0_33, %c0_34] : memref<22x192x128xbf16, #tpu.memory_space<vmem>>, vector<1x192x128xbf16>
    %34 = vector.shape_cast %33 : vector<1x192x128xbf16> to vector<192x128xbf16>
    %cst_35 = arith.constant dense<0.000000e+00> : vector<1x128xf32>
    %35 = tpu.matmul %32, %34, %cst_35 {dimension_numbers = #tpu.dot_dimension_numbers<[1], [0], [0], [1], [0, 0, 1, 1], [], []>} : vector<1x192xbf16>, vector<192x128xbf16>, vector<1x128xf32> -> vector<1x128xf32>
    %36 = arith.addf %30, %35 : vector<1x128xf32>
    %c0_36 = arith.constant 0 : index
    %c6 = arith.constant 6 : index
    %c0_37 = arith.constant 0 : index
    %37 = vector.load %arg1[%c0_36, %c6, %c0_37] : memref<1x22x192xbf16, #tpu.memory_space<vmem>>, vector<1x1x192xbf16>
    %38 = vector.shape_cast %37 : vector<1x1x192xbf16> to vector<1x192xbf16>
    %c6_38 = arith.constant 6 : index
    %c0_39 = arith.constant 0 : index
    %c0_40 = arith.constant 0 : index
    %39 = vector.load %arg2[%c6_38, %c0_39, %c0_40] : memref<22x192x128xbf16, #tpu.memory_space<vmem>>, vector<1x192x128xbf16>
    %40 = vector.shape_cast %39 : vector<1x192x128xbf16> to vector<192x128xbf16>
    %cst_41 = arith.constant dense<0.000000e+00> : vector<1x128xf32>
    %41 = tpu.matmul %38, %40, %cst_41 {dimension_numbers = #tpu.dot_dimension_numbers<[1], [0], [0], [1], [0, 0, 1, 1], [], []>} : vector<1x192xbf16>, vector<192x128xbf16>, vector<1x128xf32> -> vector<1x128xf32>
    %42 = arith.addf %36, %41 : vector<1x128xf32>
    %c0_42 = arith.constant 0 : index
    %c7 = arith.constant 7 : index
    %c0_43 = arith.constant 0 : index
    %43 = vector.load %arg1[%c0_42, %c7, %c0_43] : memref<1x22x192xbf16, #tpu.memory_space<vmem>>, vector<1x1x192xbf16>
    %44 = vector.shape_cast %43 : vector<1x1x192xbf16> to vector<1x192xbf16>
    %c7_44 = arith.constant 7 : index
    %c0_45 = arith.constant 0 : index
    %c0_46 = arith.constant 0 : index
    %45 = vector.load %arg2[%c7_44, %c0_45, %c0_46] : memref<22x192x128xbf16, #tpu.memory_space<vmem>>, vector<1x192x128xbf16>
    %46 = vector.shape_cast %45 : vector<1x192x128xbf16> to vector<192x128xbf16>
    %cst_47 = arith.constant dense<0.000000e+00> : vector<1x128xf32>
    %47 = tpu.matmul %44, %46, %cst_47 {dimension_numbers = #tpu.dot_dimension_numbers<[1], [0], [0], [1], [0, 0, 1, 1], [], []>} : vector<1x192xbf16>, vector<192x128xbf16>, vector<1x128xf32> -> vector<1x128xf32>
    %48 = arith.addf %42, %47 : vector<1x128xf32>
    %c0_48 = arith.constant 0 : index
    %c8 = arith.constant 8 : index
    %c0_49 = arith.constant 0 : index
    %49 = vector.load %arg1[%c0_48, %c8, %c0_49] : memref<1x22x192xbf16, #tpu.memory_space<vmem>>, vector<1x1x192xbf16>
    %50 = vector.shape_cast %49 : vector<1x1x192xbf16> to vector<1x192xbf16>
    %c8_50 = arith.constant 8 : index
    %c0_51 = arith.constant 0 : index
    %c0_52 = arith.constant 0 : index
    %51 = vector.load %arg2[%c8_50, %c0_51, %c0_52] : memref<22x192x128xbf16, #tpu.memory_space<vmem>>, vector<1x192x128xbf16>
    %52 = vector.shape_cast %51 : vector<1x192x128xbf16> to vector<192x128xbf16>
    %cst_53 = arith.constant dense<0.000000e+00> : vector<1x128xf32>
    %53 = tpu.matmul %50, %52, %cst_53 {dimension_numbers = #tpu.dot_dimension_numbers<[1], [0], [0], [1], [0, 0, 1, 1], [], []>} : vector<1x192xbf16>, vector<192x128xbf16>, vector<1x128xf32> -> vector<1x128xf32>
    %54 = arith.addf %48, %53 : vector<1x128xf32>
    %c0_54 = arith.constant 0 : index
    %c9 = arith.constant 9 : index
    %c0_55 = arith.constant 0 : index
    %55 = vector.load %arg1[%c0_54, %c9, %c0_55] : memref<1x22x192xbf16, #tpu.memory_space<vmem>>, vector<1x1x192xbf16>
    %56 = vector.shape_cast %55 : vector<1x1x192xbf16> to vector<1x192xbf16>
    %c9_56 = arith.constant 9 : index
    %c0_57 = arith.constant 0 : index
    %c0_58 = arith.constant 0 : index
    %57 = vector.load %arg2[%c9_56, %c0_57, %c0_58] : memref<22x192x128xbf16, #tpu.memory_space<vmem>>, vector<1x192x128xbf16>
    %58 = vector.shape_cast %57 : vector<1x192x128xbf16> to vector<192x128xbf16>
    %cst_59 = arith.constant dense<0.000000e+00> : vector<1x128xf32>
    %59 = tpu.matmul %56, %58, %cst_59 {dimension_numbers = #tpu.dot_dimension_numbers<[1], [0], [0], [1], [0, 0, 1, 1], [], []>} : vector<1x192xbf16>, vector<192x128xbf16>, vector<1x128xf32> -> vector<1x128xf32>
    %60 = arith.addf %54, %59 : vector<1x128xf32>
    %c0_60 = arith.constant 0 : index
    %c10 = arith.constant 10 : index
    %c0_61 = arith.constant 0 : index
    %61 = vector.load %arg1[%c0_60, %c10, %c0_61] : memref<1x22x192xbf16, #tpu.memory_space<vmem>>, vector<1x1x192xbf16>
    %62 = vector.shape_cast %61 : vector<1x1x192xbf16> to vector<1x192xbf16>
    %c10_62 = arith.constant 10 : index
    %c0_63 = arith.constant 0 : index
    %c0_64 = arith.constant 0 : index
    %63 = vector.load %arg2[%c10_62, %c0_63, %c0_64] : memref<22x192x128xbf16, #tpu.memory_space<vmem>>, vector<1x192x128xbf16>
    %64 = vector.shape_cast %63 : vector<1x192x128xbf16> to vector<192x128xbf16>
    %cst_65 = arith.constant dense<0.000000e+00> : vector<1x128xf32>
    %65 = tpu.matmul %62, %64, %cst_65 {dimension_numbers = #tpu.dot_dimension_numbers<[1], [0], [0], [1], [0, 0, 1, 1], [], []>} : vector<1x192xbf16>, vector<192x128xbf16>, vector<1x128xf32> -> vector<1x128xf32>
    %66 = arith.addf %60, %65 : vector<1x128xf32>
    %c0_66 = arith.constant 0 : index
    %c11 = arith.constant 11 : index
    %c0_67 = arith.constant 0 : index
    %67 = vector.load %arg1[%c0_66, %c11, %c0_67] : memref<1x22x192xbf16, #tpu.memory_space<vmem>>, vector<1x1x192xbf16>
    %68 = vector.shape_cast %67 : vector<1x1x192xbf16> to vector<1x192xbf16>
    %c11_68 = arith.constant 11 : index
    %c0_69 = arith.constant 0 : index
    %c0_70 = arith.constant 0 : index
    %69 = vector.load %arg2[%c11_68, %c0_69, %c0_70] : memref<22x192x128xbf16, #tpu.memory_space<vmem>>, vector<1x192x128xbf16>
    %70 = vector.shape_cast %69 : vector<1x192x128xbf16> to vector<192x128xbf16>
    %cst_71 = arith.constant dense<0.000000e+00> : vector<1x128xf32>
    %71 = tpu.matmul %68, %70, %cst_71 {dimension_numbers = #tpu.dot_dimension_numbers<[1], [0], [0], [1], [0, 0, 1, 1], [], []>} : vector<1x192xbf16>, vector<192x128xbf16>, vector<1x128xf32> -> vector<1x128xf32>
    %72 = arith.addf %66, %71 : vector<1x128xf32>
    %c0_72 = arith.constant 0 : index
    %c12 = arith.constant 12 : index
    %c0_73 = arith.constant 0 : index
    %73 = vector.load %arg1[%c0_72, %c12, %c0_73] : memref<1x22x192xbf16, #tpu.memory_space<vmem>>, vector<1x1x192xbf16>
    %74 = vector.shape_cast %73 : vector<1x1x192xbf16> to vector<1x192xbf16>
    %c12_74 = arith.constant 12 : index
    %c0_75 = arith.constant 0 : index
    %c0_76 = arith.constant 0 : index
    %75 = vector.load %arg2[%c12_74, %c0_75, %c0_76] : memref<22x192x128xbf16, #tpu.memory_space<vmem>>, vector<1x192x128xbf16>
    %76 = vector.shape_cast %75 : vector<1x192x128xbf16> to vector<192x128xbf16>
    %cst_77 = arith.constant dense<0.000000e+00> : vector<1x128xf32>
    %77 = tpu.matmul %74, %76, %cst_77 {dimension_numbers = #tpu.dot_dimension_numbers<[1], [0], [0], [1], [0, 0, 1, 1], [], []>} : vector<1x192xbf16>, vector<192x128xbf16>, vector<1x128xf32> -> vector<1x128xf32>
    %78 = arith.addf %72, %77 : vector<1x128xf32>
    %c0_78 = arith.constant 0 : index
    %c13 = arith.constant 13 : index
    %c0_79 = arith.constant 0 : index
    %79 = vector.load %arg1[%c0_78, %c13, %c0_79] : memref<1x22x192xbf16, #tpu.memory_space<vmem>>, vector<1x1x192xbf16>
    %80 = vector.shape_cast %79 : vector<1x1x192xbf16> to vector<1x192xbf16>
    %c13_80 = arith.constant 13 : index
    %c0_81 = arith.constant 0 : index
    %c0_82 = arith.constant 0 : index
    %81 = vector.load %arg2[%c13_80, %c0_81, %c0_82] : memref<22x192x128xbf16, #tpu.memory_space<vmem>>, vector<1x192x128xbf16>
    %82 = vector.shape_cast %81 : vector<1x192x128xbf16> to vector<192x128xbf16>
    %cst_83 = arith.constant dense<0.000000e+00> : vector<1x128xf32>
    %83 = tpu.matmul %80, %82, %cst_83 {dimension_numbers = #tpu.dot_dimension_numbers<[1], [0], [0], [1], [0, 0, 1, 1], [], []>} : vector<1x192xbf16>, vector<192x128xbf16>, vector<1x128xf32> -> vector<1x128xf32>
    %84 = arith.addf %78, %83 : vector<1x128xf32>
    %c0_84 = arith.constant 0 : index
    %c14 = arith.constant 14 : index
    %c0_85 = arith.constant 0 : index
    %85 = vector.load %arg1[%c0_84, %c14, %c0_85] : memref<1x22x192xbf16, #tpu.memory_space<vmem>>, vector<1x1x192xbf16>
    %86 = vector.shape_cast %85 : vector<1x1x192xbf16> to vector<1x192xbf16>
    %c14_86 = arith.constant 14 : index
    %c0_87 = arith.constant 0 : index
    %c0_88 = arith.constant 0 : index
    %87 = vector.load %arg2[%c14_86, %c0_87, %c0_88] : memref<22x192x128xbf16, #tpu.memory_space<vmem>>, vector<1x192x128xbf16>
    %88 = vector.shape_cast %87 : vector<1x192x128xbf16> to vector<192x128xbf16>
    %cst_89 = arith.constant dense<0.000000e+00> : vector<1x128xf32>
    %89 = tpu.matmul %86, %88, %cst_89 {dimension_numbers = #tpu.dot_dimension_numbers<[1], [0], [0], [1], [0, 0, 1, 1], [], []>} : vector<1x192xbf16>, vector<192x128xbf16>, vector<1x128xf32> -> vector<1x128xf32>
    %90 = arith.addf %84, %89 : vector<1x128xf32>
    %c0_90 = arith.constant 0 : index
    %c15 = arith.constant 15 : index
    %c0_91 = arith.constant 0 : index
    %91 = vector.load %arg1[%c0_90, %c15, %c0_91] : memref<1x22x192xbf16, #tpu.memory_space<vmem>>, vector<1x1x192xbf16>
    %92 = vector.shape_cast %91 : vector<1x1x192xbf16> to vector<1x192xbf16>
    %c15_92 = arith.constant 15 : index
    %c0_93 = arith.constant 0 : index
    %c0_94 = arith.constant 0 : index
    %93 = vector.load %arg2[%c15_92, %c0_93, %c0_94] : memref<22x192x128xbf16, #tpu.memory_space<vmem>>, vector<1x192x128xbf16>
    %94 = vector.shape_cast %93 : vector<1x192x128xbf16> to vector<192x128xbf16>
    %cst_95 = arith.constant dense<0.000000e+00> : vector<1x128xf32>
    %95 = tpu.matmul %92, %94, %cst_95 {dimension_numbers = #tpu.dot_dimension_numbers<[1], [0], [0], [1], [0, 0, 1, 1], [], []>} : vector<1x192xbf16>, vector<192x128xbf16>, vector<1x128xf32> -> vector<1x128xf32>
    %96 = arith.addf %90, %95 : vector<1x128xf32>
    %c0_96 = arith.constant 0 : index
    %c16 = arith.constant 16 : index
    %c0_97 = arith.constant 0 : index
    %97 = vector.load %arg1[%c0_96, %c16, %c0_97] : memref<1x22x192xbf16, #tpu.memory_space<vmem>>, vector<1x1x192xbf16>
    %98 = vector.shape_cast %97 : vector<1x1x192xbf16> to vector<1x192xbf16>
    %c16_98 = arith.constant 16 : index
    %c0_99 = arith.constant 0 : index
    %c0_100 = arith.constant 0 : index
    %99 = vector.load %arg2[%c16_98, %c0_99, %c0_100] : memref<22x192x128xbf16, #tpu.memory_space<vmem>>, vector<1x192x128xbf16>
    %100 = vector.shape_cast %99 : vector<1x192x128xbf16> to vector<192x128xbf16>
    %cst_101 = arith.constant dense<0.000000e+00> : vector<1x128xf32>
    %101 = tpu.matmul %98, %100, %cst_101 {dimension_numbers = #tpu.dot_dimension_numbers<[1], [0], [0], [1], [0, 0, 1, 1], [], []>} : vector<1x192xbf16>, vector<192x128xbf16>, vector<1x128xf32> -> vector<1x128xf32>
    %102 = arith.addf %96, %101 : vector<1x128xf32>
    %c0_102 = arith.constant 0 : index
    %c17 = arith.constant 17 : index
    %c0_103 = arith.constant 0 : index
    %103 = vector.load %arg1[%c0_102, %c17, %c0_103] : memref<1x22x192xbf16, #tpu.memory_space<vmem>>, vector<1x1x192xbf16>
    %104 = vector.shape_cast %103 : vector<1x1x192xbf16> to vector<1x192xbf16>
    %c17_104 = arith.constant 17 : index
    %c0_105 = arith.constant 0 : index
    %c0_106 = arith.constant 0 : index
    %105 = vector.load %arg2[%c17_104, %c0_105, %c0_106] : memref<22x192x128xbf16, #tpu.memory_space<vmem>>, vector<1x192x128xbf16>
    %106 = vector.shape_cast %105 : vector<1x192x128xbf16> to vector<192x128xbf16>
    %cst_107 = arith.constant dense<0.000000e+00> : vector<1x128xf32>
    %107 = tpu.matmul %104, %106, %cst_107 {dimension_numbers = #tpu.dot_dimension_numbers<[1], [0], [0], [1], [0, 0, 1, 1], [], []>} : vector<1x192xbf16>, vector<192x128xbf16>, vector<1x128xf32> -> vector<1x128xf32>
    %108 = arith.addf %102, %107 : vector<1x128xf32>
    %c0_108 = arith.constant 0 : index
    %c18 = arith.constant 18 : index
    %c0_109 = arith.constant 0 : index
    %109 = vector.load %arg1[%c0_108, %c18, %c0_109] : memref<1x22x192xbf16, #tpu.memory_space<vmem>>, vector<1x1x192xbf16>
    %110 = vector.shape_cast %109 : vector<1x1x192xbf16> to vector<1x192xbf16>
    %c18_110 = arith.constant 18 : index
    %c0_111 = arith.constant 0 : index
    %c0_112 = arith.constant 0 : index
    %111 = vector.load %arg2[%c18_110, %c0_111, %c0_112] : memref<22x192x128xbf16, #tpu.memory_space<vmem>>, vector<1x192x128xbf16>
    %112 = vector.shape_cast %111 : vector<1x192x128xbf16> to vector<192x128xbf16>
    %cst_113 = arith.constant dense<0.000000e+00> : vector<1x128xf32>
    %113 = tpu.matmul %110, %112, %cst_113 {dimension_numbers = #tpu.dot_dimension_numbers<[1], [0], [0], [1], [0, 0, 1, 1], [], []>} : vector<1x192xbf16>, vector<192x128xbf16>, vector<1x128xf32> -> vector<1x128xf32>
    %114 = arith.addf %108, %113 : vector<1x128xf32>
    %c0_114 = arith.constant 0 : index
    %c19 = arith.constant 19 : index
    %c0_115 = arith.constant 0 : index
    %115 = vector.load %arg1[%c0_114, %c19, %c0_115] : memref<1x22x192xbf16, #tpu.memory_space<vmem>>, vector<1x1x192xbf16>
    %116 = vector.shape_cast %115 : vector<1x1x192xbf16> to vector<1x192xbf16>
    %c19_116 = arith.constant 19 : index
    %c0_117 = arith.constant 0 : index
    %c0_118 = arith.constant 0 : index
    %117 = vector.load %arg2[%c19_116, %c0_117, %c0_118] : memref<22x192x128xbf16, #tpu.memory_space<vmem>>, vector<1x192x128xbf16>
    %118 = vector.shape_cast %117 : vector<1x192x128xbf16> to vector<192x128xbf16>
    %cst_119 = arith.constant dense<0.000000e+00> : vector<1x128xf32>
    %119 = tpu.matmul %116, %118, %cst_119 {dimension_numbers = #tpu.dot_dimension_numbers<[1], [0], [0], [1], [0, 0, 1, 1], [], []>} : vector<1x192xbf16>, vector<192x128xbf16>, vector<1x128xf32> -> vector<1x128xf32>
    %120 = arith.addf %114, %119 : vector<1x128xf32>
    %c0_120 = arith.constant 0 : index
    %c20 = arith.constant 20 : index
    %c0_121 = arith.constant 0 : index
    %121 = vector.load %arg1[%c0_120, %c20, %c0_121] : memref<1x22x192xbf16, #tpu.memory_space<vmem>>, vector<1x1x192xbf16>
    %122 = vector.shape_cast %121 : vector<1x1x192xbf16> to vector<1x192xbf16>
    %c20_122 = arith.constant 20 : index
    %c0_123 = arith.constant 0 : index
    %c0_124 = arith.constant 0 : index
    %123 = vector.load %arg2[%c20_122, %c0_123, %c0_124] : memref<22x192x128xbf16, #tpu.memory_space<vmem>>, vector<1x192x128xbf16>
    %124 = vector.shape_cast %123 : vector<1x192x128xbf16> to vector<192x128xbf16>
    %cst_125 = arith.constant dense<0.000000e+00> : vector<1x128xf32>
    %125 = tpu.matmul %122, %124, %cst_125 {dimension_numbers = #tpu.dot_dimension_numbers<[1], [0], [0], [1], [0, 0, 1, 1], [], []>} : vector<1x192xbf16>, vector<192x128xbf16>, vector<1x128xf32> -> vector<1x128xf32>
    %126 = arith.addf %120, %125 : vector<1x128xf32>
    %c0_126 = arith.constant 0 : index
    %c21 = arith.constant 21 : index
    %c0_127 = arith.constant 0 : index
    %127 = vector.load %arg1[%c0_126, %c21, %c0_127] : memref<1x22x192xbf16, #tpu.memory_space<vmem>>, vector<1x1x192xbf16>
    %128 = vector.shape_cast %127 : vector<1x1x192xbf16> to vector<1x192xbf16>
    %c21_128 = arith.constant 21 : index
    %c0_129 = arith.constant 0 : index
    %c0_130 = arith.constant 0 : index
    %129 = vector.load %arg2[%c21_128, %c0_129, %c0_130] : memref<22x192x128xbf16, #tpu.memory_space<vmem>>, vector<1x192x128xbf16>
    %130 = vector.shape_cast %129 : vector<1x192x128xbf16> to vector<192x128xbf16>
    %cst_131 = arith.constant dense<0.000000e+00> : vector<1x128xf32>
    %131 = tpu.matmul %128, %130, %cst_131 {dimension_numbers = #tpu.dot_dimension_numbers<[1], [0], [0], [1], [0, 0, 1, 1], [], []>} : vector<1x192xbf16>, vector<192x128xbf16>, vector<1x128xf32> -> vector<1x128xf32>
    %132 = arith.addf %126, %131 : vector<1x128xf32>
    %c0_132 = arith.constant 0 : index
    %c0_133 = arith.constant 0 : index
    %133 = vector.load %arg3[%c0_132, %c0_133] : memref<1x128xf32, #tpu.memory_space<vmem>>, vector<1x128xf32>
    %134 = arith.addf %132, %133 : vector<1x128xf32>
    %cst_134 = arith.constant 0.000000e+00 : f32
    %135 = vector.broadcast %cst_134 : f32 to vector<1x128xf32>
    %136 = arith.maximumf %134, %135 : vector<1x128xf32>
    %137 = arith.truncf %136 : vector<1x128xf32> to vector<1x128xbf16>
    %c0_135 = arith.constant 0 : index
    %c0_136 = arith.constant 0 : index
    %c0_137 = arith.constant 0 : index
    %138 = vector.load %arg4[%c0_135, %c0_136, %c0_137] : memref<1x1x128xbf16, #tpu.memory_space<vmem>>, vector<1x1x128xbf16>
    %139 = vector.shape_cast %138 : vector<1x1x128xbf16> to vector<1x128xbf16>
    %140 = vector.shape_cast %137 : vector<1x128xbf16> to vector<1x1x128xbf16>
    tpu.vector_store %arg4[%c0_135, %c0_136, %c0_137], %140 {strides = array<i32>} : memref<1x1x128xbf16, #tpu.memory_space<vmem>>, vector<1x1x128xbf16>,
    return
  }
  func.func @transform_0(%arg0: i32) -> (i32, i32, i32) {
    %c0_i32 = arith.constant 0 : i32
    %c0_i32_0 = arith.constant 0 : i32
    %c0_i32_1 = arith.constant 0 : i32
    return %arg0, %c0_i32, %c0_i32_0 : i32, i32, i32
  }
  func.func @transform_1(%arg0: i32) -> (i32, i32, i32) {
    %c0_i32 = arith.constant 0 : i32
    %c0_i32_0 = arith.constant 0 : i32
    %c0_i32_1 = arith.constant 0 : i32
    %c0_i32_2 = arith.constant 0 : i32
    return %c0_i32, %c0_i32_0, %c0_i32_1 : i32, i32, i32
  }
  func.func @transform_2(%arg0: i32) -> (i32, i32) {
    %c0_i32 = arith.constant 0 : i32
    %c0_i32_0 = arith.constant 0 : i32
    %c0_i32_1 = arith.constant 0 : i32
    return %c0_i32, %c0_i32_0 : i32, i32
  }
  func.func @transform_3(%arg0: i32) -> (i32, i32, i32) {
    %c0_i32 = arith.constant 0 : i32
    %c0_i32_0 = arith.constant 0 : i32
    %c0_i32_1 = arith.constant 0 : i32
    return %arg0, %c0_i32, %c0_i32_0 : i32, i32, i32
  }
}

module attributes {stable_mosaic.version = 11 : i64} {
  func.func @_tapped_matmul_kernel(%arg0: i32, %arg1: i32, %arg2: memref<1x1x42x128xbf16, #tpu.memory_space<vmem>>, %arg3: memref<1x22x128x64xbf16, #tpu.memory_space<vmem>>, %arg4: memref<1x64xf32, #tpu.memory_space<vmem>>, %arg5: memref<1x1x21x64xbf16, #tpu.memory_space<vmem>>) attributes {dimension_semantics = [#tpu.dimension_semantics<parallel>, #tpu.dimension_semantics<parallel>], iteration_bounds = array<i64: 2, 3>, scalar_prefetch = 0 : i64, scratch_operands = 0 : i64, tpu.core_type = #tpu.core_type<tc>, window_params = [{transform_indices = @transform_0, window_bounds = array<i64: 1, 1, 42, 128>}, {transform_indices = @transform_1, window_bounds = array<i64: 1, 22, 128, 64>}, {pipeline_mode = #tpu.pipeline_mode<synchronous>, transform_indices = @transform_2, window_bounds = array<i64: 1, 64>}, {transform_indices = @transform_3, window_bounds = array<i64: 1, 1, 21, 64>}]} {
    %cst = arith.constant 0.000000e+00 : f32
    %0 = vector.broadcast %cst : f32 to vector<21x64xf32>
    %c0 = arith.constant 0 : index
    %c0_0 = arith.constant 0 : index
    %c0_1 = arith.constant 0 : index
    %c0_2 = arith.constant 0 : index
    %1 = vector.load %arg2[%c0, %c0_0, %c0_1, %c0_2] : memref<1x1x42x128xbf16, #tpu.memory_space<vmem>>, vector<1x1x21x128xbf16>
    %2 = vector.shape_cast %1 : vector<1x1x21x128xbf16> to vector<21x128xbf16>
    %c0_3 = arith.constant 0 : index
    %c0_4 = arith.constant 0 : index
    %c0_5 = arith.constant 0 : index
    %c0_6 = arith.constant 0 : index
    %3 = vector.load %arg3[%c0_3, %c0_4, %c0_5, %c0_6] : memref<1x22x128x64xbf16, #tpu.memory_space<vmem>>, vector<1x1x128x64xbf16>
    %4 = vector.shape_cast %3 : vector<1x1x128x64xbf16> to vector<128x64xbf16>
    %cst_7 = arith.constant dense<0.000000e+00> : vector<21x64xf32>
    %5 = tpu.matmul %2, %4, %cst_7 {dimension_numbers = #tpu.dot_dimension_numbers<[1], [0], [0], [1], [0, 0, 1, 1], [], []>} : vector<21x128xbf16>, vector<128x64xbf16>, vector<21x64xf32> -> vector<21x64xf32>
    %6 = arith.addf %0, %5 : vector<21x64xf32>
    %c0_8 = arith.constant 0 : index
    %c0_9 = arith.constant 0 : index
    %c1 = arith.constant 1 : index
    %c0_10 = arith.constant 0 : index
    %7 = vector.load %arg2[%c0_8, %c0_9, %c1, %c0_10] : memref<1x1x42x128xbf16, #tpu.memory_space<vmem>>, vector<1x1x21x128xbf16>
    %8 = vector.shape_cast %7 : vector<1x1x21x128xbf16> to vector<21x128xbf16>
    %c0_11 = arith.constant 0 : index
    %c1_12 = arith.constant 1 : index
    %c0_13 = arith.constant 0 : index
    %c0_14 = arith.constant 0 : index
    %9 = vector.load %arg3[%c0_11, %c1_12, %c0_13, %c0_14] : memref<1x22x128x64xbf16, #tpu.memory_space<vmem>>, vector<1x1x128x64xbf16>
    %10 = vector.shape_cast %9 : vector<1x1x128x64xbf16> to vector<128x64xbf16>
    %cst_15 = arith.constant dense<0.000000e+00> : vector<21x64xf32>
    %11 = tpu.matmul %8, %10, %cst_15 {dimension_numbers = #tpu.dot_dimension_numbers<[1], [0], [0], [1], [0, 0, 1, 1], [], []>} : vector<21x128xbf16>, vector<128x64xbf16>, vector<21x64xf32> -> vector<21x64xf32>
    %12 = arith.addf %6, %11 : vector<21x64xf32>
    %c0_16 = arith.constant 0 : index
    %c0_17 = arith.constant 0 : index
    %c2 = arith.constant 2 : index
    %c0_18 = arith.constant 0 : index
    %13 = vector.load %arg2[%c0_16, %c0_17, %c2, %c0_18] : memref<1x1x42x128xbf16, #tpu.memory_space<vmem>>, vector<1x1x21x128xbf16>
    %14 = vector.shape_cast %13 : vector<1x1x21x128xbf16> to vector<21x128xbf16>
    %c0_19 = arith.constant 0 : index
    %c2_20 = arith.constant 2 : index
    %c0_21 = arith.constant 0 : index
    %c0_22 = arith.constant 0 : index
    %15 = vector.load %arg3[%c0_19, %c2_20, %c0_21, %c0_22] : memref<1x22x128x64xbf16, #tpu.memory_space<vmem>>, vector<1x1x128x64xbf16>
    %16 = vector.shape_cast %15 : vector<1x1x128x64xbf16> to vector<128x64xbf16>
    %cst_23 = arith.constant dense<0.000000e+00> : vector<21x64xf32>
    %17 = tpu.matmul %14, %16, %cst_23 {dimension_numbers = #tpu.dot_dimension_numbers<[1], [0], [0], [1], [0, 0, 1, 1], [], []>} : vector<21x128xbf16>, vector<128x64xbf16>, vector<21x64xf32> -> vector<21x64xf32>
    %18 = arith.addf %12, %17 : vector<21x64xf32>
    %c0_24 = arith.constant 0 : index
    %c0_25 = arith.constant 0 : index
    %c3 = arith.constant 3 : index
    %c0_26 = arith.constant 0 : index
    %19 = vector.load %arg2[%c0_24, %c0_25, %c3, %c0_26] : memref<1x1x42x128xbf16, #tpu.memory_space<vmem>>, vector<1x1x21x128xbf16>
    %20 = vector.shape_cast %19 : vector<1x1x21x128xbf16> to vector<21x128xbf16>
    %c0_27 = arith.constant 0 : index
    %c3_28 = arith.constant 3 : index
    %c0_29 = arith.constant 0 : index
    %c0_30 = arith.constant 0 : index
    %21 = vector.load %arg3[%c0_27, %c3_28, %c0_29, %c0_30] : memref<1x22x128x64xbf16, #tpu.memory_space<vmem>>, vector<1x1x128x64xbf16>
    %22 = vector.shape_cast %21 : vector<1x1x128x64xbf16> to vector<128x64xbf16>
    %cst_31 = arith.constant dense<0.000000e+00> : vector<21x64xf32>
    %23 = tpu.matmul %20, %22, %cst_31 {dimension_numbers = #tpu.dot_dimension_numbers<[1], [0], [0], [1], [0, 0, 1, 1], [], []>} : vector<21x128xbf16>, vector<128x64xbf16>, vector<21x64xf32> -> vector<21x64xf32>
    %24 = arith.addf %18, %23 : vector<21x64xf32>
    %c0_32 = arith.constant 0 : index
    %c0_33 = arith.constant 0 : index
    %c4 = arith.constant 4 : index
    %c0_34 = arith.constant 0 : index
    %25 = vector.load %arg2[%c0_32, %c0_33, %c4, %c0_34] : memref<1x1x42x128xbf16, #tpu.memory_space<vmem>>, vector<1x1x21x128xbf16>
    %26 = vector.shape_cast %25 : vector<1x1x21x128xbf16> to vector<21x128xbf16>
    %c0_35 = arith.constant 0 : index
    %c4_36 = arith.constant 4 : index
    %c0_37 = arith.constant 0 : index
    %c0_38 = arith.constant 0 : index
    %27 = vector.load %arg3[%c0_35, %c4_36, %c0_37, %c0_38] : memref<1x22x128x64xbf16, #tpu.memory_space<vmem>>, vector<1x1x128x64xbf16>
    %28 = vector.shape_cast %27 : vector<1x1x128x64xbf16> to vector<128x64xbf16>
    %cst_39 = arith.constant dense<0.000000e+00> : vector<21x64xf32>
    %29 = tpu.matmul %26, %28, %cst_39 {dimension_numbers = #tpu.dot_dimension_numbers<[1], [0], [0], [1], [0, 0, 1, 1], [], []>} : vector<21x128xbf16>, vector<128x64xbf16>, vector<21x64xf32> -> vector<21x64xf32>
    %30 = arith.addf %24, %29 : vector<21x64xf32>
    %c0_40 = arith.constant 0 : index
    %c0_41 = arith.constant 0 : index
    %c5 = arith.constant 5 : index
    %c0_42 = arith.constant 0 : index
    %31 = vector.load %arg2[%c0_40, %c0_41, %c5, %c0_42] : memref<1x1x42x128xbf16, #tpu.memory_space<vmem>>, vector<1x1x21x128xbf16>
    %32 = vector.shape_cast %31 : vector<1x1x21x128xbf16> to vector<21x128xbf16>
    %c0_43 = arith.constant 0 : index
    %c5_44 = arith.constant 5 : index
    %c0_45 = arith.constant 0 : index
    %c0_46 = arith.constant 0 : index
    %33 = vector.load %arg3[%c0_43, %c5_44, %c0_45, %c0_46] : memref<1x22x128x64xbf16, #tpu.memory_space<vmem>>, vector<1x1x128x64xbf16>
    %34 = vector.shape_cast %33 : vector<1x1x128x64xbf16> to vector<128x64xbf16>
    %cst_47 = arith.constant dense<0.000000e+00> : vector<21x64xf32>
    %35 = tpu.matmul %32, %34, %cst_47 {dimension_numbers = #tpu.dot_dimension_numbers<[1], [0], [0], [1], [0, 0, 1, 1], [], []>} : vector<21x128xbf16>, vector<128x64xbf16>, vector<21x64xf32> -> vector<21x64xf32>
    %36 = arith.addf %30, %35 : vector<21x64xf32>
    %c0_48 = arith.constant 0 : index
    %c0_49 = arith.constant 0 : index
    %c6 = arith.constant 6 : index
    %c0_50 = arith.constant 0 : index
    %37 = vector.load %arg2[%c0_48, %c0_49, %c6, %c0_50] : memref<1x1x42x128xbf16, #tpu.memory_space<vmem>>, vector<1x1x21x128xbf16>
    %38 = vector.shape_cast %37 : vector<1x1x21x128xbf16> to vector<21x128xbf16>
    %c0_51 = arith.constant 0 : index
    %c6_52 = arith.constant 6 : index
    %c0_53 = arith.constant 0 : index
    %c0_54 = arith.constant 0 : index
    %39 = vector.load %arg3[%c0_51, %c6_52, %c0_53, %c0_54] : memref<1x22x128x64xbf16, #tpu.memory_space<vmem>>, vector<1x1x128x64xbf16>
    %40 = vector.shape_cast %39 : vector<1x1x128x64xbf16> to vector<128x64xbf16>
    %cst_55 = arith.constant dense<0.000000e+00> : vector<21x64xf32>
    %41 = tpu.matmul %38, %40, %cst_55 {dimension_numbers = #tpu.dot_dimension_numbers<[1], [0], [0], [1], [0, 0, 1, 1], [], []>} : vector<21x128xbf16>, vector<128x64xbf16>, vector<21x64xf32> -> vector<21x64xf32>
    %42 = arith.addf %36, %41 : vector<21x64xf32>
    %c0_56 = arith.constant 0 : index
    %c0_57 = arith.constant 0 : index
    %c7 = arith.constant 7 : index
    %c0_58 = arith.constant 0 : index
    %43 = vector.load %arg2[%c0_56, %c0_57, %c7, %c0_58] : memref<1x1x42x128xbf16, #tpu.memory_space<vmem>>, vector<1x1x21x128xbf16>
    %44 = vector.shape_cast %43 : vector<1x1x21x128xbf16> to vector<21x128xbf16>
    %c0_59 = arith.constant 0 : index
    %c7_60 = arith.constant 7 : index
    %c0_61 = arith.constant 0 : index
    %c0_62 = arith.constant 0 : index
    %45 = vector.load %arg3[%c0_59, %c7_60, %c0_61, %c0_62] : memref<1x22x128x64xbf16, #tpu.memory_space<vmem>>, vector<1x1x128x64xbf16>
    %46 = vector.shape_cast %45 : vector<1x1x128x64xbf16> to vector<128x64xbf16>
    %cst_63 = arith.constant dense<0.000000e+00> : vector<21x64xf32>
    %47 = tpu.matmul %44, %46, %cst_63 {dimension_numbers = #tpu.dot_dimension_numbers<[1], [0], [0], [1], [0, 0, 1, 1], [], []>} : vector<21x128xbf16>, vector<128x64xbf16>, vector<21x64xf32> -> vector<21x64xf32>
    %48 = arith.addf %42, %47 : vector<21x64xf32>
    %c0_64 = arith.constant 0 : index
    %c0_65 = arith.constant 0 : index
    %c8 = arith.constant 8 : index
    %c0_66 = arith.constant 0 : index
    %49 = vector.load %arg2[%c0_64, %c0_65, %c8, %c0_66] : memref<1x1x42x128xbf16, #tpu.memory_space<vmem>>, vector<1x1x21x128xbf16>
    %50 = vector.shape_cast %49 : vector<1x1x21x128xbf16> to vector<21x128xbf16>
    %c0_67 = arith.constant 0 : index
    %c8_68 = arith.constant 8 : index
    %c0_69 = arith.constant 0 : index
    %c0_70 = arith.constant 0 : index
    %51 = vector.load %arg3[%c0_67, %c8_68, %c0_69, %c0_70] : memref<1x22x128x64xbf16, #tpu.memory_space<vmem>>, vector<1x1x128x64xbf16>
    %52 = vector.shape_cast %51 : vector<1x1x128x64xbf16> to vector<128x64xbf16>
    %cst_71 = arith.constant dense<0.000000e+00> : vector<21x64xf32>
    %53 = tpu.matmul %50, %52, %cst_71 {dimension_numbers = #tpu.dot_dimension_numbers<[1], [0], [0], [1], [0, 0, 1, 1], [], []>} : vector<21x128xbf16>, vector<128x64xbf16>, vector<21x64xf32> -> vector<21x64xf32>
    %54 = arith.addf %48, %53 : vector<21x64xf32>
    %c0_72 = arith.constant 0 : index
    %c0_73 = arith.constant 0 : index
    %c9 = arith.constant 9 : index
    %c0_74 = arith.constant 0 : index
    %55 = vector.load %arg2[%c0_72, %c0_73, %c9, %c0_74] : memref<1x1x42x128xbf16, #tpu.memory_space<vmem>>, vector<1x1x21x128xbf16>
    %56 = vector.shape_cast %55 : vector<1x1x21x128xbf16> to vector<21x128xbf16>
    %c0_75 = arith.constant 0 : index
    %c9_76 = arith.constant 9 : index
    %c0_77 = arith.constant 0 : index
    %c0_78 = arith.constant 0 : index
    %57 = vector.load %arg3[%c0_75, %c9_76, %c0_77, %c0_78] : memref<1x22x128x64xbf16, #tpu.memory_space<vmem>>, vector<1x1x128x64xbf16>
    %58 = vector.shape_cast %57 : vector<1x1x128x64xbf16> to vector<128x64xbf16>
    %cst_79 = arith.constant dense<0.000000e+00> : vector<21x64xf32>
    %59 = tpu.matmul %56, %58, %cst_79 {dimension_numbers = #tpu.dot_dimension_numbers<[1], [0], [0], [1], [0, 0, 1, 1], [], []>} : vector<21x128xbf16>, vector<128x64xbf16>, vector<21x64xf32> -> vector<21x64xf32>
    %60 = arith.addf %54, %59 : vector<21x64xf32>
    %c0_80 = arith.constant 0 : index
    %c0_81 = arith.constant 0 : index
    %c10 = arith.constant 10 : index
    %c0_82 = arith.constant 0 : index
    %61 = vector.load %arg2[%c0_80, %c0_81, %c10, %c0_82] : memref<1x1x42x128xbf16, #tpu.memory_space<vmem>>, vector<1x1x21x128xbf16>
    %62 = vector.shape_cast %61 : vector<1x1x21x128xbf16> to vector<21x128xbf16>
    %c0_83 = arith.constant 0 : index
    %c10_84 = arith.constant 10 : index
    %c0_85 = arith.constant 0 : index
    %c0_86 = arith.constant 0 : index
    %63 = vector.load %arg3[%c0_83, %c10_84, %c0_85, %c0_86] : memref<1x22x128x64xbf16, #tpu.memory_space<vmem>>, vector<1x1x128x64xbf16>
    %64 = vector.shape_cast %63 : vector<1x1x128x64xbf16> to vector<128x64xbf16>
    %cst_87 = arith.constant dense<0.000000e+00> : vector<21x64xf32>
    %65 = tpu.matmul %62, %64, %cst_87 {dimension_numbers = #tpu.dot_dimension_numbers<[1], [0], [0], [1], [0, 0, 1, 1], [], []>} : vector<21x128xbf16>, vector<128x64xbf16>, vector<21x64xf32> -> vector<21x64xf32>
    %66 = arith.addf %60, %65 : vector<21x64xf32>
    %c0_88 = arith.constant 0 : index
    %c0_89 = arith.constant 0 : index
    %c11 = arith.constant 11 : index
    %c0_90 = arith.constant 0 : index
    %67 = vector.load %arg2[%c0_88, %c0_89, %c11, %c0_90] : memref<1x1x42x128xbf16, #tpu.memory_space<vmem>>, vector<1x1x21x128xbf16>
    %68 = vector.shape_cast %67 : vector<1x1x21x128xbf16> to vector<21x128xbf16>
    %c0_91 = arith.constant 0 : index
    %c11_92 = arith.constant 11 : index
    %c0_93 = arith.constant 0 : index
    %c0_94 = arith.constant 0 : index
    %69 = vector.load %arg3[%c0_91, %c11_92, %c0_93, %c0_94] : memref<1x22x128x64xbf16, #tpu.memory_space<vmem>>, vector<1x1x128x64xbf16>
    %70 = vector.shape_cast %69 : vector<1x1x128x64xbf16> to vector<128x64xbf16>
    %cst_95 = arith.constant dense<0.000000e+00> : vector<21x64xf32>
    %71 = tpu.matmul %68, %70, %cst_95 {dimension_numbers = #tpu.dot_dimension_numbers<[1], [0], [0], [1], [0, 0, 1, 1], [], []>} : vector<21x128xbf16>, vector<128x64xbf16>, vector<21x64xf32> -> vector<21x64xf32>
    %72 = arith.addf %66, %71 : vector<21x64xf32>
    %c0_96 = arith.constant 0 : index
    %c0_97 = arith.constant 0 : index
    %c12 = arith.constant 12 : index
    %c0_98 = arith.constant 0 : index
    %73 = vector.load %arg2[%c0_96, %c0_97, %c12, %c0_98] : memref<1x1x42x128xbf16, #tpu.memory_space<vmem>>, vector<1x1x21x128xbf16>
    %74 = vector.shape_cast %73 : vector<1x1x21x128xbf16> to vector<21x128xbf16>
    %c0_99 = arith.constant 0 : index
    %c12_100 = arith.constant 12 : index
    %c0_101 = arith.constant 0 : index
    %c0_102 = arith.constant 0 : index
    %75 = vector.load %arg3[%c0_99, %c12_100, %c0_101, %c0_102] : memref<1x22x128x64xbf16, #tpu.memory_space<vmem>>, vector<1x1x128x64xbf16>
    %76 = vector.shape_cast %75 : vector<1x1x128x64xbf16> to vector<128x64xbf16>
    %cst_103 = arith.constant dense<0.000000e+00> : vector<21x64xf32>
    %77 = tpu.matmul %74, %76, %cst_103 {dimension_numbers = #tpu.dot_dimension_numbers<[1], [0], [0], [1], [0, 0, 1, 1], [], []>} : vector<21x128xbf16>, vector<128x64xbf16>, vector<21x64xf32> -> vector<21x64xf32>
    %78 = arith.addf %72, %77 : vector<21x64xf32>
    %c0_104 = arith.constant 0 : index
    %c0_105 = arith.constant 0 : index
    %c13 = arith.constant 13 : index
    %c0_106 = arith.constant 0 : index
    %79 = vector.load %arg2[%c0_104, %c0_105, %c13, %c0_106] : memref<1x1x42x128xbf16, #tpu.memory_space<vmem>>, vector<1x1x21x128xbf16>
    %80 = vector.shape_cast %79 : vector<1x1x21x128xbf16> to vector<21x128xbf16>
    %c0_107 = arith.constant 0 : index
    %c13_108 = arith.constant 13 : index
    %c0_109 = arith.constant 0 : index
    %c0_110 = arith.constant 0 : index
    %81 = vector.load %arg3[%c0_107, %c13_108, %c0_109, %c0_110] : memref<1x22x128x64xbf16, #tpu.memory_space<vmem>>, vector<1x1x128x64xbf16>
    %82 = vector.shape_cast %81 : vector<1x1x128x64xbf16> to vector<128x64xbf16>
    %cst_111 = arith.constant dense<0.000000e+00> : vector<21x64xf32>
    %83 = tpu.matmul %80, %82, %cst_111 {dimension_numbers = #tpu.dot_dimension_numbers<[1], [0], [0], [1], [0, 0, 1, 1], [], []>} : vector<21x128xbf16>, vector<128x64xbf16>, vector<21x64xf32> -> vector<21x64xf32>
    %84 = arith.addf %78, %83 : vector<21x64xf32>
    %c0_112 = arith.constant 0 : index
    %c0_113 = arith.constant 0 : index
    %c14 = arith.constant 14 : index
    %c0_114 = arith.constant 0 : index
    %85 = vector.load %arg2[%c0_112, %c0_113, %c14, %c0_114] : memref<1x1x42x128xbf16, #tpu.memory_space<vmem>>, vector<1x1x21x128xbf16>
    %86 = vector.shape_cast %85 : vector<1x1x21x128xbf16> to vector<21x128xbf16>
    %c0_115 = arith.constant 0 : index
    %c14_116 = arith.constant 14 : index
    %c0_117 = arith.constant 0 : index
    %c0_118 = arith.constant 0 : index
    %87 = vector.load %arg3[%c0_115, %c14_116, %c0_117, %c0_118] : memref<1x22x128x64xbf16, #tpu.memory_space<vmem>>, vector<1x1x128x64xbf16>
    %88 = vector.shape_cast %87 : vector<1x1x128x64xbf16> to vector<128x64xbf16>
    %cst_119 = arith.constant dense<0.000000e+00> : vector<21x64xf32>
    %89 = tpu.matmul %86, %88, %cst_119 {dimension_numbers = #tpu.dot_dimension_numbers<[1], [0], [0], [1], [0, 0, 1, 1], [], []>} : vector<21x128xbf16>, vector<128x64xbf16>, vector<21x64xf32> -> vector<21x64xf32>
    %90 = arith.addf %84, %89 : vector<21x64xf32>
    %c0_120 = arith.constant 0 : index
    %c0_121 = arith.constant 0 : index
    %c15 = arith.constant 15 : index
    %c0_122 = arith.constant 0 : index
    %91 = vector.load %arg2[%c0_120, %c0_121, %c15, %c0_122] : memref<1x1x42x128xbf16, #tpu.memory_space<vmem>>, vector<1x1x21x128xbf16>
    %92 = vector.shape_cast %91 : vector<1x1x21x128xbf16> to vector<21x128xbf16>
    %c0_123 = arith.constant 0 : index
    %c15_124 = arith.constant 15 : index
    %c0_125 = arith.constant 0 : index
    %c0_126 = arith.constant 0 : index
    %93 = vector.load %arg3[%c0_123, %c15_124, %c0_125, %c0_126] : memref<1x22x128x64xbf16, #tpu.memory_space<vmem>>, vector<1x1x128x64xbf16>
    %94 = vector.shape_cast %93 : vector<1x1x128x64xbf16> to vector<128x64xbf16>
    %cst_127 = arith.constant dense<0.000000e+00> : vector<21x64xf32>
    %95 = tpu.matmul %92, %94, %cst_127 {dimension_numbers = #tpu.dot_dimension_numbers<[1], [0], [0], [1], [0, 0, 1, 1], [], []>} : vector<21x128xbf16>, vector<128x64xbf16>, vector<21x64xf32> -> vector<21x64xf32>
    %96 = arith.addf %90, %95 : vector<21x64xf32>
    %c0_128 = arith.constant 0 : index
    %c0_129 = arith.constant 0 : index
    %c16 = arith.constant 16 : index
    %c0_130 = arith.constant 0 : index
    %97 = vector.load %arg2[%c0_128, %c0_129, %c16, %c0_130] : memref<1x1x42x128xbf16, #tpu.memory_space<vmem>>, vector<1x1x21x128xbf16>
    %98 = vector.shape_cast %97 : vector<1x1x21x128xbf16> to vector<21x128xbf16>
    %c0_131 = arith.constant 0 : index
    %c16_132 = arith.constant 16 : index
    %c0_133 = arith.constant 0 : index
    %c0_134 = arith.constant 0 : index
    %99 = vector.load %arg3[%c0_131, %c16_132, %c0_133, %c0_134] : memref<1x22x128x64xbf16, #tpu.memory_space<vmem>>, vector<1x1x128x64xbf16>
    %100 = vector.shape_cast %99 : vector<1x1x128x64xbf16> to vector<128x64xbf16>
    %cst_135 = arith.constant dense<0.000000e+00> : vector<21x64xf32>
    %101 = tpu.matmul %98, %100, %cst_135 {dimension_numbers = #tpu.dot_dimension_numbers<[1], [0], [0], [1], [0, 0, 1, 1], [], []>} : vector<21x128xbf16>, vector<128x64xbf16>, vector<21x64xf32> -> vector<21x64xf32>
    %102 = arith.addf %96, %101 : vector<21x64xf32>
    %c0_136 = arith.constant 0 : index
    %c0_137 = arith.constant 0 : index
    %c17 = arith.constant 17 : index
    %c0_138 = arith.constant 0 : index
    %103 = vector.load %arg2[%c0_136, %c0_137, %c17, %c0_138] : memref<1x1x42x128xbf16, #tpu.memory_space<vmem>>, vector<1x1x21x128xbf16>
    %104 = vector.shape_cast %103 : vector<1x1x21x128xbf16> to vector<21x128xbf16>
    %c0_139 = arith.constant 0 : index
    %c17_140 = arith.constant 17 : index
    %c0_141 = arith.constant 0 : index
    %c0_142 = arith.constant 0 : index
    %105 = vector.load %arg3[%c0_139, %c17_140, %c0_141, %c0_142] : memref<1x22x128x64xbf16, #tpu.memory_space<vmem>>, vector<1x1x128x64xbf16>
    %106 = vector.shape_cast %105 : vector<1x1x128x64xbf16> to vector<128x64xbf16>
    %cst_143 = arith.constant dense<0.000000e+00> : vector<21x64xf32>
    %107 = tpu.matmul %104, %106, %cst_143 {dimension_numbers = #tpu.dot_dimension_numbers<[1], [0], [0], [1], [0, 0, 1, 1], [], []>} : vector<21x128xbf16>, vector<128x64xbf16>, vector<21x64xf32> -> vector<21x64xf32>
    %108 = arith.addf %102, %107 : vector<21x64xf32>
    %c0_144 = arith.constant 0 : index
    %c0_145 = arith.constant 0 : index
    %c18 = arith.constant 18 : index
    %c0_146 = arith.constant 0 : index
    %109 = vector.load %arg2[%c0_144, %c0_145, %c18, %c0_146] : memref<1x1x42x128xbf16, #tpu.memory_space<vmem>>, vector<1x1x21x128xbf16>
    %110 = vector.shape_cast %109 : vector<1x1x21x128xbf16> to vector<21x128xbf16>
    %c0_147 = arith.constant 0 : index
    %c18_148 = arith.constant 18 : index
    %c0_149 = arith.constant 0 : index
    %c0_150 = arith.constant 0 : index
    %111 = vector.load %arg3[%c0_147, %c18_148, %c0_149, %c0_150] : memref<1x22x128x64xbf16, #tpu.memory_space<vmem>>, vector<1x1x128x64xbf16>
    %112 = vector.shape_cast %111 : vector<1x1x128x64xbf16> to vector<128x64xbf16>
    %cst_151 = arith.constant dense<0.000000e+00> : vector<21x64xf32>
    %113 = tpu.matmul %110, %112, %cst_151 {dimension_numbers = #tpu.dot_dimension_numbers<[1], [0], [0], [1], [0, 0, 1, 1], [], []>} : vector<21x128xbf16>, vector<128x64xbf16>, vector<21x64xf32> -> vector<21x64xf32>
    %114 = arith.addf %108, %113 : vector<21x64xf32>
    %c0_152 = arith.constant 0 : index
    %c0_153 = arith.constant 0 : index
    %c19 = arith.constant 19 : index
    %c0_154 = arith.constant 0 : index
    %115 = vector.load %arg2[%c0_152, %c0_153, %c19, %c0_154] : memref<1x1x42x128xbf16, #tpu.memory_space<vmem>>, vector<1x1x21x128xbf16>
    %116 = vector.shape_cast %115 : vector<1x1x21x128xbf16> to vector<21x128xbf16>
    %c0_155 = arith.constant 0 : index
    %c19_156 = arith.constant 19 : index
    %c0_157 = arith.constant 0 : index
    %c0_158 = arith.constant 0 : index
    %117 = vector.load %arg3[%c0_155, %c19_156, %c0_157, %c0_158] : memref<1x22x128x64xbf16, #tpu.memory_space<vmem>>, vector<1x1x128x64xbf16>
    %118 = vector.shape_cast %117 : vector<1x1x128x64xbf16> to vector<128x64xbf16>
    %cst_159 = arith.constant dense<0.000000e+00> : vector<21x64xf32>
    %119 = tpu.matmul %116, %118, %cst_159 {dimension_numbers = #tpu.dot_dimension_numbers<[1], [0], [0], [1], [0, 0, 1, 1], [], []>} : vector<21x128xbf16>, vector<128x64xbf16>, vector<21x64xf32> -> vector<21x64xf32>
    %120 = arith.addf %114, %119 : vector<21x64xf32>
    %c0_160 = arith.constant 0 : index
    %c0_161 = arith.constant 0 : index
    %c20 = arith.constant 20 : index
    %c0_162 = arith.constant 0 : index
    %121 = vector.load %arg2[%c0_160, %c0_161, %c20, %c0_162] : memref<1x1x42x128xbf16, #tpu.memory_space<vmem>>, vector<1x1x21x128xbf16>
    %122 = vector.shape_cast %121 : vector<1x1x21x128xbf16> to vector<21x128xbf16>
    %c0_163 = arith.constant 0 : index
    %c20_164 = arith.constant 20 : index
    %c0_165 = arith.constant 0 : index
    %c0_166 = arith.constant 0 : index
    %123 = vector.load %arg3[%c0_163, %c20_164, %c0_165, %c0_166] : memref<1x22x128x64xbf16, #tpu.memory_space<vmem>>, vector<1x1x128x64xbf16>
    %124 = vector.shape_cast %123 : vector<1x1x128x64xbf16> to vector<128x64xbf16>
    %cst_167 = arith.constant dense<0.000000e+00> : vector<21x64xf32>
    %125 = tpu.matmul %122, %124, %cst_167 {dimension_numbers = #tpu.dot_dimension_numbers<[1], [0], [0], [1], [0, 0, 1, 1], [], []>} : vector<21x128xbf16>, vector<128x64xbf16>, vector<21x64xf32> -> vector<21x64xf32>
    %126 = arith.addf %120, %125 : vector<21x64xf32>
    %c0_168 = arith.constant 0 : index
    %c0_169 = arith.constant 0 : index
    %c21 = arith.constant 21 : index
    %c0_170 = arith.constant 0 : index
    %127 = vector.load %arg2[%c0_168, %c0_169, %c21, %c0_170] : memref<1x1x42x128xbf16, #tpu.memory_space<vmem>>, vector<1x1x21x128xbf16>
    %128 = vector.shape_cast %127 : vector<1x1x21x128xbf16> to vector<21x128xbf16>
    %c0_171 = arith.constant 0 : index
    %c21_172 = arith.constant 21 : index
    %c0_173 = arith.constant 0 : index
    %c0_174 = arith.constant 0 : index
    %129 = vector.load %arg3[%c0_171, %c21_172, %c0_173, %c0_174] : memref<1x22x128x64xbf16, #tpu.memory_space<vmem>>, vector<1x1x128x64xbf16>
    %130 = vector.shape_cast %129 : vector<1x1x128x64xbf16> to vector<128x64xbf16>
    %cst_175 = arith.constant dense<0.000000e+00> : vector<21x64xf32>
    %131 = tpu.matmul %128, %130, %cst_175 {dimension_numbers = #tpu.dot_dimension_numbers<[1], [0], [0], [1], [0, 0, 1, 1], [], []>} : vector<21x128xbf16>, vector<128x64xbf16>, vector<21x64xf32> -> vector<21x64xf32>
    %132 = arith.addf %126, %131 : vector<21x64xf32>
    %c0_176 = arith.constant 0 : index
    %c0_177 = arith.constant 0 : index
    %133 = vector.load %arg4[%c0_176, %c0_177] : memref<1x64xf32, #tpu.memory_space<vmem>>, vector<1x64xf32>
    %134 = vector.broadcast %133 : vector<1x64xf32> to vector<21x64xf32>
    %135 = arith.addf %132, %134 : vector<21x64xf32>
    %cst_178 = arith.constant 0.000000e+00 : f32
    %136 = vector.broadcast %cst_178 : f32 to vector<21x64xf32>
    %137 = arith.maximumf %135, %136 : vector<21x64xf32>
    %138 = arith.truncf %137 : vector<21x64xf32> to vector<21x64xbf16>
    %c0_179 = arith.constant 0 : index
    %c0_180 = arith.constant 0 : index
    %c0_181 = arith.constant 0 : index
    %c0_182 = arith.constant 0 : index
    %139 = vector.load %arg5[%c0_179, %c0_180, %c0_181, %c0_182] : memref<1x1x21x64xbf16, #tpu.memory_space<vmem>>, vector<1x1x21x64xbf16>
    %140 = vector.shape_cast %139 : vector<1x1x21x64xbf16> to vector<21x64xbf16>
    %141 = vector.shape_cast %138 : vector<21x64xbf16> to vector<1x1x21x64xbf16>
    tpu.vector_store %arg5[%c0_179, %c0_180, %c0_181, %c0_182], %141 {strides = array<i32>} : memref<1x1x21x64xbf16, #tpu.memory_space<vmem>>, vector<1x1x21x64xbf16>,
    return
  }
  func.func @transform_0(%arg0: i32, %arg1: i32) -> (i32, i32, i32, i32) {
    %c0_i32 = arith.constant 0 : i32
    %c0_i32_0 = arith.constant 0 : i32
    %c0_i32_1 = arith.constant 0 : i32
    return %arg0, %arg1, %c0_i32, %c0_i32_0 : i32, i32, i32, i32
  }
  func.func @transform_1(%arg0: i32, %arg1: i32) -> (i32, i32, i32, i32) {
    %c0_i32 = arith.constant 0 : i32
    %c0_i32_0 = arith.constant 0 : i32
    %c0_i32_1 = arith.constant 0 : i32
    %c0_i32_2 = arith.constant 0 : i32
    return %arg1, %c0_i32, %c0_i32_0, %c0_i32_1 : i32, i32, i32, i32
  }
  func.func @transform_2(%arg0: i32, %arg1: i32) -> (i32, i32) {
    %c0_i32 = arith.constant 0 : i32
    %c0_i32_0 = arith.constant 0 : i32
    %c0_i32_1 = arith.constant 0 : i32
    return %c0_i32, %c0_i32_0 : i32, i32
  }
  func.func @transform_3(%arg0: i32, %arg1: i32) -> (i32, i32, i32, i32) {
    %c0_i32 = arith.constant 0 : i32
    %c0_i32_0 = arith.constant 0 : i32
    %c0_i32_1 = arith.constant 0 : i32
    return %arg0, %arg1, %c0_i32, %c0_i32_0 : i32, i32, i32, i32
  }
}

module attributes {stable_mosaic.version = 11 : i64} {
  func.func @_tapped_matmul_kernel(%arg0: i32, %arg1: i32, %arg2: memref<1x1x104x64xbf16, #tpu.memory_space<vmem>>, %arg3: memref<1x22x64x128xbf16, #tpu.memory_space<vmem>>, %arg4: memref<1x128xf32, #tpu.memory_space<vmem>>, %arg5: memref<1x1x83x128xf32, #tpu.memory_space<vmem>>) attributes {dimension_semantics = [#tpu.dimension_semantics<parallel>, #tpu.dimension_semantics<parallel>], iteration_bounds = array<i64: 2, 3>, scalar_prefetch = 0 : i64, scratch_operands = 0 : i64, tpu.core_type = #tpu.core_type<tc>, window_params = [{transform_indices = @transform_0, window_bounds = array<i64: 1, 1, 104, 64>}, {transform_indices = @transform_1, window_bounds = array<i64: 1, 22, 64, 128>}, {pipeline_mode = #tpu.pipeline_mode<synchronous>, transform_indices = @transform_2, window_bounds = array<i64: 1, 128>}, {transform_indices = @transform_3, window_bounds = array<i64: 1, 1, 83, 128>}]} {
    %cst = arith.constant 0.000000e+00 : f32
    %0 = vector.broadcast %cst : f32 to vector<83x128xf32>
    %c0 = arith.constant 0 : index
    %c0_0 = arith.constant 0 : index
    %c0_1 = arith.constant 0 : index
    %c0_2 = arith.constant 0 : index
    %1 = vector.load %arg2[%c0, %c0_0, %c0_1, %c0_2] : memref<1x1x104x64xbf16, #tpu.memory_space<vmem>>, vector<1x1x83x64xbf16>
    %2 = vector.shape_cast %1 : vector<1x1x83x64xbf16> to vector<83x64xbf16>
    %c0_3 = arith.constant 0 : index
    %c0_4 = arith.constant 0 : index
    %c0_5 = arith.constant 0 : index
    %c0_6 = arith.constant 0 : index
    %3 = vector.load %arg3[%c0_3, %c0_4, %c0_5, %c0_6] : memref<1x22x64x128xbf16, #tpu.memory_space<vmem>>, vector<1x1x64x128xbf16>
    %4 = vector.shape_cast %3 : vector<1x1x64x128xbf16> to vector<64x128xbf16>
    %cst_7 = arith.constant dense<0.000000e+00> : vector<83x128xf32>
    %5 = tpu.matmul %2, %4, %cst_7 {dimension_numbers = #tpu.dot_dimension_numbers<[1], [0], [0], [1], [0, 0, 1, 1], [], []>} : vector<83x64xbf16>, vector<64x128xbf16>, vector<83x128xf32> -> vector<83x128xf32>
    %6 = arith.addf %0, %5 : vector<83x128xf32>
    %c0_8 = arith.constant 0 : index
    %c0_9 = arith.constant 0 : index
    %c1 = arith.constant 1 : index
    %c0_10 = arith.constant 0 : index
    %7 = vector.load %arg2[%c0_8, %c0_9, %c1, %c0_10] : memref<1x1x104x64xbf16, #tpu.memory_space<vmem>>, vector<1x1x83x64xbf16>
    %8 = vector.shape_cast %7 : vector<1x1x83x64xbf16> to vector<83x64xbf16>
    %c0_11 = arith.constant 0 : index
    %c1_12 = arith.constant 1 : index
    %c0_13 = arith.constant 0 : index
    %c0_14 = arith.constant 0 : index
    %9 = vector.load %arg3[%c0_11, %c1_12, %c0_13, %c0_14] : memref<1x22x64x128xbf16, #tpu.memory_space<vmem>>, vector<1x1x64x128xbf16>
    %10 = vector.shape_cast %9 : vector<1x1x64x128xbf16> to vector<64x128xbf16>
    %cst_15 = arith.constant dense<0.000000e+00> : vector<83x128xf32>
    %11 = tpu.matmul %8, %10, %cst_15 {dimension_numbers = #tpu.dot_dimension_numbers<[1], [0], [0], [1], [0, 0, 1, 1], [], []>} : vector<83x64xbf16>, vector<64x128xbf16>, vector<83x128xf32> -> vector<83x128xf32>
    %12 = arith.addf %6, %11 : vector<83x128xf32>
    %c0_16 = arith.constant 0 : index
    %c0_17 = arith.constant 0 : index
    %c2 = arith.constant 2 : index
    %c0_18 = arith.constant 0 : index
    %13 = vector.load %arg2[%c0_16, %c0_17, %c2, %c0_18] : memref<1x1x104x64xbf16, #tpu.memory_space<vmem>>, vector<1x1x83x64xbf16>
    %14 = vector.shape_cast %13 : vector<1x1x83x64xbf16> to vector<83x64xbf16>
    %c0_19 = arith.constant 0 : index
    %c2_20 = arith.constant 2 : index
    %c0_21 = arith.constant 0 : index
    %c0_22 = arith.constant 0 : index
    %15 = vector.load %arg3[%c0_19, %c2_20, %c0_21, %c0_22] : memref<1x22x64x128xbf16, #tpu.memory_space<vmem>>, vector<1x1x64x128xbf16>
    %16 = vector.shape_cast %15 : vector<1x1x64x128xbf16> to vector<64x128xbf16>
    %cst_23 = arith.constant dense<0.000000e+00> : vector<83x128xf32>
    %17 = tpu.matmul %14, %16, %cst_23 {dimension_numbers = #tpu.dot_dimension_numbers<[1], [0], [0], [1], [0, 0, 1, 1], [], []>} : vector<83x64xbf16>, vector<64x128xbf16>, vector<83x128xf32> -> vector<83x128xf32>
    %18 = arith.addf %12, %17 : vector<83x128xf32>
    %c0_24 = arith.constant 0 : index
    %c0_25 = arith.constant 0 : index
    %c3 = arith.constant 3 : index
    %c0_26 = arith.constant 0 : index
    %19 = vector.load %arg2[%c0_24, %c0_25, %c3, %c0_26] : memref<1x1x104x64xbf16, #tpu.memory_space<vmem>>, vector<1x1x83x64xbf16>
    %20 = vector.shape_cast %19 : vector<1x1x83x64xbf16> to vector<83x64xbf16>
    %c0_27 = arith.constant 0 : index
    %c3_28 = arith.constant 3 : index
    %c0_29 = arith.constant 0 : index
    %c0_30 = arith.constant 0 : index
    %21 = vector.load %arg3[%c0_27, %c3_28, %c0_29, %c0_30] : memref<1x22x64x128xbf16, #tpu.memory_space<vmem>>, vector<1x1x64x128xbf16>
    %22 = vector.shape_cast %21 : vector<1x1x64x128xbf16> to vector<64x128xbf16>
    %cst_31 = arith.constant dense<0.000000e+00> : vector<83x128xf32>
    %23 = tpu.matmul %20, %22, %cst_31 {dimension_numbers = #tpu.dot_dimension_numbers<[1], [0], [0], [1], [0, 0, 1, 1], [], []>} : vector<83x64xbf16>, vector<64x128xbf16>, vector<83x128xf32> -> vector<83x128xf32>
    %24 = arith.addf %18, %23 : vector<83x128xf32>
    %c0_32 = arith.constant 0 : index
    %c0_33 = arith.constant 0 : index
    %c4 = arith.constant 4 : index
    %c0_34 = arith.constant 0 : index
    %25 = vector.load %arg2[%c0_32, %c0_33, %c4, %c0_34] : memref<1x1x104x64xbf16, #tpu.memory_space<vmem>>, vector<1x1x83x64xbf16>
    %26 = vector.shape_cast %25 : vector<1x1x83x64xbf16> to vector<83x64xbf16>
    %c0_35 = arith.constant 0 : index
    %c4_36 = arith.constant 4 : index
    %c0_37 = arith.constant 0 : index
    %c0_38 = arith.constant 0 : index
    %27 = vector.load %arg3[%c0_35, %c4_36, %c0_37, %c0_38] : memref<1x22x64x128xbf16, #tpu.memory_space<vmem>>, vector<1x1x64x128xbf16>
    %28 = vector.shape_cast %27 : vector<1x1x64x128xbf16> to vector<64x128xbf16>
    %cst_39 = arith.constant dense<0.000000e+00> : vector<83x128xf32>
    %29 = tpu.matmul %26, %28, %cst_39 {dimension_numbers = #tpu.dot_dimension_numbers<[1], [0], [0], [1], [0, 0, 1, 1], [], []>} : vector<83x64xbf16>, vector<64x128xbf16>, vector<83x128xf32> -> vector<83x128xf32>
    %30 = arith.addf %24, %29 : vector<83x128xf32>
    %c0_40 = arith.constant 0 : index
    %c0_41 = arith.constant 0 : index
    %c5 = arith.constant 5 : index
    %c0_42 = arith.constant 0 : index
    %31 = vector.load %arg2[%c0_40, %c0_41, %c5, %c0_42] : memref<1x1x104x64xbf16, #tpu.memory_space<vmem>>, vector<1x1x83x64xbf16>
    %32 = vector.shape_cast %31 : vector<1x1x83x64xbf16> to vector<83x64xbf16>
    %c0_43 = arith.constant 0 : index
    %c5_44 = arith.constant 5 : index
    %c0_45 = arith.constant 0 : index
    %c0_46 = arith.constant 0 : index
    %33 = vector.load %arg3[%c0_43, %c5_44, %c0_45, %c0_46] : memref<1x22x64x128xbf16, #tpu.memory_space<vmem>>, vector<1x1x64x128xbf16>
    %34 = vector.shape_cast %33 : vector<1x1x64x128xbf16> to vector<64x128xbf16>
    %cst_47 = arith.constant dense<0.000000e+00> : vector<83x128xf32>
    %35 = tpu.matmul %32, %34, %cst_47 {dimension_numbers = #tpu.dot_dimension_numbers<[1], [0], [0], [1], [0, 0, 1, 1], [], []>} : vector<83x64xbf16>, vector<64x128xbf16>, vector<83x128xf32> -> vector<83x128xf32>
    %36 = arith.addf %30, %35 : vector<83x128xf32>
    %c0_48 = arith.constant 0 : index
    %c0_49 = arith.constant 0 : index
    %c6 = arith.constant 6 : index
    %c0_50 = arith.constant 0 : index
    %37 = vector.load %arg2[%c0_48, %c0_49, %c6, %c0_50] : memref<1x1x104x64xbf16, #tpu.memory_space<vmem>>, vector<1x1x83x64xbf16>
    %38 = vector.shape_cast %37 : vector<1x1x83x64xbf16> to vector<83x64xbf16>
    %c0_51 = arith.constant 0 : index
    %c6_52 = arith.constant 6 : index
    %c0_53 = arith.constant 0 : index
    %c0_54 = arith.constant 0 : index
    %39 = vector.load %arg3[%c0_51, %c6_52, %c0_53, %c0_54] : memref<1x22x64x128xbf16, #tpu.memory_space<vmem>>, vector<1x1x64x128xbf16>
    %40 = vector.shape_cast %39 : vector<1x1x64x128xbf16> to vector<64x128xbf16>
    %cst_55 = arith.constant dense<0.000000e+00> : vector<83x128xf32>
    %41 = tpu.matmul %38, %40, %cst_55 {dimension_numbers = #tpu.dot_dimension_numbers<[1], [0], [0], [1], [0, 0, 1, 1], [], []>} : vector<83x64xbf16>, vector<64x128xbf16>, vector<83x128xf32> -> vector<83x128xf32>
    %42 = arith.addf %36, %41 : vector<83x128xf32>
    %c0_56 = arith.constant 0 : index
    %c0_57 = arith.constant 0 : index
    %c7 = arith.constant 7 : index
    %c0_58 = arith.constant 0 : index
    %43 = vector.load %arg2[%c0_56, %c0_57, %c7, %c0_58] : memref<1x1x104x64xbf16, #tpu.memory_space<vmem>>, vector<1x1x83x64xbf16>
    %44 = vector.shape_cast %43 : vector<1x1x83x64xbf16> to vector<83x64xbf16>
    %c0_59 = arith.constant 0 : index
    %c7_60 = arith.constant 7 : index
    %c0_61 = arith.constant 0 : index
    %c0_62 = arith.constant 0 : index
    %45 = vector.load %arg3[%c0_59, %c7_60, %c0_61, %c0_62] : memref<1x22x64x128xbf16, #tpu.memory_space<vmem>>, vector<1x1x64x128xbf16>
    %46 = vector.shape_cast %45 : vector<1x1x64x128xbf16> to vector<64x128xbf16>
    %cst_63 = arith.constant dense<0.000000e+00> : vector<83x128xf32>
    %47 = tpu.matmul %44, %46, %cst_63 {dimension_numbers = #tpu.dot_dimension_numbers<[1], [0], [0], [1], [0, 0, 1, 1], [], []>} : vector<83x64xbf16>, vector<64x128xbf16>, vector<83x128xf32> -> vector<83x128xf32>
    %48 = arith.addf %42, %47 : vector<83x128xf32>
    %c0_64 = arith.constant 0 : index
    %c0_65 = arith.constant 0 : index
    %c8 = arith.constant 8 : index
    %c0_66 = arith.constant 0 : index
    %49 = vector.load %arg2[%c0_64, %c0_65, %c8, %c0_66] : memref<1x1x104x64xbf16, #tpu.memory_space<vmem>>, vector<1x1x83x64xbf16>
    %50 = vector.shape_cast %49 : vector<1x1x83x64xbf16> to vector<83x64xbf16>
    %c0_67 = arith.constant 0 : index
    %c8_68 = arith.constant 8 : index
    %c0_69 = arith.constant 0 : index
    %c0_70 = arith.constant 0 : index
    %51 = vector.load %arg3[%c0_67, %c8_68, %c0_69, %c0_70] : memref<1x22x64x128xbf16, #tpu.memory_space<vmem>>, vector<1x1x64x128xbf16>
    %52 = vector.shape_cast %51 : vector<1x1x64x128xbf16> to vector<64x128xbf16>
    %cst_71 = arith.constant dense<0.000000e+00> : vector<83x128xf32>
    %53 = tpu.matmul %50, %52, %cst_71 {dimension_numbers = #tpu.dot_dimension_numbers<[1], [0], [0], [1], [0, 0, 1, 1], [], []>} : vector<83x64xbf16>, vector<64x128xbf16>, vector<83x128xf32> -> vector<83x128xf32>
    %54 = arith.addf %48, %53 : vector<83x128xf32>
    %c0_72 = arith.constant 0 : index
    %c0_73 = arith.constant 0 : index
    %c9 = arith.constant 9 : index
    %c0_74 = arith.constant 0 : index
    %55 = vector.load %arg2[%c0_72, %c0_73, %c9, %c0_74] : memref<1x1x104x64xbf16, #tpu.memory_space<vmem>>, vector<1x1x83x64xbf16>
    %56 = vector.shape_cast %55 : vector<1x1x83x64xbf16> to vector<83x64xbf16>
    %c0_75 = arith.constant 0 : index
    %c9_76 = arith.constant 9 : index
    %c0_77 = arith.constant 0 : index
    %c0_78 = arith.constant 0 : index
    %57 = vector.load %arg3[%c0_75, %c9_76, %c0_77, %c0_78] : memref<1x22x64x128xbf16, #tpu.memory_space<vmem>>, vector<1x1x64x128xbf16>
    %58 = vector.shape_cast %57 : vector<1x1x64x128xbf16> to vector<64x128xbf16>
    %cst_79 = arith.constant dense<0.000000e+00> : vector<83x128xf32>
    %59 = tpu.matmul %56, %58, %cst_79 {dimension_numbers = #tpu.dot_dimension_numbers<[1], [0], [0], [1], [0, 0, 1, 1], [], []>} : vector<83x64xbf16>, vector<64x128xbf16>, vector<83x128xf32> -> vector<83x128xf32>
    %60 = arith.addf %54, %59 : vector<83x128xf32>
    %c0_80 = arith.constant 0 : index
    %c0_81 = arith.constant 0 : index
    %c10 = arith.constant 10 : index
    %c0_82 = arith.constant 0 : index
    %61 = vector.load %arg2[%c0_80, %c0_81, %c10, %c0_82] : memref<1x1x104x64xbf16, #tpu.memory_space<vmem>>, vector<1x1x83x64xbf16>
    %62 = vector.shape_cast %61 : vector<1x1x83x64xbf16> to vector<83x64xbf16>
    %c0_83 = arith.constant 0 : index
    %c10_84 = arith.constant 10 : index
    %c0_85 = arith.constant 0 : index
    %c0_86 = arith.constant 0 : index
    %63 = vector.load %arg3[%c0_83, %c10_84, %c0_85, %c0_86] : memref<1x22x64x128xbf16, #tpu.memory_space<vmem>>, vector<1x1x64x128xbf16>
    %64 = vector.shape_cast %63 : vector<1x1x64x128xbf16> to vector<64x128xbf16>
    %cst_87 = arith.constant dense<0.000000e+00> : vector<83x128xf32>
    %65 = tpu.matmul %62, %64, %cst_87 {dimension_numbers = #tpu.dot_dimension_numbers<[1], [0], [0], [1], [0, 0, 1, 1], [], []>} : vector<83x64xbf16>, vector<64x128xbf16>, vector<83x128xf32> -> vector<83x128xf32>
    %66 = arith.addf %60, %65 : vector<83x128xf32>
    %c0_88 = arith.constant 0 : index
    %c0_89 = arith.constant 0 : index
    %c11 = arith.constant 11 : index
    %c0_90 = arith.constant 0 : index
    %67 = vector.load %arg2[%c0_88, %c0_89, %c11, %c0_90] : memref<1x1x104x64xbf16, #tpu.memory_space<vmem>>, vector<1x1x83x64xbf16>
    %68 = vector.shape_cast %67 : vector<1x1x83x64xbf16> to vector<83x64xbf16>
    %c0_91 = arith.constant 0 : index
    %c11_92 = arith.constant 11 : index
    %c0_93 = arith.constant 0 : index
    %c0_94 = arith.constant 0 : index
    %69 = vector.load %arg3[%c0_91, %c11_92, %c0_93, %c0_94] : memref<1x22x64x128xbf16, #tpu.memory_space<vmem>>, vector<1x1x64x128xbf16>
    %70 = vector.shape_cast %69 : vector<1x1x64x128xbf16> to vector<64x128xbf16>
    %cst_95 = arith.constant dense<0.000000e+00> : vector<83x128xf32>
    %71 = tpu.matmul %68, %70, %cst_95 {dimension_numbers = #tpu.dot_dimension_numbers<[1], [0], [0], [1], [0, 0, 1, 1], [], []>} : vector<83x64xbf16>, vector<64x128xbf16>, vector<83x128xf32> -> vector<83x128xf32>
    %72 = arith.addf %66, %71 : vector<83x128xf32>
    %c0_96 = arith.constant 0 : index
    %c0_97 = arith.constant 0 : index
    %c12 = arith.constant 12 : index
    %c0_98 = arith.constant 0 : index
    %73 = vector.load %arg2[%c0_96, %c0_97, %c12, %c0_98] : memref<1x1x104x64xbf16, #tpu.memory_space<vmem>>, vector<1x1x83x64xbf16>
    %74 = vector.shape_cast %73 : vector<1x1x83x64xbf16> to vector<83x64xbf16>
    %c0_99 = arith.constant 0 : index
    %c12_100 = arith.constant 12 : index
    %c0_101 = arith.constant 0 : index
    %c0_102 = arith.constant 0 : index
    %75 = vector.load %arg3[%c0_99, %c12_100, %c0_101, %c0_102] : memref<1x22x64x128xbf16, #tpu.memory_space<vmem>>, vector<1x1x64x128xbf16>
    %76 = vector.shape_cast %75 : vector<1x1x64x128xbf16> to vector<64x128xbf16>
    %cst_103 = arith.constant dense<0.000000e+00> : vector<83x128xf32>
    %77 = tpu.matmul %74, %76, %cst_103 {dimension_numbers = #tpu.dot_dimension_numbers<[1], [0], [0], [1], [0, 0, 1, 1], [], []>} : vector<83x64xbf16>, vector<64x128xbf16>, vector<83x128xf32> -> vector<83x128xf32>
    %78 = arith.addf %72, %77 : vector<83x128xf32>
    %c0_104 = arith.constant 0 : index
    %c0_105 = arith.constant 0 : index
    %c13 = arith.constant 13 : index
    %c0_106 = arith.constant 0 : index
    %79 = vector.load %arg2[%c0_104, %c0_105, %c13, %c0_106] : memref<1x1x104x64xbf16, #tpu.memory_space<vmem>>, vector<1x1x83x64xbf16>
    %80 = vector.shape_cast %79 : vector<1x1x83x64xbf16> to vector<83x64xbf16>
    %c0_107 = arith.constant 0 : index
    %c13_108 = arith.constant 13 : index
    %c0_109 = arith.constant 0 : index
    %c0_110 = arith.constant 0 : index
    %81 = vector.load %arg3[%c0_107, %c13_108, %c0_109, %c0_110] : memref<1x22x64x128xbf16, #tpu.memory_space<vmem>>, vector<1x1x64x128xbf16>
    %82 = vector.shape_cast %81 : vector<1x1x64x128xbf16> to vector<64x128xbf16>
    %cst_111 = arith.constant dense<0.000000e+00> : vector<83x128xf32>
    %83 = tpu.matmul %80, %82, %cst_111 {dimension_numbers = #tpu.dot_dimension_numbers<[1], [0], [0], [1], [0, 0, 1, 1], [], []>} : vector<83x64xbf16>, vector<64x128xbf16>, vector<83x128xf32> -> vector<83x128xf32>
    %84 = arith.addf %78, %83 : vector<83x128xf32>
    %c0_112 = arith.constant 0 : index
    %c0_113 = arith.constant 0 : index
    %c14 = arith.constant 14 : index
    %c0_114 = arith.constant 0 : index
    %85 = vector.load %arg2[%c0_112, %c0_113, %c14, %c0_114] : memref<1x1x104x64xbf16, #tpu.memory_space<vmem>>, vector<1x1x83x64xbf16>
    %86 = vector.shape_cast %85 : vector<1x1x83x64xbf16> to vector<83x64xbf16>
    %c0_115 = arith.constant 0 : index
    %c14_116 = arith.constant 14 : index
    %c0_117 = arith.constant 0 : index
    %c0_118 = arith.constant 0 : index
    %87 = vector.load %arg3[%c0_115, %c14_116, %c0_117, %c0_118] : memref<1x22x64x128xbf16, #tpu.memory_space<vmem>>, vector<1x1x64x128xbf16>
    %88 = vector.shape_cast %87 : vector<1x1x64x128xbf16> to vector<64x128xbf16>
    %cst_119 = arith.constant dense<0.000000e+00> : vector<83x128xf32>
    %89 = tpu.matmul %86, %88, %cst_119 {dimension_numbers = #tpu.dot_dimension_numbers<[1], [0], [0], [1], [0, 0, 1, 1], [], []>} : vector<83x64xbf16>, vector<64x128xbf16>, vector<83x128xf32> -> vector<83x128xf32>
    %90 = arith.addf %84, %89 : vector<83x128xf32>
    %c0_120 = arith.constant 0 : index
    %c0_121 = arith.constant 0 : index
    %c15 = arith.constant 15 : index
    %c0_122 = arith.constant 0 : index
    %91 = vector.load %arg2[%c0_120, %c0_121, %c15, %c0_122] : memref<1x1x104x64xbf16, #tpu.memory_space<vmem>>, vector<1x1x83x64xbf16>
    %92 = vector.shape_cast %91 : vector<1x1x83x64xbf16> to vector<83x64xbf16>
    %c0_123 = arith.constant 0 : index
    %c15_124 = arith.constant 15 : index
    %c0_125 = arith.constant 0 : index
    %c0_126 = arith.constant 0 : index
    %93 = vector.load %arg3[%c0_123, %c15_124, %c0_125, %c0_126] : memref<1x22x64x128xbf16, #tpu.memory_space<vmem>>, vector<1x1x64x128xbf16>
    %94 = vector.shape_cast %93 : vector<1x1x64x128xbf16> to vector<64x128xbf16>
    %cst_127 = arith.constant dense<0.000000e+00> : vector<83x128xf32>
    %95 = tpu.matmul %92, %94, %cst_127 {dimension_numbers = #tpu.dot_dimension_numbers<[1], [0], [0], [1], [0, 0, 1, 1], [], []>} : vector<83x64xbf16>, vector<64x128xbf16>, vector<83x128xf32> -> vector<83x128xf32>
    %96 = arith.addf %90, %95 : vector<83x128xf32>
    %c0_128 = arith.constant 0 : index
    %c0_129 = arith.constant 0 : index
    %c16 = arith.constant 16 : index
    %c0_130 = arith.constant 0 : index
    %97 = vector.load %arg2[%c0_128, %c0_129, %c16, %c0_130] : memref<1x1x104x64xbf16, #tpu.memory_space<vmem>>, vector<1x1x83x64xbf16>
    %98 = vector.shape_cast %97 : vector<1x1x83x64xbf16> to vector<83x64xbf16>
    %c0_131 = arith.constant 0 : index
    %c16_132 = arith.constant 16 : index
    %c0_133 = arith.constant 0 : index
    %c0_134 = arith.constant 0 : index
    %99 = vector.load %arg3[%c0_131, %c16_132, %c0_133, %c0_134] : memref<1x22x64x128xbf16, #tpu.memory_space<vmem>>, vector<1x1x64x128xbf16>
    %100 = vector.shape_cast %99 : vector<1x1x64x128xbf16> to vector<64x128xbf16>
    %cst_135 = arith.constant dense<0.000000e+00> : vector<83x128xf32>
    %101 = tpu.matmul %98, %100, %cst_135 {dimension_numbers = #tpu.dot_dimension_numbers<[1], [0], [0], [1], [0, 0, 1, 1], [], []>} : vector<83x64xbf16>, vector<64x128xbf16>, vector<83x128xf32> -> vector<83x128xf32>
    %102 = arith.addf %96, %101 : vector<83x128xf32>
    %c0_136 = arith.constant 0 : index
    %c0_137 = arith.constant 0 : index
    %c17 = arith.constant 17 : index
    %c0_138 = arith.constant 0 : index
    %103 = vector.load %arg2[%c0_136, %c0_137, %c17, %c0_138] : memref<1x1x104x64xbf16, #tpu.memory_space<vmem>>, vector<1x1x83x64xbf16>
    %104 = vector.shape_cast %103 : vector<1x1x83x64xbf16> to vector<83x64xbf16>
    %c0_139 = arith.constant 0 : index
    %c17_140 = arith.constant 17 : index
    %c0_141 = arith.constant 0 : index
    %c0_142 = arith.constant 0 : index
    %105 = vector.load %arg3[%c0_139, %c17_140, %c0_141, %c0_142] : memref<1x22x64x128xbf16, #tpu.memory_space<vmem>>, vector<1x1x64x128xbf16>
    %106 = vector.shape_cast %105 : vector<1x1x64x128xbf16> to vector<64x128xbf16>
    %cst_143 = arith.constant dense<0.000000e+00> : vector<83x128xf32>
    %107 = tpu.matmul %104, %106, %cst_143 {dimension_numbers = #tpu.dot_dimension_numbers<[1], [0], [0], [1], [0, 0, 1, 1], [], []>} : vector<83x64xbf16>, vector<64x128xbf16>, vector<83x128xf32> -> vector<83x128xf32>
    %108 = arith.addf %102, %107 : vector<83x128xf32>
    %c0_144 = arith.constant 0 : index
    %c0_145 = arith.constant 0 : index
    %c18 = arith.constant 18 : index
    %c0_146 = arith.constant 0 : index
    %109 = vector.load %arg2[%c0_144, %c0_145, %c18, %c0_146] : memref<1x1x104x64xbf16, #tpu.memory_space<vmem>>, vector<1x1x83x64xbf16>
    %110 = vector.shape_cast %109 : vector<1x1x83x64xbf16> to vector<83x64xbf16>
    %c0_147 = arith.constant 0 : index
    %c18_148 = arith.constant 18 : index
    %c0_149 = arith.constant 0 : index
    %c0_150 = arith.constant 0 : index
    %111 = vector.load %arg3[%c0_147, %c18_148, %c0_149, %c0_150] : memref<1x22x64x128xbf16, #tpu.memory_space<vmem>>, vector<1x1x64x128xbf16>
    %112 = vector.shape_cast %111 : vector<1x1x64x128xbf16> to vector<64x128xbf16>
    %cst_151 = arith.constant dense<0.000000e+00> : vector<83x128xf32>
    %113 = tpu.matmul %110, %112, %cst_151 {dimension_numbers = #tpu.dot_dimension_numbers<[1], [0], [0], [1], [0, 0, 1, 1], [], []>} : vector<83x64xbf16>, vector<64x128xbf16>, vector<83x128xf32> -> vector<83x128xf32>
    %114 = arith.addf %108, %113 : vector<83x128xf32>
    %c0_152 = arith.constant 0 : index
    %c0_153 = arith.constant 0 : index
    %c19 = arith.constant 19 : index
    %c0_154 = arith.constant 0 : index
    %115 = vector.load %arg2[%c0_152, %c0_153, %c19, %c0_154] : memref<1x1x104x64xbf16, #tpu.memory_space<vmem>>, vector<1x1x83x64xbf16>
    %116 = vector.shape_cast %115 : vector<1x1x83x64xbf16> to vector<83x64xbf16>
    %c0_155 = arith.constant 0 : index
    %c19_156 = arith.constant 19 : index
    %c0_157 = arith.constant 0 : index
    %c0_158 = arith.constant 0 : index
    %117 = vector.load %arg3[%c0_155, %c19_156, %c0_157, %c0_158] : memref<1x22x64x128xbf16, #tpu.memory_space<vmem>>, vector<1x1x64x128xbf16>
    %118 = vector.shape_cast %117 : vector<1x1x64x128xbf16> to vector<64x128xbf16>
    %cst_159 = arith.constant dense<0.000000e+00> : vector<83x128xf32>
    %119 = tpu.matmul %116, %118, %cst_159 {dimension_numbers = #tpu.dot_dimension_numbers<[1], [0], [0], [1], [0, 0, 1, 1], [], []>} : vector<83x64xbf16>, vector<64x128xbf16>, vector<83x128xf32> -> vector<83x128xf32>
    %120 = arith.addf %114, %119 : vector<83x128xf32>
    %c0_160 = arith.constant 0 : index
    %c0_161 = arith.constant 0 : index
    %c20 = arith.constant 20 : index
    %c0_162 = arith.constant 0 : index
    %121 = vector.load %arg2[%c0_160, %c0_161, %c20, %c0_162] : memref<1x1x104x64xbf16, #tpu.memory_space<vmem>>, vector<1x1x83x64xbf16>
    %122 = vector.shape_cast %121 : vector<1x1x83x64xbf16> to vector<83x64xbf16>
    %c0_163 = arith.constant 0 : index
    %c20_164 = arith.constant 20 : index
    %c0_165 = arith.constant 0 : index
    %c0_166 = arith.constant 0 : index
    %123 = vector.load %arg3[%c0_163, %c20_164, %c0_165, %c0_166] : memref<1x22x64x128xbf16, #tpu.memory_space<vmem>>, vector<1x1x64x128xbf16>
    %124 = vector.shape_cast %123 : vector<1x1x64x128xbf16> to vector<64x128xbf16>
    %cst_167 = arith.constant dense<0.000000e+00> : vector<83x128xf32>
    %125 = tpu.matmul %122, %124, %cst_167 {dimension_numbers = #tpu.dot_dimension_numbers<[1], [0], [0], [1], [0, 0, 1, 1], [], []>} : vector<83x64xbf16>, vector<64x128xbf16>, vector<83x128xf32> -> vector<83x128xf32>
    %126 = arith.addf %120, %125 : vector<83x128xf32>
    %c0_168 = arith.constant 0 : index
    %c0_169 = arith.constant 0 : index
    %c21 = arith.constant 21 : index
    %c0_170 = arith.constant 0 : index
    %127 = vector.load %arg2[%c0_168, %c0_169, %c21, %c0_170] : memref<1x1x104x64xbf16, #tpu.memory_space<vmem>>, vector<1x1x83x64xbf16>
    %128 = vector.shape_cast %127 : vector<1x1x83x64xbf16> to vector<83x64xbf16>
    %c0_171 = arith.constant 0 : index
    %c21_172 = arith.constant 21 : index
    %c0_173 = arith.constant 0 : index
    %c0_174 = arith.constant 0 : index
    %129 = vector.load %arg3[%c0_171, %c21_172, %c0_173, %c0_174] : memref<1x22x64x128xbf16, #tpu.memory_space<vmem>>, vector<1x1x64x128xbf16>
    %130 = vector.shape_cast %129 : vector<1x1x64x128xbf16> to vector<64x128xbf16>
    %cst_175 = arith.constant dense<0.000000e+00> : vector<83x128xf32>
    %131 = tpu.matmul %128, %130, %cst_175 {dimension_numbers = #tpu.dot_dimension_numbers<[1], [0], [0], [1], [0, 0, 1, 1], [], []>} : vector<83x64xbf16>, vector<64x128xbf16>, vector<83x128xf32> -> vector<83x128xf32>
    %132 = arith.addf %126, %131 : vector<83x128xf32>
    %c0_176 = arith.constant 0 : index
    %c0_177 = arith.constant 0 : index
    %133 = vector.load %arg4[%c0_176, %c0_177] : memref<1x128xf32, #tpu.memory_space<vmem>>, vector<1x128xf32>
    %134 = vector.broadcast %133 : vector<1x128xf32> to vector<83x128xf32>
    %135 = arith.addf %132, %134 : vector<83x128xf32>
    %c0_178 = arith.constant 0 : index
    %c0_179 = arith.constant 0 : index
    %c0_180 = arith.constant 0 : index
    %c0_181 = arith.constant 0 : index
    %136 = vector.load %arg5[%c0_178, %c0_179, %c0_180, %c0_181] : memref<1x1x83x128xf32, #tpu.memory_space<vmem>>, vector<1x1x83x128xf32>
    %137 = vector.shape_cast %136 : vector<1x1x83x128xf32> to vector<83x128xf32>
    %138 = vector.shape_cast %135 : vector<83x128xf32> to vector<1x1x83x128xf32>
    tpu.vector_store %arg5[%c0_178, %c0_179, %c0_180, %c0_181], %138 {strides = array<i32>} : memref<1x1x83x128xf32, #tpu.memory_space<vmem>>, vector<1x1x83x128xf32>,
    return
  }
  func.func @transform_0(%arg0: i32, %arg1: i32) -> (i32, i32, i32, i32) {
    %c0_i32 = arith.constant 0 : i32
    %c0_i32_0 = arith.constant 0 : i32
    %c0_i32_1 = arith.constant 0 : i32
    return %arg0, %arg1, %c0_i32, %c0_i32_0 : i32, i32, i32, i32
  }
  func.func @transform_1(%arg0: i32, %arg1: i32) -> (i32, i32, i32, i32) {
    %c0_i32 = arith.constant 0 : i32
    %c0_i32_0 = arith.constant 0 : i32
    %c0_i32_1 = arith.constant 0 : i32
    %c0_i32_2 = arith.constant 0 : i32
    return %arg1, %c0_i32, %c0_i32_0, %c0_i32_1 : i32, i32, i32, i32
  }
  func.func @transform_2(%arg0: i32, %arg1: i32) -> (i32, i32) {
    %c0_i32 = arith.constant 0 : i32
    %c0_i32_0 = arith.constant 0 : i32
    %c0_i32_1 = arith.constant 0 : i32
    return %c0_i32, %c0_i32_0 : i32, i32
  }
  func.func @transform_3(%arg0: i32, %arg1: i32) -> (i32, i32, i32, i32) {
    %c0_i32 = arith.constant 0 : i32
    %c0_i32_0 = arith.constant 0 : i32
    %c0_i32_1 = arith.constant 0 : i32
    return %arg0, %arg1, %c0_i32, %c0_i32_0 : i32, i32, i32, i32
  }
}

</mosaic_0001>

<bundles_post_ra>
// kernel: conv1d_autoencoder.4
= control target key start
LH: loop header
LB: loop body
LE: loop exit
PB: predicated region body
PF: predicated region fallthrough
CT: control target
= control target key end

     0   :  { %s540_s12 = smov 0   ;;  %s591_s0 = inlined_call_operand.vmem [shape: bf16[2,62,64], index: 0, kind: input, shape index: {}]   ;;  %s592_s1 = inlined_call_operand.vmem [shape: bf16[1,64,64], index: 1, kind: input, shape index: {}]   ;;  %s593_s2 = inlined_call_operand.vmem [shape: f32[1,64], index: 2, kind: input, shape index: {}]   ;;  %s594_s3 = inlined_call_operand.vmem [shape: bf16[2,62,64], index: 3, kind: output, shape index: {}]  }
   0x1 LB: > { %s422_s13 = sadd.s32 4294967295, %s518_s12   ;;  %p426_p0 = scmp.ge.s32.totalorder %s518_s12, 1  ;;  %s518_s12 = sphi %s540_s12, %s13_s12  }
   0x2   : > { %p137_p1 = scmp.lt.s32.totalorder %s518_s12, 3 }
   0x4   : > { %p138_p2 = pnand %p426_p0, %p137_p1 }
   0x5   : > { %v504_v0 = vld [vmem:[%s592_s1] sm:$0xff] (!%p138_p2)   ;;  %p161_p3 = scmp.lt.s32.totalorder (!%p138_p2), %s422_s13, 1  ;;  %v505_v1 = vld [vmem:[%s592_s1 + $0x8] sm:$0xff] (!%p138_p2)   ;;  %v506_v2 = vld [vmem:[%s592_s1 + $0x10] sm:$0xff] (!%p138_p2)   ;;  %vm239_vm0 = vcmask (!%p138_p2), 523264   ;;  %vm357_vm1 = vcmask (!%p138_p2), 519168  }
   0x6   : > { %141 = sbr.rel (%p138_p2) target bundleno = 245 (0xf5), region = 32  ;;  %472 = vmatprep.subr.bf16.mxu0 (!%p138_p2), %v504_v0  ;;  %488 = vmatprep.subr.bf16.mxu1 (!%p138_p2), %v504_v0  ;;  %v507_v5 = vld [vmem:[%s592_s1 + $0x18] sm:$0xff] (!%p138_p2)   ;;  %v431_v8 = vld [vmem:[%s593_s2] ss:$0 sm:$0xff] (!%p138_p2)  ;;  %vm365_vm2 = vcmask (!%p138_p2), 518144  }
   0x7   : > { %473 = vmatpush3.bf16.msra.mxu0 (!%p138_p2), %v504_v0  ;;  %492 = vmatpush3.bf16.msra.mxu1 (!%p138_p2), %v504_v0 }
   0x8   : > { %474 = vmatprep.subr.bf16.mxu0 (!%p138_p2), %v505_v1  ;;  %489 = vmatprep.subr.bf16.mxu1 (!%p138_p2), %v505_v1 }
   0xb   : > { %475 = vmatpush3.bf16.msra.mxu0 (!%p138_p2), %v505_v1  ;;  %493 = vmatpush3.bf16.msra.mxu1 (!%p138_p2), %v505_v1 }
   0xc   : > { %476 = vmatprep.subr.bf16.mxu0 (!%p138_p2), %v506_v2  ;;  %490 = vmatprep.subr.bf16.mxu1 (!%p138_p2), %v506_v2 }
   0xd   : > { %s596_s13 = smov (!%p161_p3, %s422_s13), 1 }
   0xe   : > { %s454_s20 = sshll.u32 %s596_s13, 5 }
   0xf   : > { %s165_s23 = scalar_lea.vmem %s591_s0, %s454_s20  ;;  %477 = vmatpush3.bf16.msra.mxu0 %v506_v2  ;;  %494 = vmatpush3.bf16.msra.mxu1 %v506_v2  ;;  %s170_s30 = scalar_lea.vmem %s594_s3, %s454_s20 }
  0x10   : > { %v508_v3 = vld [vmem:[%s165_s23] sm:$0xff]   ;;  %v509_v4 = vld [vmem:[%s165_s23 + $0x10] sm:$0xff]   ;;  %478 = vmatprep.subr.bf16.mxu0 %v507_v5  ;;  %491 = vmatprep.subr.bf16.mxu1 %v507_v5  ;;  %v510_v6 = vld [vmem:[%s165_s23 + $0x8] sm:$0xff]  }
  0x11   : > { %480 = vmatprep.mubr.msk.bf16.mxu0 %vm239_vm0, %v508_v3  ;;  %484 = vmatprep.mubr.msk.bf16.mxu1 %vm239_vm0, %v509_v4  ;;  %v511_v7 = vld [vmem:[%s165_s23 + $0x18] sm:$0x7f]  }
  0x13   : > { %479 = vmatpush3.bf16.msra.mxu0 %v507_v5  ;;  %495 = vmatpush3.bf16.msra.mxu1 %v507_v5 }
  0x16   : > { %481 = vmatmul.mubr.msk.bf16.vlgmr.msra.gmra.mrb[0].mxu0 %vm239_vm0, %v510_v6  ;;  %485 = vmatmul.mubr.msk.bf16.vlgmr.msra.gmra.mrb[0].mxu1 %vm239_vm0, %v511_v7 }
  0xe9   : > { %v482_v9 = vpop.f32.mrb[0].mxu0  ;;  %v486_v10 = vpop.f32.mrb[0].mxu1 }
  0xea   : > { %v295_v11 = vadd.f32 %v482_v9, %v431_v8  ;;  %v311_v12 = vadd.f32 %v486_v10, %v431_v8  ;;  %v286_v13 = vpop.f32.mrb[1].mxu0  ;;  %v302_v14 = vpop.f32.mrb[1].mxu1 }
  0xeb   : > { %v287_v15 = vadd.f32 %v431_v8, %v286_v13  ;;  %v303_v16 = vadd.f32 %v431_v8, %v302_v14  ;;  %v483_v17 = vpop.f32.mrb[2].mxu0  ;;  %v487_v18 = vpop.f32.mrb[2].mxu1 }
  0xec   : > { %v319_v19 = vmax.f32 %v295_v11, 0.0  ;;  %v323_v20 = vmax.f32 %v311_v12, 0.0  ;;  %v298_v21 = vadd.f32 %v483_v17, %v431_v8  ;;  %v314_v22 = vadd.f32 %v487_v18, %v431_v8  ;;  %v289_v23 = vpop.f32.mrb[3].mxu0  ;;  %v305_v24 = vpop.f32.mrb[3].mxu1 }
  0xed   : > { %v317_v25 = vmax.f32 %v287_v15, 0.0  ;;  %v321_v26 = vmax.f32 %v303_v16, 0.0  ;;  %v290_v27 = vadd.f32 %v431_v8, %v289_v23  ;;  %v306_v28 = vadd.f32 %v431_v8, %v305_v24 }
  0xee   : > { %v458_v29 = vpack.c.bf16 %v319_v19, %v319_v19  ;;  %v462_v30 = vpack.c.bf16 %v323_v20, %v323_v20  ;;  %v320_v31 = vmax.f32 %v298_v21, 0.0  ;;  %v324_v32 = vmax.f32 %v314_v22, 0.0 }
  0xef   : > { %v456_v33 = vpack.c.bf16 %v317_v25, %v317_v25  ;;  %v460_v34 = vpack.c.bf16 %v321_v26, %v321_v26  ;;  %v318_v35 = vmax.f32 %v290_v27, 0.0  ;;  %v322_v36 = vmax.f32 %v306_v28, 0.0 }
  0xf0   : > { %360 = vst.msk [vmem:[%s170_s30 + $0x8] sm:$0xf] %vm357_vm1, %v458_v29  ;;  %364 = vst.msk [vmem:[%s170_s30 + $0x18] sm:$0xf] %vm357_vm1, %v462_v30  ;;  %v459_v37 = vpack.c.bf16 %v320_v31, %v320_v31  ;;  %v463_v38 = vpack.c.bf16 %v324_v32, %v324_v32 }
  0xf1   : > { %358 = vst.msk [vmem:[%s170_s30] sm:$0xf] %vm357_vm1, %v456_v33  ;;  %362 = vst.msk [vmem:[%s170_s30 + $0x10] sm:$0xf] %vm357_vm1, %v460_v34  ;;  %v457_v39 = vpack.c.bf16 %v318_v35, %v318_v35  ;;  %v461_v40 = vpack.c.bf16 %v322_v36, %v322_v36 }
  0xf2   : > { %361 = vst.msk [vmem:[%s170_s30 + $0xc] sm:$0xf] %vm357_vm1, %v459_v37 }
  0xf3   : > { %366 = vst.msk [vmem:[%s170_s30 + $0x1c] sm:$0x7] %vm365_vm2, %v463_v38 }
  0xf4   : > { %359 = vst.msk [vmem:[%s170_s30 + $0x4] sm:$0xf] %vm357_vm1, %v457_v39  ;;  %363 = vst.msk [vmem:[%s170_s30 + $0x14] sm:$0xf] %vm357_vm1, %v461_v40 }
  0xf5 PF: > { %s13_s12 = sadd.s32 1, %s518_s12  }
  0xf6   : > { %p10_p4 = scmp.ge.s32.totalorder %s13_s12, 4  }
  0xf8   :  { %12 = sbr.rel (!%p10_p4) target bundleno = 1 (0x1), region = 62 }

// kernel: conv1d_autoencoder.5
= control target key start
LH: loop header
LB: loop body
LE: loop exit
PB: predicated region body
PF: predicated region fallthrough
CT: control target
= control target key end

     0   :  { %s4653_s12 = smov 0   ;;  %s5843_s0 = inlined_call_operand.vmem [shape: bf16[2,22,192], index: 0, kind: input, shape index: {}]   ;;  %s5844_s1 = inlined_call_operand.vmem [shape: bf16[22,192,128], index: 1, kind: input, shape index: {}]   ;;  %s5845_s2 = inlined_call_operand.vmem [shape: f32[1,128], index: 2, kind: input, shape index: {}]   ;;  %s5846_s3 = inlined_call_operand.vmem [shape: bf16[2,1,128], index: 3, kind: output, shape index: {}]  }
   0x1 LB: > { %s3508_s13 = sadd.s32 4294967295, %s4630_s12   ;;  %p3512_p0 = scmp.ge.s32.totalorder %s4630_s12, 1  ;;  %s4630_s12 = sphi %s4653_s12, %s13_s12  }
   0x2   : > { %p137_p1 = scmp.lt.s32.totalorder %s4630_s12, 3 }
   0x4   : > { %p138_p2 = pnand %p3512_p0, %p137_p1 }
   0x5   : > { %v4338_v0 = vld [vmem:[%s5844_s1 + $0x60] sm:$0xff] (!%p138_p2)   ;;  %v4632_v1 = vmov (!%p138_p2), 0   ;;  %v4340_v3 = vld [vmem:[%s5844_s1 + $0x68] sm:$0xff] (!%p138_p2)   ;;  %v4342_v5 = vld [vmem:[%s5844_s1 + $0x70] sm:$0xff] (!%p138_p2)   ;;  %p159_p3 = scmp.lt.s32.totalorder (!%p138_p2), %s3508_s13, 1  ;;  %vm302_vm0 = vcmask (!%p138_p2), 523264  }
   0x6   : > { %141 = sbr.rel (%p138_p2) target bundleno = 758 (0x2f6), region = 32  ;;  %306 = vmatprep.subr.bf16.mxu0 (!%p138_p2), %v4632_v1  ;;  %421 = vmatprep.subr.bf16.mxu1 (!%p138_p2), %v4632_v1  ;;  %v4339_v2 = vld [vmem:[%s5844_s1] sm:$0xff] (!%p138_p2)   ;;  %v4341_v4 = vld [vmem:[%s5844_s1 + $0x8] sm:$0xff] (!%p138_p2)   ;;  %v4343_v6 = vld [vmem:[%s5844_s1 + $0x10] sm:$0xff] (!%p138_p2)   ;;  %vm3455_vm1 = vcmask (!%p138_p2), 1040384  }
   0x7   : > { %307 = vmatpush1.bf16.msra.mxu0 (!%p138_p2), %v4338_v0  ;;  %422 = vmatpush1.bf16.msra.mxu1 (!%p138_p2), %v4339_v2  ;;  %v4344_v7 = vld [vmem:[%s5844_s1 + $0x78] sm:$0xff] (!%p138_p2)   ;;  %v4346_v9 = vld [vmem:[%s5844_s1 + $0x80] sm:$0xff] (!%p138_p2)   ;;  %v4348_v11 = vld [vmem:[%s5844_s1 + $0x88] sm:$0xff] (!%p138_p2)   ;;  %vm3456_vm2 = vsmask.f32 (!%p138_p2), 256 }
   0x8   : > { %308 = vmatprep.subr.bf16.mxu0 (!%p138_p2), %v4632_v1  ;;  %423 = vmatprep.subr.bf16.mxu1 (!%p138_p2), %v4632_v1  ;;  %v4345_v8 = vld [vmem:[%s5844_s1 + $0x18] sm:$0xff] (!%p138_p2)   ;;  %v4347_v10 = vld [vmem:[%s5844_s1 + $0x20] sm:$0xff] (!%p138_p2)   ;;  %v4349_v12 = vld [vmem:[%s5844_s1 + $0x28] sm:$0xff] (!%p138_p2)  }
   0x9   : > { %v4350_v13 = vld [vmem:[%s5844_s1 + $0x90] sm:$0xff] (!%p138_p2)   ;;  %v4352_v17 = vld [vmem:[%s5844_s1 + $0x98] sm:$0xff] (!%p138_p2)   ;;  %v4354_v20 = vld [vmem:[%s5844_s1 + $0xa0] sm:$0xff] (!%p138_p2)  }
   0xa   : > { %v4351_v14 = vld [vmem:[%s5844_s1 + $0x30] sm:$0xff] (!%p138_p2)   ;;  %v4353_v18 = vld [vmem:[%s5844_s1 + $0x38] sm:$0xff] (!%p138_p2)   ;;  %v4355_v21 = vld [vmem:[%s5844_s1 + $0x40] sm:$0xff] (!%p138_p2)  }
   0xb   : > { %309 = vmatpush1.bf16.msra.mxu0 (!%p138_p2), %v4340_v3  ;;  %424 = vmatpush1.bf16.msra.mxu1 (!%p138_p2), %v4341_v4  ;;  %v4356_v22 = vld [vmem:[%s5844_s1 + $0xa8] sm:$0xff] (!%p138_p2)   ;;  %v4358_v24 = vld [vmem:[%s5844_s1 + $0xb0] sm:$0xff] (!%p138_p2)   ;;  %v4360_v27 = vld [vmem:[%s5844_s1 + $0xb8] sm:$0xff] (!%p138_p2)  }
   0xc   : > { %310 = vmatprep.subr.bf16.mxu0 (!%p138_p2), %v4632_v1  ;;  %425 = vmatprep.subr.bf16.mxu1 (!%p138_p2), %v4632_v1  ;;  %v4357_v23 = vld [vmem:[%s5844_s1 + $0x48] sm:$0xff] (!%p138_p2)   ;;  %v4359_v25 = vld [vmem:[%s5844_s1 + $0x50] sm:$0xff] (!%p138_p2)   ;;  %v4361_v28 = vld [vmem:[%s5844_s1 + $0x58] sm:$0xff] (!%p138_p2)  }
   0xd   : > { %s5848_s13 = smov (!%p159_p3, %s3508_s13), 1  ;;  %v4364_v30 = vld [vmem:[%s5844_s1 + $0xc0] sm:$0xff]   ;;  %v4366_v34 = vld [vmem:[%s5844_s1 + $0xc8] sm:$0xff]   ;;  %v4368_v38 = vld [vmem:[%s5844_s1 + $0xd0] sm:$0xff]  }
   0xe   : > { %s4328_s7 = smul.u32 24, %s5848_s13  ;;  %v4365_v31 = vld [vmem:[%s5844_s1 + $0x120] sm:$0xff]   ;;  %v4367_v35 = vld [vmem:[%s5844_s1 + $0x128] sm:$0xff]   ;;  %v4369_v40 = vld [vmem:[%s5844_s1 + $0x130] sm:$0xff]   ;;  %s166_s18 = scalar_lea.vmem %s5846_s3, %s5848_s13 }
   0xf   : > { %311 = vmatpush1.bf16.msra.mxu0 %v4342_v5  ;;  %426 = vmatpush1.bf16.msra.mxu1 %v4343_v6  ;;  %v4370_v41 = vld [vmem:[%s5844_s1 + $0xd8] sm:$0xff]   ;;  %v4372_v43 = vld [vmem:[%s5844_s1 + $0xe0] sm:$0xff]   ;;  %v4374_v45 = vld [vmem:[%s5844_s1 + $0xe8] sm:$0xff]  }
  0x10   : > { %312 = vmatprep.subr.bf16.mxu0 %v4632_v1  ;;  %427 = vmatprep.subr.bf16.mxu1 %v4632_v1  ;;  %s4715_s16 = scalar_lea.vmem %s5843_s0, %s4328_s7  ;;  %v4371_v42 = vld [vmem:[%s5844_s1 + $0x138] sm:$0xff]   ;;  %v4373_v44 = vld [vmem:[%s5844_s1 + $0x140] sm:$0xff]   ;;  %v4375_v46 = vld [vmem:[%s5844_s1 + $0x148] sm:$0xff]  }
  0x11   : > { %v168_v15 = vld [vmem:[%s4715_s16] sm:$0x11]  ;;  %v4777_v32 = vld [vmem:[%s4715_s16] sm:$0x22]  ;;  %v4376_v47 = vld [vmem:[%s5844_s1 + $0xf0] sm:$0xff]  }
  0x12   : > { %v3539_v16 = vcombine.high %v168_v15, %v168_v15  ;;  %v3538_v26 = vcombine.low %v168_v15, %v168_v15  ;;  %v3591_v33 = vcombine.high %v4777_v32, %v4777_v32  ;;  %v4377_v48 = vld [vmem:[%s5844_s1 + $0x150] sm:$0xff]   ;;  %v4378_v49 = vld [vmem:[%s5844_s1 + $0xf8] sm:$0xff]   ;;  %v4380_v51 = vld [vmem:[%s5844_s1 + $0x100] sm:$0xff]   ;;  %v3590_v56 = vcombine.low %v4777_v32, %v4777_v32 }
  0x13   : > { %313 = vmatpush1.bf16.msra.mxu0 %v4344_v7  ;;  %428 = vmatpush1.bf16.msra.mxu1 %v4345_v8  ;;  %v4379_v50 = vld [vmem:[%s5844_s1 + $0x158] sm:$0xff]   ;;  %v4381_v52 = vld [vmem:[%s5844_s1 + $0x160] sm:$0xff]   ;;  %v4382_v53 = vld [vmem:[%s5844_s1 + $0x108] sm:$0xff]  }
  0x14   : > { %314 = vmatprep.subr.bf16.mxu0 %v4632_v1  ;;  %429 = vmatprep.subr.bf16.mxu1 %v4632_v1  ;;  %v227_v19 = vshrl.u32 %v3539_v16, 16  ;;  %v224_v29 = vshrl.u32 %v3538_v26, 16  ;;  %v493_v36 = vrot.slane %v3591_v33, 1  ;;  %v641_v37 = vshrl.u32 %v3591_v33, 16  ;;  %v4383_v54 = vld [vmem:[%s5844_s1 + $0x168] sm:$0xff]   ;;  %v4384_v55 = vld [vmem:[%s5844_s1 + $0x110] sm:$0xff]   ;;  %vm3457_vm3 = vmand %vm3455_vm1, %vm3456_vm2 }
  0x15   : > { %3565 = vmatprep.mubr.msk.bf16.mxu1 %vm302_vm0, %v3539_v16  ;;  %v4861_v57 = vld [vmem:[%s4715_s16] sm:$0x44]  ;;  %v4385_v58 = vld [vmem:[%s5844_s1 + $0x170] sm:$0xff]   ;;  %v4386_v60 = vld [vmem:[%s5844_s1 + $0x118] sm:$0xff]   ;;  %v637_v61 = vshrl.u32 %v3590_v56, 16  ;;  %v492_v63 = vrot.slane %v3590_v56, 1 }
  0x16   : > { %3552 = vmatprep.mubr.msk.bf16.mxu0 %vm302_vm0, %v227_v19  ;;  %v643_v39 = vrot.slane %v641_v37, 1  ;;  %v3667_v59 = vcombine.high %v4861_v57, %v4861_v57  ;;  %v4387_v62 = vld [vmem:[%s5844_s1 + $0x178] sm:$0xff]   ;;  %v4390_v3 = vld [vmem:[%s5844_s1 + $0x180] sm:$0xff]   ;;  %v4392_v7 = vld [vmem:[%s5844_s1 + $0x188] sm:$0xff]  }
  0x17   : > { %315 = vmatpush1.bf16.msra.mxu0 %v4346_v9  ;;  %430 = vmatpush1.bf16.msra.mxu1 %v4347_v10  ;;  %v639_v2 = vrot.slane %v637_v61, 1  ;;  %v4391_v4 = vld [vmem:[%s5844_s1 + $0x1e0] sm:$0xff]   ;;  %v4393_v8 = vld [vmem:[%s5844_s1 + $0x1e8] sm:$0xff]   ;;  %v4394_v9 = vld [vmem:[%s5844_s1 + $0x190] sm:$0xff]  }
  0x18   : > { %316 = vmatprep.subr.bf16.mxu0 %v4632_v1  ;;  %431 = vmatprep.subr.bf16.mxu1 %v4632_v1  ;;  %v941_v0 = vshrl.u32 %v3667_v59, 16  ;;  %v793_v5 = vrot.slane %v3667_v59, 2  ;;  %v4395_v10 = vld [vmem:[%s5844_s1 + $0x1f0] sm:$0xff]   ;;  %v4400_v15 = vld [vmem:[%s5844_s1 + $0x1a8] sm:$0xff]   ;;  %v4404_v19 = vld [vmem:[%s5844_s1 + $0x1b8] sm:$0xff]  }
  0x19   : > { %v4401_v16 = vld [vmem:[%s5844_s1 + $0x208] sm:$0xff]   ;;  %v4436_v59 = vld [vmem:[%s5844_s1 + $0x290] sm:$0xff]   ;;  %v4438_v61 = vld [vmem:[%s5844_s1 + $0x298] sm:$0xff]  }
  0x1a   : > { %v943_v6 = vrot.slane %v941_v0, 2  ;;  %v4434_v56 = vld [vmem:[%s5844_s1 + $0x288] sm:$0xff]  }
  0x1b   : > { %317 = vmatpush1.bf16.msra.mxu0 %v4348_v11  ;;  %432 = vmatpush1.bf16.msra.mxu1 %v4349_v12  ;;  %v4396_v11 = vld [vmem:[%s5844_s1 + $0x198] sm:$0xff]   ;;  %v5082_v0 = vld [vmem:[%s4715_s16 + $0x8] sm:$0x11] }
  0x1c   : > { %318 = vmatprep.subr.bf16.mxu0 %v4632_v1  ;;  %433 = vmatprep.subr.bf16.mxu1 %v4632_v1  ;;  %v4397_v12 = vld [vmem:[%s5844_s1 + $0x1f8] sm:$0xff]  }
  0x1f   : > { %319 = vmatpush1.bf16.msra.mxu0 %v4350_v13  ;;  %434 = vmatpush1.bf16.msra.mxu1 %v4351_v14  ;;  %v4398_v13 = vld [vmem:[%s5844_s1 + $0x1a0] sm:$0xff]  }
  0x20   : > { %320 = vmatprep.subr.bf16.mxu0 %v4632_v1  ;;  %435 = vmatprep.subr.bf16.mxu1 %v4632_v1  ;;  %v4399_v14 = vld [vmem:[%s5844_s1 + $0x200] sm:$0xff]  }
  0x23   : > { %321 = vmatpush1.bf16.msra.mxu0 %v4352_v17  ;;  %436 = vmatpush1.bf16.msra.mxu1 %v4353_v18  ;;  %v4402_v17 = vld [vmem:[%s5844_s1 + $0x1b0] sm:$0xff]  }
  0x24   : > { %322 = vmatprep.subr.bf16.mxu0 %v4632_v1  ;;  %437 = vmatprep.subr.bf16.mxu1 %v4632_v1  ;;  %v4403_v18 = vld [vmem:[%s5844_s1 + $0x210] sm:$0xff]  }
  0x27   : > { %323 = vmatpush1.bf16.msra.mxu0 %v4354_v20  ;;  %438 = vmatpush1.bf16.msra.mxu1 %v4355_v21  ;;  %v4405_v20 = vld [vmem:[%s5844_s1 + $0x218] sm:$0xff]   ;;  %v4406_v21 = vld [vmem:[%s5844_s1 + $0x1c0] sm:$0xff]  }
  0x28   : > { %324 = vmatprep.subr.bf16.mxu0 %v4632_v1  ;;  %439 = vmatprep.subr.bf16.mxu1 %v4632_v1 }
  0x2b   : > { %325 = vmatpush1.bf16.msra.mxu0 %v4356_v22  ;;  %440 = vmatpush1.bf16.msra.mxu1 %v4357_v23  ;;  %v4407_v22 = vld [vmem:[%s5844_s1 + $0x220] sm:$0xff]   ;;  %v4408_v23 = vld [vmem:[%s5844_s1 + $0x1c8] sm:$0xff]  }
  0x2c   : > { %326 = vmatprep.subr.bf16.mxu0 %v4632_v1  ;;  %441 = vmatprep.subr.bf16.mxu1 %v4632_v1 }
  0x2f   : > { %327 = vmatpush1.bf16.msra.mxu0 %v4358_v24  ;;  %442 = vmatpush1.bf16.msra.mxu1 %v4359_v25  ;;  %v4409_v24 = vld [vmem:[%s5844_s1 + $0x228] sm:$0xff]   ;;  %v4410_v25 = vld [vmem:[%s5844_s1 + $0x1d0] sm:$0xff]  }
  0x30   : > { %328 = vmatprep.subr.bf16.mxu0 %v4632_v1  ;;  %443 = vmatprep.subr.bf16.mxu1 %v4632_v1 }
  0x33   : > { %329 = vmatpush1.bf16.msra.mxu0 %v4360_v27  ;;  %444 = vmatpush1.bf16.msra.mxu1 %v4361_v28  ;;  %v4966_v27 = vld [vmem:[%s4715_s16] sm:$0x88]  ;;  %v4411_v28 = vld [vmem:[%s5844_s1 + $0x230] sm:$0xff]  }
  0x34   : > { %570 = vmatprep.subr.bf16.mxu0 %v4632_v1  ;;  %720 = vmatprep.subr.bf16.mxu1 %v4632_v1  ;;  %v3743_v32 = vcombine.high %v4966_v27, %v4966_v27 }
  0x36   : > { %339 = vmatmul.mubr.bf16.vlgmr.msra.gmra.mrb[0].mxu0 %v224_v29  ;;  %454 = vmatmul.mubr.bf16.vlgmr.msra.gmra.mrb[0].mxu1 %v3538_v26  ;;  %v3666_v26 = vcombine.low %v4861_v57, %v4861_v57  ;;  %v4412_v29 = vld [vmem:[%s5844_s1 + $0x1d8] sm:$0xff]   ;;  %v1241_v37 = vshrl.u32 %v3743_v32, 16  ;;  %v4435_v57 = vld [vmem:[%s5844_s1 + $0x2e8] sm:$0xff]  }
  0x37   : > { %571 = vmatpush1.bf16.msra.mxu0 %v4364_v30  ;;  %721 = vmatpush1.bf16.msra.mxu1 %v4365_v31  ;;  %v4413_v30 = vld [vmem:[%s5844_s1 + $0x238] sm:$0xff]  }
  0x38   : > { %572 = vmatprep.subr.bf16.mxu0 %v4632_v1  ;;  %722 = vmatprep.subr.bf16.mxu1 %v4632_v1  ;;  %v937_v31 = vshrl.u32 %v3666_v26, 16  ;;  %v792_v33 = vrot.slane %v3666_v26, 2  ;;  %v4462_v26 = vld [vmem:[%s5844_s1 + $0x350] sm:$0xff]  }
  0x39   : > { %3604 = vmatprep.mubr.msk.bf16.mxu0 %vm302_vm0, %v493_v36  ;;  %3641 = vmatprep.mubr.msk.bf16.mxu1 %vm302_vm0, %v643_v39  ;;  %v4417_v36 = vld [vmem:[%s5844_s1 + $0x2a0] sm:$0xff]   ;;  %v1093_v39 = vrot.slane %v3743_v32, 3 }
  0x3b   : > { %573 = vmatpush1.bf16.msra.mxu0 %v4366_v34  ;;  %723 = vmatpush1.bf16.msra.mxu1 %v4367_v35  ;;  %v4416_v34 = vld [vmem:[%s5844_s1 + $0x240] sm:$0xff]   ;;  %v939_v35 = vrot.slane %v937_v31, 2  ;;  %v3818_v31 = vcombine.low %v5082_v0, %v5082_v0 }
  0x3c   : > { %574 = vmatprep.subr.bf16.mxu0 %v4632_v1  ;;  %724 = vmatprep.subr.bf16.mxu1 %v4632_v1 }
  0x3f   : > { %575 = vmatpush1.bf16.msra.mxu0 %v4368_v38  ;;  %725 = vmatpush1.bf16.msra.mxu1 %v4369_v40  ;;  %v4418_v38 = vld [vmem:[%s5844_s1 + $0x248] sm:$0xff]  }
  0x40   : > { %576 = vmatprep.subr.bf16.mxu0 %v4632_v1  ;;  %726 = vmatprep.subr.bf16.mxu1 %v4632_v1  ;;  %v4419_v40 = vld [vmem:[%s5844_s1 + $0x2a8] sm:$0xff]  }
  0x43   : > { %577 = vmatpush1.bf16.msra.mxu0 %v4370_v41  ;;  %727 = vmatpush1.bf16.msra.mxu1 %v4371_v42  ;;  %v1243_v41 = vrot.slane %v1241_v37, 3  ;;  %v4420_v42 = vld [vmem:[%s5844_s1 + $0x250] sm:$0xff]   ;;  %v4470_v37 = vld [vmem:[%s5844_s1 + $0x3c8] sm:$0xff]  }
  0x44   : > { %578 = vmatprep.subr.bf16.mxu0 %v4632_v1  ;;  %728 = vmatprep.subr.bf16.mxu1 %v4632_v1 }
  0x47   : > { %579 = vmatpush1.bf16.msra.mxu0 %v4372_v43  ;;  %729 = vmatpush1.bf16.msra.mxu1 %v4373_v44  ;;  %v4421_v43 = vld [vmem:[%s5844_s1 + $0x2b0] sm:$0xff]   ;;  %v4422_v44 = vld [vmem:[%s5844_s1 + $0x258] sm:$0xff]  }
  0x48   : > { %580 = vmatprep.subr.bf16.mxu0 %v4632_v1  ;;  %730 = vmatprep.subr.bf16.mxu1 %v4632_v1 }
  0x4b   : > { %581 = vmatpush1.bf16.msra.mxu0 %v4374_v45  ;;  %731 = vmatpush1.bf16.msra.mxu1 %v4375_v46  ;;  %v4423_v45 = vld [vmem:[%s5844_s1 + $0x2b8] sm:$0xff]   ;;  %v4424_v46 = vld [vmem:[%s5844_s1 + $0x260] sm:$0xff]  }
  0x4c   : > { %582 = vmatprep.subr.bf16.mxu0 %v4632_v1  ;;  %732 = vmatprep.subr.bf16.mxu1 %v4632_v1 }
  0x4f   : > { %583 = vmatpush1.bf16.msra.mxu0 %v4376_v47  ;;  %733 = vmatpush1.bf16.msra.mxu1 %v4377_v48  ;;  %v4425_v47 = vld [vmem:[%s5844_s1 + $0x2c0] sm:$0xff]   ;;  %v4426_v48 = vld [vmem:[%s5844_s1 + $0x268] sm:$0xff]  }
  0x50   : > { %584 = vmatprep.subr.bf16.mxu0 %v4632_v1  ;;  %734 = vmatprep.subr.bf16.mxu1 %v4632_v1 }
  0x53   : > { %585 = vmatpush1.bf16.msra.mxu0 %v4378_v49  ;;  %735 = vmatpush1.bf16.msra.mxu1 %v4379_v50  ;;  %v4427_v49 = vld [vmem:[%s5844_s1 + $0x2c8] sm:$0xff]   ;;  %v4428_v50 = vld [vmem:[%s5844_s1 + $0x270] sm:$0xff]  }
  0x54   : > { %586 = vmatprep.subr.bf16.mxu0 %v4632_v1  ;;  %736 = vmatprep.subr.bf16.mxu1 %v4632_v1 }
  0x57   : > { %587 = vmatpush1.bf16.msra.mxu0 %v4380_v51  ;;  %737 = vmatpush1.bf16.msra.mxu1 %v4381_v52  ;;  %v4429_v51 = vld [vmem:[%s5844_s1 + $0x2d0] sm:$0xff]   ;;  %v4430_v52 = vld [vmem:[%s5844_s1 + $0x278] sm:$0xff]  }
  0x58   : > { %588 = vmatprep.subr.bf16.mxu0 %v4632_v1  ;;  %738 = vmatprep.subr.bf16.mxu1 %v4632_v1 }
  0x5b   : > { %589 = vmatpush1.bf16.msra.mxu0 %v4382_v53  ;;  %739 = vmatpush1.bf16.msra.mxu1 %v4383_v54  ;;  %v4431_v53 = vld [vmem:[%s5844_s1 + $0x2d8] sm:$0xff]   ;;  %v4432_v54 = vld [vmem:[%s5844_s1 + $0x280] sm:$0xff]  }
  0x5c   : > { %590 = vmatprep.subr.bf16.mxu0 %v4632_v1  ;;  %740 = vmatprep.subr.bf16.mxu1 %v4632_v1 }
  0x5f   : > { %591 = vmatpush1.bf16.msra.mxu0 %v4384_v55  ;;  %741 = vmatpush1.bf16.msra.mxu1 %v4385_v58  ;;  %v4433_v55 = vld [vmem:[%s5844_s1 + $0x2e0] sm:$0xff]   ;;  %v3742_v58 = vcombine.low %v4966_v27, %v4966_v27  ;;  %v4463_v27 = vld [vmem:[%s5844_s1 + $0x3b0] sm:$0xff]  }
  0x60   : > { %592 = vmatprep.subr.bf16.mxu0 %v4632_v1  ;;  %742 = vmatprep.subr.bf16.mxu1 %v4632_v1 }
  0x63   : > { %593 = vmatpush1.bf16.msra.mxu0 %v4386_v60  ;;  %743 = vmatpush1.bf16.msra.mxu1 %v4387_v62  ;;  %v4437_v60 = vld [vmem:[%s5844_s1 + $0x2f0] sm:$0xff]   ;;  %v1237_v62 = vshrl.u32 %v3742_v58, 16 }
  0x64   : > { %870 = vmatprep.subr.bf16.mxu0 %v4632_v1  ;;  %1020 = vmatprep.subr.bf16.mxu1 %v4632_v1 }
  0x66   : > { %603 = vmatmul.mubr.bf16.vlgmr.msra.gmra.mrb[4].mxu0 %v492_v63  ;;  %753 = vmatmul.mubr.bf16.vlgmr.msra.gmra.mrb[4].mxu1 %v639_v2  ;;  %v4439_v63 = vld [vmem:[%s5844_s1 + $0x2f8] sm:$0xff]   ;;  %v4442_v2 = vld [vmem:[%s5844_s1 + $0x300] sm:$0xff]  }
  0x67   : > { %871 = vmatpush1.bf16.msra.mxu0 %v4390_v3  ;;  %1021 = vmatpush1.bf16.msra.mxu1 %v4391_v4  ;;  %v1092_v3 = vrot.slane %v3742_v58, 3  ;;  %v1239_v4 = vrot.slane %v1237_v62, 3  ;;  %v4481_v58 = vld [vmem:[%s5844_s1 + $0x450] sm:$0xff]   ;;  %v4484_v62 = vld [vmem:[%s5844_s1 + $0x400] sm:$0xff]  }
  0x68   : > { %872 = vmatprep.subr.bf16.mxu0 %v4632_v1  ;;  %1022 = vmatprep.subr.bf16.mxu1 %v4632_v1 }
  0x69   : > { %3680 = vmatprep.mubr.msk.bf16.mxu0 %vm302_vm0, %v793_v5  ;;  %3717 = vmatprep.mubr.msk.bf16.mxu1 %vm302_vm0, %v943_v6  ;;  %v4443_v5 = vld [vmem:[%s5844_s1 + $0x360] sm:$0xff]   ;;  %v3819_v6 = vcombine.high %v5082_v0, %v5082_v0  ;;  %v4486_v0 = vld [vmem:[%s5844_s1 + $0x408] sm:$0xff]  }
  0x6b   : > { %873 = vmatpush1.bf16.msra.mxu0 %v4392_v7  ;;  %1023 = vmatpush1.bf16.msra.mxu1 %v4393_v8  ;;  %v4444_v7 = vld [vmem:[%s5844_s1 + $0x308] sm:$0xff]  }
  0x6c   : > { %874 = vmatprep.subr.bf16.mxu0 %v4632_v1  ;;  %1024 = vmatprep.subr.bf16.mxu1 %v4632_v1  ;;  %v4445_v8 = vld [vmem:[%s5844_s1 + $0x368] sm:$0xff]  }
  0x6f   : > { %875 = vmatpush1.bf16.msra.mxu0 %v4394_v9  ;;  %1025 = vmatpush1.bf16.msra.mxu1 %v4395_v10  ;;  %v1537_v9 = vshrl.u32 %v3819_v6, 16  ;;  %v4446_v10 = vld [vmem:[%s5844_s1 + $0x310] sm:$0xff]  }
  0x70   : > { %876 = vmatprep.subr.bf16.mxu0 %v4632_v1  ;;  %1026 = vmatprep.subr.bf16.mxu1 %v4632_v1 }
  0x73   : > { %877 = vmatpush1.bf16.msra.mxu0 %v4396_v11  ;;  %1027 = vmatpush1.bf16.msra.mxu1 %v4397_v12  ;;  %v4447_v11 = vld [vmem:[%s5844_s1 + $0x370] sm:$0xff]   ;;  %v4448_v12 = vld [vmem:[%s5844_s1 + $0x318] sm:$0xff]  }
  0x74   : > { %878 = vmatprep.subr.bf16.mxu0 %v4632_v1  ;;  %1028 = vmatprep.subr.bf16.mxu1 %v4632_v1 }
  0x77   : > { %879 = vmatpush1.bf16.msra.mxu0 %v4398_v13  ;;  %1029 = vmatpush1.bf16.msra.mxu1 %v4399_v14  ;;  %v4449_v13 = vld [vmem:[%s5844_s1 + $0x378] sm:$0xff]   ;;  %v4450_v14 = vld [vmem:[%s5844_s1 + $0x320] sm:$0xff]  }
  0x78   : > { %880 = vmatprep.subr.bf16.mxu0 %v4632_v1  ;;  %1030 = vmatprep.subr.bf16.mxu1 %v4632_v1 }
  0x7b   : > { %881 = vmatpush1.bf16.msra.mxu0 %v4400_v15  ;;  %1031 = vmatpush1.bf16.msra.mxu1 %v4401_v16  ;;  %v4451_v15 = vld [vmem:[%s5844_s1 + $0x380] sm:$0xff]   ;;  %v4452_v16 = vld [vmem:[%s5844_s1 + $0x328] sm:$0xff]  }
  0x7c   : > { %882 = vmatprep.subr.bf16.mxu0 %v4632_v1  ;;  %1032 = vmatprep.subr.bf16.mxu1 %v4632_v1 }
  0x7f   : > { %883 = vmatpush1.bf16.msra.mxu0 %v4402_v17  ;;  %1033 = vmatpush1.bf16.msra.mxu1 %v4403_v18  ;;  %v4453_v17 = vld [vmem:[%s5844_s1 + $0x388] sm:$0xff]   ;;  %v4454_v18 = vld [vmem:[%s5844_s1 + $0x330] sm:$0xff]  }
  0x80   : > { %884 = vmatprep.subr.bf16.mxu0 %v4632_v1  ;;  %1034 = vmatprep.subr.bf16.mxu1 %v4632_v1 }
  0x83   : > { %885 = vmatpush1.bf16.msra.mxu0 %v4404_v19  ;;  %1035 = vmatpush1.bf16.msra.mxu1 %v4405_v20  ;;  %v4455_v19 = vld [vmem:[%s5844_s1 + $0x390] sm:$0xff]   ;;  %v4456_v20 = vld [vmem:[%s5844_s1 + $0x338] sm:$0xff]  }
  0x84   : > { %886 = vmatprep.subr.bf16.mxu0 %v4632_v1  ;;  %1036 = vmatprep.subr.bf16.mxu1 %v4632_v1 }
  0x87   : > { %887 = vmatpush1.bf16.msra.mxu0 %v4406_v21  ;;  %1037 = vmatpush1.bf16.msra.mxu1 %v4407_v22  ;;  %v4457_v21 = vld [vmem:[%s5844_s1 + $0x398] sm:$0xff]   ;;  %v4458_v22 = vld [vmem:[%s5844_s1 + $0x340] sm:$0xff]  }
  0x88   : > { %888 = vmatprep.subr.bf16.mxu0 %v4632_v1  ;;  %1038 = vmatprep.subr.bf16.mxu1 %v4632_v1 }
  0x8b   : > { %889 = vmatpush1.bf16.msra.mxu0 %v4408_v23  ;;  %1039 = vmatpush1.bf16.msra.mxu1 %v4409_v24  ;;  %v4459_v23 = vld [vmem:[%s5844_s1 + $0x3a0] sm:$0xff]   ;;  %v4460_v24 = vld [vmem:[%s5844_s1 + $0x348] sm:$0xff]  }
  0x8c   : > { %890 = vmatprep.subr.bf16.mxu0 %v4632_v1  ;;  %1040 = vmatprep.subr.bf16.mxu1 %v4632_v1 }
  0x8f   : > { %891 = vmatpush1.bf16.msra.mxu0 %v4410_v25  ;;  %1041 = vmatpush1.bf16.msra.mxu1 %v4411_v28  ;;  %v4461_v25 = vld [vmem:[%s5844_s1 + $0x3a8] sm:$0xff]  }
  0x90   : > { %892 = vmatprep.subr.bf16.mxu0 %v4632_v1  ;;  %1042 = vmatprep.subr.bf16.mxu1 %v4632_v1  ;;  %v5177_v28 = vld [vmem:[%s4715_s16 + $0x8] sm:$0x22] }
  0x91   : > { %v3895_v32 = vcombine.high %v5177_v28, %v5177_v28 }
  0x93   : > { %893 = vmatpush1.bf16.msra.mxu0 %v4412_v29  ;;  %1043 = vmatpush1.bf16.msra.mxu1 %v4413_v30  ;;  %v4464_v29 = vld [vmem:[%s5844_s1 + $0x358] sm:$0xff]  }
  0x94   : > { %1170 = vmatprep.subr.bf16.mxu0 %v4632_v1  ;;  %1320 = vmatprep.subr.bf16.mxu1 %v4632_v1  ;;  %v4465_v30 = vld [vmem:[%s5844_s1 + $0x3b8] sm:$0xff]  }
  0x96   : > { %903 = vmatmul.mubr.bf16.vlgmr.msra.gmra.mrb[8].mxu0 %v792_v33  ;;  %1053 = vmatmul.mubr.bf16.vlgmr.msra.gmra.mrb[8].mxu1 %v939_v35  ;;  %v4468_v33 = vld [vmem:[%s5844_s1 + $0x3c0] sm:$0xff]  }
  0x97   : > { %1171 = vmatpush1.bf16.msra.mxu0 %v4416_v34  ;;  %1321 = vmatpush1.bf16.msra.mxu1 %v4417_v36  ;;  %v1535_v34 = vshrl.u32 %v3818_v31, 16  ;;  %v4469_v35 = vld [vmem:[%s5844_s1 + $0x420] sm:$0xff]   ;;  %v1836_v36 = vshrl.u32 %v3895_v32, 16 }
  0x98   : > { %1172 = vmatprep.subr.bf16.mxu0 %v4632_v1  ;;  %1322 = vmatprep.subr.bf16.mxu1 %v4632_v1 }
  0x99   : > { %3756 = vmatprep.mubr.msk.bf16.mxu0 %vm302_vm0, %v1093_v39  ;;  %3793 = vmatprep.mubr.msk.bf16.mxu1 %vm302_vm0, %v1243_v41  ;;  %v4471_v39 = vld [vmem:[%s5844_s1 + $0x428] sm:$0xff]   ;;  %v4472_v41 = vld [vmem:[%s5844_s1 + $0x3d0] sm:$0xff]  }
  0x9b   : > { %1173 = vmatpush1.bf16.msra.mxu0 %v4418_v38  ;;  %1323 = vmatpush1.bf16.msra.mxu1 %v4419_v40  ;;  %v1688_v38 = vrot.slane %v3895_v32, 1  ;;  %v1838_v40 = vrot.slane %v1836_v36, 1 }
  0x9c   : > { %1174 = vmatprep.subr.bf16.mxu0 %v4632_v1  ;;  %1324 = vmatprep.subr.bf16.mxu1 %v4632_v1 }
  0x9f   : > { %1175 = vmatpush1.bf16.msra.mxu0 %v4420_v42  ;;  %1325 = vmatpush1.bf16.msra.mxu1 %v4421_v43  ;;  %v4473_v42 = vld [vmem:[%s5844_s1 + $0x430] sm:$0xff]   ;;  %v4474_v43 = vld [vmem:[%s5844_s1 + $0x3d8] sm:$0xff]  }
  0xa0   : > { %1176 = vmatprep.subr.bf16.mxu0 %v4632_v1  ;;  %1326 = vmatprep.subr.bf16.mxu1 %v4632_v1 }
  0xa3   : > { %1177 = vmatpush1.bf16.msra.mxu0 %v4422_v44  ;;  %1327 = vmatpush1.bf16.msra.mxu1 %v4423_v45  ;;  %v4475_v44 = vld [vmem:[%s5844_s1 + $0x438] sm:$0xff]   ;;  %v4476_v45 = vld [vmem:[%s5844_s1 + $0x3e0] sm:$0xff]  }
  0xa4   : > { %1178 = vmatprep.subr.bf16.mxu0 %v4632_v1  ;;  %1328 = vmatprep.subr.bf16.mxu1 %v4632_v1 }
  0xa7   : > { %1179 = vmatpush1.bf16.msra.mxu0 %v4424_v46  ;;  %1329 = vmatpush1.bf16.msra.mxu1 %v4425_v47  ;;  %v4477_v46 = vld [vmem:[%s5844_s1 + $0x440] sm:$0xff]   ;;  %v4478_v47 = vld [vmem:[%s5844_s1 + $0x3e8] sm:$0xff]  }
  0xa8   : > { %1180 = vmatprep.subr.bf16.mxu0 %v4632_v1  ;;  %1330 = vmatprep.subr.bf16.mxu1 %v4632_v1 }
  0xab   : > { %1181 = vmatpush1.bf16.msra.mxu0 %v4426_v48  ;;  %1331 = vmatpush1.bf16.msra.mxu1 %v4427_v49  ;;  %v4479_v48 = vld [vmem:[%s5844_s1 + $0x448] sm:$0xff]  }
  0xac   : > { %1182 = vmatprep.subr.bf16.mxu0 %v4632_v1  ;;  %1332 = vmatprep.subr.bf16.mxu1 %v4632_v1 }
  0xaf   : > { %1183 = vmatpush1.bf16.msra.mxu0 %v4428_v50  ;;  %1333 = vmatpush1.bf16.msra.mxu1 %v4429_v51 }
  0xb0   : > { %1184 = vmatprep.subr.bf16.mxu0 %v4632_v1  ;;  %1334 = vmatprep.subr.bf16.mxu1 %v4632_v1 }
  0xb3   : > { %1185 = vmatpush1.bf16.msra.mxu0 %v4430_v52  ;;  %1335 = vmatpush1.bf16.msra.mxu1 %v4431_v53 }
  0xb4   : > { %1186 = vmatprep.subr.bf16.mxu0 %v4632_v1  ;;  %1336 = vmatprep.subr.bf16.mxu1 %v4632_v1 }
  0xb7   : > { %1187 = vmatpush1.bf16.msra.mxu0 %v4432_v54  ;;  %1337 = vmatpush1.bf16.msra.mxu1 %v4433_v55  ;;  %v4480_v55 = vld [vmem:[%s5844_s1 + $0x3f0] sm:$0xff]  }
  0xb8   : > { %1188 = vmatprep.subr.bf16.mxu0 %v4632_v1  ;;  %1338 = vmatprep.subr.bf16.mxu1 %v4632_v1 }
  0xbb   : > { %1189 = vmatpush1.bf16.msra.mxu0 %v4434_v56  ;;  %1339 = vmatpush1.bf16.msra.mxu1 %v4435_v57 }
  0xbc   : > { %1190 = vmatprep.subr.bf16.mxu0 %v4632_v1  ;;  %1340 = vmatprep.subr.bf16.mxu1 %v4632_v1 }
  0xbf   : > { %1191 = vmatpush1.bf16.msra.mxu0 %v4436_v59  ;;  %1341 = vmatpush1.bf16.msra.mxu1 %v4437_v60  ;;  %v4482_v60 = vld [vmem:[%s5844_s1 + $0x3f8] sm:$0xff]  }
  0xc0   : > { %1192 = vmatprep.subr.bf16.mxu0 %v4632_v1  ;;  %1342 = vmatprep.subr.bf16.mxu1 %v4632_v1 }
  0xc3   : > { %1193 = vmatpush1.bf16.msra.mxu0 %v4438_v61  ;;  %1343 = vmatpush1.bf16.msra.mxu1 %v4439_v63  ;;  %v4483_v61 = vld [vmem:[%s5844_s1 + $0x458] sm:$0xff]   ;;  %v4485_v63 = vld [vmem:[%s5844_s1 + $0x460] sm:$0xff]  }
  0xc4   : > { %1468 = vmatprep.subr.bf16.mxu0 %v4632_v1  ;;  %1615 = vmatprep.subr.bf16.mxu1 %v4632_v1 }
  0xc6   : > { %1203 = vmatmul.mubr.bf16.vlgmr.msra.gmra.mrb[12].mxu0 %v1092_v3  ;;  %1353 = vmatmul.mubr.bf16.vlgmr.msra.gmra.mrb[12].mxu1 %v1239_v4  ;;  %v4488_v3 = vld [vmem:[%s5844_s1 + $0x410] sm:$0xff]   ;;  %v3894_v4 = vcombine.low %v5177_v28, %v5177_v28 }
  0xc7   : > { %1469 = vmatpush1.bf16.msra.mxu0 %v4442_v2  ;;  %1616 = vmatpush1.bf16.msra.mxu1 %v4443_v5  ;;  %v4487_v2 = vld [vmem:[%s5844_s1 + $0x468] sm:$0xff]  }
  0xc8   : > { %1470 = vmatprep.subr.bf16.mxu0 %v4632_v1  ;;  %1617 = vmatprep.subr.bf16.mxu1 %v4632_v1  ;;  %v5283_v5 = vld [vmem:[%s4715_s16 + $0x8] sm:$0x44] }
  0xc9   : > { %3832 = vmatprep.mubr.msk.bf16.mxu0 %vm302_vm0, %v3819_v6  ;;  %3869 = vmatprep.mubr.msk.bf16.mxu1 %vm302_vm0, %v1537_v9  ;;  %v4489_v6 = vld [vmem:[%s5844_s1 + $0x470] sm:$0xff]   ;;  %v1832_v9 = vshrl.u32 %v3894_v4, 16 }
  0xcb   : > { %1471 = vmatpush1.bf16.msra.mxu0 %v4444_v7  ;;  %1618 = vmatpush1.bf16.msra.mxu1 %v4445_v8  ;;  %v3971_v7 = vcombine.high %v5283_v5, %v5283_v5  ;;  %v4490_v8 = vld [vmem:[%s5844_s1 + $0x418] sm:$0xff]  }
  0xcc   : > { %1472 = vmatprep.subr.bf16.mxu0 %v4632_v1  ;;  %1619 = vmatprep.subr.bf16.mxu1 %v4632_v1 }
  0xcf   : > { %1473 = vmatpush1.bf16.msra.mxu0 %v4446_v10  ;;  %1620 = vmatpush1.bf16.msra.mxu1 %v4447_v11  ;;  %v4491_v10 = vld [vmem:[%s5844_s1 + $0x478] sm:$0xff]   ;;  %v1687_v11 = vrot.slane %v3894_v4, 1  ;;  %v4528_v4 = vld [vmem:[%s5844_s1 + $0x560] sm:$0xff]  }
  0xd0   : > { %1474 = vmatprep.subr.bf16.mxu0 %v4632_v1  ;;  %1621 = vmatprep.subr.bf16.mxu1 %v4632_v1 }
  0xd3   : > { %1475 = vmatpush1.bf16.msra.mxu0 %v4448_v12  ;;  %1622 = vmatpush1.bf16.msra.mxu1 %v4449_v13  ;;  %v2136_v12 = vshrl.u32 %v3971_v7, 16  ;;  %v1834_v13 = vrot.slane %v1832_v9, 1 }
  0xd4   : > { %1476 = vmatprep.subr.bf16.mxu0 %v4632_v1  ;;  %1623 = vmatprep.subr.bf16.mxu1 %v4632_v1 }
  0xd7   : > { %1477 = vmatpush1.bf16.msra.mxu0 %v4450_v14  ;;  %1624 = vmatpush1.bf16.msra.mxu1 %v4451_v15  ;;  %v4494_v14 = vld [vmem:[%s5844_s1 + $0x480] sm:$0xff]  }
  0xd8   : > { %1478 = vmatprep.subr.bf16.mxu0 %v4632_v1  ;;  %1625 = vmatprep.subr.bf16.mxu1 %v4632_v1  ;;  %v4495_v15 = vld [vmem:[%s5844_s1 + $0x4e0] sm:$0xff]  }
  0xdb   : > { %1479 = vmatpush1.bf16.msra.mxu0 %v4452_v16  ;;  %1626 = vmatpush1.bf16.msra.mxu1 %v4453_v17  ;;  %v1988_v16 = vrot.slane %v3971_v7, 2  ;;  %v2138_v17 = vrot.slane %v2136_v12, 2  ;;  %v4531_v7 = vld [vmem:[%s5844_s1 + $0x5c8] sm:$0xff]  }
  0xdc   : > { %1480 = vmatprep.subr.bf16.mxu0 %v4632_v1  ;;  %1627 = vmatprep.subr.bf16.mxu1 %v4632_v1 }
  0xdf   : > { %1481 = vmatpush1.bf16.msra.mxu0 %v4454_v18  ;;  %1628 = vmatpush1.bf16.msra.mxu1 %v4455_v19  ;;  %v4496_v18 = vld [vmem:[%s5844_s1 + $0x488] sm:$0xff]  }
  0xe0   : > { %1482 = vmatprep.subr.bf16.mxu0 %v4632_v1  ;;  %1629 = vmatprep.subr.bf16.mxu1 %v4632_v1  ;;  %v4497_v19 = vld [vmem:[%s5844_s1 + $0x4e8] sm:$0xff]  }
  0xe3   : > { %1483 = vmatpush1.bf16.msra.mxu0 %v4456_v20  ;;  %1630 = vmatpush1.bf16.msra.mxu1 %v4457_v21  ;;  %v4498_v20 = vld [vmem:[%s5844_s1 + $0x490] sm:$0xff]  }
  0xe4   : > { %1484 = vmatprep.subr.bf16.mxu0 %v4632_v1  ;;  %1631 = vmatprep.subr.bf16.mxu1 %v4632_v1  ;;  %v4499_v21 = vld [vmem:[%s5844_s1 + $0x4f0] sm:$0xff]  }
  0xe7   : > { %1485 = vmatpush1.bf16.msra.mxu0 %v4458_v22  ;;  %1632 = vmatpush1.bf16.msra.mxu1 %v4459_v23  ;;  %v4500_v22 = vld [vmem:[%s5844_s1 + $0x498] sm:$0xff]  }
  0xe8   : > { %1486 = vmatprep.subr.bf16.mxu0 %v4632_v1  ;;  %1633 = vmatprep.subr.bf16.mxu1 %v4632_v1  ;;  %v4501_v23 = vld [vmem:[%s5844_s1 + $0x4f8] sm:$0xff]  }
  0xeb   : > { %1487 = vmatpush1.bf16.msra.mxu0 %v4460_v24  ;;  %1634 = vmatpush1.bf16.msra.mxu1 %v4461_v25  ;;  %v4502_v24 = vld [vmem:[%s5844_s1 + $0x4a0] sm:$0xff]  }
  0xec   : > { %1488 = vmatprep.subr.bf16.mxu0 %v4632_v1  ;;  %1635 = vmatprep.subr.bf16.mxu1 %v4632_v1  ;;  %v4503_v25 = vld [vmem:[%s5844_s1 + $0x500] sm:$0xff]  }
  0xef   : > { %1489 = vmatpush1.bf16.msra.mxu0 %v4462_v26  ;;  %1636 = vmatpush1.bf16.msra.mxu1 %v4463_v27  ;;  %v4504_v26 = vld [vmem:[%s5844_s1 + $0x4a8] sm:$0xff]  }
  0xf0   : > { %1490 = vmatprep.subr.bf16.mxu0 %v4632_v1  ;;  %1637 = vmatprep.subr.bf16.mxu1 %v4632_v1  ;;  %v4505_v27 = vld [vmem:[%s5844_s1 + $0x508] sm:$0xff]  }
  0xf3   : > { %1491 = vmatpush1.bf16.msra.mxu0 %v4464_v29  ;;  %1638 = vmatpush1.bf16.msra.mxu1 %v4465_v30 }
  0xf4   : > { %1765 = vmatprep.subr.bf16.mxu0 %v4632_v1  ;;  %1915 = vmatprep.subr.bf16.mxu1 %v4632_v1 }
  0xf6   : > { %1501 = vmatmul.mubr.bf16.vlgmr.msra.gmra.mrb[16].mxu0 %v3818_v31  ;;  %1648 = vmatmul.mubr.bf16.vlgmr.msra.gmra.mrb[16].mxu1 %v1535_v34  ;;  %v4506_v34 = vld [vmem:[%s5844_s1 + $0x4b0] sm:$0xff]  }
  0xf7   : > { %1766 = vmatpush1.bf16.msra.mxu0 %v4468_v33  ;;  %1916 = vmatpush1.bf16.msra.mxu1 %v4469_v35 }
  0xf8   : > { %1767 = vmatprep.subr.bf16.mxu0 %v4632_v1  ;;  %1917 = vmatprep.subr.bf16.mxu1 %v4632_v1 }
  0xf9   : > { %3908 = vmatprep.mubr.msk.bf16.mxu0 %vm302_vm0, %v1688_v38  ;;  %3945 = vmatprep.mubr.msk.bf16.mxu1 %vm302_vm0, %v1838_v40  ;;  %v4507_v38 = vld [vmem:[%s5844_s1 + $0x510] sm:$0xff]   ;;  %v4508_v40 = vld [vmem:[%s5844_s1 + $0x4b8] sm:$0xff]  }
  0xfb   : > { %1768 = vmatpush1.bf16.msra.mxu0 %v4470_v37  ;;  %1918 = vmatpush1.bf16.msra.mxu1 %v4471_v39 }
  0xfc   : > { %1769 = vmatprep.subr.bf16.mxu0 %v4632_v1  ;;  %1919 = vmatprep.subr.bf16.mxu1 %v4632_v1 }
  0xff   : > { %1770 = vmatpush1.bf16.msra.mxu0 %v4472_v41  ;;  %1920 = vmatpush1.bf16.msra.mxu1 %v4473_v42  ;;  %v4509_v41 = vld [vmem:[%s5844_s1 + $0x518] sm:$0xff]   ;;  %v4510_v42 = vld [vmem:[%s5844_s1 + $0x4c0] sm:$0xff]  }
 0x100   : > { %1771 = vmatprep.subr.bf16.mxu0 %v4632_v1  ;;  %1921 = vmatprep.subr.bf16.mxu1 %v4632_v1 }
 0x103   : > { %1772 = vmatpush1.bf16.msra.mxu0 %v4474_v43  ;;  %1922 = vmatpush1.bf16.msra.mxu1 %v4475_v44  ;;  %v4511_v43 = vld [vmem:[%s5844_s1 + $0x520] sm:$0xff]   ;;  %v4512_v44 = vld [vmem:[%s5844_s1 + $0x4c8] sm:$0xff]  }
 0x104   : > { %1773 = vmatprep.subr.bf16.mxu0 %v4632_v1  ;;  %1923 = vmatprep.subr.bf16.mxu1 %v4632_v1 }
 0x107   : > { %1774 = vmatpush1.bf16.msra.mxu0 %v4476_v45  ;;  %1924 = vmatpush1.bf16.msra.mxu1 %v4477_v46  ;;  %v4513_v45 = vld [vmem:[%s5844_s1 + $0x528] sm:$0xff]   ;;  %v4514_v46 = vld [vmem:[%s5844_s1 + $0x4d0] sm:$0xff]  }
 0x108   : > { %1775 = vmatprep.subr.bf16.mxu0 %v4632_v1  ;;  %1925 = vmatprep.subr.bf16.mxu1 %v4632_v1 }
 0x109   : > { %v340_v49 = vpop.f32.mrb[0].mxu0  ;;  %v455_v50 = vpop.f32.mrb[0].mxu1 }
 0x10a   : > { %v342_v51 = vpop.f32.mrb[1].mxu0  ;;  %v5243_v52 = vadd.f32 %v455_v50, %v340_v49  ;;  %v457_v53 = vpop.f32.mrb[1].mxu1  ;;  %v4515_v49 = vld [vmem:[%s5844_s1 + $0x530] sm:$0xff]  }
 0x10b   : > { %v343_v54 = vpop.f32.mrb[2].mxu0  ;;  %1776 = vmatpush1.bf16.msra.mxu0 %v4478_v47  ;;  %v458_v56 = vpop.f32.mrb[2].mxu1  ;;  %1926 = vmatpush1.bf16.msra.mxu1 %v4479_v48  ;;  %v3970_v47 = vcombine.low %v5283_v5, %v5283_v5  ;;  %v5391_v48 = vld [vmem:[%s4715_s16 + $0x8] sm:$0x88]  ;;  %v4516_v51 = vld [vmem:[%s5844_s1 + $0x4d8] sm:$0xff]   ;;  %v4529_v5 = vld [vmem:[%s5844_s1 + $0x5c0] sm:$0xff]  }
 0x10c   : > { %v344_v57 = vpop.f32.mrb[3].mxu0  ;;  %1777 = vmatprep.subr.bf16.mxu0 %v4632_v1  ;;  %v459_v59 = vpop.f32.mrb[3].mxu1  ;;  %1927 = vmatprep.subr.bf16.mxu1 %v4632_v1  ;;  %v4047_v50 = vcombine.high %v5391_v48, %v5391_v48  ;;  %v4517_v53 = vld [vmem:[%s5844_s1 + $0x538] sm:$0xff]  }
 0x10d   : > { %v1987_v54 = vrot.slane %v3970_v47, 2  ;;  %v4520_v57 = vld [vmem:[%s5844_s1 + $0x540] sm:$0xff]  }
 0x10e   : > { %v2288_v59 = vrot.slane %v4047_v50, 3 }
 0x10f   : > { %1778 = vmatpush1.bf16.msra.mxu0 %v4480_v55  ;;  %1928 = vmatpush1.bf16.msra.mxu1 %v4481_v58  ;;  %v2436_v55 = vshrl.u32 %v4047_v50, 16  ;;  %v4521_v58 = vld [vmem:[%s5844_s1 + $0x5a0] sm:$0xff]  }
 0x110   : > { %1779 = vmatprep.subr.bf16.mxu0 %v4632_v1  ;;  %1929 = vmatprep.subr.bf16.mxu1 %v4632_v1 }
 0x113   : > { %1780 = vmatpush1.bf16.msra.mxu0 %v4482_v60  ;;  %1930 = vmatpush1.bf16.msra.mxu1 %v4483_v61  ;;  %v2438_v60 = vrot.slane %v2436_v55, 3  ;;  %v4522_v61 = vld [vmem:[%s5844_s1 + $0x548] sm:$0xff]   ;;  %v4558_v55 = vld [vmem:[%s5844_s1 + $0x630] sm:$0xff]  }
 0x114   : > { %1781 = vmatprep.subr.bf16.mxu0 %v4632_v1  ;;  %1931 = vmatprep.subr.bf16.mxu1 %v4632_v1 }
 0x117   : > { %1782 = vmatpush1.bf16.msra.mxu0 %v4484_v62  ;;  %1932 = vmatpush1.bf16.msra.mxu1 %v4485_v63  ;;  %v4523_v62 = vld [vmem:[%s5844_s1 + $0x5a8] sm:$0xff]   ;;  %v4524_v63 = vld [vmem:[%s5844_s1 + $0x550] sm:$0xff]  }
 0x118   : > { %1783 = vmatprep.subr.bf16.mxu0 %v4632_v1  ;;  %1933 = vmatprep.subr.bf16.mxu1 %v4632_v1 }
 0x11b   : > { %1784 = vmatpush1.bf16.msra.mxu0 %v4486_v0  ;;  %1934 = vmatpush1.bf16.msra.mxu1 %v4487_v2  ;;  %v4525_v0 = vld [vmem:[%s5844_s1 + $0x5b0] sm:$0xff]   ;;  %v4526_v2 = vld [vmem:[%s5844_s1 + $0x558] sm:$0xff]  }
 0x11c   : > { %1785 = vmatprep.subr.bf16.mxu0 %v4632_v1  ;;  %1935 = vmatprep.subr.bf16.mxu1 %v4632_v1 }
 0x11f   : > { %1786 = vmatpush1.bf16.msra.mxu0 %v4488_v3  ;;  %1936 = vmatpush1.bf16.msra.mxu1 %v4489_v6  ;;  %v4527_v3 = vld [vmem:[%s5844_s1 + $0x5b8] sm:$0xff]   ;;  %v4530_v6 = vld [vmem:[%s5844_s1 + $0x568] sm:$0xff]  }
 0x120   : > { %1787 = vmatprep.subr.bf16.mxu0 %v4632_v1  ;;  %1937 = vmatprep.subr.bf16.mxu1 %v4632_v1 }
 0x123   : > { %1788 = vmatpush1.bf16.msra.mxu0 %v4490_v8  ;;  %1938 = vmatpush1.bf16.msra.mxu1 %v4491_v10 }
 0x124   : > { %2065 = vmatprep.subr.bf16.mxu0 %v4632_v1  ;;  %2215 = vmatprep.subr.bf16.mxu1 %v4632_v1 }
 0x126   : > { %1798 = vmatmul.mubr.bf16.vlgmr.msra.gmra.mrb[20].mxu0 %v1687_v11  ;;  %1948 = vmatmul.mubr.bf16.vlgmr.msra.gmra.mrb[20].mxu1 %v1834_v13 }
 0x127   : > { %2066 = vmatpush1.bf16.msra.mxu0 %v4494_v14  ;;  %2216 = vmatpush1.bf16.msra.mxu1 %v4495_v15  ;;  %v4532_v14 = vld [vmem:[%s5844_s1 + $0x570] sm:$0xff]  }
 0x128   : > { %2067 = vmatprep.subr.bf16.mxu0 %v4632_v1  ;;  %2217 = vmatprep.subr.bf16.mxu1 %v4632_v1 }
 0x129   : > { %3984 = vmatprep.mubr.msk.bf16.mxu0 %vm302_vm0, %v1988_v16  ;;  %4021 = vmatprep.mubr.msk.bf16.mxu1 %vm302_vm0, %v2138_v17 }
 0x12b   : > { %2068 = vmatpush1.bf16.msra.mxu0 %v4496_v18  ;;  %2218 = vmatpush1.bf16.msra.mxu1 %v4497_v19  ;;  %v4533_v18 = vld [vmem:[%s5844_s1 + $0x5d0] sm:$0xff]  }
 0x12c   : > { %2069 = vmatprep.subr.bf16.mxu0 %v4632_v1  ;;  %2219 = vmatprep.subr.bf16.mxu1 %v4632_v1 }
 0x12f   : > { %2070 = vmatpush1.bf16.msra.mxu0 %v4498_v20  ;;  %2220 = vmatpush1.bf16.msra.mxu1 %v4499_v21  ;;  %v4534_v20 = vld [vmem:[%s5844_s1 + $0x578] sm:$0xff]  }
 0x130   : > { %2071 = vmatprep.subr.bf16.mxu0 %v4632_v1  ;;  %2221 = vmatprep.subr.bf16.mxu1 %v4632_v1  ;;  %v4535_v21 = vld [vmem:[%s5844_s1 + $0x5d8] sm:$0xff]  }
 0x133   : > { %2072 = vmatpush1.bf16.msra.mxu0 %v4500_v22  ;;  %2222 = vmatpush1.bf16.msra.mxu1 %v4501_v23  ;;  %v4536_v22 = vld [vmem:[%s5844_s1 + $0x580] sm:$0xff]  }
 0x134   : > { %2073 = vmatprep.subr.bf16.mxu0 %v4632_v1  ;;  %2223 = vmatprep.subr.bf16.mxu1 %v4632_v1  ;;  %v4537_v23 = vld [vmem:[%s5844_s1 + $0x5e0] sm:$0xff]  }
 0x137   : > { %2074 = vmatpush1.bf16.msra.mxu0 %v4502_v24  ;;  %2224 = vmatpush1.bf16.msra.mxu1 %v4503_v25  ;;  %v4538_v24 = vld [vmem:[%s5844_s1 + $0x588] sm:$0xff]  }
 0x138   : > { %2075 = vmatprep.subr.bf16.mxu0 %v4632_v1  ;;  %2225 = vmatprep.subr.bf16.mxu1 %v4632_v1  ;;  %v4539_v25 = vld [vmem:[%s5844_s1 + $0x5e8] sm:$0xff]  }
 0x139   : > { %v604_v28 = vpop.f32.mrb[4].mxu0  ;;  %v754_v30 = vpop.f32.mrb[4].mxu1 }
 0x13a   : > { %v610_v29 = vadd.f32 %v604_v28, %v5243_v52  ;;  %v606_v31 = vpop.f32.mrb[5].mxu0  ;;  %v756_v32 = vpop.f32.mrb[5].mxu1  ;;  %v2132_v52 = vshrl.u32 %v3970_v47, 16  ;;  %v4541_v28 = vld [vmem:[%s5844_s1 + $0x5f0] sm:$0xff]   ;;  %v4556_v47 = vld [vmem:[%s5844_s1 + $0x628] sm:$0xff]  }
 0x13b   : > { %v607_v33 = vpop.f32.mrb[6].mxu0  ;;  %2076 = vmatpush1.bf16.msra.mxu0 %v4504_v26  ;;  %v757_v36 = vpop.f32.mrb[6].mxu1  ;;  %2226 = vmatpush1.bf16.msra.mxu1 %v4505_v27  ;;  %v4540_v26 = vld [vmem:[%s5844_s1 + $0x590] sm:$0xff]   ;;  %v4046_v27 = vcombine.low %v5391_v48, %v5391_v48  ;;  %v4543_v32 = vld [vmem:[%s5844_s1 + $0x5f8] sm:$0xff]   ;;  %v4557_v48 = vld [vmem:[%s5844_s1 + $0x688] sm:$0xff]  }
 0x13c   : > { %v5354_v35 = vadd.f32 %v754_v30, %v610_v29  ;;  %v608_v37 = vpop.f32.mrb[7].mxu0  ;;  %2077 = vmatprep.subr.bf16.mxu0 %v4632_v1  ;;  %v758_v39 = vpop.f32.mrb[7].mxu1  ;;  %2227 = vmatprep.subr.bf16.mxu1 %v4632_v1  ;;  %v2134_v56 = vrot.slane %v2132_v52, 2  ;;  %v4542_v29 = vld [vmem:[%s5844_s1 + $0x598] sm:$0xff]   ;;  %v5507_v31 = vld [vmem:[%s4715_s16 + $0x10] sm:$0x11] }
 0x13d   : > { %v2432_v30 = vshrl.u32 %v4046_v27, 16  ;;  %v2287_v33 = vrot.slane %v4046_v27, 3  ;;  %v4546_v36 = vld [vmem:[%s5844_s1 + $0x600] sm:$0xff]   ;;  %v4548_v39 = vld [vmem:[%s5844_s1 + $0x608] sm:$0xff]  }
 0x13e   : > { %v4547_v37 = vld [vmem:[%s5844_s1 + $0x660] sm:$0xff]  }
 0x13f   : > { %2078 = vmatpush1.bf16.msra.mxu0 %v4506_v34  ;;  %2228 = vmatpush1.bf16.msra.mxu1 %v4507_v38  ;;  %v4123_v34 = vcombine.high %v5507_v31, %v5507_v31 }
 0x140   : > { %2079 = vmatprep.subr.bf16.mxu0 %v4632_v1  ;;  %2229 = vmatprep.subr.bf16.mxu1 %v4632_v1 }
 0x141   : > { %v2732_v38 = vshrl.u32 %v4123_v34, 16 }
 0x143   : > { %2080 = vmatpush1.bf16.msra.mxu0 %v4508_v40  ;;  %2230 = vmatpush1.bf16.msra.mxu1 %v4509_v41  ;;  %v4549_v40 = vld [vmem:[%s5844_s1 + $0x668] sm:$0xff]   ;;  %v4550_v41 = vld [vmem:[%s5844_s1 + $0x610] sm:$0xff]  }
 0x144   : > { %2081 = vmatprep.subr.bf16.mxu0 %v4632_v1  ;;  %2231 = vmatprep.subr.bf16.mxu1 %v4632_v1 }
 0x147   : > { %2082 = vmatpush1.bf16.msra.mxu0 %v4510_v42  ;;  %2232 = vmatpush1.bf16.msra.mxu1 %v4511_v43  ;;  %v4551_v42 = vld [vmem:[%s5844_s1 + $0x670] sm:$0xff]   ;;  %v4552_v43 = vld [vmem:[%s5844_s1 + $0x618] sm:$0xff]  }
 0x148   : > { %2083 = vmatprep.subr.bf16.mxu0 %v4632_v1  ;;  %2233 = vmatprep.subr.bf16.mxu1 %v4632_v1 }
 0x14b   : > { %2084 = vmatpush1.bf16.msra.mxu0 %v4512_v44  ;;  %2234 = vmatpush1.bf16.msra.mxu1 %v4513_v45  ;;  %v4553_v44 = vld [vmem:[%s5844_s1 + $0x678] sm:$0xff]   ;;  %v4554_v45 = vld [vmem:[%s5844_s1 + $0x620] sm:$0xff]  }
 0x14c   : > { %2085 = vmatprep.subr.bf16.mxu0 %v4632_v1  ;;  %2235 = vmatprep.subr.bf16.mxu1 %v4632_v1 }
 0x14f   : > { %2086 = vmatpush1.bf16.msra.mxu0 %v4514_v46  ;;  %2236 = vmatpush1.bf16.msra.mxu1 %v4515_v49  ;;  %v4555_v46 = vld [vmem:[%s5844_s1 + $0x680] sm:$0xff]  }
 0x150   : > { %2087 = vmatprep.subr.bf16.mxu0 %v4632_v1  ;;  %2237 = vmatprep.subr.bf16.mxu1 %v4632_v1 }
 0x153   : > { %2088 = vmatpush1.bf16.msra.mxu0 %v4516_v51  ;;  %2238 = vmatpush1.bf16.msra.mxu1 %v4517_v53 }
 0x154   : > { %2365 = vmatprep.subr.bf16.mxu0 %v4632_v1  ;;  %2515 = vmatprep.subr.bf16.mxu1 %v4632_v1 }
 0x156   : > { %2098 = vmatmul.mubr.bf16.vlgmr.msra.gmra.mrb[24].mxu0 %v1987_v54  ;;  %2248 = vmatmul.mubr.bf16.vlgmr.msra.gmra.mrb[24].mxu1 %v2134_v56 }
 0x157   : > { %2366 = vmatpush1.bf16.msra.mxu0 %v4520_v57  ;;  %2516 = vmatpush1.bf16.msra.mxu1 %v4521_v58 }
 0x158   : > { %2367 = vmatprep.subr.bf16.mxu0 %v4632_v1  ;;  %2517 = vmatprep.subr.bf16.mxu1 %v4632_v1 }
 0x159   : > { %4060 = vmatprep.mubr.msk.bf16.mxu0 %vm302_vm0, %v2288_v59  ;;  %4097 = vmatprep.mubr.msk.bf16.mxu1 %vm302_vm0, %v2438_v60  ;;  %v4559_v59 = vld [vmem:[%s5844_s1 + $0x690] sm:$0xff]  }
 0x15b   : > { %2368 = vmatpush1.bf16.msra.mxu0 %v4522_v61  ;;  %2518 = vmatpush1.bf16.msra.mxu1 %v4523_v62  ;;  %v4560_v61 = vld [vmem:[%s5844_s1 + $0x638] sm:$0xff]  }
 0x15c   : > { %2369 = vmatprep.subr.bf16.mxu0 %v4632_v1  ;;  %2519 = vmatprep.subr.bf16.mxu1 %v4632_v1  ;;  %v4561_v62 = vld [vmem:[%s5844_s1 + $0x698] sm:$0xff]  }
 0x15f   : > { %2370 = vmatpush1.bf16.msra.mxu0 %v4524_v63  ;;  %2520 = vmatpush1.bf16.msra.mxu1 %v4525_v0  ;;  %v4562_v63 = vld [vmem:[%s5844_s1 + $0x640] sm:$0xff]  }
 0x160   : > { %2371 = vmatprep.subr.bf16.mxu0 %v4632_v1  ;;  %2521 = vmatprep.subr.bf16.mxu1 %v4632_v1  ;;  %v4563_v0 = vld [vmem:[%s5844_s1 + $0x6a0] sm:$0xff]  }
 0x163   : > { %2372 = vmatpush1.bf16.msra.mxu0 %v4526_v2  ;;  %2522 = vmatpush1.bf16.msra.mxu1 %v4527_v3  ;;  %v4564_v2 = vld [vmem:[%s5844_s1 + $0x648] sm:$0xff]  }
 0x164   : > { %2373 = vmatprep.subr.bf16.mxu0 %v4632_v1  ;;  %2523 = vmatprep.subr.bf16.mxu1 %v4632_v1  ;;  %v4565_v3 = vld [vmem:[%s5844_s1 + $0x6a8] sm:$0xff]  }
 0x167   : > { %2374 = vmatpush1.bf16.msra.mxu0 %v4528_v4  ;;  %2524 = vmatpush1.bf16.msra.mxu1 %v4529_v5  ;;  %v4566_v4 = vld [vmem:[%s5844_s1 + $0x650] sm:$0xff]  }
 0x168   : > { %2375 = vmatprep.subr.bf16.mxu0 %v4632_v1  ;;  %2525 = vmatprep.subr.bf16.mxu1 %v4632_v1  ;;  %v5605_v5 = vld [vmem:[%s4715_s16 + $0x10] sm:$0x22] }
 0x169   : > { %v904_v8 = vpop.f32.mrb[8].mxu0  ;;  %v1054_v10 = vpop.f32.mrb[8].mxu1 }
 0x16a   : > { %v910_v9 = vadd.f32 %v904_v8, %v5354_v35  ;;  %v906_v11 = vpop.f32.mrb[9].mxu0  ;;  %v1056_v12 = vpop.f32.mrb[9].mxu1  ;;  %v2434_v35 = vrot.slane %v2432_v30, 3  ;;  %v4568_v8 = vld [vmem:[%s5844_s1 + $0x658] sm:$0xff]  }
 0x16b   : > { %v907_v13 = vpop.f32.mrb[10].mxu0  ;;  %2376 = vmatpush1.bf16.msra.mxu0 %v4530_v6  ;;  %v1057_v16 = vpop.f32.mrb[10].mxu1  ;;  %2526 = vmatpush1.bf16.msra.mxu1 %v4531_v7  ;;  %v4567_v6 = vld [vmem:[%s5844_s1 + $0x6b0] sm:$0xff]   ;;  %v4199_v7 = vcombine.high %v5605_v5, %v5605_v5 }
 0x16c   : > { %v5462_v15 = vadd.f32 %v1054_v10, %v910_v9  ;;  %v908_v17 = vpop.f32.mrb[11].mxu0  ;;  %2377 = vmatprep.subr.bf16.mxu0 %v4632_v1  ;;  %v1058_v19 = vpop.f32.mrb[11].mxu1  ;;  %2527 = vmatprep.subr.bf16.mxu1 %v4632_v1  ;;  %v4122_v9 = vcombine.low %v5507_v31, %v5507_v31  ;;  %v4569_v10 = vld [vmem:[%s5844_s1 + $0x6b8] sm:$0xff]   ;;  %v4572_v13 = vld [vmem:[%s5844_s1 + $0x6c0] sm:$0xff]  }
 0x16d   : > { %v3031_v11 = vshrl.u32 %v4199_v7, 16  ;;  %v4574_v17 = vld [vmem:[%s5844_s1 + $0x6c8] sm:$0xff]   ;;  %v4576_v19 = vld [vmem:[%s5844_s1 + $0x6d0] sm:$0xff]  }
 0x16e   : > { %v2730_v12 = vshrl.u32 %v4122_v9, 16 }
 0x16f   : > { %2378 = vmatpush1.bf16.msra.mxu0 %v4532_v14  ;;  %2528 = vmatpush1.bf16.msra.mxu1 %v4533_v18  ;;  %v4573_v14 = vld [vmem:[%s5844_s1 + $0x720] sm:$0xff]   ;;  %v3033_v16 = vrot.slane %v3031_v11, 1  ;;  %v4575_v18 = vld [vmem:[%s5844_s1 + $0x728] sm:$0xff]  }
 0x170   : > { %2379 = vmatprep.subr.bf16.mxu0 %v4632_v1  ;;  %2529 = vmatprep.subr.bf16.mxu1 %v4632_v1 }
 0x173   : > { %2380 = vmatpush1.bf16.msra.mxu0 %v4534_v20  ;;  %2530 = vmatpush1.bf16.msra.mxu1 %v4535_v21  ;;  %v4577_v20 = vld [vmem:[%s5844_s1 + $0x730] sm:$0xff]   ;;  %v4578_v21 = vld [vmem:[%s5844_s1 + $0x6d8] sm:$0xff]  }
 0x174   : > { %2381 = vmatprep.subr.bf16.mxu0 %v4632_v1  ;;  %2531 = vmatprep.subr.bf16.mxu1 %v4632_v1 }
 0x177   : > { %2382 = vmatpush1.bf16.msra.mxu0 %v4536_v22  ;;  %2532 = vmatpush1.bf16.msra.mxu1 %v4537_v23  ;;  %v4579_v22 = vld [vmem:[%s5844_s1 + $0x738] sm:$0xff]   ;;  %v4580_v23 = vld [vmem:[%s5844_s1 + $0x6e0] sm:$0xff]  }
 0x178   : > { %2383 = vmatprep.subr.bf16.mxu0 %v4632_v1  ;;  %2533 = vmatprep.subr.bf16.mxu1 %v4632_v1 }
 0x17b   : > { %2384 = vmatpush1.bf16.msra.mxu0 %v4538_v24  ;;  %2534 = vmatpush1.bf16.msra.mxu1 %v4539_v25  ;;  %v4581_v24 = vld [vmem:[%s5844_s1 + $0x740] sm:$0xff]   ;;  %v4582_v25 = vld [vmem:[%s5844_s1 + $0x6e8] sm:$0xff]  }
 0x17c   : > { %2385 = vmatprep.subr.bf16.mxu0 %v4632_v1  ;;  %2535 = vmatprep.subr.bf16.mxu1 %v4632_v1 }
 0x17f   : > { %2386 = vmatpush1.bf16.msra.mxu0 %v4540_v26  ;;  %2536 = vmatpush1.bf16.msra.mxu1 %v4541_v28  ;;  %v4583_v26 = vld [vmem:[%s5844_s1 + $0x748] sm:$0xff]  }
 0x180   : > { %2387 = vmatprep.subr.bf16.mxu0 %v4632_v1  ;;  %2537 = vmatprep.subr.bf16.mxu1 %v4632_v1 }
 0x183   : > { %2388 = vmatpush1.bf16.msra.mxu0 %v4542_v29  ;;  %2538 = vmatpush1.bf16.msra.mxu1 %v4543_v32 }
 0x184   : > { %2663 = vmatprep.subr.bf16.mxu0 %v4632_v1  ;;  %2810 = vmatprep.subr.bf16.mxu1 %v4632_v1 }
 0x186   : > { %2398 = vmatmul.mubr.bf16.vlgmr.msra.gmra.mrb[28].mxu0 %v2287_v33  ;;  %2548 = vmatmul.mubr.bf16.vlgmr.msra.gmra.mrb[28].mxu1 %v2434_v35  ;;  %v4584_v33 = vld [vmem:[%s5844_s1 + $0x6f0] sm:$0xff]  }
 0x187   : > { %2664 = vmatpush1.bf16.msra.mxu0 %v4546_v36  ;;  %2811 = vmatpush1.bf16.msra.mxu1 %v4547_v37  ;;  %v4585_v37 = vld [vmem:[%s5844_s1 + $0x750] sm:$0xff]  }
 0x188   : > { %2665 = vmatprep.subr.bf16.mxu0 %v4632_v1  ;;  %2812 = vmatprep.subr.bf16.mxu1 %v4632_v1 }
 0x189   : > { %4136 = vmatprep.mubr.msk.bf16.mxu0 %vm302_vm0, %v4123_v34  ;;  %4173 = vmatprep.mubr.msk.bf16.mxu1 %vm302_vm0, %v2732_v38 }
 0x18b   : > { %2666 = vmatpush1.bf16.msra.mxu0 %v4548_v39  ;;  %2813 = vmatpush1.bf16.msra.mxu1 %v4549_v40  ;;  %v4586_v39 = vld [vmem:[%s5844_s1 + $0x6f8] sm:$0xff]  }
 0x18c   : > { %2667 = vmatprep.subr.bf16.mxu0 %v4632_v1  ;;  %2814 = vmatprep.subr.bf16.mxu1 %v4632_v1  ;;  %v4587_v40 = vld [vmem:[%s5844_s1 + $0x758] sm:$0xff]  }
 0x18f   : > { %2668 = vmatpush1.bf16.msra.mxu0 %v4550_v41  ;;  %2815 = vmatpush1.bf16.msra.mxu1 %v4551_v42  ;;  %v4588_v41 = vld [vmem:[%s5844_s1 + $0x700] sm:$0xff]  }
 0x190   : > { %2669 = vmatprep.subr.bf16.mxu0 %v4632_v1  ;;  %2816 = vmatprep.subr.bf16.mxu1 %v4632_v1  ;;  %v4589_v42 = vld [vmem:[%s5844_s1 + $0x760] sm:$0xff]  }
 0x193   : > { %2670 = vmatpush1.bf16.msra.mxu0 %v4552_v43  ;;  %2817 = vmatpush1.bf16.msra.mxu1 %v4553_v44  ;;  %v4590_v43 = vld [vmem:[%s5844_s1 + $0x708] sm:$0xff]  }
 0x194   : > { %2671 = vmatprep.subr.bf16.mxu0 %v4632_v1  ;;  %2818 = vmatprep.subr.bf16.mxu1 %v4632_v1  ;;  %v4591_v44 = vld [vmem:[%s5844_s1 + $0x768] sm:$0xff]  }
 0x197   : > { %2672 = vmatpush1.bf16.msra.mxu0 %v4554_v45  ;;  %2819 = vmatpush1.bf16.msra.mxu1 %v4555_v46  ;;  %v4592_v45 = vld [vmem:[%s5844_s1 + $0x710] sm:$0xff]   ;;  %v4198_v46 = vcombine.low %v5605_v5, %v5605_v5  ;;  %v4608_v5 = vld [vmem:[%s5844_s1 + $0x7a8] sm:$0xff]  }
 0x198   : > { %2673 = vmatprep.subr.bf16.mxu0 %v4632_v1  ;;  %2820 = vmatprep.subr.bf16.mxu1 %v4632_v1 }
 0x199   : > { %v1204_v49 = vpop.f32.mrb[12].mxu0  ;;  %v1354_v51 = vpop.f32.mrb[12].mxu1 }
 0x19a   : > { %v1210_v50 = vadd.f32 %v1204_v49, %v5462_v15  ;;  %v1206_v52 = vpop.f32.mrb[13].mxu0  ;;  %v1356_v53 = vpop.f32.mrb[13].mxu1  ;;  %v2883_v15 = vrot.slane %v4199_v7, 1 }
 0x19b   : > { %v1207_v54 = vpop.f32.mrb[14].mxu0  ;;  %2674 = vmatpush1.bf16.msra.mxu0 %v4556_v47  ;;  %v1357_v57 = vpop.f32.mrb[14].mxu1  ;;  %2821 = vmatpush1.bf16.msra.mxu1 %v4557_v48  ;;  %v5715_v47 = vld [vmem:[%s4715_s16 + $0x10] sm:$0x44]  ;;  %v4595_v52 = vld [vmem:[%s5844_s1 + $0x778] sm:$0xff]   ;;  %v2882_v53 = vrot.slane %v4198_v46, 1 }
 0x19c   : > { %v5570_v56 = vadd.f32 %v1354_v51, %v1210_v50  ;;  %v1208_v58 = vpop.f32.mrb[15].mxu0  ;;  %2675 = vmatprep.subr.bf16.mxu0 %v4632_v1  ;;  %v1358_v60 = vpop.f32.mrb[15].mxu1  ;;  %2822 = vmatprep.subr.bf16.mxu1 %v4632_v1  ;;  %v4593_v48 = vld [vmem:[%s5844_s1 + $0x770] sm:$0xff]   ;;  %v4275_v49 = vcombine.high %v5715_v47, %v5715_v47  ;;  %v4594_v50 = vld [vmem:[%s5844_s1 + $0x718] sm:$0xff]   ;;  %v3027_v51 = vshrl.u32 %v4198_v46, 16  ;;  %v4599_v57 = vld [vmem:[%s5844_s1 + $0x7e0] sm:$0xff]  }
 0x19d   : > { %v4600_v60 = vld [vmem:[%s5844_s1 + $0x788] sm:$0xff]  }
 0x19e   : > { %v3331_v54 = vshrl.u32 %v4275_v49, 16  ;;  %v3183_v58 = vrot.slane %v4275_v49, 2 }
 0x19f   : > { %2676 = vmatpush1.bf16.msra.mxu0 %v4558_v55  ;;  %2823 = vmatpush1.bf16.msra.mxu1 %v4559_v59  ;;  %v3029_v55 = vrot.slane %v3027_v51, 1 }
 0x1a0   : > { %2677 = vmatprep.subr.bf16.mxu0 %v4632_v1  ;;  %2824 = vmatprep.subr.bf16.mxu1 %v4632_v1  ;;  %v3333_v59 = vrot.slane %v3331_v54, 2 }
 0x1a3   : > { %2678 = vmatpush1.bf16.msra.mxu0 %v4560_v61  ;;  %2825 = vmatpush1.bf16.msra.mxu1 %v4561_v62  ;;  %v4601_v61 = vld [vmem:[%s5844_s1 + $0x7e8] sm:$0xff]   ;;  %v4602_v62 = vld [vmem:[%s5844_s1 + $0x790] sm:$0xff]  }
 0x1a4   : > { %2679 = vmatprep.subr.bf16.mxu0 %v4632_v1  ;;  %2826 = vmatprep.subr.bf16.mxu1 %v4632_v1 }
 0x1a7   : > { %2680 = vmatpush1.bf16.msra.mxu0 %v4562_v63  ;;  %2827 = vmatpush1.bf16.msra.mxu1 %v4563_v0  ;;  %v4603_v63 = vld [vmem:[%s5844_s1 + $0x7f0] sm:$0xff]   ;;  %v4604_v0 = vld [vmem:[%s5844_s1 + $0x798] sm:$0xff]  }
 0x1a8   : > { %2681 = vmatprep.subr.bf16.mxu0 %v4632_v1  ;;  %2828 = vmatprep.subr.bf16.mxu1 %v4632_v1 }
 0x1ab   : > { %2682 = vmatpush1.bf16.msra.mxu0 %v4564_v2  ;;  %2829 = vmatpush1.bf16.msra.mxu1 %v4565_v3  ;;  %v4605_v2 = vld [vmem:[%s5844_s1 + $0x7f8] sm:$0xff]   ;;  %v4606_v3 = vld [vmem:[%s5844_s1 + $0x7a0] sm:$0xff]  }
 0x1ac   : > { %2683 = vmatprep.subr.bf16.mxu0 %v4632_v1  ;;  %2830 = vmatprep.subr.bf16.mxu1 %v4632_v1 }
 0x1af   : > { %2684 = vmatpush1.bf16.msra.mxu0 %v4566_v4  ;;  %2831 = vmatpush1.bf16.msra.mxu1 %v4567_v6  ;;  %v4607_v4 = vld [vmem:[%s5844_s1 + $0x800] sm:$0xff]   ;;  %v4609_v6 = vld [vmem:[%s5844_s1 + $0x808] sm:$0xff]  }
 0x1b0   : > { %2685 = vmatprep.subr.bf16.mxu0 %v4632_v1  ;;  %2832 = vmatprep.subr.bf16.mxu1 %v4632_v1 }
 0x1b3   : > { %2686 = vmatpush1.bf16.msra.mxu0 %v4568_v8  ;;  %2833 = vmatpush1.bf16.msra.mxu1 %v4569_v10 }
 0x1b4   : > { %2960 = vmatprep.subr.bf16.mxu0 %v4632_v1  ;;  %3110 = vmatprep.subr.bf16.mxu1 %v4632_v1 }
 0x1b6   : > { %2696 = vmatmul.mubr.bf16.vlgmr.msra.gmra.mrb[32].mxu0 %v4122_v9  ;;  %2843 = vmatmul.mubr.bf16.vlgmr.msra.gmra.mrb[32].mxu1 %v2730_v12 }
 0x1b7   : > { %2961 = vmatpush1.bf16.msra.mxu0 %v4572_v13  ;;  %3111 = vmatpush1.bf16.msra.mxu1 %v4573_v14  ;;  %v4610_v13 = vld [vmem:[%s5844_s1 + $0x7b0] sm:$0xff]  }
 0x1b8   : > { %2962 = vmatprep.subr.bf16.mxu0 %v4632_v1  ;;  %3112 = vmatprep.subr.bf16.mxu1 %v4632_v1 }
 0x1b9   : > { %4212 = vmatprep.mubr.msk.bf16.mxu0 %vm302_vm0, %v2883_v15  ;;  %4249 = vmatprep.mubr.msk.bf16.mxu1 %vm302_vm0, %v3033_v16 }
 0x1bb   : > { %2963 = vmatpush1.bf16.msra.mxu0 %v4574_v17  ;;  %3113 = vmatpush1.bf16.msra.mxu1 %v4575_v18  ;;  %v4611_v17 = vld [vmem:[%s5844_s1 + $0x810] sm:$0xff]  }
 0x1bc   : > { %2964 = vmatprep.subr.bf16.mxu0 %v4632_v1  ;;  %3114 = vmatprep.subr.bf16.mxu1 %v4632_v1 }
 0x1bf   : > { %2965 = vmatpush1.bf16.msra.mxu0 %v4576_v19  ;;  %3115 = vmatpush1.bf16.msra.mxu1 %v4577_v20  ;;  %v4612_v19 = vld [vmem:[%s5844_s1 + $0x7b8] sm:$0xff]  }
 0x1c0   : > { %2966 = vmatprep.subr.bf16.mxu0 %v4632_v1  ;;  %3116 = vmatprep.subr.bf16.mxu1 %v4632_v1  ;;  %v4613_v20 = vld [vmem:[%s5844_s1 + $0x818] sm:$0xff]  }
 0x1c3   : > { %2967 = vmatpush1.bf16.msra.mxu0 %v4578_v21  ;;  %3117 = vmatpush1.bf16.msra.mxu1 %v4579_v22  ;;  %v4614_v21 = vld [vmem:[%s5844_s1 + $0x7c0] sm:$0xff]  }
 0x1c4   : > { %2968 = vmatprep.subr.bf16.mxu0 %v4632_v1  ;;  %3118 = vmatprep.subr.bf16.mxu1 %v4632_v1  ;;  %v4615_v22 = vld [vmem:[%s5844_s1 + $0x820] sm:$0xff]  }
 0x1c7   : > { %2969 = vmatpush1.bf16.msra.mxu0 %v4580_v23  ;;  %3119 = vmatpush1.bf16.msra.mxu1 %v4581_v24  ;;  %v4616_v23 = vld [vmem:[%s5844_s1 + $0x7c8] sm:$0xff]  }
 0x1c8   : > { %2970 = vmatprep.subr.bf16.mxu0 %v4632_v1  ;;  %3120 = vmatprep.subr.bf16.mxu1 %v4632_v1  ;;  %v4617_v24 = vld [vmem:[%s5844_s1 + $0x828] sm:$0xff]  }
 0x1c9   : > { %v1502_v27 = vpop.f32.mrb[16].mxu0  ;;  %v1649_v29 = vpop.f32.mrb[16].mxu1 }
 0x1ca   : > { %v1508_v28 = vadd.f32 %v1502_v27, %v5570_v56  ;;  %v1504_v30 = vpop.f32.mrb[17].mxu0  ;;  %v1651_v31 = vpop.f32.mrb[17].mxu1  ;;  %v4598_v56 = vld [vmem:[%s5844_s1 + $0x780] sm:$0xff]   ;;  %v4619_v27 = vld [vmem:[%s5844_s1 + $0x830] sm:$0xff]  }
 0x1cb   : > { %v1505_v32 = vpop.f32.mrb[18].mxu0  ;;  %2971 = vmatpush1.bf16.msra.mxu0 %v4582_v25  ;;  %v1652_v35 = vpop.f32.mrb[18].mxu1  ;;  %3121 = vmatpush1.bf16.msra.mxu1 %v4583_v26  ;;  %v4618_v25 = vld [vmem:[%s5844_s1 + $0x7d0] sm:$0xff]   ;;  %v4274_v26 = vcombine.low %v5715_v47, %v5715_v47  ;;  %v4621_v30 = vld [vmem:[%s5844_s1 + $0x838] sm:$0xff]  }
 0x1cc   : > { %v5678_v34 = vadd.f32 %v1649_v29, %v1508_v28  ;;  %v1506_v36 = vpop.f32.mrb[19].mxu0  ;;  %2972 = vmatprep.subr.bf16.mxu0 %v4632_v1  ;;  %v1653_v38 = vpop.f32.mrb[19].mxu1  ;;  %3122 = vmatprep.subr.bf16.mxu1 %v4632_v1  ;;  %v4620_v28 = vld [vmem:[%s5844_s1 + $0x7d8] sm:$0xff]  }
 0x1cd   : > { %v3327_v29 = vshrl.u32 %v4274_v26, 16  ;;  %v3182_v31 = vrot.slane %v4274_v26, 2 }
 0x1cf   : > { %2973 = vmatpush1.bf16.msra.mxu0 %v4584_v33  ;;  %3123 = vmatpush1.bf16.msra.mxu1 %v4585_v37  ;;  %v3329_v32 = vrot.slane %v3327_v29, 2 }
 0x1d0   : > { %2974 = vmatprep.subr.bf16.mxu0 %v4632_v1  ;;  %3124 = vmatprep.subr.bf16.mxu1 %v4632_v1 }
 0x1d3   : > { %2975 = vmatpush1.bf16.msra.mxu0 %v4586_v39  ;;  %3125 = vmatpush1.bf16.msra.mxu1 %v4587_v40 }
 0x1d4   : > { %2976 = vmatprep.subr.bf16.mxu0 %v4632_v1  ;;  %3126 = vmatprep.subr.bf16.mxu1 %v4632_v1 }
 0x1d7   : > { %2977 = vmatpush1.bf16.msra.mxu0 %v4588_v41  ;;  %3127 = vmatpush1.bf16.msra.mxu1 %v4589_v42 }
 0x1d8   : > { %2978 = vmatprep.subr.bf16.mxu0 %v4632_v1  ;;  %3128 = vmatprep.subr.bf16.mxu1 %v4632_v1 }
 0x1db   : > { %2979 = vmatpush1.bf16.msra.mxu0 %v4590_v43  ;;  %3129 = vmatpush1.bf16.msra.mxu1 %v4591_v44 }
 0x1dc   : > { %2980 = vmatprep.subr.bf16.mxu0 %v4632_v1  ;;  %3130 = vmatprep.subr.bf16.mxu1 %v4632_v1 }
 0x1df   : > { %2981 = vmatpush1.bf16.msra.mxu0 %v4592_v45  ;;  %3131 = vmatpush1.bf16.msra.mxu1 %v4593_v48 }
 0x1e0   : > { %2982 = vmatprep.subr.bf16.mxu0 %v4632_v1  ;;  %3132 = vmatprep.subr.bf16.mxu1 %v4632_v1 }
 0x1e3   : > { %2983 = vmatpush1.bf16.msra.mxu0 %v4594_v50  ;;  %3133 = vmatpush1.bf16.msra.mxu1 %v4595_v52 }
 0x1e4   : > { %3260 = vmatprep.subr.bf16.mxu0 %v4632_v1  ;;  %3410 = vmatprep.subr.bf16.mxu1 %v4632_v1 }
 0x1e6   : > { %2993 = vmatmul.mubr.bf16.vlgmr.msra.gmra.mrb[36].mxu0 %v2882_v53  ;;  %3143 = vmatmul.mubr.bf16.vlgmr.msra.gmra.mrb[36].mxu1 %v3029_v55 }
 0x1e7   : > { %3261 = vmatpush1.bf16.msra.mxu0 %v4598_v56  ;;  %3411 = vmatpush1.bf16.msra.mxu1 %v4599_v57 }
 0x1e8   : > { %3262 = vmatprep.subr.bf16.mxu0 %v4632_v1  ;;  %3412 = vmatprep.subr.bf16.mxu1 %v4632_v1 }
 0x1e9   : > { %4288 = vmatprep.mubr.msk.bf16.mxu0 %vm302_vm0, %v3183_v58  ;;  %4325 = vmatprep.mubr.msk.bf16.mxu1 %vm302_vm0, %v3333_v59 }
 0x1eb   : > { %3263 = vmatpush1.bf16.msra.mxu0 %v4600_v60  ;;  %3413 = vmatpush1.bf16.msra.mxu1 %v4601_v61 }
 0x1ec   : > { %3264 = vmatprep.subr.bf16.mxu0 %v4632_v1  ;;  %3414 = vmatprep.subr.bf16.mxu1 %v4632_v1 }
 0x1ef   : > { %3265 = vmatpush1.bf16.msra.mxu0 %v4602_v62  ;;  %3415 = vmatpush1.bf16.msra.mxu1 %v4603_v63 }
 0x1f0   : > { %3266 = vmatprep.subr.bf16.mxu0 %v4632_v1  ;;  %3416 = vmatprep.subr.bf16.mxu1 %v4632_v1 }
 0x1f3   : > { %3267 = vmatpush1.bf16.msra.mxu0 %v4604_v0  ;;  %3417 = vmatpush1.bf16.msra.mxu1 %v4605_v2 }
 0x1f4   : > { %3268 = vmatprep.subr.bf16.mxu0 %v4632_v1  ;;  %3418 = vmatprep.subr.bf16.mxu1 %v4632_v1 }
 0x1f7   : > { %3269 = vmatpush1.bf16.msra.mxu0 %v4606_v3  ;;  %3419 = vmatpush1.bf16.msra.mxu1 %v4607_v4 }
 0x1f8   : > { %3270 = vmatprep.subr.bf16.mxu0 %v4632_v1  ;;  %3420 = vmatprep.subr.bf16.mxu1 %v4632_v1 }
 0x1f9   : > { %v1799_v7 = vpop.f32.mrb[20].mxu0  ;;  %v1949_v9 = vpop.f32.mrb[20].mxu1 }
 0x1fa   : > { %v1805_v8 = vadd.f32 %v1799_v7, %v5678_v34  ;;  %v1801_v10 = vpop.f32.mrb[21].mxu0  ;;  %v1951_v11 = vpop.f32.mrb[21].mxu1 }
 0x1fb   : > { %v1802_v12 = vpop.f32.mrb[22].mxu0  ;;  %3271 = vmatpush1.bf16.msra.mxu0 %v4608_v5  ;;  %v1952_v15 = vpop.f32.mrb[22].mxu1  ;;  %3421 = vmatpush1.bf16.msra.mxu1 %v4609_v6 }
 0x1fc   : > { %v1955_v14 = vadd.f32 %v1949_v9, %v1805_v8  ;;  %v1803_v16 = vpop.f32.mrb[23].mxu0  ;;  %3272 = vmatprep.subr.bf16.mxu0 %v4632_v1  ;;  %v1953_v18 = vpop.f32.mrb[23].mxu1  ;;  %3422 = vmatprep.subr.bf16.mxu1 %v4632_v1 }
 0x1ff   : > { %3273 = vmatpush1.bf16.msra.mxu0 %v4610_v13  ;;  %3423 = vmatpush1.bf16.msra.mxu1 %v4611_v17  ;;  %v3451_v13 = vld [vmem:[%s5845_s2] sm:$0x1] }
 0x200   : > { %3274 = vmatprep.subr.bf16.mxu0 %v4632_v1  ;;  %3424 = vmatprep.subr.bf16.mxu1 %v4632_v1 }
 0x203   : > { %3275 = vmatpush1.bf16.msra.mxu0 %v4612_v19  ;;  %3425 = vmatpush1.bf16.msra.mxu1 %v4613_v20 }
 0x204   : > { %3276 = vmatprep.subr.bf16.mxu0 %v4632_v1  ;;  %3426 = vmatprep.subr.bf16.mxu1 %v4632_v1 }
 0x207   : > { %3277 = vmatpush1.bf16.msra.mxu0 %v4614_v21  ;;  %3427 = vmatpush1.bf16.msra.mxu1 %v4615_v22  ;;  %v3458_v22 = vld [vmem:[%s166_s18] sm:$0x1] }
 0x208   : > { %3278 = vmatprep.subr.bf16.mxu0 %v4632_v1  ;;  %3428 = vmatprep.subr.bf16.mxu1 %v4632_v1 }
 0x20b   : > { %3279 = vmatpush1.bf16.msra.mxu0 %v4616_v23  ;;  %3429 = vmatpush1.bf16.msra.mxu1 %v4617_v24 }
 0x20c   : > { %3280 = vmatprep.subr.bf16.mxu0 %v4632_v1  ;;  %3430 = vmatprep.subr.bf16.mxu1 %v4632_v1 }
 0x20f   : > { %3281 = vmatpush1.bf16.msra.mxu0 %v4618_v25  ;;  %3431 = vmatpush1.bf16.msra.mxu1 %v4619_v27 }
 0x210   : > { %3282 = vmatprep.subr.bf16.mxu0 %v4632_v1  ;;  %3432 = vmatprep.subr.bf16.mxu1 %v4632_v1 }
 0x213   : > { %3283 = vmatpush1.bf16.msra.mxu0 %v4620_v28  ;;  %3433 = vmatpush1.bf16.msra.mxu1 %v4621_v30 }
 0x216   : > { %3293 = vmatmul.mubr.bf16.vlgmr.msra.gmra.mrb[40].mxu0 %v3182_v31  ;;  %3443 = vmatmul.mubr.bf16.vlgmr.msra.gmra.mrb[40].mxu1 %v3329_v32 }
 0x229   : > { %v2099_v33 = vpop.f32.mrb[24].mxu0  ;;  %v2249_v35 = vpop.f32.mrb[24].mxu1 }
 0x22a   : > { %v2105_v34 = vadd.f32 %v2099_v33, %v1955_v14  ;;  %v2101_v36 = vpop.f32.mrb[25].mxu0  ;;  %v2251_v37 = vpop.f32.mrb[25].mxu1 }
 0x22b   : > { %v2102_v38 = vpop.f32.mrb[26].mxu0  ;;  %v2252_v40 = vpop.f32.mrb[26].mxu1 }
 0x22c   : > { %v2255_v39 = vadd.f32 %v2249_v35, %v2105_v34  ;;  %v2103_v41 = vpop.f32.mrb[27].mxu0  ;;  %v2253_v42 = vpop.f32.mrb[27].mxu1 }
 0x259   : > { %v2399_v43 = vpop.f32.mrb[28].mxu0  ;;  %v2549_v45 = vpop.f32.mrb[28].mxu1 }
 0x25a   : > { %v2405_v44 = vadd.f32 %v2399_v43, %v2255_v39  ;;  %v2401_v1 = vpop.f32.mrb[29].mxu0  ;;  %v2551_v46 = vpop.f32.mrb[29].mxu1 }
 0x25b   : > { %v2402_v47 = vpop.f32.mrb[30].mxu0  ;;  %v2552_v49 = vpop.f32.mrb[30].mxu1 }
 0x25c   : > { %v2555_v48 = vadd.f32 %v2549_v45, %v2405_v44  ;;  %v2403_v50 = vpop.f32.mrb[31].mxu0  ;;  %v2553_v51 = vpop.f32.mrb[31].mxu1 }
 0x289   : > { %v2697_v52 = vpop.f32.mrb[32].mxu0  ;;  %v2844_v54 = vpop.f32.mrb[32].mxu1 }
 0x28a   : > { %v2703_v53 = vadd.f32 %v2697_v52, %v2555_v48  ;;  %v2699_v55 = vpop.f32.mrb[33].mxu0  ;;  %v2846_v56 = vpop.f32.mrb[33].mxu1 }
 0x28b   : > { %v2700_v57 = vpop.f32.mrb[34].mxu0  ;;  %v2847_v59 = vpop.f32.mrb[34].mxu1 }
 0x28c   : > { %v2850_v58 = vadd.f32 %v2844_v54, %v2703_v53  ;;  %v2701_v60 = vpop.f32.mrb[35].mxu0  ;;  %v2848_v61 = vpop.f32.mrb[35].mxu1 }
 0x2b9   : > { %v2994_v62 = vpop.f32.mrb[36].mxu0  ;;  %v3144_v0 = vpop.f32.mrb[36].mxu1 }
 0x2ba   : > { %v3000_v63 = vadd.f32 %v2994_v62, %v2850_v58  ;;  %v2996_v2 = vpop.f32.mrb[37].mxu0  ;;  %v3146_v3 = vpop.f32.mrb[37].mxu1 }
 0x2bb   : > { %v2997_v4 = vpop.f32.mrb[38].mxu0  ;;  %v3147_v6 = vpop.f32.mrb[38].mxu1 }
 0x2bc   : > { %v3150_v5 = vadd.f32 %v3144_v0, %v3000_v63  ;;  %v2998_v7 = vpop.f32.mrb[39].mxu0  ;;  %v3148_v8 = vpop.f32.mrb[39].mxu1 }
 0x2e9   : > { %v3294_v9 = vpop.f32.mrb[40].mxu0  ;;  %v3444_v11 = vpop.f32.mrb[40].mxu1 }
 0x2ea   : > { %v3300_v10 = vadd.f32 %v3294_v9, %v3150_v5  ;;  %v3296_v12 = vpop.f32.mrb[41].mxu0  ;;  %v3446_v14 = vpop.f32.mrb[41].mxu1 }
 0x2eb   : > { %v3297_v15 = vpop.f32.mrb[42].mxu0  ;;  %v3447_v17 = vpop.f32.mrb[42].mxu1 }
 0x2ec   : > { %v3450_v16 = vadd.f32 %v3444_v11, %v3300_v10  ;;  %v3298_v18 = vpop.f32.mrb[43].mxu0  ;;  %v3448_v19 = vpop.f32.mrb[43].mxu1 }
 0x2ee   : > { %v3452_v20 = vadd.f32 %v3451_v13, %v3450_v16 }
 0x2f0   : > { %v3453_v21 = vmax.f32 %v3452_v20, 0.0 }
 0x2f2   : > { %v3454_v23 = vpack.c.bf16 %v3453_v21, %v3453_v21 }
 0x2f4   : > { %v3459_v24 = vsel %vm3457_vm3, %v3454_v23, %v3458_v22 }
 0x2f5   : > { %3460 = vst [vmem:[%s166_s18] sm:$0x1] %v3459_v24 }
 0x2f6 PF: > { %s13_s12 = sadd.s32 1, %s4630_s12  }
 0x2f7   : > { %p10_p4 = scmp.ge.s32.totalorder %s13_s12, 4  }
 0x2f9   :  { %12 = sbr.rel (!%p10_p4) target bundleno = 1 (0x1), region = 83 }

// kernel: conv1d_autoencoder.6
= control target key start
LH: loop header
LB: loop body
LE: loop exit
PB: predicated region body
PF: predicated region fallthrough
CT: control target
= control target key end

     0   :  { %s4788_s12 = smov 0   ;;  %s4790_s13 = smov 0   ;;  %s5259_s0 = inlined_call_operand.vmem [shape: bf16[2,3,42,128], index: 0, kind: input, shape index: {}]   ;;  %s5260_s1 = inlined_call_operand.vmem [shape: bf16[3,22,128,64], index: 1, kind: input, shape index: {}]   ;;  %s5261_s2 = inlined_call_operand.vmem [shape: f32[1,64], index: 2, kind: input, shape index: {}]   ;;  %s5262_s3 = inlined_call_operand.vmem [shape: bf16[2,3,21,64], index: 3, kind: output, shape index: {}]  }
   0x1   :  { %s4792_s14 = smov 0   ;;  %s4794_s15 = smov 0  }
   0x2   :  { %s4796_s16 = smov 0  }
   0x3 LB: > { %s22_s17 = sadd.s32 1, %s4758_s14  ;;  %s25_s18 = sadd.s32 1, %s4762_s15  ;;  %s4766_s16 = sphi %s4796_s16, %s13_s16   ;;  %s4762_s15 = sphi %s4794_s15, %s5266_s15   ;;  %s4758_s14 = sphi %s4792_s14, %s5265_s14   ;;  %s4754_s13 = sphi %s4790_s13, %s5264_s13   ;;  %s4750_s12 = sphi %s4788_s12, %s5263_s12  }
   0x4   : > { %p23_p0 = scmp.ge.s32.totalorder %s22_s17, 3  ;;  %p3278_p1 = scmp.ge.s32.totalorder %s4766_s16, 1 }
   0x5   : > { %p167_p2 = scmp.lt.s32.totalorder %s4766_s16, 7 }
   0x6   : > { %s5268_s17 = smov (%p23_p0, %s22_s17), 0  ;;  %s5270_s18 = smov (!%p23_p0, %s25_s18), %s4762_s15 }
   0x7   : > { %p168_p3 = pnand %p3278_p1, %p167_p2  ;;  %p27_p4 = scmp.ge.s32.totalorder %s5270_s18, 2 }
   0x8   : > { %p206_p5 = scmp.lt.s32.totalorder (!%p168_p3), %s4750_s12, 2  ;;  %p204_p6 = scmp.lt.s32.totalorder (!%p168_p3), %s4754_s13, 1  ;;  %vm272_vm0 = vsmask.f32 (!%p168_p3), 7424  ;;  %vm631_vm1 = vsmask.f32 (!%p168_p3), 6400 }
   0x9   : > { %s5272_s18 = smov (%p27_p4, %s5270_s18), 0  ;;  %171 = sbr.rel (%p168_p3) target bundleno = 599 (0x257), region = 32 }
   0xa   : > { %vm509_vm2 = vcmask (!%p168_p3), 1046528   ;;  %vm781_vm3 = vcmask (!%p168_p3), 1045504   ;;  %vm903_vm4 = vsmask.f32 (!%p168_p3), 5376  ;;  %vm1047_vm5 = vcmask (!%p168_p3), 1044480  }
   0xb   : > { %vm1169_vm6 = vsmask.f32 (!%p168_p3), 4352  ;;  %vm3161_vm7 = vcmask (!%p168_p3), 518144   ;;  %vm3162_vm8 = vsmask.f32 (!%p168_p3), 2304  ;;  %vm3158_vm10 = vcmask (!%p168_p3), 519168  }
   0xc   : > { %vm3163_vm9 = vmand (!%p168_p3), %vm3161_vm7, %vm3162_vm8 }
  0x10   : > { %s5274_s12 = smov (!%p206_p5, %s4750_s12), 2  ;;  %s5276_s13 = smov (!%p204_p6, %s4754_s13), 1 }
  0x11   : > { %s4487_s19 = smul.u32 1408, %s5274_s12 }
  0x12   : > { %s4485_s23 = smul.u32 6, %s5274_s12 }
  0x13   : > { %s4826_s22 = scalar_lea.vmem %s5260_s1, %s4487_s19  ;;  %s4486_s24 = smul.u32 18, %s5276_s13 }
  0x14   : > { %v4530_v0 = vld [vmem:[%s4826_s22 + $0x40] sm:$0xff]   ;;  %v4532_v2 = vld [vmem:[%s4826_s22 + $0x48] sm:$0xff]   ;;  %v4534_v4 = vld [vmem:[%s4826_s22 + $0x50] sm:$0xff]   ;;  %s4488_s30 = smul.u32 3, %s5274_s12 }
  0x15   : > { %v4531_v1 = vld [vmem:[%s4826_s22] sm:$0xff]   ;;  %4045 = vmatprep.subr.bf16.mxu0 %v4530_v0  ;;  %v4533_v3 = vld [vmem:[%s4826_s22 + $0x8] sm:$0xff]   ;;  %v4535_v5 = vld [vmem:[%s4826_s22 + $0x10] sm:$0xff]   ;;  %s210_s25 = sadd.s32 %s4486_s24, %s4485_s23  ;;  %s4489_s4 = smul.u32 9, %s5276_s13 }
  0x16   : > { %4065 = vmatprep.subr.bf16.mxu1 %v4531_v1  ;;  %4046 = vmatpush3.bf16.msra.mxu0 %v4530_v0  ;;  %v4536_v6 = vld [vmem:[%s4826_s22 + $0x58] sm:$0xff]   ;;  %s3279_s26 = sshll.u32 %s210_s25, 2  ;;  %v4538_v8 = vld [vmem:[%s4826_s22 + $0x60] sm:$0xff]   ;;  %v4540_v10 = vld [vmem:[%s4826_s22 + $0x68] sm:$0xff]  }
  0x17   : > { %4066 = vmatpush3.bf16.msra.mxu1 %v4531_v1  ;;  %4047 = vmatprep.subr.bf16.mxu0 %v4532_v2  ;;  %v4537_v7 = vld [vmem:[%s4826_s22 + $0x18] sm:$0xff]   ;;  %v4539_v9 = vld [vmem:[%s4826_s22 + $0x20] sm:$0xff]   ;;  %s4843_s29 = scalar_lea.vmem %s5259_s0, %s3279_s26  ;;  %v4541_v13 = vld [vmem:[%s4826_s22 + $0x28] sm:$0xff]   ;;  %s224_s5 = sadd.s32 %s4489_s4, %s4488_s30 }
  0x18   : > { %4067 = vmatprep.subr.bf16.mxu1 %v4533_v3  ;;  %v228_v11 = vld [vmem:[%s4843_s29] sm:$0xf]  ;;  %v229_v12 = vld [vmem:[%s4843_s29 + $0x4] sm:$0xf]  ;;  %v4542_v16 = vld [vmem:[%s4826_s22 + $0x70] sm:$0xff]   ;;  %s3281_s6 = sshll.u32 %s224_s5, 2 }
  0x19   : > { %v3298_v14 = vcombine.low %v228_v11, %v229_v12  ;;  %v4547_v15 = vld [vmem:[%s4843_s29 + $0x8] ss:$0 sps:$4 sm:$0x77]   ;;  %v4543_v20 = vld [vmem:[%s4826_s22 + $0x30] sm:$0xff]   ;;  %v4544_v24 = vld [vmem:[%s4826_s22 + $0x78] sm:$0xff]   ;;  %s226_s11 = scalar_lea.vmem %s5262_s3, %s3281_s6 }
  0x1a   : > { %4048 = vmatpush3.bf16.msra.mxu0 %v4532_v2  ;;  %v281_v19 = vshll.u32 %v4547_v15, 16  ;;  %v4545_v25 = vld [vmem:[%s4826_s22 + $0x38] sm:$0xff]   ;;  %v285_v27 = vshrl.u32 %v4547_v15, 16  ;;  %v4548_v28 = vld [vmem:[%s4826_s22 + $0x80] sm:$0xff]   ;;  %v4550_v31 = vld [vmem:[%s4826_s22 + $0x88] sm:$0xff]  }
  0x1b   : > { %4068 = vmatpush3.bf16.msra.mxu1 %v4533_v3  ;;  %4049 = vmatprep.subr.bf16.mxu0 %v4534_v4  ;;  %v274_v17 = vshrl.u32 %v3298_v14, 16  ;;  %v276_v18 = vshll.u32 %v3298_v14, 16  ;;  %v4549_v29 = vld [vmem:[%s4826_s22 + $0xc0] sm:$0xff]   ;;  %v4551_v32 = vld [vmem:[%s4826_s22 + $0xc8] sm:$0xff]   ;;  %v4552_v36 = vld [vmem:[%s4826_s22 + $0x90] sm:$0xff]  }
  0x1c   : > { %4069 = vmatprep.subr.bf16.mxu1 %v4535_v5  ;;  %4081 = vmatprep.mubr.bf16.mxu1 %v3298_v14  ;;  %v283_v22 = vrot.slane %v281_v19, 1  ;;  %v484_v33 = vld [vmem:[%s4843_s29] sm:$0xe]  ;;  %v4861_v35 = vld [vmem:[%s4843_s29 + $0x8] ss:$0 sps:$4 sm:$0xff]   ;;  %v4553_v41 = vld [vmem:[%s4826_s22 + $0xd0] sm:$0xff]  }
  0x1d   : > { %v278_v21 = vrot.slane %v276_v18, 1  ;;  %v3332_v34 = vcombine.low %v484_v33, %v229_v12  ;;  %v511_v38 = vrot.slane %v4861_v35, 1  ;;  %v641_v42 = vshrl.u32 %v4861_v35, 16  ;;  %v4554_v47 = vld [vmem:[%s4826_s22 + $0x98] sm:$0xff]   ;;  %v4556_v54 = vld [vmem:[%s4826_s22 + $0xa0] sm:$0xff]   ;;  %v4558_v56 = vld [vmem:[%s4826_s22 + $0xa8] sm:$0xff]  }
  0x1e   : > { %4050 = vmatpush3.bf16.msra.mxu0 %v4534_v4  ;;  %v287_v30 = vor.u32 %v285_v27, %v283_v22  ;;  %v644_v43 = vshll.u32 %v4861_v35, 16  ;;  %v4555_v51 = vld [vmem:[%s4826_s22 + $0xd8] sm:$0xff]   ;;  %v4557_v55 = vld [vmem:[%s4826_s22 + $0xe0] sm:$0xff]   ;;  %v4559_v57 = vld [vmem:[%s4826_s22 + $0xe8] sm:$0xff]  }
  0x1f   : > { %4070 = vmatpush3.bf16.msra.mxu1 %v4535_v5  ;;  %4051 = vmatprep.subr.bf16.mxu0 %v4536_v6  ;;  %v279_v23 = vor.u32 %v278_v21, %v274_v17  ;;  %v510_v37 = vrot.slane %v3332_v34, 1  ;;  %v633_v39 = vshrl.u32 %v3332_v34, 16  ;;  %v636_v40 = vshll.u32 %v3332_v34, 16  ;;  %v4560_v58 = vld [vmem:[%s4826_s22 + $0xb0] sm:$0xff]   ;;  %v750_v59 = vld [vmem:[%s4843_s29] sm:$0xc] }
  0x20   : > { %4071 = vmatprep.subr.bf16.mxu1 %v4537_v7  ;;  %v643_v48 = vrot.slane %v641_v42, 1  ;;  %v646_v49 = vrot.slane %v644_v43, 2  ;;  %v4884_v60 = vld [vmem:[%s4843_s29 + $0x4] sm:$0xf]  ;;  %v4887_v61 = vld [vmem:[%s4843_s29 + $0x8] sm:$0xf] }
  0x21   : > { %v284_v26 = vsel %vm272_vm0, %v279_v23, %v283_v22  ;;  %v512_v44 = vsel %vm509_vm2, %v510_v37, %v511_v38  ;;  %v635_v45 = vrot.slane %v633_v39, 1  ;;  %v638_v46 = vrot.slane %v636_v40, 2  ;;  %v753_v62 = vld [vmem:[%s4843_s29 + $0xc] sm:$0x1]  ;;  %v4561_v63 = vld [vmem:[%s4826_s22 + $0xf0] sm:$0xff]   ;;  %v4562_v5 = vld [vmem:[%s4826_s22 + $0xb8] sm:$0xff]  }
  0x22   : > { %4052 = vmatpush3.bf16.msra.mxu0 %v4536_v6  ;;  %4061 = vmatprep.mubr.bf16.mxu0 %v284_v26  ;;  %v4873_v52 = vor.u32 %v646_v49, %v643_v48  ;;  %v3382_v0 = vcombine.low %v750_v59, %v4884_v60  ;;  %v4893_v1 = vcombine.low %v4887_v61, %v753_v62  ;;  %v4567_v14 = vld [vmem:[%s4826_s22 + $0x140] sm:$0xff]   ;;  %v4568_v19 = vld [vmem:[%s4826_s22 + $0x108] sm:$0xff]   ;;  %v4570_v23 = vld [vmem:[%s4826_s22 + $0x110] sm:$0xff]  }
  0x23   : > { %4072 = vmatpush3.bf16.msra.mxu1 %v4537_v7  ;;  %4053 = vmatprep.subr.bf16.mxu0 %v4538_v8  ;;  %v639_v50 = vor.u32 %v638_v46, %v635_v45  ;;  %v4897_v2 = vcombine.low %v4884_v60, %v4887_v61  ;;  %v4573_v26 = vld [vmem:[%s4826_s22 + $0x158] sm:$0xff]   ;;  %v4574_v27 = vld [vmem:[%s4826_s22 + $0x120] sm:$0xff]   ;;  %v4578_v35 = vld [vmem:[%s4826_s22 + $0x130] sm:$0xff]  }
  0x24   : > { %4073 = vmatprep.subr.bf16.mxu1 %v4539_v9  ;;  %v905_v3 = vshrl.u32 %v3382_v0, 16  ;;  %v908_v4 = vshll.u32 %v3382_v0, 16  ;;  %v913_v6 = vshrl.u32 %v4893_v1, 16  ;;  %v916_v7 = vshll.u32 %v4893_v1, 16  ;;  %v4581_v42 = vld [vmem:[%s4826_s22 + $0x178] sm:$0xff]   ;;  %v4585_v48 = vld [vmem:[%s4826_s22 + $0x1c0] sm:$0xff]  }
  0x25   : > { %v648_v53 = vsel %vm631_vm1, %v639_v50, %v4873_v52  ;;  %v4590_v59 = vld [vmem:[%s4826_s22 + $0x198] sm:$0xff]   ;;  %v4592_v62 = vld [vmem:[%s4826_s22 + $0x1a0] sm:$0xff]  }
  0x26   : > { %4054 = vmatpush3.bf16.msra.mxu0 %v4538_v8  ;;  %v4563_v8 = vld [vmem:[%s4826_s22 + $0xf8] sm:$0xff]   ;;  %v915_v11 = vrot.slane %v913_v6, 2  ;;  %v918_v12 = vrot.slane %v916_v7, 3  ;;  %v1431_v6 = vshll.u32 %v4897_v2, 16 }
  0x27   : > { %4074 = vmatpush3.bf16.msra.mxu1 %v4539_v9  ;;  %4055 = vmatprep.subr.bf16.mxu0 %v4540_v10  ;;  %v907_v9 = vrot.slane %v905_v3, 2  ;;  %v4596_v3 = vld [vmem:[%s4826_s22 + $0x1b0] sm:$0xff]   ;;  %v4598_v7 = vld [vmem:[%s4826_s22 + $0x1b8] sm:$0xff]  }
  0x28   : > { %4075 = vmatprep.subr.bf16.mxu1 %v4541_v13  ;;  %v4906_v18 = vor.u32 %v918_v12, %v915_v11  ;;  %v4602_v12 = vld [vmem:[%s4826_s22 + $0x200] sm:$0xff]  }
  0x2a   : > { %4056 = vmatpush3.bf16.msra.mxu0 %v4540_v10  ;;  %v910_v10 = vrot.slane %v908_v4, 3  ;;  %v4597_v4 = vld [vmem:[%s4826_s22 + $0x1f0] sm:$0xff]  }
  0x2b   : > { %4076 = vmatpush3.bf16.msra.mxu1 %v4541_v13  ;;  %4057 = vmatprep.subr.bf16.mxu0 %v4542_v16  ;;  %v4566_v13 = vld [vmem:[%s4826_s22 + $0x100] sm:$0xff]  }
  0x2c   : > { %4077 = vmatprep.subr.bf16.mxu1 %v4543_v20  ;;  %v911_v17 = vor.u32 %v910_v10, %v907_v9  ;;  %v1429_v9 = vshrl.u32 %v4897_v2, 16  ;;  %v1433_v10 = vrot.slane %v1431_v6, 1  ;;  %v4633_v6 = vld [vmem:[%s4826_s22 + $0x2f0] sm:$0xff]  }
  0x2e   : > { %4058 = vmatpush3.bf16.msra.mxu0 %v4542_v16  ;;  %v783_v16 = vrot.slane %v4893_v1, 2  ;;  %v920_v22 = vsel %vm903_vm4, %v911_v17, %v4906_v18  ;;  %v4595_v1 = vld [vmem:[%s4826_s22 + $0x1e8] sm:$0xff]  }
  0x2f   : > { %4078 = vmatpush3.bf16.msra.mxu1 %v4543_v20  ;;  %4059 = vmatprep.subr.bf16.mxu0 %v4544_v24  ;;  %v4569_v20 = vld [vmem:[%s4826_s22 + $0x148] sm:$0xff]  }
  0x30   : > { %4079 = vmatprep.subr.bf16.mxu1 %v4545_v25  ;;  %v4605_v17 = vld [vmem:[%s4826_s22 + $0x248] sm:$0xff]  }
  0x32   : > { %4060 = vmatpush3.bf16.msra.mxu0 %v4544_v24  ;;  %v4571_v24 = vld [vmem:[%s4826_s22 + $0x150] sm:$0xff]  }
  0x33   : > { %4080 = vmatpush3.bf16.msra.mxu1 %v4545_v25  ;;  %4085 = vmatprep.subr.bf16.mxu0 %v4548_v28  ;;  %v4572_v25 = vld [vmem:[%s4826_s22 + $0x118] sm:$0xff]  }
  0x34   : > { %4105 = vmatprep.subr.bf16.mxu1 %v4549_v29 }
  0x35   : > { %4062 = vmatmul.mubr.bf16.vlgmr.msra.gmra.mrb[0].mxu0 %v287_v30  ;;  %v1022_v30 = vld [vmem:[%s4843_s29] sm:$0x8] }
  0x36   : > { %4082 = vmatmul.mubr.bf16.vlgmr.msra.gmra.mrb[0].mxu1 %v4547_v15  ;;  %4086 = vmatpush3.bf16.msra.mxu0 %v4548_v28  ;;  %v782_v15 = vrot.slane %v3382_v0, 2  ;;  %v4575_v28 = vld [vmem:[%s4826_s22 + $0x160] sm:$0xff]   ;;  %v3432_v33 = vcombine.low %v1022_v30, %v4884_v60  ;;  %v4591_v60 = vld [vmem:[%s4826_s22 + $0x1d8] sm:$0xff]   ;;  %v4594_v0 = vld [vmem:[%s4826_s22 + $0x1a8] sm:$0xff]  }
  0x37   : > { %4106 = vmatpush3.bf16.msra.mxu1 %v4549_v29  ;;  %4087 = vmatprep.subr.bf16.mxu0 %v4550_v31  ;;  %v4576_v29 = vld [vmem:[%s4826_s22 + $0x128] sm:$0xff]   ;;  %v4615_v30 = vld [vmem:[%s4826_s22 + $0x270] sm:$0xff]  }
  0x38   : > { %4107 = vmatprep.subr.bf16.mxu1 %v4551_v32  ;;  %4101 = vmatprep.mubr.bf16.mxu0 %v512_v44  ;;  %v784_v21 = vsel %vm781_vm3, %v782_v15, %v783_v16  ;;  %v1171_v37 = vshrl.u32 %v3432_v33, 16  ;;  %v1048_v49 = vrot.slane %v3432_v33, 3 }
  0x39   : > { %4121 = vmatprep.mubr.bf16.mxu1 %v648_v53 }
  0x3a   : > { %4088 = vmatpush3.bf16.msra.mxu0 %v4550_v31  ;;  %v1023_v31 = vld [vmem:[%s4843_s29 + $0xc] sm:$0x3]  ;;  %v1173_v43 = vrot.slane %v1171_v37, 3  ;;  %v4617_v37 = vld [vmem:[%s4826_s22 + $0x278] sm:$0xff]  }
  0x3b   : > { %4108 = vmatpush3.bf16.msra.mxu1 %v4551_v32  ;;  %4089 = vmatprep.subr.bf16.mxu0 %v4552_v36  ;;  %v4577_v32 = vld [vmem:[%s4826_s22 + $0x168] sm:$0xff]   ;;  %v4930_v34 = vcombine.low %v4887_v61, %v1023_v31 }
  0x3c   : > { %4109 = vmatprep.subr.bf16.mxu1 %v4553_v41 }
  0x3d   : > { %v1179_v39 = vshrl.u32 %v4930_v34, 16  ;;  %v1182_v40 = vshll.u32 %v4930_v34, 16  ;;  %v1049_v50 = vrot.slane %v4930_v34, 3 }
  0x3e   : > { %4090 = vmatpush3.bf16.msra.mxu0 %v4552_v36  ;;  %v4579_v36 = vld [vmem:[%s4826_s22 + $0x170] sm:$0xff]  }
  0x3f   : > { %4110 = vmatpush3.bf16.msra.mxu1 %v4553_v41  ;;  %4091 = vmatprep.subr.bf16.mxu0 %v4554_v47  ;;  %v4580_v41 = vld [vmem:[%s4826_s22 + $0x138] sm:$0xff]   ;;  %v1181_v45 = vrot.slane %v1179_v39, 3  ;;  %v1184_v46 = vrot.slane %v1182_v40, 4 }
  0x40   : > { %4111 = vmatprep.subr.bf16.mxu1 %v4555_v51 }
  0x41   : > { %v4942_v53 = vor.u32 %v1184_v46, %v1181_v45  ;;  %v4621_v45 = vld [vmem:[%s4826_s22 + $0x2c0] sm:$0xff]  }
  0x42   : > { %4092 = vmatpush3.bf16.msra.mxu0 %v4554_v47  ;;  %v4584_v47 = vld [vmem:[%s4826_s22 + $0x180] sm:$0xff]  }
  0x43   : > { %4112 = vmatpush3.bf16.msra.mxu1 %v4555_v51  ;;  %4093 = vmatprep.subr.bf16.mxu0 %v4556_v54  ;;  %v4586_v51 = vld [vmem:[%s4826_s22 + $0x188] sm:$0xff]  }
  0x44   : > { %4113 = vmatprep.subr.bf16.mxu1 %v4557_v55 }
  0x46   : > { %4094 = vmatpush3.bf16.msra.mxu0 %v4556_v54  ;;  %v4587_v54 = vld [vmem:[%s4826_s22 + $0x1c8] sm:$0xff]  }
  0x47   : > { %4114 = vmatpush3.bf16.msra.mxu1 %v4557_v55  ;;  %4095 = vmatprep.subr.bf16.mxu0 %v4558_v56  ;;  %v1050_v55 = vsel %vm1047_vm5, %v1048_v49, %v1049_v50  ;;  %v4622_v49 = vld [vmem:[%s4826_s22 + $0x288] sm:$0xff]  }
  0x48   : > { %4115 = vmatprep.subr.bf16.mxu1 %v4559_v57 }
  0x4a   : > { %4096 = vmatpush3.bf16.msra.mxu0 %v4558_v56 }
  0x4b   : > { %4116 = vmatpush3.bf16.msra.mxu1 %v4559_v57  ;;  %4097 = vmatprep.subr.bf16.mxu0 %v4560_v58  ;;  %v4588_v57 = vld [vmem:[%s4826_s22 + $0x190] sm:$0xff]  }
  0x4c   : > { %4117 = vmatprep.subr.bf16.mxu1 %v4561_v63 }
  0x4e   : > { %4098 = vmatpush3.bf16.msra.mxu0 %v4560_v58  ;;  %v4589_v58 = vld [vmem:[%s4826_s22 + $0x1d0] sm:$0xff]  }
  0x4f   : > { %4118 = vmatpush3.bf16.msra.mxu1 %v4561_v63  ;;  %4099 = vmatprep.subr.bf16.mxu0 %v4562_v5  ;;  %v4593_v63 = vld [vmem:[%s4826_s22 + $0x1e0] sm:$0xff]  }
  0x50   : > { %4119 = vmatprep.subr.bf16.mxu1 %v4563_v8 }
  0x52   : > { %4100 = vmatpush3.bf16.msra.mxu0 %v4562_v5  ;;  %v4964_v5 = vld [vmem:[%s4843_s29 + $0xc] ss:$0 sps:$4 sm:$0x77]  }
  0x53   : > { %4120 = vmatpush3.bf16.msra.mxu1 %v4563_v8  ;;  %4125 = vmatprep.subr.bf16.mxu0 %v4566_v13  ;;  %v4599_v8 = vld [vmem:[%s4826_s22 + $0x1f8] sm:$0xff]   ;;  %v1436_v11 = vshll.u32 %v4964_v5, 16 }
  0x54   : > { %4145 = vmatprep.subr.bf16.mxu1 %v4567_v14 }
  0x55   : > { %4102 = vmatmul.mubr.bf16.vlgmr.msra.gmra.mrb[4].mxu0 %v511_v38  ;;  %v1174_v38 = vshll.u32 %v3432_v33, 16  ;;  %v4973_v15 = vrot.slane %v1436_v11, 1  ;;  %v4616_v33 = vld [vmem:[%s4826_s22 + $0x238] sm:$0xff]  }
  0x56   : > { %4122 = vmatmul.mubr.bf16.vlgmr.msra.gmra.mrb[4].mxu1 %v4873_v52  ;;  %4126 = vmatpush3.bf16.msra.mxu0 %v4566_v13  ;;  %v4603_v13 = vld [vmem:[%s4826_s22 + $0x240] sm:$0xff]   ;;  %v4634_v11 = vld [vmem:[%s4826_s22 + $0x2b8] sm:$0xff]  }
  0x57   : > { %4146 = vmatpush3.bf16.msra.mxu1 %v4567_v14  ;;  %4127 = vmatprep.subr.bf16.mxu0 %v4568_v19  ;;  %v1176_v44 = vrot.slane %v1174_v38, 4  ;;  %v1434_v14 = vor.u32 %v1433_v10, %v1429_v9  ;;  %v1440_v38 = vshrl.u32 %v4964_v5, 16 }
  0x58   : > { %4147 = vmatprep.subr.bf16.mxu1 %v4569_v20  ;;  %4141 = vmatprep.mubr.bf16.mxu0 %v784_v21  ;;  %v4608_v21 = vld [vmem:[%s4826_s22 + $0x218] sm:$0xff]  }
  0x59   : > { %4161 = vmatprep.mubr.bf16.mxu1 %v920_v22  ;;  %v1177_v52 = vor.u32 %v1176_v44, %v1173_v43  ;;  %v4609_v22 = vld [vmem:[%s4826_s22 + $0x258] sm:$0xff]   ;;  %v4620_v44 = vld [vmem:[%s4826_s22 + $0x280] sm:$0xff]  }
  0x5a   : > { %4128 = vmatpush3.bf16.msra.mxu0 %v4568_v19  ;;  %v4606_v19 = vld [vmem:[%s4826_s22 + $0x210] sm:$0xff]  }
  0x5b   : > { %4148 = vmatpush3.bf16.msra.mxu1 %v4569_v20  ;;  %4129 = vmatprep.subr.bf16.mxu0 %v4570_v23  ;;  %v1186_v56 = vsel %vm1169_vm6, %v1177_v52, %v4942_v53  ;;  %v4607_v20 = vld [vmem:[%s4826_s22 + $0x250] sm:$0xff]   ;;  %v4623_v52 = vld [vmem:[%s4826_s22 + $0x2c8] sm:$0xff]  }
  0x5c   : > { %4149 = vmatprep.subr.bf16.mxu1 %v4571_v24 }
  0x5e   : > { %4130 = vmatpush3.bf16.msra.mxu0 %v4570_v23  ;;  %v4610_v23 = vld [vmem:[%s4826_s22 + $0x220] sm:$0xff]  }
  0x5f   : > { %4150 = vmatpush3.bf16.msra.mxu1 %v4571_v24  ;;  %4131 = vmatprep.subr.bf16.mxu0 %v4572_v25  ;;  %v4611_v24 = vld [vmem:[%s4826_s22 + $0x260] sm:$0xff]  }
  0x60   : > { %4151 = vmatprep.subr.bf16.mxu1 %v4573_v26 }
  0x62   : > { %4132 = vmatpush3.bf16.msra.mxu0 %v4572_v25  ;;  %v1544_v25 = vld [vmem:[%s4843_s29 + $0x4] sm:$0xe] }
  0x63   : > { %4152 = vmatpush3.bf16.msra.mxu1 %v4573_v26  ;;  %4133 = vmatprep.subr.bf16.mxu0 %v4574_v27  ;;  %v4613_v26 = vld [vmem:[%s4826_s22 + $0x268] sm:$0xff]  }
  0x64   : > { %4153 = vmatprep.subr.bf16.mxu1 %v4575_v28 }
  0x66   : > { %4134 = vmatpush3.bf16.msra.mxu0 %v4574_v27  ;;  %v3532_v27 = vcombine.low %v1544_v25, %v4887_v61  ;;  %v5002_v61 = vld [vmem:[%s4843_s29 + $0x8] sm:$0xf] }
  0x67   : > { %4154 = vmatpush3.bf16.msra.mxu1 %v4575_v28  ;;  %4135 = vmatprep.subr.bf16.mxu0 %v4576_v29  ;;  %v4994_v28 = vld [vmem:[%s4843_s29 + $0xc] ss:$0 sps:$4 sm:$0xff]  }
  0x68   : > { %4155 = vmatprep.subr.bf16.mxu1 %v4577_v32  ;;  %v1691_v31 = vshrl.u32 %v3532_v27, 16  ;;  %v1699_v34 = vshrl.u32 %v4994_v28, 16  ;;  %v1569_v46 = vrot.slane %v3532_v27, 1 }
  0x6a   : > { %4136 = vmatpush3.bf16.msra.mxu0 %v4576_v29  ;;  %v4614_v29 = vld [vmem:[%s4826_s22 + $0x230] sm:$0xff]   ;;  %v1693_v40 = vrot.slane %v1691_v31, 1  ;;  %v4647_v31 = vld [vmem:[%s4826_s22 + $0x360] sm:$0xff]  }
  0x6b   : > { %4156 = vmatpush3.bf16.msra.mxu1 %v4577_v32  ;;  %4137 = vmatprep.subr.bf16.mxu0 %v4578_v35  ;;  %v1694_v32 = vshll.u32 %v3532_v27, 16  ;;  %v4643_v27 = vld [vmem:[%s4826_s22 + $0x350] sm:$0xff]  }
  0x6c   : > { %4157 = vmatprep.subr.bf16.mxu1 %v4579_v36 }
  0x6e   : > { %4138 = vmatpush3.bf16.msra.mxu0 %v4578_v35  ;;  %v1702_v35 = vshll.u32 %v4994_v28, 16 }
  0x6f   : > { %4158 = vmatpush3.bf16.msra.mxu1 %v4579_v36  ;;  %4139 = vmatprep.subr.bf16.mxu0 %v4580_v41  ;;  %v5005_v36 = vld [vmem:[%s4843_s29 + $0xc] sm:$0xf] }
  0x70   : > { %4159 = vmatprep.subr.bf16.mxu1 %v4581_v42  ;;  %v5011_v39 = vcombine.low %v5002_v61, %v5005_v36  ;;  %v1704_v43 = vrot.slane %v1702_v35, 2  ;;  %v4649_v35 = vld [vmem:[%s4826_s22 + $0x368] sm:$0xff]  }
  0x72   : > { %4140 = vmatpush3.bf16.msra.mxu0 %v4580_v41  ;;  %v1696_v41 = vrot.slane %v1694_v32, 2  ;;  %v4648_v32 = vld [vmem:[%s4826_s22 + $0x328] sm:$0xff]  }
  0x73   : > { %4160 = vmatpush3.bf16.msra.mxu1 %v4581_v42  ;;  %4165 = vmatprep.subr.bf16.mxu0 %v4584_v47  ;;  %v1701_v42 = vrot.slane %v1699_v34, 1  ;;  %v2079_v34 = vld [vmem:[%s4843_s29 + $0x10] sm:$0x3] }
  0x74   : > { %4185 = vmatprep.subr.bf16.mxu1 %v4585_v48 }
  0x75   : > { %4142 = vmatmul.mubr.bf16.vlgmr.msra.gmra.mrb[8].mxu0 %v783_v16  ;;  %v4604_v16 = vld [vmem:[%s4826_s22 + $0x208] sm:$0xff]  }
  0x76   : > { %4162 = vmatmul.mubr.bf16.vlgmr.msra.gmra.mrb[8].mxu1 %v4906_v18  ;;  %4166 = vmatpush3.bf16.msra.mxu0 %v4584_v47  ;;  %v1439_v18 = vsel %vm272_vm0, %v1434_v14, %v4973_v15  ;;  %v1570_v47 = vrot.slane %v4994_v28, 1  ;;  %v4644_v28 = vld [vmem:[%s4826_s22 + $0x318] sm:$0xff]  }
  0x77   : > { %4186 = vmatpush3.bf16.msra.mxu1 %v4585_v48  ;;  %4167 = vmatprep.subr.bf16.mxu0 %v4586_v51  ;;  %v1442_v48 = vor.u32 %v1440_v38, %v4973_v15  ;;  %v5074_v38 = vcombine.low %v5005_v36, %v2079_v34  ;;  %v4679_v34 = vld [vmem:[%s4826_s22 + $0x450] sm:$0xff]  }
  0x78   : > { %4187 = vmatprep.subr.bf16.mxu1 %v4587_v54  ;;  %4181 = vmatprep.mubr.bf16.mxu0 %v1050_v55  ;;  %v4624_v55 = vld [vmem:[%s4826_s22 + $0x290] sm:$0xff]  }
  0x79   : > { %4201 = vmatprep.mubr.bf16.mxu1 %v1186_v56  ;;  %v4625_v56 = vld [vmem:[%s4826_s22 + $0x2d0] sm:$0xff]  }
  0x7a   : > { %4168 = vmatpush3.bf16.msra.mxu0 %v4586_v51  ;;  %v5018_v51 = vor.u32 %v1704_v43, %v1701_v42 }
  0x7b   : > { %4188 = vmatpush3.bf16.msra.mxu1 %v4587_v54  ;;  %4169 = vmatprep.subr.bf16.mxu0 %v4588_v57 }
  0x7c   : > { %4189 = vmatprep.subr.bf16.mxu1 %v4589_v58 }
  0x7e   : > { %4170 = vmatpush3.bf16.msra.mxu0 %v4588_v57  ;;  %v4626_v57 = vld [vmem:[%s4826_s22 + $0x298] sm:$0xff]  }
  0x7f   : > { %4190 = vmatpush3.bf16.msra.mxu1 %v4589_v58  ;;  %4171 = vmatprep.subr.bf16.mxu0 %v4590_v59  ;;  %v4627_v58 = vld [vmem:[%s4826_s22 + $0x2d8] sm:$0xff]  }
  0x80   : > { %4191 = vmatprep.subr.bf16.mxu1 %v4591_v60 }
  0x82   : > { %4172 = vmatpush3.bf16.msra.mxu0 %v4590_v59  ;;  %v4628_v59 = vld [vmem:[%s4826_s22 + $0x2a0] sm:$0xff]  }
  0x83   : > { %4192 = vmatpush3.bf16.msra.mxu1 %v4591_v60  ;;  %4173 = vmatprep.subr.bf16.mxu0 %v4592_v62  ;;  %v4629_v60 = vld [vmem:[%s4826_s22 + $0x2e0] sm:$0xff]  }
  0x84   : > { %4193 = vmatprep.subr.bf16.mxu1 %v4593_v63 }
  0x86   : > { %4174 = vmatpush3.bf16.msra.mxu0 %v4592_v62  ;;  %v1808_v62 = vld [vmem:[%s4843_s29 + $0x4] sm:$0xc] }
  0x87   : > { %4194 = vmatpush3.bf16.msra.mxu1 %v4593_v63  ;;  %4175 = vmatprep.subr.bf16.mxu0 %v4594_v0  ;;  %v1811_v63 = vld [vmem:[%s4843_s29 + $0x10] sm:$0x1] }
  0x88   : > { %4195 = vmatprep.subr.bf16.mxu1 %v4595_v1 }
  0x8a   : > { %4176 = vmatpush3.bf16.msra.mxu0 %v4594_v0  ;;  %v4630_v0 = vld [vmem:[%s4826_s22 + $0x2a8] sm:$0xff]  }
  0x8b   : > { %4196 = vmatpush3.bf16.msra.mxu1 %v4595_v1  ;;  %4177 = vmatprep.subr.bf16.mxu0 %v4596_v3  ;;  %v4631_v1 = vld [vmem:[%s4826_s22 + $0x2e8] sm:$0xff]  }
  0x8c   : > { %4197 = vmatprep.subr.bf16.mxu1 %v4597_v4 }
  0x8e   : > { %4178 = vmatpush3.bf16.msra.mxu0 %v4596_v3  ;;  %v3582_v3 = vcombine.low %v1808_v62, %v5002_v61  ;;  %v4660_v62 = vld [vmem:[%s4826_s22 + $0x390] sm:$0xff]  }
  0x8f   : > { %4198 = vmatpush3.bf16.msra.mxu1 %v4597_v4  ;;  %4179 = vmatprep.subr.bf16.mxu0 %v4598_v7  ;;  %v5039_v4 = vcombine.low %v5005_v36, %v1811_v63  ;;  %v4661_v63 = vld [vmem:[%s4826_s22 + $0x3d0] sm:$0xff]  }
  0x90   : > { %4199 = vmatprep.subr.bf16.mxu1 %v4599_v8 }
  0x91   : > { %v1969_v9 = vshrl.u32 %v5039_v4, 16  ;;  %v1972_v10 = vshll.u32 %v5039_v4, 16 }
  0x92   : > { %4180 = vmatpush3.bf16.msra.mxu0 %v4598_v7  ;;  %v1961_v7 = vshrl.u32 %v3582_v3, 16 }
  0x93   : > { %4200 = vmatpush3.bf16.msra.mxu1 %v4599_v8  ;;  %4205 = vmatprep.subr.bf16.mxu0 %v4602_v12  ;;  %v1964_v8 = vshll.u32 %v3582_v3, 16  ;;  %v1971_v15 = vrot.slane %v1969_v9, 2  ;;  %v4669_v9 = vld [vmem:[%s4826_s22 + $0x3f0] sm:$0xff]  }
  0x94   : > { %4225 = vmatprep.subr.bf16.mxu1 %v4603_v13 }
  0x95   : > { %4182 = vmatmul.mubr.bf16.vlgmr.msra.gmra.mrb[12].mxu0 %v1049_v50  ;;  %v1697_v50 = vor.u32 %v1696_v41, %v1693_v40  ;;  %v1966_v14 = vrot.slane %v1964_v8, 3  ;;  %v4650_v40 = vld [vmem:[%s4826_s22 + $0x330] sm:$0xff]  }
  0x96   : > { %4202 = vmatmul.mubr.bf16.vlgmr.msra.gmra.mrb[12].mxu1 %v4942_v53  ;;  %4206 = vmatpush3.bf16.msra.mxu0 %v4602_v12  ;;  %v1571_v53 = vsel %vm509_vm2, %v1569_v46, %v1570_v47  ;;  %v4635_v12 = vld [vmem:[%s4826_s22 + $0x2f8] sm:$0xff]   ;;  %v4651_v41 = vld [vmem:[%s4826_s22 + $0x370] sm:$0xff]  }
  0x97   : > { %4226 = vmatpush3.bf16.msra.mxu1 %v4603_v13  ;;  %4207 = vmatprep.subr.bf16.mxu0 %v4604_v16  ;;  %v1706_v54 = vsel %vm631_vm1, %v1697_v50, %v5018_v51  ;;  %v1963_v13 = vrot.slane %v1961_v7, 2  ;;  %v4653_v46 = vld [vmem:[%s4826_s22 + $0x378] sm:$0xff]   ;;  %v4668_v7 = vld [vmem:[%s4826_s22 + $0x3b0] sm:$0xff]  }
  0x98   : > { %4227 = vmatprep.subr.bf16.mxu1 %v4605_v17  ;;  %4221 = vmatprep.mubr.bf16.mxu0 %v4897_v2  ;;  %v4612_v2 = vld [vmem:[%s4826_s22 + $0x228] sm:$0xff]  }
  0x99   : > { %4241 = vmatprep.mubr.bf16.mxu1 %v1439_v18  ;;  %v4639_v18 = vld [vmem:[%s4826_s22 + $0x340] sm:$0xff]  }
  0x9a   : > { %4208 = vmatpush3.bf16.msra.mxu0 %v4604_v16  ;;  %v1974_v16 = vrot.slane %v1972_v10, 3 }
  0x9b   : > { %4228 = vmatpush3.bf16.msra.mxu1 %v4605_v17  ;;  %4209 = vmatprep.subr.bf16.mxu0 %v4606_v19  ;;  %v4638_v17 = vld [vmem:[%s4826_s22 + $0x300] sm:$0xff]  }
  0x9c   : > { %4229 = vmatprep.subr.bf16.mxu1 %v4607_v20 }
  0x9e   : > { %4210 = vmatpush3.bf16.msra.mxu0 %v4606_v19  ;;  %v1839_v19 = vrot.slane %v3582_v3, 2  ;;  %v4664_v3 = vld [vmem:[%s4826_s22 + $0x3a0] sm:$0xff]  }
  0x9f   : > { %4230 = vmatpush3.bf16.msra.mxu1 %v4607_v20  ;;  %4211 = vmatprep.subr.bf16.mxu0 %v4608_v21  ;;  %v1840_v20 = vrot.slane %v5039_v4, 2  ;;  %v4665_v4 = vld [vmem:[%s4826_s22 + $0x3e0] sm:$0xff]  }
  0xa0   : > { %4231 = vmatprep.subr.bf16.mxu1 %v4609_v22 }
  0xa1   : > { %v1841_v25 = vsel %vm781_vm3, %v1839_v19, %v1840_v20 }
  0xa2   : > { %4212 = vmatpush3.bf16.msra.mxu0 %v4608_v21  ;;  %v1967_v21 = vor.u32 %v1966_v14, %v1963_v13 }
  0xa3   : > { %4232 = vmatpush3.bf16.msra.mxu1 %v4609_v22  ;;  %4213 = vmatprep.subr.bf16.mxu0 %v4610_v23  ;;  %v5050_v22 = vor.u32 %v1974_v16, %v1971_v15  ;;  %v2485_v15 = vshll.u32 %v5011_v39, 16  ;;  %v5111_v16 = vld [vmem:[%s4843_s29 + $0x10] ss:$0 sps:$4 sm:$0x77]  }
  0xa4   : > { %4233 = vmatprep.subr.bf16.mxu1 %v4611_v24 }
  0xa6   : > { %4214 = vmatpush3.bf16.msra.mxu0 %v4610_v23  ;;  %v4640_v23 = vld [vmem:[%s4826_s22 + $0x308] sm:$0xff]  }
  0xa7   : > { %4234 = vmatpush3.bf16.msra.mxu1 %v4611_v24  ;;  %4215 = vmatprep.subr.bf16.mxu0 %v4612_v2  ;;  %v4641_v24 = vld [vmem:[%s4826_s22 + $0x348] sm:$0xff]  }
  0xa8   : > { %4235 = vmatprep.subr.bf16.mxu1 %v4613_v26 }
  0xaa   : > { %4216 = vmatpush3.bf16.msra.mxu0 %v4612_v2  ;;  %v1976_v2 = vsel %vm903_vm4, %v1967_v21, %v5050_v22 }
  0xab   : > { %4236 = vmatpush3.bf16.msra.mxu1 %v4613_v26  ;;  %4217 = vmatprep.subr.bf16.mxu0 %v4614_v29  ;;  %v4642_v26 = vld [vmem:[%s4826_s22 + $0x310] sm:$0xff]  }
  0xac   : > { %4237 = vmatprep.subr.bf16.mxu1 %v4615_v30 }
  0xae   : > { %4218 = vmatpush3.bf16.msra.mxu0 %v4614_v29  ;;  %v4645_v29 = vld [vmem:[%s4826_s22 + $0x358] sm:$0xff]  }
  0xaf   : > { %4238 = vmatpush3.bf16.msra.mxu1 %v4615_v30  ;;  %4219 = vmatprep.subr.bf16.mxu0 %v4616_v33  ;;  %v4646_v30 = vld [vmem:[%s4826_s22 + $0x320] sm:$0xff]  }
  0xb0   : > { %4239 = vmatprep.subr.bf16.mxu1 %v4617_v37 }
  0xb2   : > { %4220 = vmatpush3.bf16.msra.mxu0 %v4616_v33  ;;  %v2078_v33 = vld [vmem:[%s4843_s29 + $0x4] sm:$0x8] }
  0xb3   : > { %4240 = vmatpush3.bf16.msra.mxu1 %v4617_v37  ;;  %4245 = vmatprep.subr.bf16.mxu0 %v4620_v44  ;;  %v3632_v37 = vcombine.low %v2078_v33, %v5002_v61  ;;  %v4652_v61 = vld [vmem:[%s4826_s22 + $0x338] sm:$0xff]   ;;  %v4678_v33 = vld [vmem:[%s4826_s22 + $0x410] sm:$0xff]  }
  0xb4   : > { %4265 = vmatprep.subr.bf16.mxu1 %v4621_v45 }
  0xb5   : > { %4222 = vmatmul.mubr.bf16.vlgmr.msra.gmra.mrb[16].mxu0 %v4964_v5  ;;  %v4632_v5 = vld [vmem:[%s4826_s22 + $0x2b0] sm:$0xff]   ;;  %v2225_v42 = vshrl.u32 %v3632_v37, 16  ;;  %v2228_v43 = vshll.u32 %v3632_v37, 16 }
  0xb6   : > { %4242 = vmatmul.mubr.bf16.vlgmr.msra.gmra.mrb[16].mxu1 %v1442_v48  ;;  %4246 = vmatpush3.bf16.msra.mxu0 %v4620_v44  ;;  %v2233_v44 = vshrl.u32 %v5074_v38, 16 }
  0xb7   : > { %4266 = vmatpush3.bf16.msra.mxu1 %v4621_v45  ;;  %4247 = vmatprep.subr.bf16.mxu0 %v4622_v49  ;;  %v2236_v45 = vshll.u32 %v5074_v38, 16  ;;  %v2230_v48 = vrot.slane %v2228_v43, 4 }
  0xb8   : > { %4267 = vmatprep.subr.bf16.mxu1 %v4623_v52  ;;  %4261 = vmatprep.mubr.bf16.mxu0 %v1571_v53  ;;  %v2103_v53 = vrot.slane %v3632_v37, 3  ;;  %v4681_v37 = vld [vmem:[%s4826_s22 + $0x458] sm:$0xff]  }
  0xb9   : > { %4281 = vmatprep.mubr.bf16.mxu1 %v1706_v54  ;;  %v2238_v50 = vrot.slane %v2236_v45, 4  ;;  %v2104_v54 = vrot.slane %v5074_v38, 3  ;;  %v4682_v38 = vld [vmem:[%s4826_s22 + $0x420] sm:$0xff]   ;;  %v4686_v45 = vld [vmem:[%s4826_s22 + $0x430] sm:$0xff]  }
  0xba   : > { %4248 = vmatpush3.bf16.msra.mxu0 %v4622_v49  ;;  %v2235_v49 = vrot.slane %v2233_v44, 3  ;;  %v5144_v44 = vld [vmem:[%s4843_s29 + $0x10] ss:$0 sps:$4 sm:$0xff]  }
  0xbb   : > { %4268 = vmatpush3.bf16.msra.mxu1 %v4623_v52  ;;  %4249 = vmatprep.subr.bf16.mxu0 %v4624_v55  ;;  %v4657_v52 = vld [vmem:[%s4826_s22 + $0x3c0] sm:$0xff]  }
  0xbc   : > { %4269 = vmatprep.subr.bf16.mxu1 %v4625_v56 }
  0xbe   : > { %4250 = vmatpush3.bf16.msra.mxu0 %v4624_v55 }
  0xbf   : > { %4270 = vmatpush3.bf16.msra.mxu1 %v4625_v56  ;;  %4251 = vmatprep.subr.bf16.mxu0 %v4626_v57  ;;  %v5085_v56 = vor.u32 %v2238_v50, %v2235_v49 }
  0xc0   : > { %4271 = vmatprep.subr.bf16.mxu1 %v4627_v58 }
  0xc2   : > { %4252 = vmatpush3.bf16.msra.mxu0 %v4626_v57  ;;  %v4658_v57 = vld [vmem:[%s4826_s22 + $0x388] sm:$0xff]  }
  0xc3   : > { %4272 = vmatpush3.bf16.msra.mxu1 %v4627_v58  ;;  %4253 = vmatprep.subr.bf16.mxu0 %v4628_v59  ;;  %v4659_v58 = vld [vmem:[%s4826_s22 + $0x3c8] sm:$0xff]  }
  0xc4   : > { %4273 = vmatprep.subr.bf16.mxu1 %v4629_v60 }
  0xc6   : > { %4254 = vmatpush3.bf16.msra.mxu0 %v4628_v59  ;;  %v2105_v59 = vsel %vm1047_vm5, %v2103_v53, %v2104_v54 }
  0xc7   : > { %4274 = vmatpush3.bf16.msra.mxu1 %v4629_v60  ;;  %4255 = vmatprep.subr.bf16.mxu0 %v4630_v0 }
  0xc8   : > { %4275 = vmatprep.subr.bf16.mxu1 %v4631_v1 }
  0xca   : > { %4256 = vmatpush3.bf16.msra.mxu0 %v4630_v0  ;;  %v4662_v0 = vld [vmem:[%s4826_s22 + $0x398] sm:$0xff]  }
  0xcb   : > { %4276 = vmatpush3.bf16.msra.mxu1 %v4631_v1  ;;  %4257 = vmatprep.subr.bf16.mxu0 %v4632_v5  ;;  %v4663_v1 = vld [vmem:[%s4826_s22 + $0x3d8] sm:$0xff]  }
  0xcc   : > { %4277 = vmatprep.subr.bf16.mxu1 %v4633_v6 }
  0xce   : > { %4258 = vmatpush3.bf16.msra.mxu0 %v4632_v5  ;;  %v4666_v5 = vld [vmem:[%s4826_s22 + $0x3a8] sm:$0xff]  }
  0xcf   : > { %4278 = vmatpush3.bf16.msra.mxu1 %v4633_v6  ;;  %4259 = vmatprep.subr.bf16.mxu0 %v4634_v11  ;;  %v4667_v6 = vld [vmem:[%s4826_s22 + $0x3e8] sm:$0xff]  }
  0xd0   : > { %4279 = vmatprep.subr.bf16.mxu1 %v4635_v12 }
  0xd2   : > { %4260 = vmatpush3.bf16.msra.mxu0 %v4634_v11 }
  0xd3   : > { %4280 = vmatpush3.bf16.msra.mxu1 %v4635_v12  ;;  %4285 = vmatprep.subr.bf16.mxu0 %v4638_v17 }
  0xd4   : > { %4305 = vmatprep.subr.bf16.mxu1 %v4639_v18 }
  0xd5   : > { %4262 = vmatmul.mubr.bf16.vlgmr.msra.gmra.mrb[20].mxu0 %v1570_v47  ;;  %v2227_v47 = vrot.slane %v2225_v42, 3  ;;  %v4685_v42 = vld [vmem:[%s4826_s22 + $0x468] sm:$0xff]  }
  0xd6   : > { %4282 = vmatmul.mubr.bf16.vlgmr.msra.gmra.mrb[20].mxu1 %v5018_v51  ;;  %4286 = vmatpush3.bf16.msra.mxu0 %v4638_v17  ;;  %v4656_v51 = vld [vmem:[%s4826_s22 + $0x380] sm:$0xff]  }
  0xd7   : > { %4306 = vmatpush3.bf16.msra.mxu1 %v4639_v18  ;;  %4287 = vmatprep.subr.bf16.mxu0 %v4640_v23  ;;  %v2231_v55 = vor.u32 %v2230_v48, %v2227_v47 }
  0xd8   : > { %4307 = vmatprep.subr.bf16.mxu1 %v4641_v24  ;;  %4301 = vmatprep.mubr.bf16.mxu0 %v1841_v25  ;;  %v2487_v25 = vrot.slane %v2485_v15, 1  ;;  %v4694_v15 = vld [vmem:[%s4826_s22 + $0x488] sm:$0xff]  }
  0xd9   : > { %4321 = vmatprep.mubr.bf16.mxu1 %v1976_v2  ;;  %v2240_v60 = vsel %vm1169_vm6, %v2231_v55, %v5085_v56  ;;  %v2490_v2 = vshll.u32 %v5111_v16, 16  ;;  %v2756_v55 = vshll.u32 %v5144_v44, 16 }
  0xda   : > { %4288 = vmatpush3.bf16.msra.mxu0 %v4640_v23 }
  0xdb   : > { %4308 = vmatpush3.bf16.msra.mxu1 %v4641_v24  ;;  %4289 = vmatprep.subr.bf16.mxu0 %v4642_v26  ;;  %v2483_v24 = vshrl.u32 %v5011_v39, 16 }
  0xdc   : > { %4309 = vmatprep.subr.bf16.mxu1 %v4643_v27 }
  0xde   : > { %4290 = vmatpush3.bf16.msra.mxu0 %v4642_v26  ;;  %v4674_v26 = vld [vmem:[%s4826_s22 + $0x400] sm:$0xff]  }
  0xdf   : > { %4310 = vmatpush3.bf16.msra.mxu1 %v4643_v27  ;;  %4291 = vmatprep.subr.bf16.mxu0 %v4644_v28  ;;  %v4675_v27 = vld [vmem:[%s4826_s22 + $0x440] sm:$0xff]  }
  0xe0   : > { %4311 = vmatprep.subr.bf16.mxu1 %v4645_v29 }
  0xe2   : > { %4292 = vmatpush3.bf16.msra.mxu0 %v4644_v28  ;;  %v2488_v28 = vor.u32 %v2487_v25, %v2483_v24  ;;  %v4701_v24 = vld [vmem:[%s4826_s22 + $0x4e0] sm:$0xff]   ;;  %v4702_v25 = vld [vmem:[%s4826_s22 + $0x4a8] sm:$0xff]  }
  0xe3   : > { %4312 = vmatpush3.bf16.msra.mxu1 %v4645_v29  ;;  %4293 = vmatprep.subr.bf16.mxu0 %v4646_v30  ;;  %v5123_v29 = vrot.slane %v2490_v2, 1  ;;  %v4703_v2 = vld [vmem:[%s4826_s22 + $0x4e8] sm:$0xff]  }
  0xe4   : > { %4313 = vmatprep.subr.bf16.mxu1 %v4647_v31 }
  0xe6   : > { %4294 = vmatpush3.bf16.msra.mxu0 %v4646_v30  ;;  %v4676_v30 = vld [vmem:[%s4826_s22 + $0x408] sm:$0xff]  }
  0xe7   : > { %4314 = vmatpush3.bf16.msra.mxu1 %v4647_v31  ;;  %4295 = vmatprep.subr.bf16.mxu0 %v4648_v32  ;;  %v4677_v31 = vld [vmem:[%s4826_s22 + $0x448] sm:$0xff]  }
  0xe8   : > { %4315 = vmatprep.subr.bf16.mxu1 %v4649_v35 }
  0xea   : > { %4296 = vmatpush3.bf16.msra.mxu0 %v4648_v32  ;;  %v2493_v32 = vsel %vm272_vm0, %v2488_v28, %v5123_v29  ;;  %v4704_v28 = vld [vmem:[%s4826_s22 + $0x4b0] sm:$0xff]  }
  0xeb   : > { %4316 = vmatpush3.bf16.msra.mxu1 %v4649_v35  ;;  %4297 = vmatprep.subr.bf16.mxu0 %v4650_v40  ;;  %v4680_v35 = vld [vmem:[%s4826_s22 + $0x418] sm:$0xff]  }
  0xec   : > { %4317 = vmatprep.subr.bf16.mxu1 %v4651_v41 }
  0xee   : > { %4298 = vmatpush3.bf16.msra.mxu0 %v4650_v40  ;;  %v4683_v40 = vld [vmem:[%s4826_s22 + $0x460] sm:$0xff]  }
  0xef   : > { %4318 = vmatpush3.bf16.msra.mxu1 %v4651_v41  ;;  %4299 = vmatprep.subr.bf16.mxu0 %v4652_v61  ;;  %v4684_v41 = vld [vmem:[%s4826_s22 + $0x428] sm:$0xff]  }
  0xf0   : > { %4319 = vmatprep.subr.bf16.mxu1 %v4653_v46 }
  0xf2   : > { %4300 = vmatpush3.bf16.msra.mxu0 %v4652_v61 }
  0xf3   : > { %4320 = vmatpush3.bf16.msra.mxu1 %v4653_v46  ;;  %4325 = vmatprep.subr.bf16.mxu0 %v4656_v51  ;;  %v4687_v46 = vld [vmem:[%s4826_s22 + $0x470] sm:$0xff]  }
  0xf4   : > { %4345 = vmatprep.subr.bf16.mxu1 %v4657_v52 }
  0xf5   : > { %4302 = vmatmul.mubr.bf16.vlgmr.msra.gmra.mrb[24].mxu0 %v1840_v20  ;;  %v4670_v20 = vld [vmem:[%s4826_s22 + $0x3b8] sm:$0xff]  }
  0xf6   : > { %4322 = vmatmul.mubr.bf16.vlgmr.msra.gmra.mrb[24].mxu1 %v5050_v22  ;;  %4326 = vmatpush3.bf16.msra.mxu0 %v4656_v51  ;;  %v4671_v22 = vld [vmem:[%s4826_s22 + $0x3f8] sm:$0xff]  }
  0xf7   : > { %4346 = vmatpush3.bf16.msra.mxu1 %v4657_v52  ;;  %4327 = vmatprep.subr.bf16.mxu0 %v4658_v57 }
  0xf8   : > { %4347 = vmatprep.subr.bf16.mxu1 %v4659_v58  ;;  %4341 = vmatprep.mubr.bf16.mxu0 %v2105_v59  ;;  %v4688_v59 = vld [vmem:[%s4826_s22 + $0x438] sm:$0xff]  }
  0xf9   : > { %4361 = vmatprep.mubr.bf16.mxu1 %v2240_v60 }
  0xfa   : > { %4328 = vmatpush3.bf16.msra.mxu0 %v4658_v57 }
  0xfb   : > { %4348 = vmatpush3.bf16.msra.mxu1 %v4659_v58  ;;  %4329 = vmatprep.subr.bf16.mxu0 %v4660_v62 }
  0xfc   : > { %4349 = vmatprep.subr.bf16.mxu1 %v4661_v63 }
  0xfe   : > { %4330 = vmatpush3.bf16.msra.mxu0 %v4660_v62 }
  0xff   : > { %4350 = vmatpush3.bf16.msra.mxu1 %v4661_v63  ;;  %4331 = vmatprep.subr.bf16.mxu0 %v4662_v0 }
 0x100   : > { %4351 = vmatprep.subr.bf16.mxu1 %v4663_v1 }
 0x102   : > { %4332 = vmatpush3.bf16.msra.mxu0 %v4662_v0  ;;  %v4689_v0 = vld [vmem:[%s4826_s22 + $0x478] sm:$0xff]  }
 0x103   : > { %4352 = vmatpush3.bf16.msra.mxu1 %v4663_v1  ;;  %4333 = vmatprep.subr.bf16.mxu0 %v4664_v3  ;;  %v2494_v1 = vshrl.u32 %v5111_v16, 16 }
 0x104   : > { %4353 = vmatprep.subr.bf16.mxu1 %v4665_v4 }
 0x106   : > { %4334 = vmatpush3.bf16.msra.mxu0 %v4664_v3 }
 0x107   : > { %4354 = vmatpush3.bf16.msra.mxu1 %v4665_v4  ;;  %4335 = vmatprep.subr.bf16.mxu0 %v4666_v5 }
 0x108   : > { %v4063_v8 = vpop.f32.mrb[0].mxu0  ;;  %4355 = vmatprep.subr.bf16.mxu1 %v4667_v6 }
 0x109   : > { %v4083_v10 = vpop.f32.mrb[0].mxu1  ;;  %v372_v11 = vpop.f32.mrb[1].mxu0 }
 0x10a   : > { %v5107_v12 = vadd.f32 %v4083_v10, %v4063_v8  ;;  %v470_v13 = vpop.f32.mrb[1].mxu1  ;;  %v4064_v14 = vpop.f32.mrb[2].mxu0  ;;  %4336 = vmatpush3.bf16.msra.mxu0 %v4666_v5  ;;  %v4692_v8 = vld [vmem:[%s4826_s22 + $0x480] sm:$0xff]  }
 0x10b   : > { %v5113_v17 = vadd.f32 %v470_v13, %v372_v11  ;;  %v4084_v18 = vpop.f32.mrb[2].mxu1  ;;  %4356 = vmatpush3.bf16.msra.mxu1 %v4667_v6  ;;  %v375_v19 = vpop.f32.mrb[3].mxu0  ;;  %4337 = vmatprep.subr.bf16.mxu0 %v4668_v7  ;;  %v2624_v11 = vrot.slane %v5144_v44, 1 }
 0x10c   : > { %v473_v21 = vpop.f32.mrb[3].mxu1  ;;  %4357 = vmatprep.subr.bf16.mxu1 %v4669_v9 }
 0x10d   : > { %v5117_v23 = vadd.f32 %v473_v21, %v375_v19  ;;  %v4697_v21 = vld [vmem:[%s4826_s22 + $0x4d0] sm:$0xff]  }
 0x10e   : > { %4338 = vmatpush3.bf16.msra.mxu0 %v4668_v7  ;;  %v2758_v7 = vrot.slane %v2756_v55, 2  ;;  %v4711_v55 = vld [vmem:[%s4826_s22 + $0x540] sm:$0xff]  }
 0x10f   : > { %4358 = vmatpush3.bf16.msra.mxu1 %v4669_v9  ;;  %4339 = vmatprep.subr.bf16.mxu0 %v4670_v20  ;;  %v4693_v9 = vld [vmem:[%s4826_s22 + $0x4c0] sm:$0xff]  }
 0x110   : > { %4359 = vmatprep.subr.bf16.mxu1 %v4671_v22 }
 0x112   : > { %4340 = vmatpush3.bf16.msra.mxu0 %v4670_v20  ;;  %v4696_v20 = vld [vmem:[%s4826_s22 + $0x490] sm:$0xff]  }
 0x113   : > { %4360 = vmatpush3.bf16.msra.mxu1 %v4671_v22  ;;  %4365 = vmatprep.subr.bf16.mxu0 %v4674_v26  ;;  %v4699_v22 = vld [vmem:[%s4826_s22 + $0x4d8] sm:$0xff]  }
 0x114   : > { %4385 = vmatprep.subr.bf16.mxu1 %v4675_v27 }
 0x115   : > { %4342 = vmatmul.mubr.bf16.vlgmr.msra.gmra.mrb[28].mxu0 %v2104_v54  ;;  %v2753_v54 = vshrl.u32 %v5144_v44, 16  ;;  %v4715_v44 = vld [vmem:[%s4826_s22 + $0x550] sm:$0xff]  }
 0x116   : > { %4362 = vmatmul.mubr.bf16.vlgmr.msra.gmra.mrb[28].mxu1 %v5085_v56  ;;  %4366 = vmatpush3.bf16.msra.mxu0 %v4674_v26  ;;  %v4726_v26 = vld [vmem:[%s4843_s29 + $0x8] sm:$0xfc]  }
 0x117   : > { %4386 = vmatpush3.bf16.msra.mxu1 %v4675_v27  ;;  %4367 = vmatprep.subr.bf16.mxu0 %v4676_v30  ;;  %v2755_v6 = vrot.slane %v2753_v54, 1  ;;  %v5186_v27 = vld [vmem:[%s4843_s29 + $0x10] sm:$0x1f]   ;;  %v4710_v54 = vld [vmem:[%s4826_s22 + $0x500] sm:$0xff]  }
 0x118   : > { %4387 = vmatprep.subr.bf16.mxu1 %v4677_v31  ;;  %4381 = vmatprep.mubr.bf16.mxu0 %v5011_v39  ;;  %v2598_v39 = vld [vmem:[%s4843_s29 + $0x8] sm:$0xe] }
 0x119   : > { %4401 = vmatprep.mubr.bf16.mxu1 %v2493_v32  ;;  %v3732_v43 = vcombine.low %v2598_v39, %v5005_v36  ;;  %v5166_v14 = vor.u32 %v2758_v7, %v2755_v6  ;;  %v3023_v39 = vshrl.u32 %v5186_v27, 16  ;;  %v4719_v6 = vld [vmem:[%s4826_s22 + $0x560] sm:$0xff]   ;;  %v4720_v7 = vld [vmem:[%s4826_s22 + $0x528] sm:$0xff]  }
 0x11a   : > { %4368 = vmatpush3.bf16.msra.mxu0 %v4676_v30  ;;  %v4705_v30 = vld [vmem:[%s4826_s22 + $0x4f0] sm:$0xff]  }
 0x11b   : > { %4388 = vmatpush3.bf16.msra.mxu1 %v4677_v31  ;;  %4369 = vmatprep.subr.bf16.mxu0 %v4678_v33  ;;  %v2745_v50 = vshrl.u32 %v3732_v43, 16  ;;  %v2748_v53 = vshll.u32 %v3732_v43, 16  ;;  %v2623_v10 = vrot.slane %v3732_v43, 1 }
 0x11c   : > { %4389 = vmatprep.subr.bf16.mxu1 %v4679_v34 }
 0x11d   : > { %v2747_v3 = vrot.slane %v2745_v50, 1  ;;  %v2750_v5 = vrot.slane %v2748_v53, 2  ;;  %v2625_v18 = vsel %vm509_vm2, %v2623_v10, %v2624_v11 }
 0x11e   : > { %4370 = vmatpush3.bf16.msra.mxu0 %v4678_v33 }
 0x11f   : > { %4390 = vmatpush3.bf16.msra.mxu1 %v4679_v34  ;;  %4371 = vmatprep.subr.bf16.mxu0 %v4680_v35  ;;  %v2751_v13 = vor.u32 %v2750_v5, %v2747_v3  ;;  %v3015_v34 = vshrl.u32 %v4726_v26, 16  ;;  %v4716_v3 = vld [vmem:[%s4826_s22 + $0x518] sm:$0xff]   ;;  %v4718_v5 = vld [vmem:[%s4826_s22 + $0x520] sm:$0xff]  }
 0x120   : > { %4391 = vmatprep.subr.bf16.mxu1 %v4681_v37 }
 0x121   : > { %v2760_v19 = vsel %vm631_vm1, %v2751_v13, %v5166_v14  ;;  %v3017_v50 = vrot.slane %v3015_v34, 2 }
 0x122   : > { %4372 = vmatpush3.bf16.msra.mxu0 %v4680_v35 }
 0x123   : > { %4392 = vmatpush3.bf16.msra.mxu1 %v4681_v37  ;;  %4373 = vmatprep.subr.bf16.mxu0 %v4682_v38 }
 0x124   : > { %4393 = vmatprep.subr.bf16.mxu1 %v4683_v40 }
 0x126   : > { %4374 = vmatpush3.bf16.msra.mxu0 %v4682_v38 }
 0x127   : > { %4394 = vmatpush3.bf16.msra.mxu1 %v4683_v40  ;;  %4375 = vmatprep.subr.bf16.mxu0 %v4684_v41  ;;  %v3018_v40 = vshll.u32 %v4726_v26, 16 }
 0x128   : > { %v4103_v61 = vpop.f32.mrb[4].mxu0  ;;  %4395 = vmatprep.subr.bf16.mxu1 %v4685_v42 }
 0x129   : > { %v613_v47 = vadd.f32 %v4103_v61, %v5107_v12  ;;  %v4123_v48 = vpop.f32.mrb[4].mxu1  ;;  %v597_v49 = vpop.f32.mrb[5].mxu0  ;;  %v2496_v12 = vor.u32 %v2494_v1, %v5123_v29  ;;  %v4706_v61 = vld [vmem:[%s4826_s22 + $0x4b8] sm:$0xff]   ;;  %v4714_v1 = vld [vmem:[%s4826_s22 + $0x510] sm:$0xff]  }
 0x12a   : > { %v611_v51 = vadd.f32 %v597_v49, %v5113_v17  ;;  %v733_v52 = vpop.f32.mrb[5].mxu1  ;;  %v4104_v36 = vpop.f32.mrb[6].mxu0  ;;  %4376 = vmatpush3.bf16.msra.mxu0 %v4684_v41  ;;  %v4695_v17 = vld [vmem:[%s4826_s22 + $0x4c8] sm:$0xff]   ;;  %v3026_v41 = vshll.u32 %v5186_v27, 16  ;;  %v4707_v49 = vld [vmem:[%s4826_s22 + $0x4f8] sm:$0xff]  }
 0x12b   : > { %v5152_v56 = vadd.f32 %v4123_v48, %v613_v47  ;;  %v4124_v57 = vpop.f32.mrb[6].mxu1  ;;  %4396 = vmatpush3.bf16.msra.mxu1 %v4685_v42  ;;  %v600_v58 = vpop.f32.mrb[7].mxu0  ;;  %4377 = vmatprep.subr.bf16.mxu0 %v4686_v45  ;;  %v3025_v36 = vrot.slane %v3023_v39, 2 }
 0x12c   : > { %v5155_v60 = vadd.f32 %v733_v52, %v611_v51  ;;  %v612_v62 = vadd.f32 %v600_v58, %v5117_v23  ;;  %v736_v63 = vpop.f32.mrb[7].mxu1  ;;  %4397 = vmatprep.subr.bf16.mxu1 %v4687_v46  ;;  %v4700_v23 = vld [vmem:[%s4826_s22 + $0x4a0] sm:$0xff]   ;;  %v3020_v52 = vrot.slane %v3018_v40, 3  ;;  %v3028_v53 = vrot.slane %v3026_v41, 3 }
 0x12d   : > { %v2894_v57 = vrot.slane %v5186_v27, 2 }
 0x12e   : > { %v5160_v4 = vadd.f32 %v736_v63, %v612_v62  ;;  %4378 = vmatpush3.bf16.msra.mxu0 %v4686_v45  ;;  %v3021_v58 = vor.u32 %v3020_v52, %v3017_v50  ;;  %v4713_v62 = vld [vmem:[%s4826_s22 + $0x548] sm:$0xff]  }
 0x12f   : > { %4398 = vmatpush3.bf16.msra.mxu1 %v4687_v46  ;;  %4379 = vmatprep.subr.bf16.mxu0 %v4688_v59 }
 0x130   : > { %4399 = vmatprep.subr.bf16.mxu1 %v4689_v0 }
 0x132   : > { %4380 = vmatpush3.bf16.msra.mxu0 %v4688_v59  ;;  %v5206_v59 = vor.u32 %v3028_v53, %v3025_v36 }
 0x133   : > { %4400 = vmatpush3.bf16.msra.mxu1 %v4689_v0  ;;  %4405 = vmatprep.subr.bf16.mxu0 %v4692_v8 }
 0x134   : > { %4425 = vmatprep.subr.bf16.mxu1 %v4693_v9  ;;  %v3030_v0 = vsel %vm903_vm4, %v3021_v58, %v5206_v59 }
 0x135   : > { %4382 = vmatmul.mubr.bf16.vlgmr.msra.gmra.mrb[32].mxu0 %v5111_v16  ;;  %v4698_v16 = vld [vmem:[%s4826_s22 + $0x498] sm:$0xff]  }
 0x136   : > { %4402 = vmatmul.mubr.bf16.vlgmr.msra.gmra.mrb[32].mxu1 %v2496_v12  ;;  %4406 = vmatpush3.bf16.msra.mxu0 %v4692_v8  ;;  %v4721_v8 = vld [vmem:[%s4826_s22 + $0x568] sm:$0xff]  }
 0x137   : > { %4426 = vmatpush3.bf16.msra.mxu1 %v4693_v9  ;;  %4407 = vmatprep.subr.bf16.mxu0 %v4694_v15  ;;  %v4722_v9 = vld [vmem:[%s4826_s22 + $0x530] sm:$0xff]  }
 0x138   : > { %4427 = vmatprep.subr.bf16.mxu1 %v4695_v17  ;;  %4421 = vmatprep.mubr.bf16.mxu0 %v2625_v18 }
 0x139   : > { %4441 = vmatprep.mubr.bf16.mxu1 %v2760_v19 }
 0x13a   : > { %4408 = vmatpush3.bf16.msra.mxu0 %v4694_v15 }
 0x13b   : > { %4428 = vmatpush3.bf16.msra.mxu1 %v4695_v17  ;;  %4409 = vmatprep.subr.bf16.mxu0 %v4696_v20 }
 0x13c   : > { %4429 = vmatprep.subr.bf16.mxu1 %v4697_v21 }
 0x13e   : > { %4410 = vmatpush3.bf16.msra.mxu0 %v4696_v20 }
 0x13f   : > { %4430 = vmatpush3.bf16.msra.mxu1 %v4697_v21  ;;  %4411 = vmatprep.subr.bf16.mxu0 %v4698_v16 }
 0x140   : > { %4431 = vmatprep.subr.bf16.mxu1 %v4699_v22 }
 0x142   : > { %4412 = vmatpush3.bf16.msra.mxu0 %v4698_v16  ;;  %v4724_v16 = vld [vmem:[%s4826_s22 + $0x538] sm:$0xff]  }
 0x143   : > { %4432 = vmatpush3.bf16.msra.mxu1 %v4699_v22  ;;  %4413 = vmatprep.subr.bf16.mxu0 %v4700_v23 }
 0x144   : > { %4433 = vmatprep.subr.bf16.mxu1 %v4701_v24 }
 0x146   : > { %4414 = vmatpush3.bf16.msra.mxu0 %v4700_v23 }
 0x147   : > { %4434 = vmatpush3.bf16.msra.mxu1 %v4701_v24  ;;  %4415 = vmatprep.subr.bf16.mxu0 %v4702_v25 }
 0x148   : > { %v4143_v29 = vpop.f32.mrb[8].mxu0  ;;  %4435 = vmatprep.subr.bf16.mxu1 %v4703_v2 }
 0x149   : > { %v885_v31 = vadd.f32 %v4143_v29, %v5152_v56  ;;  %v4163_v32 = vpop.f32.mrb[8].mxu1  ;;  %v869_v33 = vpop.f32.mrb[9].mxu0  ;;  %v2893_v56 = vrot.slane %v4726_v26, 2 }
 0x14a   : > { %v883_v35 = vadd.f32 %v869_v33, %v5155_v60  ;;  %v1005_v37 = vpop.f32.mrb[9].mxu1  ;;  %v4144_v38 = vpop.f32.mrb[10].mxu0  ;;  %4416 = vmatpush3.bf16.msra.mxu0 %v4702_v25  ;;  %v4712_v60 = vld [vmem:[%s4826_s22 + $0x508] sm:$0xff]   ;;  %v4725_v25 = vld [vmem:[%s4826_s22 + $0x578] sm:$0xff]  }
 0x14b   : > { %v5194_v42 = vadd.f32 %v4163_v32, %v885_v31  ;;  %v4164_v43 = vpop.f32.mrb[10].mxu1  ;;  %4436 = vmatpush3.bf16.msra.mxu1 %v4703_v2  ;;  %v872_v45 = vpop.f32.mrb[11].mxu0  ;;  %4417 = vmatprep.subr.bf16.mxu0 %v4704_v28  ;;  %v2895_v63 = vsel %vm781_vm3, %v2893_v56, %v2894_v57 }
 0x14c   : > { %v5197_v46 = vadd.f32 %v1005_v37, %v883_v35  ;;  %v884_v47 = vadd.f32 %v872_v45, %v5160_v4  ;;  %v1008_v48 = vpop.f32.mrb[11].mxu1  ;;  %4437 = vmatprep.subr.bf16.mxu1 %v4705_v30  ;;  %v4717_v4 = vld [vmem:[%s4826_s22 + $0x558] sm:$0xff]  }
 0x14e   : > { %v5201_v51 = vadd.f32 %v1008_v48, %v884_v47  ;;  %4418 = vmatpush3.bf16.msra.mxu0 %v4704_v28 }
 0x14f   : > { %4438 = vmatpush3.bf16.msra.mxu1 %v4705_v30  ;;  %4419 = vmatprep.subr.bf16.mxu0 %v4706_v61 }
 0x150   : > { %4439 = vmatprep.subr.bf16.mxu1 %v4707_v49 }
 0x152   : > { %4420 = vmatpush3.bf16.msra.mxu0 %v4706_v61 }
 0x153   : > { %4440 = vmatpush3.bf16.msra.mxu1 %v4707_v49  ;;  %4445 = vmatprep.subr.bf16.mxu0 %v4710_v54 }
 0x154   : > { %4465 = vmatprep.subr.bf16.mxu1 %v4711_v55 }
 0x155   : > { %4422 = vmatmul.mubr.bf16.vlgmr.msra.gmra.mrb[36].mxu0 %v2624_v11  ;;  %v4723_v11 = vld [vmem:[%s4826_s22 + $0x570] sm:$0xff]  }
 0x156   : > { %4442 = vmatmul.mubr.bf16.vlgmr.msra.gmra.mrb[36].mxu1 %v5166_v14  ;;  %4446 = vmatpush3.bf16.msra.mxu0 %v4710_v54 }
 0x157   : > { %4466 = vmatpush3.bf16.msra.mxu1 %v4711_v55  ;;  %4447 = vmatprep.subr.bf16.mxu0 %v4712_v60 }
 0x158   : > { %4467 = vmatprep.subr.bf16.mxu1 %v4713_v62  ;;  %4461 = vmatprep.mubr.bf16.mxu0 %v2895_v63 }
 0x159   : > { %4481 = vmatprep.mubr.bf16.mxu1 %v3030_v0 }
 0x15a   : > { %4448 = vmatpush3.bf16.msra.mxu0 %v4712_v60 }
 0x15b   : > { %4468 = vmatpush3.bf16.msra.mxu1 %v4713_v62  ;;  %4449 = vmatprep.subr.bf16.mxu0 %v4714_v1 }
 0x15c   : > { %4469 = vmatprep.subr.bf16.mxu1 %v4715_v44 }
 0x15e   : > { %4450 = vmatpush3.bf16.msra.mxu0 %v4714_v1 }
 0x15f   : > { %4470 = vmatpush3.bf16.msra.mxu1 %v4715_v44  ;;  %4451 = vmatprep.subr.bf16.mxu0 %v4716_v3 }
 0x160   : > { %4471 = vmatprep.subr.bf16.mxu1 %v4717_v4 }
 0x162   : > { %4452 = vmatpush3.bf16.msra.mxu0 %v4716_v3 }
 0x163   : > { %4472 = vmatpush3.bf16.msra.mxu1 %v4717_v4  ;;  %4453 = vmatprep.subr.bf16.mxu0 %v4718_v5 }
 0x164   : > { %4473 = vmatprep.subr.bf16.mxu1 %v4719_v6 }
 0x166   : > { %4454 = vmatpush3.bf16.msra.mxu0 %v4718_v5 }
 0x167   : > { %4474 = vmatpush3.bf16.msra.mxu1 %v4719_v6  ;;  %4455 = vmatprep.subr.bf16.mxu0 %v4720_v7 }
 0x168   : > { %v4183_v10 = vpop.f32.mrb[12].mxu0  ;;  %4475 = vmatprep.subr.bf16.mxu1 %v4721_v8 }
 0x169   : > { %v1151_v12 = vadd.f32 %v4183_v10, %v5194_v42  ;;  %v4203_v13 = vpop.f32.mrb[12].mxu1  ;;  %v1135_v14 = vpop.f32.mrb[13].mxu0 }
 0x16a   : > { %v1149_v15 = vadd.f32 %v1135_v14, %v5197_v46  ;;  %v1271_v17 = vpop.f32.mrb[13].mxu1  ;;  %v4184_v18 = vpop.f32.mrb[14].mxu0  ;;  %4456 = vmatpush3.bf16.msra.mxu0 %v4720_v7 }
 0x16b   : > { %v1287_v19 = vadd.f32 %v4203_v13, %v1151_v12  ;;  %v4204_v20 = vpop.f32.mrb[14].mxu1  ;;  %4476 = vmatpush3.bf16.msra.mxu1 %v4721_v8  ;;  %v1138_v21 = vpop.f32.mrb[15].mxu0  ;;  %4457 = vmatprep.subr.bf16.mxu0 %v4722_v9 }
 0x16c   : > { %v1285_v22 = vadd.f32 %v1271_v17, %v1149_v15  ;;  %v1150_v23 = vadd.f32 %v1138_v21, %v5201_v51  ;;  %v1274_v24 = vpop.f32.mrb[15].mxu1  ;;  %4477 = vmatprep.subr.bf16.mxu1 %v4723_v11 }
 0x16e   : > { %v1286_v2 = vadd.f32 %v1274_v24, %v1150_v23  ;;  %4458 = vmatpush3.bf16.msra.mxu0 %v4722_v9 }
 0x16f   : > { %4478 = vmatpush3.bf16.msra.mxu1 %v4723_v11  ;;  %4459 = vmatprep.subr.bf16.mxu0 %v4724_v16 }
 0x170   : > { %4479 = vmatprep.subr.bf16.mxu1 %v4725_v25 }
 0x172   : > { %4460 = vmatpush3.bf16.msra.mxu0 %v4724_v16 }
 0x173   : > { %4480 = vmatpush3.bf16.msra.mxu1 %v4725_v25 }
 0x175   : > { %4462 = vmatmul.mubr.bf16.vlgmr.msra.gmra.mrb[40].mxu0 %v2894_v57 }
 0x176   : > { %4482 = vmatmul.mubr.bf16.vlgmr.msra.gmra.mrb[40].mxu1 %v5206_v59 }
 0x188   : > { %v4223_v26 = vpop.f32.mrb[16].mxu0 }
 0x189   : > { %v1410_v28 = vadd.f32 %v4223_v26, %v1287_v19  ;;  %v4243_v29 = vpop.f32.mrb[16].mxu1  ;;  %v1394_v30 = vpop.f32.mrb[17].mxu0 }
 0x18a   : > { %v1408_v31 = vadd.f32 %v1394_v30, %v1285_v22  ;;  %v1527_v32 = vpop.f32.mrb[17].mxu1  ;;  %v4224_v33 = vpop.f32.mrb[18].mxu0 }
 0x18b   : > { %v1543_v34 = vadd.f32 %v4243_v29, %v1410_v28  ;;  %v4244_v35 = vpop.f32.mrb[18].mxu1  ;;  %v1397_v37 = vpop.f32.mrb[19].mxu0 }
 0x18c   : > { %v1541_v38 = vadd.f32 %v1527_v32, %v1408_v31  ;;  %v1409_v40 = vadd.f32 %v1397_v37, %v1286_v2  ;;  %v1530_v39 = vpop.f32.mrb[19].mxu1 }
 0x18e   : > { %v1542_v41 = vadd.f32 %v1530_v39, %v1409_v40 }
 0x1a8   : > { %v4263_v42 = vpop.f32.mrb[20].mxu0 }
 0x1a9   : > { %v1672_v43 = vadd.f32 %v4263_v42, %v1543_v34  ;;  %v4283_v27 = vpop.f32.mrb[20].mxu1  ;;  %v1656_v45 = vpop.f32.mrb[21].mxu0 }
 0x1aa   : > { %v1670_v61 = vadd.f32 %v1656_v45, %v1541_v38  ;;  %v1791_v46 = vpop.f32.mrb[21].mxu1  ;;  %v4264_v47 = vpop.f32.mrb[22].mxu0 }
 0x1ab   : > { %v1807_v48 = vadd.f32 %v4283_v27, %v1672_v43  ;;  %v4284_v49 = vpop.f32.mrb[22].mxu1  ;;  %v1659_v50 = vpop.f32.mrb[23].mxu0 }
 0x1ac   : > { %v1805_v51 = vadd.f32 %v1791_v46, %v1670_v61  ;;  %v1671_v52 = vadd.f32 %v1659_v50, %v1542_v41  ;;  %v1794_v36 = vpop.f32.mrb[23].mxu1 }
 0x1ae   : > { %v1806_v53 = vadd.f32 %v1794_v36, %v1671_v52 }
 0x1c8   : > { %v4303_v54 = vpop.f32.mrb[24].mxu0 }
 0x1c9   : > { %v1942_v55 = vadd.f32 %v4303_v54, %v1807_v48  ;;  %v4323_v56 = vpop.f32.mrb[24].mxu1  ;;  %v1926_v57 = vpop.f32.mrb[25].mxu0 }
 0x1ca   : > { %v1940_v58 = vadd.f32 %v1926_v57, %v1805_v51  ;;  %v2061_v59 = vpop.f32.mrb[25].mxu1  ;;  %v4304_v60 = vpop.f32.mrb[26].mxu0  ;;  %v3816_v51 = vld [vmem:[%s5261_s2] ss:$0 sm:$0xff] }
 0x1cb   : > { %v2077_v62 = vadd.f32 %v4323_v56, %v1942_v55  ;;  %v4324_v63 = vpop.f32.mrb[26].mxu1  ;;  %v1929_v0 = vpop.f32.mrb[27].mxu0 }
 0x1cc   : > { %v2075_v1 = vadd.f32 %v2061_v59, %v1940_v58  ;;  %v1941_v44 = vadd.f32 %v1929_v0, %v1806_v53  ;;  %v2064_v3 = vpop.f32.mrb[27].mxu1 }
 0x1ce   : > { %v2076_v4 = vadd.f32 %v2064_v3, %v1941_v44 }
 0x1e8   : > { %v4343_v5 = vpop.f32.mrb[28].mxu0 }
 0x1e9   : > { %v2206_v6 = vadd.f32 %v4343_v5, %v2077_v62  ;;  %v4363_v7 = vpop.f32.mrb[28].mxu1  ;;  %v2190_v8 = vpop.f32.mrb[29].mxu0 }
 0x1ea   : > { %v2204_v9 = vadd.f32 %v2190_v8, %v2075_v1  ;;  %v2325_v10 = vpop.f32.mrb[29].mxu1  ;;  %v4344_v11 = vpop.f32.mrb[30].mxu0  ;;  %v3164_v1 = vld [vmem:[%s226_s11 + $0x8] sm:$0x7] }
 0x1eb   : > { %v2341_v12 = vadd.f32 %v4363_v7, %v2206_v6  ;;  %v4364_v13 = vpop.f32.mrb[30].mxu1  ;;  %v2193_v14 = vpop.f32.mrb[31].mxu0 }
 0x1ec   : > { %v2339_v15 = vadd.f32 %v2325_v10, %v2204_v9  ;;  %v2205_v17 = vadd.f32 %v2193_v14, %v2076_v4  ;;  %v2328_v18 = vpop.f32.mrb[31].mxu1 }
 0x1ee   : > { %v2340_v19 = vadd.f32 %v2328_v18, %v2205_v17 }
 0x208   : > { %v4383_v20 = vpop.f32.mrb[32].mxu0 }
 0x209   : > { %v2464_v21 = vadd.f32 %v4383_v20, %v2341_v12  ;;  %v4403_v16 = vpop.f32.mrb[32].mxu1  ;;  %v2448_v22 = vpop.f32.mrb[33].mxu0 }
 0x20a   : > { %v2462_v23 = vadd.f32 %v2448_v22, %v2339_v15  ;;  %v2581_v24 = vpop.f32.mrb[33].mxu1  ;;  %v4384_v25 = vpop.f32.mrb[34].mxu0 }
 0x20b   : > { %v2597_v2 = vadd.f32 %v4403_v16, %v2464_v21  ;;  %v4404_v26 = vpop.f32.mrb[34].mxu1  ;;  %v2451_v28 = vpop.f32.mrb[35].mxu0 }
 0x20c   : > { %v2595_v29 = vadd.f32 %v2581_v24, %v2462_v23  ;;  %v2463_v30 = vadd.f32 %v2451_v28, %v2340_v19  ;;  %v2584_v31 = vpop.f32.mrb[35].mxu1 }
 0x20e   : > { %v2596_v32 = vadd.f32 %v2584_v31, %v2463_v30 }
 0x228   : > { %v4423_v33 = vpop.f32.mrb[36].mxu0 }
 0x229   : > { %v2726_v34 = vadd.f32 %v4423_v33, %v2597_v2  ;;  %v4443_v35 = vpop.f32.mrb[36].mxu1  ;;  %v2710_v37 = vpop.f32.mrb[37].mxu0 }
 0x22a   : > { %v2724_v38 = vadd.f32 %v2710_v37, %v2595_v29  ;;  %v2845_v40 = vpop.f32.mrb[37].mxu1  ;;  %v4424_v39 = vpop.f32.mrb[38].mxu0 }
 0x22b   : > { %v2861_v41 = vadd.f32 %v4443_v35, %v2726_v34  ;;  %v4444_v42 = vpop.f32.mrb[38].mxu1  ;;  %v2713_v43 = vpop.f32.mrb[39].mxu0 }
 0x22c   : > { %v2859_v27 = vadd.f32 %v2845_v40, %v2724_v38  ;;  %v2725_v45 = vadd.f32 %v2713_v43, %v2596_v32  ;;  %v2848_v61 = vpop.f32.mrb[39].mxu1 }
 0x22e   : > { %v2860_v46 = vadd.f32 %v2848_v61, %v2725_v45 }
 0x248   : > { %v4463_v47 = vpop.f32.mrb[40].mxu0 }
 0x249   : > { %v2996_v48 = vadd.f32 %v4463_v47, %v2861_v41  ;;  %v4483_v49 = vpop.f32.mrb[40].mxu1  ;;  %v2980_v50 = vpop.f32.mrb[41].mxu0 }
 0x24a   : > { %v2994_v52 = vadd.f32 %v2980_v50, %v2859_v27  ;;  %v3115_v36 = vpop.f32.mrb[41].mxu1  ;;  %v4464_v53 = vpop.f32.mrb[42].mxu0 }
 0x24b   : > { %v3131_v54 = vadd.f32 %v4483_v49, %v2996_v48  ;;  %v4484_v55 = vpop.f32.mrb[42].mxu1  ;;  %v2983_v56 = vpop.f32.mrb[43].mxu0 }
 0x24c   : > { %v3129_v57 = vadd.f32 %v3115_v36, %v2994_v52  ;;  %v2995_v58 = vadd.f32 %v2983_v56, %v2860_v46  ;;  %v3118_v59 = vpop.f32.mrb[43].mxu1 }
 0x24d   : > { %v3141_v60 = vadd.f32 %v3816_v51, %v3131_v54 }
 0x24e   : > { %v3139_v62 = vadd.f32 %v3816_v51, %v3129_v57  ;;  %v3130_v63 = vadd.f32 %v3118_v59, %v2995_v58 }
 0x24f   : > { %v3144_v0 = vmax.f32 %v3141_v60, 0.0 }
 0x250   : > { %v3142_v44 = vmax.f32 %v3139_v62, 0.0  ;;  %v3140_v3 = vadd.f32 %v3816_v51, %v3130_v63 }
 0x251   : > { %v3824_v4 = vpack.c.bf16 %v3144_v0, %v3144_v0 }
 0x252   : > { %v3822_v5 = vpack.c.bf16 %v3142_v44, %v3142_v44  ;;  %v3143_v6 = vmax.f32 %v3140_v3, 0.0 }
 0x253   : > { %v3165_v7 = vsel %vm3163_vm9, %v3824_v4, %v3164_v1 }
 0x254   : > { %3166 = vst [vmem:[%s226_s11 + $0x8] sm:$0x7] %v3165_v7  ;;  %3159 = vst.msk [vmem:[%s226_s11] sm:$0xf] %vm3158_vm10, %v3822_v5  ;;  %v3823_v8 = vpack.c.bf16 %v3143_v6, %v3143_v6 }
 0x256   : > { %3160 = vst.msk [vmem:[%s226_s11 + $0x4] sm:$0xf] %vm3158_vm10, %v3823_v8 }
 0x257 PF: > { %s13_s16 = sadd.s32 1, %s4766_s16   ;;  %s5263_s12 = smov %s4758_s14 }
 0x258   : > { %p10_p7 = scmp.ge.s32.totalorder %s13_s16, 8   ;;  %s5264_s13 = smov %s4762_s15 }
 0x259   : > { %s5265_s14 = smov %s5268_s17  ;;  %s5266_s15 = smov %s5272_s18 }
 0x25a   :  { %12 = sbr.rel (!%p10_p7) target bundleno = 3 (0x3), region = 86 }

// kernel: conv1d_autoencoder.7
= control target key start
LH: loop header
LB: loop body
LE: loop exit
PB: predicated region body
PF: predicated region fallthrough
CT: control target
= control target key end

     0   :  { %s5684_s12 = smov 0   ;;  %s5686_s13 = smov 0   ;;  %s6802_s0 = inlined_call_operand.vmem [shape: bf16[2,3,104,64], index: 0, kind: input, shape index: {}]   ;;  %s6803_s1 = inlined_call_operand.vmem [shape: bf16[3,22,64,128], index: 1, kind: input, shape index: {}]   ;;  %s6804_s2 = inlined_call_operand.vmem [shape: f32[1,128], index: 2, kind: input, shape index: {}]   ;;  %s6805_s3 = inlined_call_operand.vmem [shape: f32[2,3,83,128], index: 3, kind: output, shape index: {}]  }
   0x1   :  { %s5688_s14 = smov 0   ;;  %s5690_s15 = smov 0  }
   0x2   :  { %s5692_s16 = smov 0  }
   0x3 LB: > { %s22_s17 = sadd.s32 1, %s5654_s14  ;;  %s25_s18 = sadd.s32 1, %s5658_s15  ;;  %s5662_s16 = sphi %s5692_s16, %s13_s16   ;;  %s5658_s15 = sphi %s5690_s15, %s6852_s15   ;;  %s5654_s14 = sphi %s5688_s14, %s6851_s14   ;;  %s5650_s13 = sphi %s5686_s13, %s6850_s13   ;;  %s5646_s12 = sphi %s5684_s12, %s6849_s12  }
   0x4   : > { %p23_p0 = scmp.ge.s32.totalorder %s22_s17, 3  ;;  %p4181_p1 = scmp.ge.s32.totalorder %s5662_s16, 1 }
   0x5   : > { %p167_p2 = scmp.lt.s32.totalorder %s5662_s16, 7 }
   0x6   : > { %s6854_s17 = smov (%p23_p0, %s22_s17), 0  ;;  %s6856_s18 = smov (!%p23_p0, %s25_s18), %s5658_s15 }
   0x7   : > { %p168_p3 = pnand %p4181_p1, %p167_p2  ;;  %p27_p4 = scmp.ge.s32.totalorder %s6856_s18, 2 }
   0x9   : > { %s6858_s18 = smov (%p27_p4, %s6856_s18), 0  ;;  %171 = sbr.rel (%p168_p3) target bundleno = 537 (0x219), region = 32 }
  0x10   : > { %p206_p5 = scmp.lt.s32.totalorder %s5646_s12, 2  ;;  %p204_p6 = scmp.lt.s32.totalorder %s5650_s13, 1  ;;  %vm284_vm0 = vsmask.f32 7424  ;;  %vm742_vm1 = vsmask.f32 6400 }
  0x11   : > { %vm356_vm2 = vcmask 523264   ;;  %vm926_vm3 = vcmask 1045504   ;;  %vm588_vm4 = vcmask 1046528   ;;  %vm1080_vm5 = vsmask.f32 5376 }
  0x12   : > { %s6860_s12 = smov (!%p206_p5, %s5646_s12), 2  ;;  %s6862_s13 = smov (!%p204_p6, %s5650_s13), 1  ;;  %vm1298_vm6 = vcmask 1044480   ;;  %vm1452_vm7 = vsmask.f32 4352 }
  0x13   : > { %s5448_s19 = smul.u32 704, %s6860_s12 }
  0x14   : > { %s5446_s20 = smul.u32 13, %s6860_s12 }
  0x15   : > { %s5723_s23 = scalar_lea.vmem %s6803_s1, %s5448_s19  ;;  %s5447_s24 = smul.u32 39, %s6862_s13 }
  0x16   : > { %v5491_v0 = vld [vmem:[%s5723_s23 + $0x20] sm:$0xff]   ;;  %v5493_v2 = vld [vmem:[%s5723_s23 + $0x28] sm:$0xff]   ;;  %v5495_v4 = vld [vmem:[%s5723_s23 + $0x30] sm:$0xff]   ;;  %s5449_s30 = smul.u32 11, %s6860_s12 }
  0x17   : > { %v5492_v1 = vld [vmem:[%s5723_s23 + $0x160] sm:$0xff]   ;;  %s210_s25 = sadd.s32 %s5447_s24, %s5446_s20  ;;  %4838 = vmatprep.subr.bf16.mxu1 %v5491_v0  ;;  %v5494_v3 = vld [vmem:[%s5723_s23 + $0x168] sm:$0xff]   ;;  %v5496_v5 = vld [vmem:[%s5723_s23 + $0x170] sm:$0xff]   ;;  %s5450_s4 = smul.u32 33, %s6862_s13 }
  0x18   : > { %s4182_s26 = sshll.u32 %s210_s25, 2  ;;  %5058 = vmatprep.subr.bf16.mxu0 %v5492_v1  ;;  %4839 = vmatpush3.bf16.msra.mxu1 %v5491_v0  ;;  %v5497_v6 = vld [vmem:[%s5723_s23 + $0x38] sm:$0xff]   ;;  %v5504_v25 = vld [vmem:[%s5723_s23] sm:$0xff]   ;;  %v5506_v40 = vld [vmem:[%s5723_s23 + $0x8] sm:$0xff]  }
  0x19   : > { %5059 = vmatpush3.bf16.msra.mxu0 %v5492_v1  ;;  %4840 = vmatprep.subr.bf16.mxu1 %v5493_v2  ;;  %s5735_s29 = scalar_lea.vmem %s6802_s0, %s4182_s26  ;;  %v5498_v7 = vld [vmem:[%s5723_s23 + $0x178] sm:$0xff]   ;;  %v5511_v1 = vld [vmem:[%s5723_s23 + $0x180] sm:$0xff]   ;;  %s224_s5 = sadd.s32 %s5450_s4, %s5449_s30 }
  0x1a   : > { %5060 = vmatprep.subr.bf16.mxu0 %v5494_v3  ;;  %v228_v8 = vld [vmem:[%s5735_s29] sm:$0xf]  ;;  %v5741_v9 = vld [vmem:[%s5735_s29 + $0x4] sm:$0xf]  ;;  %v5747_v11 = vld [vmem:[%s5735_s29 + $0x8] sm:$0xff]   ;;  %s4184_s6 = sshll.u32 %s224_s5, 3 }
  0x1b   : > { %v5744_v10 = vcombine.low %v228_v8, %v5741_v9  ;;  %v5750_v12 = vld [vmem:[%s5735_s29 + $0x8] sm:$0xf]  ;;  %v5753_v13 = vld [vmem:[%s5735_s29 + $0xc] sm:$0xf]  ;;  %v5756_v14 = vld [vmem:[%s5735_s29 + $0x10] sm:$0xf]  ;;  %s6733_s11 = scalar_lea.vmem %s6805_s3, %s4184_s6 }
  0x1c   : > { %4841 = vmatpush3.bf16.msra.mxu1 %v5493_v2  ;;  %v1973_v15 = vld [vmem:[%s5735_s29 + $0x4] sm:$0xe]  ;;  %v5762_v18 = vshll.u32 %v5747_v11, 16  ;;  %v5765_v19 = vshrl.u32 %v5747_v11, 16  ;;  %v5769_v20 = vcombine.low %v5753_v13, %v5756_v14  ;;  %v5775_v22 = vld [vmem:[%s5735_s29 + $0x10] sm:$0xff]   ;;  %v5798_v35 = vld [vmem:[%s5735_s29 + $0x18] sm:$0xff]  }
  0x1d   : > { %5061 = vmatpush3.bf16.msra.mxu0 %v5494_v3  ;;  %4842 = vmatprep.subr.bf16.mxu1 %v5495_v4  ;;  %v286_v16 = vshrl.u32 %v5744_v10, 16  ;;  %v288_v17 = vshll.u32 %v5744_v10, 16  ;;  %v5772_v21 = vcombine.low %v1973_v15, %v5750_v12  ;;  %v5788_v30 = vld [vmem:[%s5735_s29 + $0x14] sm:$0xf]  ;;  %v5792_v33 = vshll.u32 %v5775_v22, 16  ;;  %v5823_v50 = vld [vmem:[%s5735_s29 + $0x20] sm:$0xff]  }
  0x1e   : > { %5062 = vmatprep.subr.bf16.mxu0 %v5496_v5  ;;  %v295_v24 = vrot.slane %v5762_v18, 1  ;;  %v5780_v26 = vshll.u32 %v5769_v20, 16  ;;  %v5783_v27 = vshrl.u32 %v5769_v20, 16  ;;  %v5795_v34 = vld [vmem:[%s5735_s29 + $0x18] sm:$0xf]  ;;  %v5810_v44 = vshrl.u32 %v5775_v22, 16 }
  0x1f   : > { %6821 = vst [vmem:[#allocation2_spill] sm:$0xff] %v5772_v21  ;;  %v290_v23 = vrot.slane %v288_v17, 1  ;;  %v2144_v28 = vshrl.u32 %v5772_v21, 16  ;;  %v2147_v29 = vshll.u32 %v5772_v21, 16  ;;  %v303_v42 = vrot.slane %v5792_v33, 1 }
  0x20   : > { %4843 = vmatpush3.bf16.msra.mxu1 %v5495_v4  ;;  %6822 = vst [vmem:[#allocation3_spill] sm:$0xff] %v5780_v26  ;;  %6823 = vst [vmem:[#allocation4_spill] sm:$0xff] %v5783_v27  ;;  %v299_v32 = vor.u32 %v5765_v19, %v295_v24  ;;  %v2151_v38 = vrot.slane %v5783_v27, 1  ;;  %v2152_v39 = vrot.slane %v5780_v26, 2  ;;  %v5807_v43 = vcombine.low %v5788_v30, %v5795_v34  ;;  %v5817_v48 = vld [vmem:[%s5735_s29 + $0x1c] sm:$0xf] }
  0x21   : > { %5063 = vmatpush3.bf16.msra.mxu0 %v5496_v5  ;;  %4844 = vmatprep.subr.bf16.mxu1 %v5497_v6  ;;  %v291_v31 = vor.u32 %v290_v23, %v286_v16  ;;  %v2146_v36 = vrot.slane %v2144_v28, 1  ;;  %v2149_v37 = vrot.slane %v2147_v29, 2  ;;  %v5814_v47 = vshll.u32 %v5798_v35, 16  ;;  %v5820_v49 = vld [vmem:[%s5735_s29 + $0x20] sm:$0xf]  ;;  %v5512_v16 = vld [vmem:[%s5723_s23 + $0x10] sm:$0xff]  }
  0x22   : > { %5064 = vmatprep.subr.bf16.mxu0 %v5498_v7  ;;  %v2153_v46 = vor.u32 %v2152_v39, %v2151_v38  ;;  %v304_v51 = vsel %vm284_vm0, %v299_v32, %v303_v42  ;;  %v5827_v52 = vshll.u32 %v5807_v43, 16  ;;  %v5830_v53 = vshrl.u32 %v5807_v43, 16  ;;  %v5844_v59 = vld [vmem:[%s5735_s29 + $0x24] sm:$0xf]  ;;  %v5847_v60 = vld [vmem:[%s5735_s29 + $0x28] sm:$0xf] }
  0x23   : > { %v296_v41 = vsel %vm284_vm0, %v291_v31, %v295_v24  ;;  %v2150_v45 = vor.u32 %v2149_v37, %v2146_v36  ;;  %v307_v54 = vor.u32 %v5810_v44, %v303_v42  ;;  %v311_v56 = vrot.slane %v5814_v47, 1  ;;  %v5513_v31 = vld [vmem:[%s5723_s23 + $0x188] sm:$0xff]   ;;  %v5516_v38 = vld [vmem:[%s5723_s23 + $0x190] sm:$0xff]  }
  0x24   : > { %4845 = vmatpush3.bf16.msra.mxu1 %v5497_v6  ;;  %4846 = vmatprep.mubr.msk.bf16.mxu1 %vm356_vm2, %v296_v41  ;;  %6824 = vst [vmem:[#allocation5_spill] sm:$0xff] %v5827_v52  ;;  %6825 = vst [vmem:[#allocation6_spill] sm:$0xff] %v5830_v53  ;;  %v5838_v57 = vcombine.low %v5817_v48, %v5820_v49  ;;  %v5841_v58 = vshrl.u32 %v5798_v35, 16  ;;  %v2155_v61 = vrot.slane %v5830_v53, 1  ;;  %v2156_v62 = vrot.slane %v5827_v52, 2  ;;  %v5517_v41 = vld [vmem:[%s5723_s23 + $0x18] sm:$0xff]  }
  0x25   : > { %5065 = vmatpush3.bf16.msra.mxu0 %v5498_v7  ;;  %4858 = vmatprep.subr.bf16.mxu1 %v5504_v25  ;;  %v2154_v55 = vsel %vm742_vm1, %v2150_v45, %v2153_v46  ;;  %v5853_v63 = vshll.u32 %v5823_v50, 16  ;;  %v5857_v0 = vcombine.low %v5844_v59, %v5847_v60  ;;  %v312_v2 = vsel %vm284_vm0, %v307_v54, %v311_v56  ;;  %v5886_v36 = vld [vmem:[%s5735_s29 + $0x28] ss:$0 sps:$4 sm:$0x33]  }
  0x26   : > { %6826 = vst [vmem:[#allocation7_spill] sm:$0xff] %v5838_v57  ;;  %5066 = vmatprep.mubr.msk.bf16.mxu0 %vm356_vm2, %v2154_v55  ;;  %v5862_v3 = vshll.u32 %v5838_v57, 16  ;;  %v5865_v4 = vshrl.u32 %v5838_v57, 16  ;;  %v315_v5 = vor.u32 %v5841_v58, %v311_v56  ;;  %v2157_v6 = vor.u32 %v2156_v62, %v2155_v61  ;;  %5078 = vmatprep.subr.bf16.mxu0 %v5511_v1  ;;  %v2309_v61 = vld [vmem:[%s5735_s29 + $0x4] sm:$0xc] }
  0x27   : > { %4847 = vmatmul.mubr.msk.bf16.vlgmr.msra.gmra.mrb[0].mxu1 %vm356_vm2, %v304_v51  ;;  %6827 = vst [vmem:[#allocation8_spill] sm:$0xff] %v5857_v0  ;;  %v319_v7 = vrot.slane %v5853_v63, 1  ;;  %v5871_v8 = vshll.u32 %v5857_v0, 16  ;;  %v5874_v15 = vshrl.u32 %v5857_v0, 16  ;;  %v5889_v37 = vshrl.u32 %v5823_v50, 16 }
  0x28   : > { %4859 = vmatpush3.bf16.msra.mxu1 %v5504_v25  ;;  %6828 = vst [vmem:[#allocation9_spill] sm:$0xff] %v5862_v3  ;;  %6829 = vst [vmem:[#allocation10_spill] sm:$0xff] %v5865_v4  ;;  %4850 = vmatprep.mubr.msk.bf16.mxu1 %vm356_vm2, %v312_v2  ;;  %v2159_v17 = vrot.slane %v5865_v4, 1  ;;  %v2160_v23 = vrot.slane %v5862_v3, 2  ;;  %v2158_v24 = vsel %vm742_vm1, %v2153_v46, %v2157_v6  ;;  %v325_v46 = vshll.u32 %v5886_v36, 16 }
  0x29   : > { %4860 = vmatprep.subr.bf16.mxu1 %v5506_v40  ;;  %6830 = vst [vmem:[#allocation11_spill] sm:$0xff] %v5871_v8  ;;  %6831 = vst [vmem:[#allocation12_spill] sm:$0xff] %v5874_v15  ;;  %v320_v25 = vsel %vm284_vm0, %v315_v5, %v319_v7  ;;  %v2163_v28 = vrot.slane %v5874_v15, 1  ;;  %v2164_v29 = vrot.slane %v5871_v8, 2  ;;  %5067 = vmatmul.mubr.msk.bf16.vlgmr.msra.gmra.mrb[0].mxu0 %vm356_vm2, %v2158_v24  ;;  %v329_v51 = vshrl.u32 %v5886_v36, 16  ;;  %v5520_v5 = vld [vmem:[%s5723_s23 + $0x40] sm:$0xff]  }
  0x2a   : > { %v2161_v32 = vor.u32 %v2160_v23, %v2159_v17  ;;  %5079 = vmatpush3.bf16.msra.mxu0 %v5511_v1  ;;  %v323_v45 = vor.u32 %v5889_v37, %v319_v7  ;;  %v327_v56 = vrot.slane %v325_v46, 1  ;;  %v5905_v17 = vcombine.low %v2309_v61, %v5750_v12  ;;  %v5518_v23 = vld [vmem:[%s5723_s23 + $0x198] sm:$0xff]  }
  0x2b   : > { %v2165_v39 = vor.u32 %v2164_v29, %v2163_v28  ;;  %5080 = vmatprep.subr.bf16.mxu0 %v5513_v31  ;;  %v5522_v29 = vld [vmem:[%s5723_s23 + $0x1a0] sm:$0xff]  }
  0x2c   : > { %4861 = vmatpush3.bf16.msra.mxu1 %v5506_v40  ;;  %v5515_v40 = vld [vmem:[%s5735_s29 + $0x2c] ss:$0 sps:$4 sm:$0x77]   ;;  %v2162_v42 = vsel %vm742_vm1, %v2157_v6, %v2161_v32  ;;  %v328_v6 = vsel %vm284_vm0, %v323_v45, %v327_v56  ;;  %v331_v7 = vor.u32 %v329_v51, %v327_v56  ;;  %v2326_v28 = vrot.slane %v5905_v17, 2  ;;  %v5526_v56 = vld [vmem:[%s5723_s23 + $0x1b0] sm:$0xff]  }
  0x2d   : > { %4862 = vmatprep.subr.bf16.mxu1 %v5512_v16  ;;  %5070 = vmatprep.mubr.msk.bf16.mxu0 %vm356_vm2, %v2162_v42  ;;  %v2168_v54 = vshrl.u32 %v5515_v40, 16  ;;  %v2171_v55 = vshll.u32 %v5515_v40, 16  ;;  %v2166_v62 = vsel %vm742_vm1, %v2161_v32, %v2165_v39  ;;  %v5524_v40 = vld [vmem:[%s5723_s23 + $0x1a8] sm:$0xff]   ;;  %v5938_v42 = vcombine.low %v5795_v34, %v5817_v48 }
  0x2e   : > { %5081 = vmatpush3.bf16.msra.mxu0 %v5513_v31  ;;  %v5918_v31 = vcombine.low %v5756_v14, %v5788_v30  ;;  %v2329_v14 = vrot.slane %v5807_v43, 2  ;;  %v5523_v30 = vld [vmem:[%s5723_s23 + $0x50] sm:$0xff]   ;;  %v5942_v45 = vcombine.low %v5820_v49, %v5844_v59  ;;  %v5946_v51 = vld [vmem:[%s5735_s29 + $0x2c] ss:$0 sps:$4 sm:$0xff]   ;;  %v2480_v34 = vshrl.u32 %v5905_v17, 16 }
  0x2f   : > { %4851 = vmatmul.mubr.msk.bf16.gmra.mrb[4].mxu1 %vm356_vm2, %v320_v25  ;;  %v2170_v1 = vrot.slane %v2168_v54, 1  ;;  %v2173_v2 = vrot.slane %v2171_v55, 2  ;;  %5082 = vmatprep.subr.bf16.mxu0 %v5516_v38  ;;  %v2327_v25 = vrot.slane %v5769_v20, 2  ;;  %v5527_v54 = vld [vmem:[%s5723_s23 + $0x58] sm:$0xff]   ;;  %v2333_v48 = vrot.slane %v5857_v0, 2 }
  0x30   : > { %4863 = vmatpush3.bf16.msra.mxu1 %v5512_v16  ;;  %4854 = vmatprep.mubr.msk.bf16.mxu1 %vm356_vm2, %v328_v6  ;;  %v751_v49 = vrot.slane %v5765_v19, 1  ;;  %v2335_v59 = vrot.slane %v5946_v51, 2  ;;  %v2483_v61 = vshll.u32 %v5905_v17, 16  ;;  %v756_v17 = vrot.slane %v5792_v33, 2 }
  0x31   : > { %4864 = vmatprep.subr.bf16.mxu1 %v5517_v41  ;;  %v2174_v16 = vor.u32 %v2173_v2, %v2170_v1  ;;  %5071 = vmatmul.mubr.msk.bf16.gmra.mrb[4].mxu0 %vm356_vm2, %v2166_v62  ;;  %v2328_v32 = vsel %vm926_vm3, %v2326_v28, %v2327_v25  ;;  %v752_v62 = vrot.slane %v5762_v18, 2  ;;  %v755_v1 = vrot.slane %v5810_v44, 1 }
  0x32   : > { %5083 = vmatpush3.bf16.msra.mxu0 %v5516_v38  ;;  %v5521_v38 = vld [vmem:[%s5723_s23 + $0x48] sm:$0xff]   ;;  %v590_v2 = vrot.slane %v5747_v11, 1  ;;  %v2488_v28 = vrot.slane %v5780_v26, 3 }
  0x33   : > { %v2175_v24 = vsel %vm742_vm1, %v2165_v39, %v2174_v16  ;;  %5084 = vmatprep.subr.bf16.mxu0 %v5518_v23  ;;  %v2330_v39 = vsel %vm926_vm3, %v2327_v25, %v2329_v14  ;;  %v2487_v25 = vrot.slane %v5783_v27, 2 }
  0x34   : > { %4865 = vmatpush3.bf16.msra.mxu1 %v5517_v41  ;;  %5074 = vmatprep.mubr.msk.bf16.mxu0 %vm356_vm2, %v2175_v24  ;;  %v571_v41 = vld [vmem:[%s5735_s29] sm:$0xe] }
  0x35   : > { %4878 = vmatprep.subr.bf16.mxu1 %v5520_v5  ;;  %v5951_v55 = vcombine.low %v571_v41, %v5741_v9 }
  0x36   : > { %5085 = vmatpush3.bf16.msra.mxu0 %v5518_v23  ;;  %v5970_v23 = vor.u32 %v752_v62, %v751_v49  ;;  %v592_v49 = vrot.slane %v5775_v22, 1  ;;  %v2491_v62 = vrot.slane %v5830_v53, 2  ;;  %v5552_v53 = vld [vmem:[%s5723_s23 + $0x98] sm:$0xff]  }
  0x37   : > { %4855 = vmatmul.mubr.msk.bf16.gmra.mrb[8].mxu1 %vm356_vm2, %v331_v7  ;;  %5098 = vmatprep.subr.bf16.mxu0 %v5522_v29  ;;  %v589_v6 = vrot.slane %v5951_v55, 1  ;;  %v2482_v7 = vrot.slane %v2480_v34, 2  ;;  %v2489_v34 = vor.u32 %v2488_v28, %v2487_v25 }
  0x38   : > { %4866 = vmatprep.mubr.msk.bf16.mxu1 %vm356_vm2, %v5744_v10  ;;  %v2331_v10 = vrot.slane %v5838_v57, 2  ;;  %v593_v28 = vsel %vm588_vm4, %v590_v2, %v592_v49  ;;  %v1480_v57 = vshrl.u32 %v5938_v42, 16 }
  0x39   : > { %5075 = vmatmul.mubr.msk.bf16.gmra.mrb[8].mxu0 %vm356_vm2, %v2174_v16  ;;  %v5530_v16 = vld [vmem:[%s5723_s23 + $0x60] sm:$0xff]  }
  0x3a   : > { %5086 = vmatprep.mubr.msk.bf16.mxu0 %vm356_vm2, %v2328_v32  ;;  %v2332_v46 = vsel %vm926_vm3, %v2329_v14, %v2331_v10  ;;  %v2334_v24 = vsel %vm926_vm3, %v2331_v10, %v2333_v48  ;;  %v2485_v32 = vrot.slane %v2483_v61, 3  ;;  %v759_v14 = vrot.slane %v5841_v58, 1 }
  0x3b   : > { %v591_v10 = vsel %vm588_vm4, %v589_v6, %v590_v2  ;;  %v2495_v6 = vrot.slane %v5865_v4, 2  ;;  %v596_v2 = vrot.slane %v5823_v50, 1 }
  0x3f   : > { %4867 = vmatmul.mubr.msk.bf16.vlgmr.msra.gmra.mrb[0].mxu1 %vm356_vm2, %v5747_v11 }
  0x40   : > { %4879 = vmatpush3.bf16.msra.mxu1 %v5520_v5  ;;  %4870 = vmatprep.mubr.msk.bf16.mxu1 %vm356_vm2, %v5775_v22  ;;  %v5528_v5 = vld [vmem:[%s5723_s23 + $0x1b8] sm:$0xff]  }
  0x41   : > { %4880 = vmatprep.subr.bf16.mxu1 %v5521_v38  ;;  %5087 = vmatmul.mubr.msk.bf16.vlgmr.msra.gmra.mrb[0].mxu0 %vm356_vm2, %v2330_v39 }
  0x42   : > { %5090 = vmatprep.mubr.msk.bf16.mxu0 %vm356_vm2, %v2332_v46  ;;  %5099 = vmatpush3.bf16.msra.mxu0 %v5522_v29  ;;  %v2336_v29 = vsel %vm926_vm3, %v2333_v48, %v2335_v59  ;;  %v764_v46 = vrot.slane %v5853_v63, 2  ;;  %v5991_v48 = vld [vmem:[%s5723_s23 + $0x1c0] sm:$0xff]  }
  0x43   : > { %5100 = vmatprep.subr.bf16.mxu0 %v5524_v40 }
  0x44   : > { %4881 = vmatpush3.bf16.msra.mxu1 %v5521_v38  ;;  %v757_v38 = vor.u32 %v756_v17, %v755_v1  ;;  %v594_v1 = vrot.slane %v5798_v35, 1  ;;  %v6006_v17 = vld [vmem:[%s5735_s29 + $0x28] ss:$0 sps:$4 sm:$0x77]  }
  0x45   : > { %4882 = vmatprep.subr.bf16.mxu1 %v5523_v30 }
  0x46   : > { %5101 = vmatpush3.bf16.msra.mxu0 %v5524_v40  ;;  %v5983_v39 = vsel %vm742_vm1, %v5970_v23, %v757_v38  ;;  %v763_v40 = vrot.slane %v5889_v37, 1 }
  0x47   : > { %4871 = vmatmul.mubr.msk.bf16.gmra.mrb[4].mxu1 %vm356_vm2, %v5798_v35  ;;  %5102 = vmatprep.subr.bf16.mxu0 %v5526_v56 }
  0x48   : > { %4883 = vmatpush3.bf16.msra.mxu1 %v5523_v30  ;;  %4874 = vmatprep.mubr.msk.bf16.mxu1 %vm356_vm2, %v5823_v50  ;;  %v760_v30 = vrot.slane %v5814_v47, 2 }
  0x49   : > { %4884 = vmatprep.subr.bf16.mxu1 %v5527_v54  ;;  %5091 = vmatmul.mubr.msk.bf16.gmra.mrb[4].mxu0 %vm356_vm2, %v2334_v24 }
  0x4a   : > { %5094 = vmatprep.mubr.msk.bf16.mxu0 %vm356_vm2, %v2336_v29  ;;  %5103 = vmatpush3.bf16.msra.mxu0 %v5526_v56  ;;  %v761_v41 = vor.u32 %v760_v30, %v759_v14  ;;  %v5998_v56 = vor.u32 %v764_v46, %v763_v40  ;;  %v2504_v29 = vshrl.u32 %v5946_v51, 16  ;;  %v2507_v14 = vshll.u32 %v5946_v51, 16 }
  0x4b   : > { %5104 = vmatprep.subr.bf16.mxu0 %v5528_v5  ;;  %v2500_v46 = vrot.slane %v5871_v8, 3  ;;  %v5549_v8 = vld [vmem:[%s5723_s23 + $0x1e8] sm:$0xff]  }
  0x4c   : > { %4885 = vmatpush3.bf16.msra.mxu1 %v5527_v54  ;;  %v2486_v54 = vor.u32 %v2485_v32, %v2482_v7  ;;  %v5996_v61 = vsel %vm742_vm1, %v757_v38, %v761_v41  ;;  %v2496_v7 = vrot.slane %v5862_v3, 3  ;;  %v6010_v24 = vsel %vm742_vm1, %v761_v41, %v5998_v56  ;;  %v909_v32 = vld [vmem:[%s5735_s29] sm:$0xc] }
  0x4d   : > { %4898 = vmatprep.subr.bf16.mxu1 %v5530_v16  ;;  %v595_v38 = vsel %vm588_vm4, %v592_v49, %v594_v1  ;;  %v6022_v30 = vcombine.low %v909_v32, %v5741_v9  ;;  %v2499_v41 = vrot.slane %v5874_v15, 2  ;;  %v930_v9 = vrot.slane %v5775_v22, 2  ;;  %v6047_v32 = vld [vmem:[%s5735_s29 + $0x8] sm:$0xf] }
  0x4e   : > { %5105 = vmatpush3.bf16.msra.mxu0 %v5528_v5  ;;  %v2490_v25 = vsel %vm1080_vm5, %v2486_v54, %v2489_v34  ;;  %v5531_v5 = vld [vmem:[%s5723_s23 + $0x68] sm:$0xff]   ;;  %v2506_v49 = vrot.slane %v2504_v29, 2 }
  0x4f   : > { %4875 = vmatmul.mubr.msk.bf16.gmra.mrb[12].mxu1 %vm356_vm2, %v5886_v36  ;;  %v2492_v36 = vrot.slane %v5827_v52, 3  ;;  %5118 = vmatprep.subr.bf16.mxu0 %v5991_v48  ;;  %v927_v51 = vrot.slane %v6022_v30, 2  ;;  %v6050_v29 = vld [vmem:[%s5735_s29 + $0xc] sm:$0xf]  ;;  %v5553_v52 = vld [vmem:[%s5723_s23 + $0x1f8] sm:$0xff]  }
  0x50   : > { %4886 = vmatprep.mubr.msk.bf16.mxu1 %vm356_vm2, %v591_v10  ;;  %v928_v10 = vrot.slane %v5747_v11, 2  ;;  %v5533_v11 = vld [vmem:[%s5723_s23 + $0x70] sm:$0xff]  }
  0x51   : > { %5095 = vmatmul.mubr.msk.bf16.gmra.mrb[12].mxu0 %vm356_vm2, %v2335_v59  ;;  %v2493_v40 = vor.u32 %v2492_v36, %v2491_v62  ;;  %v2497_v59 = vor.u32 %v2496_v7, %v2495_v6  ;;  %v744_v62 = vshrl.u32 %v5951_v55, 16  ;;  %v747_v36 = vshll.u32 %v5951_v55, 16  ;;  %v2645_v7 = vld [vmem:[%s5735_s29 + $0x4] sm:$0x8] }
  0x52   : > { %5106 = vmatprep.mubr.msk.bf16.mxu0 %vm356_vm2, %v2490_v25  ;;  %v2509_v6 = vrot.slane %v2507_v14, 3  ;;  %v6039_v25 = vsel %vm926_vm3, %v927_v51, %v928_v10  ;;  %v6042_v22 = vsel %vm926_vm3, %v928_v10, %v930_v9  ;;  %v6055_v14 = vld [vmem:[%s5735_s29 + $0x10] sm:$0xf]  ;;  %v6809_v10 = vrot.slane %v5823_v50, 2 }
  0x53   : > { %v2498_v55 = vsel %vm1080_vm5, %v2493_v40, %v2497_v59  ;;  %v746_v54 = vrot.slane %v744_v62, 1  ;;  %v749_v21 = vrot.slane %v747_v36, 2  ;;  %v5538_v36 = vld [vmem:[%s5723_s23 + $0x1d8] sm:$0xff]  }
  0x54   : > { %v6066_v4 = vor.u32 %v2509_v6, %v2506_v49  ;;  %v6087_v49 = vld [vmem:[%s5723_s23 + $0x80] sm:$0xff]   ;;  %v1082_v6 = vshrl.u32 %v6022_v30, 16 }
  0x57   : > { %4887 = vmatmul.mubr.msk.bf16.vlgmr.msra.gmra.mrb[0].mxu1 %vm356_vm2, %v593_v28  ;;  %v2494_v28 = vsel %vm1080_vm5, %v2489_v34, %v2493_v40  ;;  %v2501_v34 = vor.u32 %v2500_v46, %v2499_v41  ;;  %v6832_v40 = vrot.slane %v6006_v17, 1  ;;  %v6081_v41 = vcombine.low %v6050_v29, %v6055_v14 }
  0x58   : > { %4899 = vmatpush3.bf16.msra.mxu1 %v5530_v16  ;;  %4890 = vmatprep.mubr.msk.bf16.mxu1 %vm356_vm2, %v595_v38  ;;  %v932_v16 = vrot.slane %v5798_v35, 2  ;;  %v5534_v38 = vld [vmem:[%s5723_s23 + $0x1c8] sm:$0xff]   ;;  %v597_v35 = vsel %vm588_vm4, %v594_v1, %v596_v2  ;;  %v750_v46 = vor.u32 %v749_v21, %v746_v54  ;;  %v1084_v54 = vrot.slane %v1082_v6, 2  ;;  %v6130_v6 = vld [vmem:[%s5723_s23 + $0x1e0] sm:$0xff]  }
  0x59   : > { %4900 = vmatprep.subr.bf16.mxu1 %v5531_v5  ;;  %5107 = vmatmul.mubr.msk.bf16.vlgmr.msra.gmra.mrb[0].mxu0 %vm356_vm2, %v2494_v28  ;;  %v599_v15 = vsel %vm588_vm4, %v596_v2, %v6832_v40  ;;  %v5536_v2 = vld [vmem:[%s5723_s23 + $0x1d0] sm:$0xff]   ;;  %v2502_v62 = vsel %vm1080_vm5, %v2497_v59, %v2501_v34  ;;  %v2697_v21 = vrot.slane %v6081_v41, 3  ;;  %v1090_v59 = vrot.slane %v5762_v18, 3 }
  0x5a   : > { %v6058_v51 = vsel %vm926_vm3, %v930_v9, %v932_v16  ;;  %v5537_v9 = vld [vmem:[%s5723_s23 + $0x78] sm:$0xff]   ;;  %v6072_v1 = vsel %vm926_vm3, %v932_v16, %v6809_v10  ;;  %5110 = vmatprep.mubr.msk.bf16.mxu0 %vm356_vm2, %v2498_v55  ;;  %5119 = vmatpush3.bf16.msra.mxu0 %v5991_v48  ;;  %v2511_v48 = vsel %vm1080_vm5, %v2501_v34, %v6066_v4  ;;  %v1093_v28 = vrot.slane %v5810_v44, 2  ;;  %v6107_v18 = vld [vmem:[%s5735_s29 + $0x14] sm:$0xf] }
  0x5b   : > { %5120 = vmatprep.subr.bf16.mxu0 %v5534_v38  ;;  %v754_v55 = vsel %vm742_vm1, %v750_v46, %v5970_v23  ;;  %v6110_v34 = vld [vmem:[%s5735_s29 + $0x18] sm:$0xf]  ;;  %v6114_v44 = vld [vmem:[%s5735_s29 + $0x1c] sm:$0xf]  ;;  %v6124_v46 = vcombine.low %v5750_v12, %v5753_v13 }
  0x5c   : > { %4901 = vmatpush3.bf16.msra.mxu1 %v5531_v5  ;;  %v6077_v5 = vcombine.low %v2645_v7, %v6047_v32  ;;  %v1085_v7 = vshll.u32 %v6022_v30, 16  ;;  %v1094_v30 = vrot.slane %v5792_v33, 3  ;;  %v6117_v33 = vld [vmem:[%s5735_s29 + $0x20] sm:$0xf] }
  0x5d   : > { %4902 = vmatprep.subr.bf16.mxu1 %v5533_v11 }
  0x5e   : > { %5121 = vmatpush3.bf16.msra.mxu0 %v5534_v38  ;;  %v1087_v16 = vrot.slane %v1085_v7, 3  ;;  %v1095_v23 = vor.u32 %v1094_v30, %v1093_v28  ;;  %v6163_v28 = vld [vmem:[%s5735_s29 + $0x24] sm:$0xf]  ;;  %v1247_v30 = vld [vmem:[%s5735_s29] sm:$0x8]  ;;  %v2850_v3 = vshrl.u32 %v6077_v5, 16 }
  0x5f   : > { %4891 = vmatmul.mubr.msk.bf16.gmra.mrb[4].mxu1 %vm356_vm2, %v597_v35  ;;  %5122 = vmatprep.subr.bf16.mxu0 %v5536_v2  ;;  %v1097_v35 = vrot.slane %v5841_v58, 2  ;;  %v1102_v58 = vrot.slane %v5853_v63, 3  ;;  %v768_v63 = vshrl.u32 %v6006_v17, 16 }
  0x60   : > { %4903 = vmatpush3.bf16.msra.mxu1 %v5533_v11  ;;  %4894 = vmatprep.mubr.msk.bf16.mxu1 %vm356_vm2, %v599_v15  ;;  %v2696_v11 = vrot.slane %v6077_v5, 3  ;;  %v1089_v15 = vrot.slane %v5765_v19, 2  ;;  %v1098_v19 = vrot.slane %v5814_v47, 3  ;;  %v1088_v40 = vor.u32 %v1087_v16, %v1084_v54  ;;  %v5544_v16 = vld [vmem:[%s5723_s23 + $0x88] sm:$0xff]  }
  0x61   : > { %4904 = vmatprep.subr.bf16.mxu1 %v5537_v9  ;;  %5111 = vmatmul.mubr.msk.bf16.gmra.mrb[4].mxu0 %vm356_vm2, %v2502_v62  ;;  %v6833_v62 = vrot.slane %v6006_v17, 1 }
  0x62   : > { %v1091_v38 = vor.u32 %v1090_v59, %v1089_v15  ;;  %5114 = vmatprep.mubr.msk.bf16.mxu0 %vm356_vm2, %v2511_v48  ;;  %5123 = vmatpush3.bf16.msra.mxu0 %v5536_v2  ;;  %v1099_v47 = vor.u32 %v1098_v19, %v1097_v35  ;;  %v771_v48 = vshll.u32 %v6006_v17, 16  ;;  %v6152_v15 = vcombine.low %v6107_v18, %v6110_v34  ;;  %v6166_v17 = vld [vmem:[%s5735_s29 + $0x28] sm:$0xf]  ;;  %v2656_v35 = vld [vmem:[%s5735_s29 + $0x30] sm:$0x1] }
  0x63   : > { %5124 = vmatprep.subr.bf16.mxu0 %v5538_v36  ;;  %v6156_v59 = vcombine.low %v6114_v44, %v6117_v33  ;;  %v2698_v54 = vsel %vm1298_vm6, %v2696_v11, %v2697_v21  ;;  %v6176_v19 = vld [vmem:[%s5735_s29 + $0x4] sm:$0xf] }
  0x64   : > { %4905 = vmatpush3.bf16.msra.mxu1 %v5537_v9  ;;  %v1101_v9 = vrot.slane %v5889_v37, 2  ;;  %v6134_v37 = vsel %vm1080_vm5, %v1088_v40, %v1091_v38  ;;  %v6137_v2 = vsel %vm1080_vm5, %v1091_v38, %v1095_v23  ;;  %v6143_v13 = vsel %vm1080_vm5, %v1095_v23, %v1099_v47  ;;  %v6172_v38 = vld [vmem:[%s5735_s29 + $0x2c] sm:$0xf] }
  0x65   : > { %4918 = vmatprep.subr.bf16.mxu1 %v6087_v49  ;;  %v773_v11 = vrot.slane %v771_v48, 2  ;;  %v4303_v40 = vcombine.low %v1247_v30, %v6176_v19  ;;  %v1302_v23 = vrot.slane %v5918_v31, 3  ;;  %v6199_v48 = vcombine.low %v6172_v38, %v2656_v35 }
  0x66   : > { %v6139_v12 = vor.u32 %v1102_v58, %v1101_v9  ;;  %5125 = vmatpush3.bf16.msra.mxu0 %v5538_v36  ;;  %v770_v36 = vrot.slane %v768_v63, 1  ;;  %v2699_v9 = vrot.slane %v6152_v15, 3  ;;  %v2701_v58 = vrot.slane %v6156_v59, 3 }
  0x67   : > { %4895 = vmatmul.mubr.msk.bf16.gmra.mrb[16].mxu1 %vm356_vm2, %v6833_v62  ;;  %5138 = vmatprep.subr.bf16.mxu0 %v6130_v6  ;;  %v6196_v63 = vcombine.low %v6163_v28, %v6166_v17 }
  0x68   : > { %4906 = vmatprep.mubr.msk.bf16.mxu1 %vm356_vm2, %v754_v55  ;;  %v6148_v7 = vsel %vm1080_vm5, %v1099_v47, %v6139_v12  ;;  %v1300_v55 = vrot.slane %v6124_v46, 3  ;;  %v1299_v47 = vrot.slane %v4303_v40, 3  ;;  %v2700_v10 = vsel %vm1298_vm6, %v2697_v21, %v2699_v9 }
  0x69   : > { %5115 = vmatmul.mubr.msk.bf16.gmra.mrb[16].mxu0 %vm356_vm2, %v6066_v4  ;;  %v1304_v4 = vrot.slane %v5938_v42, 3  ;;  %v2702_v35 = vsel %vm1298_vm6, %v2699_v9, %v2701_v58  ;;  %v1454_v9 = vshrl.u32 %v4303_v40, 16 }
  0x6a   : > { %5126 = vmatprep.mubr.msk.bf16.mxu0 %vm356_vm2, %v2698_v54  ;;  %v6188_v62 = vsel %vm1298_vm6, %v1300_v55, %v1302_v23  ;;  %v6202_v54 = vor.u32 %v773_v11, %v770_v36  ;;  %v6205_v30 = vsel %vm1298_vm6, %v1299_v47, %v1300_v55  ;;  %v2853_v36 = vshll.u32 %v6077_v5, 16 }
  0x6b   : > { %v2858_v55 = vshrl.u32 %v6081_v41, 16  ;;  %v2703_v47 = vrot.slane %v6196_v63, 3  ;;  %v1456_v27 = vrot.slane %v1454_v9, 3 }
  0x6c   : > { %v775_v5 = vsel %vm742_vm1, %v5998_v56, %v6202_v54  ;;  %v6242_v56 = vrot.slane %v2853_v36, 4 }
  0x6d   : > { %v2704_v36 = vsel %vm1298_vm6, %v2701_v58, %v2703_v47  ;;  %v1474_v58 = vshll.u32 %v5918_v31, 16 }
  0x6f   : > { %4907 = vmatmul.mubr.msk.bf16.vlgmr.msra.gmra.mrb[0].mxu1 %vm356_vm2, %v5983_v39  ;;  %v5548_v39 = vld [vmem:[%s5723_s23 + $0x90] sm:$0xff]  }
  0x70   : > { %4919 = vmatpush3.bf16.msra.mxu1 %v6087_v49  ;;  %4910 = vmatprep.mubr.msk.bf16.mxu1 %vm356_vm2, %v5996_v61  ;;  %v6208_v49 = vsel %vm1298_vm6, %v1302_v23, %v1304_v4  ;;  %v1306_v61 = vrot.slane %v5942_v45, 3  ;;  %v1258_v23 = vld [vmem:[%s5735_s29 + $0x2c] sm:$0x1] }
  0x71   : > { %4920 = vmatprep.subr.bf16.mxu1 %v5544_v16  ;;  %v6226_v21 = vcombine.low %v5847_v60, %v1258_v23  ;;  %5127 = vmatmul.mubr.msk.bf16.vlgmr.msra.gmra.mrb[0].mxu0 %vm356_vm2, %v2700_v10  ;;  %v6240_v10 = vrot.slane %v2850_v3, 3  ;;  %v2860_v23 = vrot.slane %v2858_v55, 3  ;;  %v1465_v3 = vshll.u32 %v6124_v46, 16 }
  0x72   : > { %v6220_v11 = vsel %vm1298_vm6, %v1304_v4, %v1306_v61  ;;  %v2861_v4 = vshll.u32 %v6081_v41, 16  ;;  %5130 = vmatprep.mubr.msk.bf16.mxu0 %vm356_vm2, %v2702_v35  ;;  %5139 = vmatpush3.bf16.msra.mxu0 %v6130_v6  ;;  %v6246_v41 = vld [vmem:[%s5723_s23 + $0xa0] sm:$0xff]   ;;  %v1457_v35 = vshll.u32 %v4303_v40, 16  ;;  %v6834_v55 = vrot.slane %v6199_v48, 3 }
  0x73   : > { %v6818_v60 = vrot.slane %v6226_v21, 3  ;;  %5140 = vmatprep.subr.bf16.mxu0 %v5549_v8  ;;  %v1471_v40 = vshrl.u32 %v5918_v31, 16  ;;  %v2879_v31 = vshll.u32 %v6156_v59, 16 }
  0x74   : > { %4921 = vmatpush3.bf16.msra.mxu1 %v5544_v16  ;;  %v5551_v16 = vld [vmem:[%s5723_s23 + $0x1f0] sm:$0xff]   ;;  %v1459_v26 = vrot.slane %v1457_v35, 4  ;;  %v2856_v35 = vor.u32 %v6242_v56, %v6240_v10 }
  0x75   : > { %4922 = vmatprep.subr.bf16.mxu1 %v5548_v39  ;;  %v6251_v6 = vsel %vm1298_vm6, %v1306_v61, %v6818_v60  ;;  %v1467_v61 = vrot.slane %v1465_v3, 4  ;;  %v2867_v60 = vshrl.u32 %v6152_v15, 16  ;;  %v1473_v9 = vrot.slane %v1471_v40, 3 }
  0x76   : > { %5141 = vmatpush3.bf16.msra.mxu0 %v5549_v8  ;;  %v1483_v8 = vshll.u32 %v5938_v42, 16  ;;  %v1482_v3 = vrot.slane %v1480_v57, 3  ;;  %v5557_v42 = vld [vmem:[%s5723_s23 + $0x200] sm:$0xff]   ;;  %v1492_v57 = vshll.u32 %v5942_v45, 16 }
  0x77   : > { %4911 = vmatmul.mubr.msk.bf16.gmra.mrb[4].mxu1 %vm356_vm2, %v6010_v24  ;;  %v1462_v24 = vshrl.u32 %v6124_v46, 16  ;;  %5142 = vmatprep.subr.bf16.mxu0 %v5551_v16  ;;  %v2870_v46 = vshll.u32 %v6152_v15, 16  ;;  %v1476_v15 = vrot.slane %v1474_v58, 4  ;;  %v2881_v58 = vrot.slane %v2879_v31, 4  ;;  %v5558_v31 = vld [vmem:[%s5723_s23 + $0xb0] sm:$0xff]  }
  0x78   : > { %4923 = vmatpush3.bf16.msra.mxu1 %v5548_v39  ;;  %4914 = vmatprep.mubr.msk.bf16.mxu1 %vm356_vm2, %v775_v5  ;;  %v2706_v39 = vsel %vm1298_vm6, %v2703_v47, %v6834_v55  ;;  %v2863_v5 = vrot.slane %v2861_v4, 4  ;;  %v1460_v47 = vor.u32 %v1459_v26, %v1456_v27  ;;  %v2876_v26 = vshrl.u32 %v6156_v59, 16 }
  0x79   : > { %4924 = vmatprep.subr.bf16.mxu1 %v5552_v53  ;;  %v1464_v0 = vrot.slane %v1462_v24, 3  ;;  %5131 = vmatmul.mubr.msk.bf16.gmra.mrb[4].mxu0 %vm356_vm2, %v2704_v36  ;;  %v1477_v10 = vor.u32 %v1476_v15, %v1473_v9  ;;  %v1501_v36 = vshll.u32 %v6226_v21, 16  ;;  %v2869_v55 = vrot.slane %v2867_v60, 3  ;;  %v6293_v9 = vld [vmem:[%s5735_s29 + $0x28] ss:$0 sps:$4 sm:$0xff]  }
  0x7a   : > { %v2864_v24 = vor.u32 %v2863_v5, %v2860_v23  ;;  %5134 = vmatprep.mubr.msk.bf16.mxu0 %vm356_vm2, %v2706_v39  ;;  %5143 = vmatpush3.bf16.msra.mxu0 %v5551_v16  ;;  %v1498_v16 = vshrl.u32 %v6226_v21, 16  ;;  %v1494_v59 = vrot.slane %v1492_v57, 4  ;;  %v2872_v5 = vrot.slane %v2870_v46, 4 }
  0x7b   : > { %v1468_v4 = vor.u32 %v1467_v61, %v1464_v0  ;;  %v1489_v0 = vshrl.u32 %v5942_v45, 16  ;;  %5144 = vmatprep.subr.bf16.mxu0 %v5553_v52  ;;  %v1503_v61 = vrot.slane %v1501_v36, 4  ;;  %v2878_v40 = vrot.slane %v2876_v26, 3 }
  0x7c   : > { %4925 = vmatpush3.bf16.msra.mxu1 %v5552_v53  ;;  %v1485_v53 = vrot.slane %v1483_v8, 4  ;;  %v1500_v39 = vrot.slane %v1498_v16, 3  ;;  %v2873_v8 = vor.u32 %v2872_v5, %v2869_v55  ;;  %v2888_v15 = vshll.u32 %v6196_v63, 16  ;;  %v5563_v5 = vld [vmem:[%s5723_s23 + $0x218] sm:$0xff]  }
  0x7d   : > { %4938 = vmatprep.subr.bf16.mxu1 %v6246_v41  ;;  %v6273_v27 = vsel %vm1452_vm7, %v1460_v47, %v1468_v4  ;;  %v1491_v23 = vrot.slane %v1489_v0, 3  ;;  %v2882_v26 = vor.u32 %v2881_v58, %v2878_v40  ;;  %v2897_v0 = vshll.u32 %v6199_v48, 16 }
  0x7e   : > { %v1486_v56 = vor.u32 %v1485_v53, %v1482_v3  ;;  %5145 = vmatpush3.bf16.msra.mxu0 %v5553_v52  ;;  %v6295_v60 = vor.u32 %v1503_v61, %v1500_v39  ;;  %v5556_v52 = vld [vmem:[%s5723_s23 + $0xa8] sm:$0xff]   ;;  %v2894_v53 = vshrl.u32 %v6199_v48, 16  ;;  %v2890_v16 = vrot.slane %v2888_v15, 4 }
  0x7f   : > { %4915 = vmatmul.mubr.msk.bf16.gmra.mrb[20].mxu1 %vm356_vm2, %v6202_v54  ;;  %v6286_v54 = vsel %vm1452_vm7, %v1468_v4, %v1477_v10  ;;  %5158 = vmatprep.subr.bf16.mxu0 %v5557_v42  ;;  %v1495_v47 = vor.u32 %v1494_v59, %v1491_v23  ;;  %v6835_v4 = vrot.slane %v6199_v48, 3  ;;  %v2899_v36 = vrot.slane %v2897_v0, 4  ;;  %v5562_v48 = vld [vmem:[%s5723_s23 + $0xb8] sm:$0xff]  }
  0x80   : > { %4926 = vmatprep.mubr.msk.bf16.mxu1 %vm356_vm2, %v6039_v25  ;;  %v6289_v45 = vsel %vm1452_vm7, %v1477_v10, %v1486_v56  ;;  %v2865_v25 = vsel %vm1452_vm7, %v2856_v35, %v2864_v24  ;;  %v2885_v35 = vshrl.u32 %v6196_v63, 16  ;;  %v936_v63 = vrot.slane %v6293_v9, 2 }
  0x81   : > { %5135 = vmatmul.mubr.msk.bf16.gmra.mrb[20].mxu0 %vm356_vm2, %v6835_v4  ;;  %v6302_v46 = vsel %vm1452_vm7, %v1486_v56, %v1495_v47  ;;  %v6309_v3 = vsel %vm1452_vm7, %v1495_v47, %v6295_v60  ;;  %v2874_v10 = vsel %vm1452_vm7, %v2864_v24, %v2873_v8  ;;  %v5559_v56 = vld [vmem:[%s5723_s23 + $0x208] sm:$0xff]   ;;  %v2896_v23 = vrot.slane %v2894_v53, 3 }
  0x82   : > { %5146 = vmatprep.mubr.msk.bf16.mxu0 %vm356_vm2, %v2865_v25  ;;  %v2887_v57 = vrot.slane %v2885_v35, 3  ;;  %v6335_v59 = vcombine.low %v6110_v34, %v6114_v44  ;;  %v5565_v34 = vld [vmem:[%s5723_s23 + $0xc0] sm:$0xff]   ;;  %v1106_v4 = vshrl.u32 %v6293_v9, 16  ;;  %v4505_v53 = vcombine.low %v6047_v32, %v6050_v29 }
  0x84   : > { %v2891_v55 = vor.u32 %v2890_v16, %v2887_v57  ;;  %v6388_v35 = vshll.u32 %v6335_v59, 16  ;;  %v5566_v57 = vld [vmem:[%s5723_s23 + $0xc8] sm:$0xff]  }
  0x87   : > { %4927 = vmatmul.mubr.msk.bf16.vlgmr.msra.gmra.mrb[0].mxu1 %vm356_vm2, %v6042_v22  ;;  %v2883_v22 = vsel %vm1452_vm7, %v2873_v8, %v2882_v26  ;;  %v1109_v8 = vshll.u32 %v6293_v9, 16  ;;  %v3888_v9 = vrot.slane %v6388_v35, 3 }
  0x88   : > { %4939 = vmatpush3.bf16.msra.mxu1 %v6246_v41  ;;  %4930 = vmatprep.mubr.msk.bf16.mxu1 %vm356_vm2, %v6058_v51  ;;  %v6326_v41 = vcombine.low %v6055_v14, %v6107_v18  ;;  %v6836_v51 = vrot.slane %v5823_v50, 2  ;;  %v2900_v14 = vor.u32 %v2899_v36, %v2896_v23  ;;  %v5561_v18 = vld [vmem:[%s5723_s23 + $0x210] sm:$0xff]   ;;  %v6342_v50 = vcombine.low %v6117_v33, %v6163_v28 }
  0x89   : > { %4940 = vmatprep.subr.bf16.mxu1 %v5556_v52  ;;  %5147 = vmatmul.mubr.msk.bf16.vlgmr.msra.gmra.mrb[0].mxu0 %vm356_vm2, %v2874_v10  ;;  %v6353_v33 = vcombine.low %v6166_v17, %v6172_v38  ;;  %v5569_v17 = vld [vmem:[%s5723_s23 + $0x220] sm:$0xff]   ;;  %v1111_v16 = vrot.slane %v1109_v8, 3  ;;  %v3195_v8 = vshrl.u32 %v4505_v53, 16 }
  0x8a   : > { %v937_v24 = vsel %vm926_vm3, %v6836_v51, %v936_v63  ;;  %5150 = vmatprep.mubr.msk.bf16.mxu0 %vm356_vm2, %v2883_v22  ;;  %5159 = vmatpush3.bf16.msra.mxu0 %v5557_v42  ;;  %v3723_v39 = vrot.slane %v6326_v41, 2  ;;  %v3725_v42 = vrot.slane %v6335_v59, 2  ;;  %v3727_v44 = vrot.slane %v6342_v50, 2 }
  0x8b   : > { %5160 = vmatprep.subr.bf16.mxu0 %v5559_v56  ;;  %v2901_v61 = vsel %vm1452_vm7, %v2891_v55, %v2900_v14  ;;  %v3729_v40 = vrot.slane %v6353_v33, 2  ;;  %v6375_v58 = vshll.u32 %v6326_v41, 16  ;;  %v6378_v47 = vshrl.u32 %v6326_v41, 16 }
  0x8c   : > { %4941 = vmatpush3.bf16.msra.mxu1 %v5556_v52  ;;  %v6358_v28 = vsel %vm926_vm3, %v3723_v39, %v3725_v42  ;;  %v6362_v25 = vsel %vm926_vm3, %v3725_v42, %v3727_v44  ;;  %v6384_v52 = vshrl.u32 %v6335_v59, 16  ;;  %v6396_v0 = vshrl.u32 %v6342_v50, 16 }
  0x8d   : > { %4942 = vmatprep.subr.bf16.mxu1 %v5558_v31  ;;  %v6371_v38 = vsel %vm926_vm3, %v3727_v44, %v3729_v40  ;;  %v3883_v15 = vrot.slane %v6378_v47, 2  ;;  %v6402_v10 = vshll.u32 %v6342_v50, 16  ;;  %v6407_v32 = vshrl.u32 %v6353_v33, 16  ;;  %v5571_v44 = vld [vmem:[%s5723_s23 + $0x228] sm:$0xff]  }
  0x8e   : > { %5161 = vmatpush3.bf16.msra.mxu0 %v5559_v56  ;;  %v3891_v56 = vrot.slane %v6396_v0, 2  ;;  %v6412_v23 = vshll.u32 %v6353_v33, 16 }
  0x8f   : > { %4931 = vmatmul.mubr.msk.bf16.gmra.mrb[4].mxu1 %vm356_vm2, %v6072_v1  ;;  %v2892_v1 = vsel %vm1452_vm7, %v2882_v26, %v2891_v55  ;;  %5162 = vmatprep.subr.bf16.mxu0 %v5561_v18  ;;  %v3884_v26 = vrot.slane %v6375_v58, 3  ;;  %v3892_v36 = vrot.slane %v6402_v10, 3  ;;  %v3895_v51 = vrot.slane %v6407_v32, 2 }
  0x90   : > { %4943 = vmatpush3.bf16.msra.mxu1 %v5558_v31  ;;  %4934 = vmatprep.mubr.msk.bf16.mxu1 %vm356_vm2, %v937_v24  ;;  %v3896_v55 = vrot.slane %v6412_v23, 3 }
  0x91   : > { %4944 = vmatprep.subr.bf16.mxu1 %v5562_v48  ;;  %5151 = vmatmul.mubr.msk.bf16.gmra.mrb[4].mxu0 %vm356_vm2, %v2892_v1  ;;  %v6398_v31 = vor.u32 %v3884_v26, %v3883_v15  ;;  %v3893_v24 = vor.u32 %v3892_v36, %v3891_v56  ;;  %v5575_v1 = vld [vmem:[%s5723_s23 + $0xd8] sm:$0xff]   ;;  %v5584_v26 = vld [vmem:[%s5723_s23 + $0x240] sm:$0xff]  }
  0x92   : > { %5154 = vmatprep.mubr.msk.bf16.mxu0 %vm356_vm2, %v2901_v61  ;;  %5163 = vmatpush3.bf16.msra.mxu0 %v5561_v18  ;;  %v6429_v42 = vor.u32 %v3896_v55, %v3895_v51  ;;  %v3197_v61 = vshll.u32 %v4505_v53, 16  ;;  %v5586_v51 = vld [vmem:[%s5723_s23 + $0x248] sm:$0xff]   ;;  %v5589_v55 = vld [vmem:[%s5723_s23 + $0xf8] sm:$0xff]  }
  0x93   : > { %5164 = vmatprep.subr.bf16.mxu0 %v5563_v5 }
  0x94   : > { %4945 = vmatpush3.bf16.msra.mxu1 %v5562_v48  ;;  %v3199_v15 = vrot.slane %v3197_v61, 1 }
  0x95   : > { %4958 = vmatprep.subr.bf16.mxu1 %v5565_v34 }
  0x96   : > { %5165 = vmatpush3.bf16.msra.mxu0 %v5563_v5  ;;  %v5574_v5 = vld [vmem:[%s5723_s23 + $0x230] sm:$0xff]  }
  0x97   : > { %4935 = vmatmul.mubr.msk.bf16.gmra.mrb[24].mxu1 %vm356_vm2, %v936_v63  ;;  %5178 = vmatprep.subr.bf16.mxu0 %v5569_v17  ;;  %v1108_v63 = vrot.slane %v1106_v4, 2  ;;  %v5580_v4 = vld [vmem:[%s5723_s23 + $0xe0] sm:$0xff]  }
  0x98   : > { %4946 = vmatprep.mubr.msk.bf16.mxu1 %vm356_vm2, %v6134_v37  ;;  %v3887_v37 = vrot.slane %v6384_v52, 2 }
  0x99   : > { %5155 = vmatmul.mubr.msk.bf16.gmra.mrb[24].mxu0 %vm356_vm2, %v2900_v14  ;;  %v5570_v14 = vld [vmem:[%s5723_s23 + $0xd0] sm:$0xff]   ;;  %v1112_v18 = vor.u32 %v1111_v16, %v1108_v63  ;;  %v5581_v63 = vld [vmem:[%s5723_s23 + $0xe8] sm:$0xff]   ;;  %v3217_v16 = vrot.slane %v6402_v10, 1 }
  0x9a   : > { %v3889_v22 = vor.u32 %v3888_v9, %v3887_v37  ;;  %5166 = vmatprep.mubr.msk.bf16.mxu0 %vm356_vm2, %v4505_v53  ;;  %v5573_v53 = vld [vmem:[%s5735_s29 + $0x30] ss:$0 sps:$4 sm:$0x33]   ;;  %v3210_v9 = vrot.slane %v6388_v35, 1 }
  0x9c   : > { %v6419_v48 = vsel %vm1080_vm5, %v6398_v31, %v3889_v22 }
  0x9f   : > { %4947 = vmatmul.mubr.msk.bf16.vlgmr.msra.gmra.mrb[0].mxu1 %vm356_vm2, %v6137_v2  ;;  %v6427_v2 = vsel %vm1080_vm5, %v3889_v22, %v3893_v24  ;;  %v5585_v22 = vld [vmem:[%s5723_s23 + $0xf0] sm:$0xff]  }
  0xa0   : > { %4959 = vmatpush3.bf16.msra.mxu1 %v5565_v34  ;;  %4950 = vmatprep.mubr.msk.bf16.mxu1 %vm356_vm2, %v6143_v13  ;;  %v6434_v34 = vsel %vm1080_vm5, %v3893_v24, %v6429_v42  ;;  %v1113_v13 = vsel %vm1080_vm5, %v6139_v12, %v1112_v18  ;;  %v5576_v12 = vld [vmem:[%s5723_s23 + $0x238] sm:$0xff]   ;;  %v3229_v24 = vshll.u32 %v5573_v53, 16 }
  0xa1   : > { %4960 = vmatprep.subr.bf16.mxu1 %v5566_v57  ;;  %5167 = vmatmul.mubr.msk.bf16.vlgmr.msra.gmra.mrb[0].mxu0 %vm356_vm2, %v6326_v41 }
  0xa2   : > { %5170 = vmatprep.mubr.msk.bf16.mxu0 %vm356_vm2, %v6335_v59  ;;  %5179 = vmatpush3.bf16.msra.mxu0 %v5569_v17  ;;  %v3203_v17 = vrot.slane %v6375_v58, 1 }
  0xa3   : > { %5180 = vmatprep.subr.bf16.mxu0 %v5571_v44 }
  0xa4   : > { %4961 = vmatpush3.bf16.msra.mxu1 %v5566_v57  ;;  %v3207_v57 = vor.u32 %v6378_v47, %v3203_v17 }
  0xa5   : > { %4962 = vmatprep.subr.bf16.mxu1 %v5570_v14 }
  0xa6   : > { %5181 = vmatpush3.bf16.msra.mxu0 %v5571_v44  ;;  %v3211_v56 = vsel %vm284_vm0, %v3207_v57, %v3210_v9  ;;  %v5588_v44 = vld [vmem:[%s5723_s23 + $0x250] sm:$0xff]  }
  0xa7   : > { %4951 = vmatmul.mubr.msk.bf16.gmra.mrb[4].mxu1 %vm356_vm2, %v6148_v7  ;;  %5182 = vmatprep.subr.bf16.mxu0 %v5574_v5  ;;  %v3200_v7 = vor.u32 %v3199_v15, %v3195_v8  ;;  %v3387_v15 = vrot.slane %v6326_v41, 1  ;;  %v6516_v57 = vld [vmem:[%s5735_s29 + $0x30] ss:$0 sps:$4 sm:$0x77]  }
  0xa8   : > { %4963 = vmatpush3.bf16.msra.mxu1 %v5570_v14  ;;  %4954 = vmatprep.mubr.msk.bf16.mxu1 %vm356_vm2, %v1113_v13  ;;  %v3369_v13 = vld [vmem:[%s5735_s29 + $0x8] sm:$0xe] }
  0xa9   : > { %4964 = vmatprep.subr.bf16.mxu1 %v5575_v1  ;;  %5171 = vmatmul.mubr.msk.bf16.gmra.mrb[4].mxu0 %vm356_vm2, %v6342_v50  ;;  %v3204_v37 = vsel %vm284_vm0, %v3200_v7, %v3203_v17  ;;  %v5594_v7 = vld [vmem:[%s5723_s23 + $0x260] sm:$0xff]  }
  0xaa   : > { %5174 = vmatprep.mubr.msk.bf16.mxu0 %vm356_vm2, %v6353_v33  ;;  %5183 = vmatpush3.bf16.msra.mxu0 %v5574_v5 }
  0xab   : > { %5184 = vmatprep.subr.bf16.mxu0 %v5576_v12 }
  0xac   : > { %4965 = vmatpush3.bf16.msra.mxu1 %v5575_v1  ;;  %v5592_v1 = vld [vmem:[%s5723_s23 + $0x100] sm:$0xff]  }
  0xad   : > { %4978 = vmatprep.subr.bf16.mxu1 %v5580_v4 }
  0xae   : > { %5185 = vmatpush3.bf16.msra.mxu0 %v5576_v12  ;;  %v3233_v12 = vshrl.u32 %v5573_v53, 16 }
  0xaf   : > { %4955 = vmatmul.mubr.msk.bf16.gmra.mrb[28].mxu1 %vm356_vm2, %v1112_v18  ;;  %5198 = vmatprep.subr.bf16.mxu0 %v5584_v26  ;;  %v3231_v18 = vrot.slane %v3229_v24, 1 }
  0xb0   : > { %4966 = vmatprep.mubr.msk.bf16.mxu1 %vm356_vm2, %v6205_v30  ;;  %v3214_v30 = vor.u32 %v6384_v52, %v3210_v9 }
  0xb1   : > { %5175 = vmatmul.mubr.msk.bf16.gmra.mrb[28].mxu0 %vm356_vm2, %v5573_v53  ;;  %v5595_v53 = vld [vmem:[%s5723_s23 + $0x110] sm:$0xff]  }
  0xb2   : > { %5186 = vmatprep.mubr.msk.bf16.mxu0 %vm356_vm2, %v3204_v37  ;;  %v3218_v36 = vsel %vm284_vm0, %v3214_v30, %v3217_v16  ;;  %v5598_v30 = vld [vmem:[%s5723_s23 + $0x270] sm:$0xff]  }
  0xb7   : > { %4967 = vmatmul.mubr.msk.bf16.vlgmr.msra.gmra.mrb[0].mxu1 %vm356_vm2, %v6188_v62  ;;  %v3224_v62 = vrot.slane %v6412_v23, 1 }
  0xb8   : > { %4979 = vmatpush3.bf16.msra.mxu1 %v5580_v4  ;;  %4970 = vmatprep.mubr.msk.bf16.mxu1 %vm356_vm2, %v6208_v49  ;;  %v3221_v49 = vor.u32 %v6396_v0, %v3217_v16  ;;  %v4547_v4 = vcombine.low %v3369_v13, %v6050_v29  ;;  %v3235_v29 = vor.u32 %v3233_v12, %v3231_v18  ;;  %v3555_v13 = vrot.slane %v6396_v0, 1  ;;  %v5605_v0 = vld [vmem:[%s5723_s23 + $0x130] sm:$0xff]  }
  0xb9   : > { %4980 = vmatprep.subr.bf16.mxu1 %v5581_v63  ;;  %5187 = vmatmul.mubr.msk.bf16.vlgmr.msra.gmra.mrb[0].mxu0 %vm356_vm2, %v3211_v56  ;;  %v3228_v14 = vor.u32 %v6407_v32, %v3224_v62  ;;  %v3560_v12 = vrot.slane %v6412_v23, 2  ;;  %v6838_v23 = vld [vmem:[#allocation7_spill] sm:$0xff] }
  0xba   : > { %5190 = vmatprep.mubr.msk.bf16.mxu0 %vm356_vm2, %v3218_v36  ;;  %5199 = vmatpush3.bf16.msra.mxu0 %v5584_v26  ;;  %v3225_v5 = vsel %vm284_vm0, %v3221_v49, %v3224_v62  ;;  %v3386_v8 = vrot.slane %v4547_v4, 1  ;;  %v3389_v26 = vrot.slane %v6335_v59, 1  ;;  %v3540_v59 = vshrl.u32 %v4547_v4, 16  ;;  %v5621_v49 = vld [vmem:[%s5735_s29 + $0x8] sm:$0xf] }
  0xbb   : > { %5200 = vmatprep.subr.bf16.mxu0 %v5586_v51  ;;  %v3232_v61 = vsel %vm284_vm0, %v3228_v14, %v3231_v18  ;;  %v3543_v16 = vshll.u32 %v4547_v4, 16  ;;  %v3547_v62 = vrot.slane %v6378_v47, 1  ;;  %v5604_v47 = vld [vmem:[%s5723_s23 + $0x280] sm:$0xff]   ;;  %v3559_v4 = vrot.slane %v6407_v32, 1 }
  0xbc   : > { %4981 = vmatpush3.bf16.msra.mxu1 %v5581_v63  ;;  %v3388_v17 = vsel %vm588_vm4, %v3386_v8, %v3387_v15  ;;  %v3390_v37 = vsel %vm588_vm4, %v3387_v15, %v3389_v26  ;;  %v5596_v63 = vld [vmem:[%s5723_s23 + $0x268] sm:$0xff]   ;;  %v3542_v36 = vrot.slane %v3540_v59, 1 }
  0xbd   : > { %4982 = vmatprep.subr.bf16.mxu1 %v5585_v22  ;;  %v3545_v24 = vrot.slane %v3543_v16, 2  ;;  %v5606_v8 = vld [vmem:[%s5723_s23 + $0x288] sm:$0xff]   ;;  %v3561_v32 = vor.u32 %v3560_v12, %v3559_v4  ;;  %v5619_v12 = vld [vmem:[%s5723_s23 + $0x158] sm:$0xff]  }
  0xbe   : > { %5201 = vmatpush3.bf16.msra.mxu0 %v5586_v51  ;;  %v5622_v16 = vld [vmem:[%s5735_s29 + $0xc] sm:$0xf] }
  0xbf   : > { %4971 = vmatmul.mubr.msk.bf16.gmra.mrb[4].mxu1 %vm356_vm2, %v6220_v11  ;;  %5202 = vmatprep.subr.bf16.mxu0 %v5588_v44  ;;  %v5590_v11 = vld [vmem:[%s5723_s23 + $0x258] sm:$0xff]   ;;  %v3546_v14 = vor.u32 %v3545_v24, %v3542_v36  ;;  %v5614_v24 = vld [vmem:[%s5723_s23 + $0x2a0] sm:$0xff]  }
  0xc0   : > { %4983 = vmatpush3.bf16.msra.mxu1 %v5585_v22  ;;  %4974 = vmatprep.mubr.msk.bf16.mxu1 %vm356_vm2, %v6251_v6  ;;  %v6837_v6 = vrot.slane %v6226_v21, 3  ;;  %v5593_v21 = vld [vmem:[%s5723_s23 + $0x108] sm:$0xff]   ;;  %v5602_v22 = vld [vmem:[%s5723_s23 + $0x120] sm:$0xff]  }
  0xc1   : > { %4984 = vmatprep.subr.bf16.mxu1 %v5589_v55  ;;  %5191 = vmatmul.mubr.msk.bf16.gmra.mrb[4].mxu0 %vm356_vm2, %v3225_v5 }
  0xc2   : > { %5194 = vmatprep.mubr.msk.bf16.mxu0 %vm356_vm2, %v3232_v61  ;;  %5203 = vmatpush3.bf16.msra.mxu0 %v5588_v44  ;;  %v3567_v61 = vshll.u32 %v6516_v57, 16 }
  0xc3   : > { %5204 = vmatprep.subr.bf16.mxu0 %v5590_v11 }
  0xc4   : > { %4985 = vmatpush3.bf16.msra.mxu1 %v5589_v55  ;;  %v3548_v55 = vrot.slane %v6375_v58, 2  ;;  %v3551_v58 = vrot.slane %v6384_v52, 1 }
  0xc5   : > { %4998 = vmatprep.subr.bf16.mxu1 %v5592_v1 }
  0xc6   : > { %5205 = vmatpush3.bf16.msra.mxu0 %v5590_v11  ;;  %v3549_v18 = vor.u32 %v3548_v55, %v3547_v62  ;;  %v6842_v62 = vld [vmem:[#allocation4_spill] sm:$0xff] }
  0xc7   : > { %4975 = vmatmul.mubr.msk.bf16.gmra.mrb[32].mxu1 %vm356_vm2, %v6837_v6  ;;  %5218 = vmatprep.subr.bf16.mxu0 %v5594_v7 }
  0xc8   : > { %4986 = vmatprep.mubr.msk.bf16.mxu1 %vm356_vm2, %v6273_v27  ;;  %v3391_v27 = vrot.slane %v6342_v50, 1  ;;  %v3395_v50 = vrot.slane %v6516_v57, 1  ;;  %v3550_v44 = vsel %vm742_vm1, %v3546_v14, %v3549_v18  ;;  %v6844_v14 = vld [vmem:[#allocation9_spill] sm:$0xff] }
  0xc9   : > { %5195 = vmatmul.mubr.msk.bf16.gmra.mrb[32].mxu0 %vm356_vm2, %v3235_v29  ;;  %v5609_v29 = vld [vmem:[%s5723_s23 + $0x138] sm:$0xff]  }
  0xca   : > { %5206 = vmatprep.mubr.msk.bf16.mxu0 %vm356_vm2, %v3388_v17  ;;  %v3392_v9 = vsel %vm588_vm4, %v3389_v26, %v3391_v27 }
  0xcf   : > { %4987 = vmatmul.mubr.msk.bf16.vlgmr.msra.gmra.mrb[0].mxu1 %vm356_vm2, %v6286_v54  ;;  %v5599_v54 = vld [vmem:[%s5723_s23 + $0x118] sm:$0xff]  }
  0xd0   : > { %4999 = vmatpush3.bf16.msra.mxu1 %v5592_v1  ;;  %4990 = vmatprep.mubr.msk.bf16.mxu1 %vm356_vm2, %v6289_v45  ;;  %v3393_v45 = vrot.slane %v6353_v33, 1  ;;  %v3556_v1 = vrot.slane %v6402_v10, 2 }
  0xd1   : > { %5000 = vmatprep.subr.bf16.mxu1 %v5593_v21  ;;  %5207 = vmatmul.mubr.msk.bf16.vlgmr.msra.gmra.mrb[0].mxu0 %vm356_vm2, %v3390_v37  ;;  %v3705_v37 = vld [vmem:[%s5735_s29 + $0x8] sm:$0xc] }
  0xd2   : > { %5210 = vmatprep.mubr.msk.bf16.mxu0 %vm356_vm2, %v3392_v9  ;;  %5219 = vmatpush3.bf16.msra.mxu0 %v5594_v7  ;;  %v3394_v56 = vsel %vm588_vm4, %v3391_v27, %v3393_v45  ;;  %v3396_v51 = vsel %vm588_vm4, %v3393_v45, %v3395_v50  ;;  %v3557_v52 = vor.u32 %v3556_v1, %v3555_v13  ;;  %v3569_v7 = vrot.slane %v3567_v61, 2  ;;  %v5608_v27 = vld [vmem:[%s5723_s23 + $0x290] sm:$0xff]   ;;  %v6845_v1 = vld [vmem:[#allocation11_spill] sm:$0xff] }
  0xd3   : > { %5220 = vmatprep.subr.bf16.mxu0 %v5596_v63  ;;  %v1828_v41 = vrot.slane %v6845_v1, 1 }
  0xd4   : > { %5001 = vmatpush3.bf16.msra.mxu1 %v5593_v21  ;;  %v3562_v45 = vsel %vm742_vm1, %v3557_v52, %v3561_v32 }
  0xd5   : > { %5002 = vmatprep.subr.bf16.mxu1 %v5595_v53 }
  0xd6   : > { %5221 = vmatpush3.bf16.msra.mxu0 %v5596_v63  ;;  %v6840_v63 = vld [vmem:[#allocation3_spill] sm:$0xff] }
  0xd7   : > { %4991 = vmatmul.mubr.msk.bf16.gmra.mrb[4].mxu1 %vm356_vm2, %v6302_v46  ;;  %5222 = vmatprep.subr.bf16.mxu0 %v5598_v30  ;;  %v5600_v46 = vld [vmem:[%s5723_s23 + $0x278] sm:$0xff]  }
  0xd8   : > { %5003 = vmatpush3.bf16.msra.mxu1 %v5595_v53  ;;  %4994 = vmatprep.mubr.msk.bf16.mxu1 %vm356_vm2, %v6309_v3  ;;  %v4345_v3 = vcombine.low %v6176_v19, %v5621_v49  ;;  %v3552_v19 = vrot.slane %v6388_v35, 2  ;;  %v3564_v35 = vshrl.u32 %v6516_v57, 16  ;;  %v6839_v53 = vld [vmem:[#allocation8_spill] sm:$0xff]  ;;  %v1807_v57 = vrot.slane %v6840_v63, 1  ;;  %v6843_v49 = vld [vmem:[#allocation6_spill] sm:$0xff] }
  0xd9   : > { %5004 = vmatprep.subr.bf16.mxu1 %v5599_v54  ;;  %5211 = vmatmul.mubr.msk.bf16.gmra.mrb[4].mxu0 %vm356_vm2, %v3394_v56 }
  0xda   : > { %5214 = vmatprep.mubr.msk.bf16.mxu0 %vm356_vm2, %v3396_v51  ;;  %5223 = vmatpush3.bf16.msra.mxu0 %v5598_v30  ;;  %v3553_v5 = vor.u32 %v3552_v19, %v3551_v58  ;;  %v1801_v10 = vshll.u32 %v4345_v3, 16  ;;  %v3566_v15 = vrot.slane %v3564_v35, 1  ;;  %v1799_v17 = vshrl.u32 %v4345_v3, 16  ;;  %v5610_v30 = vld [vmem:[%s5723_s23 + $0x298] sm:$0xff]   ;;  %v5613_v19 = vld [vmem:[%s5723_s23 + $0x148] sm:$0xff]  }
  0xdb   : > { %5224 = vmatprep.subr.bf16.mxu0 %v5600_v46  ;;  %v6841_v51 = vld [vmem:[#allocation5_spill] sm:$0xff]  ;;  %v1811_v55 = vor.u32 %v6842_v62, %v1807_v57 }
  0xdc   : > { %5005 = vmatpush3.bf16.msra.mxu1 %v5599_v54  ;;  %v3554_v11 = vsel %vm742_vm1, %v3549_v18, %v3553_v5  ;;  %v3558_v6 = vsel %vm742_vm1, %v3553_v5, %v3557_v52  ;;  %v1803_v21 = vrot.slane %v1801_v10, 1  ;;  %v3570_v26 = vor.u32 %v3569_v7, %v3566_v15  ;;  %v5612_v54 = vld [vmem:[%s5723_s23 + $0x140] sm:$0xff]   ;;  %v5615_v5 = vld [vmem:[%s5723_s23 + $0x150] sm:$0xff]  }
  0xdd   : > { %5018 = vmatprep.subr.bf16.mxu1 %v5602_v22  ;;  %v1821_v18 = vrot.slane %v6844_v14, 1  ;;  %v6847_v52 = vld [vmem:[#allocation12_spill] sm:$0xff] }
  0xde   : > { %5225 = vmatpush3.bf16.msra.mxu0 %v5600_v46  ;;  %v1804_v9 = vor.u32 %v1803_v21, %v1799_v17  ;;  %v3571_v59 = vsel %vm742_vm1, %v3561_v32, %v3570_v26  ;;  %v1814_v46 = vrot.slane %v6841_v51, 1  ;;  %v1832_v35 = vor.u32 %v6847_v52, %v1828_v41  ;;  %v5617_v10 = vld [vmem:[%s5735_s29 + $0x30] ss:$0 sps:$4 sm:$0xff]   ;;  %v5623_v51 = vld [vmem:[%s5735_s29 + $0x2c] ss:$0 sps:$4 sm:$0x77]  }
  0xdf   : > { %4995 = vmatmul.mubr.msk.bf16.gmra.mrb[36].mxu1 %vm356_vm2, %v6295_v60  ;;  %5238 = vmatprep.subr.bf16.mxu0 %v5604_v47  ;;  %v5603_v60 = vld [vmem:[%s5723_s23 + $0x128] sm:$0xff]   ;;  %v5618_v15 = vld [vmem:[%s5723_s23 + $0x2b0] sm:$0xff]  }
  0xe0   : > { %5006 = vmatprep.mubr.msk.bf16.mxu1 %vm356_vm2, %v4345_v3  ;;  %v1808_v56 = vsel %vm284_vm0, %v1804_v9, %v1807_v57  ;;  %v1818_v3 = vor.u32 %v6843_v49, %v1814_v46  ;;  %v1815_v58 = vsel %vm284_vm0, %v1811_v55, %v1814_v46 }
  0xe1   : > { %5215 = vmatmul.mubr.msk.bf16.gmra.mrb[36].mxu0 %vm356_vm2, %v3395_v50  ;;  %v6576_v50 = vld [vmem:[%s5735_s29 + $0x2c] ss:$0 sps:$4 sm:$0x33]  }
  0xe2   : > { %5226 = vmatprep.mubr.msk.bf16.mxu0 %vm356_vm2, %v3550_v44  ;;  %v1822_v44 = vsel %vm284_vm0, %v1818_v3, %v1821_v18  ;;  %v1833_v13 = vshll.u32 %v6576_v50, 16 }
  0xe4   : > { %v1835_v61 = vrot.slane %v1833_v13, 1 }
  0xe6   : > { %v1836_v4 = vsel %vm284_vm0, %v1832_v35, %v1835_v61 }
  0xe7   : > { %5007 = vmatmul.mubr.msk.bf16.vlgmr.msra.gmra.mrb[0].mxu1 %vm356_vm2, %v5769_v20 }
  0xe8   : > { %5019 = vmatpush3.bf16.msra.mxu1 %v5602_v22  ;;  %5010 = vmatprep.mubr.msk.bf16.mxu1 %vm356_vm2, %v5807_v43  ;;  %v6580_v22 = vcombine.low %v3705_v37, %v5622_v16  ;;  %v5620_v37 = vld [vmem:[%s5723_s23 + $0x2b8] sm:$0xff]  }
  0xe9   : > { %5020 = vmatprep.subr.bf16.mxu1 %v5603_v60  ;;  %5227 = vmatmul.mubr.msk.bf16.vlgmr.msra.gmra.mrb[0].mxu0 %vm356_vm2, %v3554_v11 }
  0xea   : > { %5230 = vmatprep.mubr.msk.bf16.mxu0 %vm356_vm2, %v3558_v6  ;;  %5239 = vmatpush3.bf16.msra.mxu0 %v5604_v47  ;;  %v3722_v36 = vrot.slane %v6580_v22, 2  ;;  %v3731_v6 = vrot.slane %v5617_v10, 2  ;;  %v3876_v7 = vshrl.u32 %v6580_v22, 16 }
  0xeb   : > { %5240 = vmatprep.subr.bf16.mxu0 %v5606_v8 }
  0xec   : > { %5021 = vmatpush3.bf16.msra.mxu1 %v5603_v60  ;;  %v3724_v47 = vsel %vm926_vm3, %v3722_v36, %v3723_v39  ;;  %v6846_v39 = vld [vmem:[#allocation10_spill] sm:$0xff]  ;;  %v3878_v9 = vrot.slane %v3876_v7, 2  ;;  %v1997_v36 = vrot.slane %v6839_v53, 1 }
  0xed   : > { %5022 = vmatprep.subr.bf16.mxu1 %v5605_v0  ;;  %v1825_v60 = vor.u32 %v6846_v39, %v1821_v18 }
  0xee   : > { %5241 = vmatpush3.bf16.msra.mxu0 %v5606_v8  ;;  %v1837_v8 = vshrl.u32 %v6576_v50, 16 }
  0xef   : > { %5011 = vmatmul.mubr.msk.bf16.gmra.mrb[4].mxu1 %vm356_vm2, %v6838_v23  ;;  %5242 = vmatprep.subr.bf16.mxu0 %v5608_v27  ;;  %v1829_v11 = vsel %vm284_vm0, %v1825_v60, %v1828_v41 }
  0xf0   : > { %5023 = vmatpush3.bf16.msra.mxu1 %v5605_v0  ;;  %5014 = vmatprep.mubr.msk.bf16.mxu1 %vm356_vm2, %v6839_v53  ;;  %v5616_v0 = vld [vmem:[%s5723_s23 + $0x2a8] sm:$0xff]  }
  0xf1   : > { %5024 = vmatprep.subr.bf16.mxu1 %v5609_v29  ;;  %5231 = vmatmul.mubr.msk.bf16.gmra.mrb[4].mxu0 %vm356_vm2, %v3562_v45 }
  0xf2   : > { %5234 = vmatprep.mubr.msk.bf16.mxu0 %vm356_vm2, %v3571_v59  ;;  %5243 = vmatpush3.bf16.msra.mxu0 %v5608_v27  ;;  %v1839_v27 = vor.u32 %v1837_v8, %v1835_v61  ;;  %v1995_v59 = vrot.slane %v6838_v23, 1  ;;  %v3900_v23 = vshrl.u32 %v5617_v10, 16 }
  0xf3   : > { %5244 = vmatprep.subr.bf16.mxu0 %v5610_v30 }
  0xf4   : > { %5025 = vmatpush3.bf16.msra.mxu1 %v5609_v29  ;;  %v6848_v29 = vld [vmem:[#allocation2_spill] sm:$0xff]  ;;  %v3902_v46 = vrot.slane %v3900_v23, 2  ;;  %v1998_v62 = vsel %vm588_vm4, %v1995_v59, %v1997_v36 }
  0xf5   : > { %5038 = vmatprep.subr.bf16.mxu1 %v5612_v54  ;;  %v1990_v17 = vrot.slane %v6848_v29, 1 }
  0xf6   : > { %5245 = vmatpush3.bf16.msra.mxu0 %v5610_v30 }
  0xf7   : > { %5015 = vmatmul.mubr.msk.bf16.gmra.mrb[40].mxu1 %vm356_vm2, %v6576_v50  ;;  %5258 = vmatprep.subr.bf16.mxu0 %v5614_v24 }
  0xf8   : > { %5026 = vmatprep.mubr.msk.bf16.mxu1 %vm356_vm2, %v1808_v56  ;;  %v3903_v56 = vshll.u32 %v5617_v10, 16 }
  0xf9   : > { %5235 = vmatmul.mubr.msk.bf16.gmra.mrb[40].mxu0 %vm356_vm2, %v3570_v26  ;;  %v3732_v26 = vsel %vm926_vm3, %v3729_v40, %v3731_v6  ;;  %v1993_v40 = vrot.slane %v5807_v43, 1 }
  0xfa   : > { %5246 = vmatprep.mubr.msk.bf16.mxu0 %vm356_vm2, %v3724_v47 }
  0xfb   : > { %v1996_v43 = vsel %vm588_vm4, %v1993_v40, %v1995_v59 }
  0xff   : > { %5027 = vmatmul.mubr.msk.bf16.vlgmr.msra.gmra.mrb[0].mxu1 %vm356_vm2, %v1815_v58 }
 0x100   : > { %5039 = vmatpush3.bf16.msra.mxu1 %v5612_v54  ;;  %5030 = vmatprep.mubr.msk.bf16.mxu1 %vm356_vm2, %v1822_v44 }
 0x101   : > { %5040 = vmatprep.subr.bf16.mxu1 %v5613_v19  ;;  %5247 = vmatmul.mubr.msk.bf16.vlgmr.msra.gmra.mrb[0].mxu0 %vm356_vm2, %v6358_v28  ;;  %v3879_v28 = vshll.u32 %v6580_v22, 16 }
 0x102   : > { %5250 = vmatprep.mubr.msk.bf16.mxu0 %vm356_vm2, %v6362_v25  ;;  %5259 = vmatpush3.bf16.msra.mxu0 %v5614_v24  ;;  %v1991_v25 = vrot.slane %v5769_v20, 1  ;;  %v3905_v24 = vrot.slane %v3903_v56, 3 }
 0x103   : > { %5260 = vmatprep.subr.bf16.mxu0 %v5616_v0  ;;  %v3881_v63 = vrot.slane %v3879_v28, 3 }
 0x104   : > { %5041 = vmatpush3.bf16.msra.mxu1 %v5613_v19  ;;  %v1992_v20 = vsel %vm588_vm4, %v1990_v17, %v1991_v25  ;;  %v1994_v22 = vsel %vm588_vm4, %v1991_v25, %v1993_v40  ;;  %v3906_v49 = vor.u32 %v3905_v24, %v3902_v46 }
 0x105   : > { %5042 = vmatprep.subr.bf16.mxu1 %v5615_v5  ;;  %v3882_v33 = vor.u32 %v3881_v63, %v3878_v9 }
 0x106   : > { %5261 = vmatpush3.bf16.msra.mxu0 %v5616_v0  ;;  %v3907_v18 = vsel %vm1080_vm5, %v6429_v42, %v3906_v49 }
 0x107   : > { %5031 = vmatmul.mubr.msk.bf16.gmra.mrb[4].mxu1 %vm356_vm2, %v1829_v11  ;;  %5262 = vmatprep.subr.bf16.mxu0 %v5618_v15  ;;  %v3886_v30 = vsel %vm1080_vm5, %v3882_v33, %v6398_v31  ;;  %v1999_v31 = vrot.slane %v5623_v51, 1 }
 0x108   : > { %5043 = vmatpush3.bf16.msra.mxu1 %v5615_v5  ;;  %5034 = vmatprep.mubr.msk.bf16.mxu1 %vm356_vm2, %v1836_v4 }
 0x109   : > { %5044 = vmatprep.subr.bf16.mxu1 %v5619_v12  ;;  %5251 = vmatmul.mubr.msk.bf16.gmra.mrb[4].mxu0 %vm356_vm2, %v6371_v38  ;;  %v2000_v55 = vsel %vm588_vm4, %v1997_v36, %v1999_v31 }
 0x10a   : > { %v4856_v21 = vpop.f32.mrb[8].mxu1  ;;  %5254 = vmatprep.mubr.msk.bf16.mxu0 %vm356_vm2, %v3732_v26  ;;  %5263 = vmatpush3.bf16.msra.mxu0 %v5618_v15 }
 0x10b   : > { %v441_v32 = vpop.f32.mrb[9].mxu1  ;;  %5264 = vmatprep.subr.bf16.mxu0 %v5620_v37 }
 0x10c   : > { %v4857_v57 = vpop.f32.mrb[10].mxu1  ;;  %5045 = vmatpush3.bf16.msra.mxu1 %v5619_v12  ;;  %v6637_v45 = vpop.f32.mrb[8].mxu0 }
 0x10d   : > { %v444_v54 = vpop.f32.mrb[11].mxu1  ;;  %v6640_v38 = vpop.f32.mrb[9].mxu0 }
 0x10e   : > { %5265 = vmatpush3.bf16.msra.mxu0 %v5620_v37  ;;  %v5077_v50 = vpop.f32.mrb[10].mxu0 }
 0x10f   : > { %5035 = vmatmul.mubr.msk.bf16.gmra.mrb[44].mxu1 %vm356_vm2, %v1839_v27  ;;  %v6644_v16 = vpop.f32.mrb[11].mxu0 }
 0x110   : > { %5046 = vmatprep.mubr.msk.bf16.mxu1 %vm356_vm2, %v1992_v20 }
 0x111   : > { %5255 = vmatmul.mubr.msk.bf16.gmra.mrb[44].mxu0 %vm356_vm2, %v3731_v6 }
 0x112   : > { %5266 = vmatprep.mubr.msk.bf16.mxu0 %vm356_vm2, %v3886_v30 }
 0x117   : > { %5047 = vmatmul.mubr.msk.bf16.vlgmr.msra.gmra.mrb[0].mxu1 %vm356_vm2, %v1994_v22 }
 0x118   : > { %5050 = vmatprep.mubr.msk.bf16.mxu1 %vm356_vm2, %v1996_v43 }
 0x119   : > { %5267 = vmatmul.mubr.msk.bf16.vlgmr.msra.gmra.mrb[0].mxu0 %vm356_vm2, %v6419_v48 }
 0x11a   : > { %5270 = vmatprep.mubr.msk.bf16.mxu0 %vm356_vm2, %v6427_v2 }
 0x11f   : > { %5051 = vmatmul.mubr.msk.bf16.gmra.mrb[4].mxu1 %vm356_vm2, %v1998_v62 }
 0x120   : > { %5054 = vmatprep.mubr.msk.bf16.mxu1 %vm356_vm2, %v2000_v55 }
 0x121   : > { %5271 = vmatmul.mubr.msk.bf16.gmra.mrb[4].mxu0 %vm356_vm2, %v6434_v34 }
 0x122   : > { %v4876_v53 = vpop.f32.mrb[12].mxu1  ;;  %5274 = vmatprep.mubr.msk.bf16.mxu0 %vm356_vm2, %v3907_v18 }
 0x123   : > { %v566_v3 = vadd.f32 %v4876_v53, %v4856_v21  ;;  %v557_v14 = vpop.f32.mrb[13].mxu1 }
 0x124   : > { %v558_v47 = vadd.f32 %v557_v14, %v441_v32  ;;  %v4877_v58 = vpop.f32.mrb[14].mxu1  ;;  %v6668_v2 = vpop.f32.mrb[12].mxu0 }
 0x125   : > { %v560_v48 = vpop.f32.mrb[15].mxu1  ;;  %v6670_v44 = vpop.f32.mrb[13].mxu0 }
 0x126   : > { %v561_v19 = vadd.f32 %v560_v48, %v444_v54  ;;  %v5097_v13 = vpop.f32.mrb[14].mxu0 }
 0x127   : > { %5055 = vmatmul.mubr.msk.bf16.gmra.mrb[48].mxu1 %vm356_vm2, %v1999_v31  ;;  %v6672_v1 = vpop.f32.mrb[15].mxu0 }
 0x129   : > { %5275 = vmatmul.mubr.msk.bf16.gmra.mrb[48].mxu0 %vm356_vm2, %v3906_v49 }
 0x13a   : > { %v4896_v42 = vpop.f32.mrb[16].mxu1 }
 0x13b   : > { %v732_v41 = vadd.f32 %v4896_v42, %v566_v3  ;;  %v708_v39 = vpop.f32.mrb[17].mxu1 }
 0x13c   : > { %v730_v60 = vadd.f32 %v708_v39, %v558_v47  ;;  %v4897_v34 = vpop.f32.mrb[18].mxu1  ;;  %v6675_v35 = vpop.f32.mrb[16].mxu0 }
 0x13d   : > { %v711_v5 = vpop.f32.mrb[19].mxu1  ;;  %v6677_v61 = vpop.f32.mrb[17].mxu0 }
 0x13e   : > { %v731_v52 = vadd.f32 %v711_v5, %v561_v19  ;;  %v5117_v0 = vpop.f32.mrb[18].mxu0 }
 0x13f   : > { %v6679_v10 = vpop.f32.mrb[19].mxu0 }
 0x152   : > { %v4916_v11 = vpop.f32.mrb[20].mxu1 }
 0x153   : > { %v908_v4 = vadd.f32 %v4916_v11, %v732_v41  ;;  %v884_v12 = vpop.f32.mrb[21].mxu1 }
 0x154   : > { %v906_v6 = vadd.f32 %v884_v12, %v730_v60  ;;  %v4917_v8 = vpop.f32.mrb[22].mxu1  ;;  %v6681_v28 = vpop.f32.mrb[20].mxu0 }
 0x155   : > { %v887_v15 = vpop.f32.mrb[23].mxu1  ;;  %v6683_v29 = vpop.f32.mrb[21].mxu0 }
 0x156   : > { %v907_v7 = vadd.f32 %v887_v15, %v731_v52  ;;  %v5137_v17 = vpop.f32.mrb[22].mxu0 }
 0x157   : > { %v6685_v25 = vpop.f32.mrb[23].mxu0 }
 0x16a   : > { %v4936_v21 = vpop.f32.mrb[24].mxu1 }
 0x16b   : > { %v1070_v32 = vadd.f32 %v4936_v21, %v908_v4  ;;  %v1046_v26 = vpop.f32.mrb[25].mxu1 }
 0x16c   : > { %v1068_v27 = vadd.f32 %v1046_v26, %v906_v6  ;;  %v4937_v37 = vpop.f32.mrb[26].mxu1  ;;  %v6687_v57 = vpop.f32.mrb[24].mxu0 }
 0x16d   : > { %v1049_v9 = vpop.f32.mrb[27].mxu1  ;;  %v6689_v54 = vpop.f32.mrb[25].mxu0 }
 0x16e   : > { %v1069_v63 = vadd.f32 %v1049_v9, %v907_v7  ;;  %v5157_v20 = vpop.f32.mrb[26].mxu0 }
 0x16f   : > { %v6691_v33 = vpop.f32.mrb[27].mxu0 }
 0x182   : > { %v4956_v40 = vpop.f32.mrb[28].mxu1 }
 0x183   : > { %v1246_v59 = vadd.f32 %v4956_v40, %v1070_v32  ;;  %v1222_v50 = vpop.f32.mrb[29].mxu1 }
 0x184   : > { %v1244_v30 = vadd.f32 %v1222_v50, %v1068_v27  ;;  %v4957_v22 = vpop.f32.mrb[30].mxu1  ;;  %v6693_v56 = vpop.f32.mrb[28].mxu0 }
 0x185   : > { %v1225_v43 = vpop.f32.mrb[31].mxu1  ;;  %v6695_v36 = vpop.f32.mrb[29].mxu0 }
 0x186   : > { %v1245_v23 = vadd.f32 %v1225_v43, %v1069_v63  ;;  %v5177_v51 = vpop.f32.mrb[30].mxu0 }
 0x187   : > { %v6697_v31 = vpop.f32.mrb[31].mxu0 }
 0x19a   : > { %v4976_v46 = vpop.f32.mrb[32].mxu1 }
 0x19b   : > { %v1442_v24 = vadd.f32 %v4976_v46, %v1246_v59  ;;  %v1418_v62 = vpop.f32.mrb[33].mxu1 }
 0x19c   : > { %v1440_v55 = vadd.f32 %v1418_v62, %v1244_v30  ;;  %v4977_v49 = vpop.f32.mrb[34].mxu1  ;;  %v6699_v14 = vpop.f32.mrb[32].mxu0 }
 0x19d   : > { %v1421_v53 = vpop.f32.mrb[35].mxu1  ;;  %v6701_v18 = vpop.f32.mrb[33].mxu0 }
 0x19e   : > { %v1441_v3 = vadd.f32 %v1421_v53, %v1245_v23  ;;  %v5197_v47 = vpop.f32.mrb[34].mxu0 }
 0x19f   : > { %v6703_v58 = vpop.f32.mrb[35].mxu0 }
 0x1b2   : > { %v4996_v48 = vpop.f32.mrb[36].mxu1 }
 0x1b3   : > { %v1638_v19 = vadd.f32 %v4996_v48, %v1442_v24  ;;  %v1614_v13 = vpop.f32.mrb[37].mxu1 }
 0x1b4   : > { %v1636_v42 = vadd.f32 %v1614_v13, %v1440_v55  ;;  %v4997_v41 = vpop.f32.mrb[38].mxu1  ;;  %v6705_v34 = vpop.f32.mrb[36].mxu0  ;;  %v6728_v55 = vld [vmem:[%s6804_s2] ss:$0 sm:$0xff] }
 0x1b5   : > { %v1617_v39 = vpop.f32.mrb[39].mxu1  ;;  %v6707_v5 = vpop.f32.mrb[37].mxu0 }
 0x1b6   : > { %v1637_v60 = vadd.f32 %v1617_v39, %v1441_v3  ;;  %v5217_v52 = vpop.f32.mrb[38].mxu0 }
 0x1b7   : > { %v6709_v0 = vpop.f32.mrb[39].mxu0 }
 0x1ca   : > { %v5016_v11 = vpop.f32.mrb[40].mxu1 }
 0x1cb   : > { %v1789_v4 = vadd.f32 %v5016_v11, %v1638_v19  ;;  %v1765_v12 = vpop.f32.mrb[41].mxu1 }
 0x1cc   : > { %v1787_v6 = vadd.f32 %v1765_v12, %v1636_v42  ;;  %v5017_v8 = vpop.f32.mrb[42].mxu1  ;;  %v6711_v17 = vpop.f32.mrb[40].mxu0 }
 0x1cd   : > { %v1768_v15 = vpop.f32.mrb[43].mxu1  ;;  %v6713_v21 = vpop.f32.mrb[41].mxu0 }
 0x1ce   : > { %v1788_v7 = vadd.f32 %v1768_v15, %v1637_v60  ;;  %v5237_v32 = vpop.f32.mrb[42].mxu0 }
 0x1cf   : > { %v6715_v26 = vpop.f32.mrb[43].mxu0 }
 0x1e2   : > { %v5036_v27 = vpop.f32.mrb[44].mxu1 }
 0x1e3   : > { %v1972_v37 = vadd.f32 %v5036_v27, %v1789_v4  ;;  %v1948_v9 = vpop.f32.mrb[45].mxu1 }
 0x1e4   : > { %v1970_v63 = vadd.f32 %v1948_v9, %v1787_v6  ;;  %v5037_v20 = vpop.f32.mrb[46].mxu1  ;;  %v6718_v50 = vpop.f32.mrb[44].mxu0 }
 0x1e5   : > { %v1951_v40 = vpop.f32.mrb[47].mxu1  ;;  %v6721_v30 = vpop.f32.mrb[45].mxu0 }
 0x1e6   : > { %v1971_v59 = vadd.f32 %v1951_v40, %v1788_v7  ;;  %v5257_v22 = vpop.f32.mrb[46].mxu0 }
 0x1e7   : > { %v6723_v23 = vpop.f32.mrb[47].mxu0 }
 0x1ea   : > { %v5048_v43 = vpop.f32.mrb[0].mxu1 }
 0x1eb   : > { %v2077_v51 = vpop.f32.mrb[1].mxu1 }
 0x1ec   : > { %v5049_v46 = vpop.f32.mrb[2].mxu1  ;;  %v5268_v62 = vpop.f32.mrb[0].mxu0 }
 0x1ed   : > { %v2080_v24 = vpop.f32.mrb[3].mxu1  ;;  %v5278_v49 = vadd.f32 %v5268_v62, %v5048_v43  ;;  %v3984_v53 = vpop.f32.mrb[1].mxu0 }
 0x1ee   : > { %v5279_v3 = vadd.f32 %v3984_v53, %v2077_v51  ;;  %v5269_v47 = vpop.f32.mrb[2].mxu0 }
 0x1ef   : > { %v4050_v19 = vadd.f32 %v5278_v49, %v6728_v55  ;;  %v5280_v13 = vadd.f32 %v5269_v47, %v5049_v46  ;;  %v3987_v42 = vpop.f32.mrb[3].mxu0 }
 0x1f0   : > { %v4048_v39 = vadd.f32 %v5279_v3, %v6728_v55  ;;  %v5281_v60 = vadd.f32 %v3987_v42, %v2080_v24 }
 0x1f1   : > { %4061 = vst [vmem:[%s6733_s11 + $0x10] sm:$0xff] %v4050_v19  ;;  %v4051_v11 = vadd.f32 %v5280_v13, %v6728_v55 }
 0x1f2   : > { %v5052_v48 = vpop.f32.mrb[4].mxu1  ;;  %4059 = vst [vmem:[%s6733_s11] sm:$0xff] %v4048_v39  ;;  %v4049_v12 = vadd.f32 %v5281_v60, %v6728_v55 }
 0x1f3   : > { %v2093_v41 = vpop.f32.mrb[5].mxu1  ;;  %4062 = vst [vmem:[%s6733_s11 + $0x18] sm:$0xff] %v4051_v11 }
 0x1f4   : > { %v5053_v52 = vpop.f32.mrb[6].mxu1  ;;  %4060 = vst [vmem:[%s6733_s11 + $0x8] sm:$0xff] %v4049_v12  ;;  %v5272_v6 = vpop.f32.mrb[4].mxu0 }
 0x1f5   : > { %v2096_v4 = vpop.f32.mrb[7].mxu1  ;;  %v5282_v8 = vadd.f32 %v5272_v6, %v5052_v48  ;;  %v4000_v15 = vpop.f32.mrb[5].mxu0 }
 0x1f6   : > { %v5283_v7 = vadd.f32 %v4000_v15, %v2093_v41  ;;  %v5273_v32 = vpop.f32.mrb[6].mxu0 }
 0x1f7   : > { %v4054_v9 = vadd.f32 %v5282_v8, %v6728_v55  ;;  %v5284_v20 = vadd.f32 %v5273_v32, %v5053_v52  ;;  %v4003_v40 = vpop.f32.mrb[7].mxu0 }
 0x1f8   : > { %v4052_v51 = vadd.f32 %v5283_v7, %v6728_v55  ;;  %v5285_v46 = vadd.f32 %v4003_v40, %v2096_v4 }
 0x1f9   : > { %4065 = vst [vmem:[%s6733_s11 + $0x30] sm:$0xff] %v4054_v9  ;;  %v4055_v49 = vadd.f32 %v5284_v20, %v6728_v55 }
 0x1fa   : > { %v5056_v27 = vpop.f32.mrb[48].mxu1  ;;  %4063 = vst [vmem:[%s6733_s11 + $0x20] sm:$0xff] %v4052_v51  ;;  %v4053_v47 = vadd.f32 %v5285_v46, %v6728_v55 }
 0x1fb   : > { %v2133_v22 = vadd.f32 %v5056_v27, %v1972_v37  ;;  %v2109_v43 = vpop.f32.mrb[49].mxu1  ;;  %4066 = vst [vmem:[%s6733_s11 + $0x38] sm:$0xff] %v4055_v49 }
 0x1fc   : > { %v2131_v24 = vadd.f32 %v2109_v43, %v1970_v63  ;;  %v5057_v62 = vpop.f32.mrb[50].mxu1  ;;  %4064 = vst [vmem:[%s6733_s11 + $0x28] sm:$0xff] %v4053_v47  ;;  %v5276_v42 = vpop.f32.mrb[48].mxu0 }
 0x1fd   : > { %v2308_v53 = vadd.f32 %v6637_v45, %v2133_v22  ;;  %v2112_v3 = vpop.f32.mrb[51].mxu1  ;;  %v4016_v39 = vpop.f32.mrb[49].mxu0 }
 0x1fe   : > { %v2306_v48 = vadd.f32 %v6640_v38, %v2131_v24  ;;  %v2132_v19 = vadd.f32 %v2112_v3, %v1971_v59  ;;  %v5277_v52 = vpop.f32.mrb[50].mxu0 }
 0x1ff   : > { %v2469_v37 = vadd.f32 %v6668_v2, %v2308_v53  ;;  %v4019_v59 = vpop.f32.mrb[51].mxu0 }
 0x200   : > { %v2467_v13 = vadd.f32 %v6670_v44, %v2306_v48  ;;  %v2307_v63 = vadd.f32 %v6644_v16, %v2132_v19 }
 0x201   : > { %v2644_v41 = vadd.f32 %v6675_v35, %v2469_v37 }
 0x202   : > { %v2642_v45 = vadd.f32 %v6677_v61, %v2467_v13  ;;  %v2468_v60 = vadd.f32 %v6672_v1, %v2307_v63 }
 0x203   : > { %v2839_v38 = vadd.f32 %v6681_v28, %v2644_v41 }
 0x204   : > { %v2837_v11 = vadd.f32 %v6683_v29, %v2642_v45  ;;  %v2643_v2 = vadd.f32 %v6679_v10, %v2468_v60 }
 0x205   : > { %v3034_v44 = vadd.f32 %v6687_v57, %v2839_v38 }
 0x206   : > { %v3032_v16 = vadd.f32 %v6689_v54, %v2837_v11  ;;  %v2838_v4 = vadd.f32 %v6685_v25, %v2643_v2 }
 0x207   : > { %v3185_v35 = vadd.f32 %v6693_v56, %v3034_v44 }
 0x208   : > { %v3033_v61 = vadd.f32 %v6691_v33, %v2838_v4  ;;  %v3183_v1 = vadd.f32 %v6695_v36, %v3032_v16 }
 0x209   : > { %v3368_v12 = vadd.f32 %v6699_v14, %v3185_v35 }
 0x20a   : > { %v3366_v28 = vadd.f32 %v6701_v18, %v3183_v1  ;;  %v3184_v29 = vadd.f32 %v6697_v31, %v3033_v61 }
 0x20b   : > { %v3529_v10 = vadd.f32 %v6705_v34, %v3368_v12 }
 0x20c   : > { %v3527_v57 = vadd.f32 %v6707_v5, %v3366_v28  ;;  %v3367_v25 = vadd.f32 %v6703_v58, %v3184_v29 }
 0x20d   : > { %v3704_v54 = vadd.f32 %v6711_v17, %v3529_v10 }
 0x20e   : > { %v3702_v33 = vadd.f32 %v6713_v21, %v3527_v57  ;;  %v3528_v56 = vadd.f32 %v6709_v0, %v3367_v25 }
 0x20f   : > { %v3865_v36 = vadd.f32 %v6718_v50, %v3704_v54 }
 0x210   : > { %v3863_v14 = vadd.f32 %v6721_v30, %v3702_v33  ;;  %v3703_v31 = vadd.f32 %v6715_v26, %v3528_v56 }
 0x211   : > { %v4040_v18 = vadd.f32 %v5276_v42, %v3865_v36 }
 0x212   : > { %v4038_v34 = vadd.f32 %v4016_v39, %v3863_v14  ;;  %v3864_v6 = vadd.f32 %v6723_v23, %v3703_v31 }
 0x213   : > { %v4058_v5 = vadd.f32 %v6728_v55, %v4040_v18 }
 0x214   : > { %v4056_v58 = vadd.f32 %v6728_v55, %v4038_v34  ;;  %v4039_v8 = vadd.f32 %v4019_v59, %v3864_v6 }
 0x215   : > { %4069 = vst [vmem:[%s6733_s11 + $0x50] sm:$0x7] %v4058_v5 }
 0x216   : > { %4067 = vst [vmem:[%s6733_s11 + $0x40] sm:$0xff] %v4056_v58  ;;  %v4057_v17 = vadd.f32 %v6728_v55, %v4039_v8 }
 0x218   : > { %4068 = vst [vmem:[%s6733_s11 + $0x48] sm:$0xff] %v4057_v17 }
 0x219 PF: > { %s13_s16 = sadd.s32 1, %s5662_s16   ;;  %s6849_s12 = smov %s5654_s14 }
 0x21a   : > { %p10_p7 = scmp.ge.s32.totalorder %s13_s16, 8   ;;  %s6850_s13 = smov %s5658_s15 }
 0x21b   : > { %s6851_s14 = smov %s6854_s17  ;;  %s6852_s15 = smov %s6858_s18 }
 0x21c   :  { %12 = sbr.rel (!%p10_p7) target bundleno = 3 (0x3), region = 86 }

</bundles_post_ra>
